<compile_context>
chip_gen: v5e
topology: v5e:2x2
jax: 0.10.0
libtpu: 0.0.40
codegen_flags: <defaults>
</compile_context>

<pallas_src>
import functools
import math

import jax
import jax.numpy as jnp
import numpy as np
from jax.experimental import pallas as pl
from jax.experimental.pallas import tpu as pltpu


# ----------------------------- helpers -----------------------------------------

def _rotate_within_head(xh, head_dim, use_roll):
    """concat(x2, x1) for one head slice (the minus sign lives in the sin table)."""
    if use_roll:
        # shift == head_dim//2 is its own inverse inside one head, so the result
        # does not depend on the roll direction convention.
        return pltpu.roll(xh, head_dim // 2, axis=1)
    return jnp.concatenate([xh[:, head_dim // 2:], xh[:, :head_dim // 2]], axis=1)


# ------------------------- kernel 1: RMSNorm + QKV + RoPE -----------------------

def _qkv_rope_kernel(x_ref, cos_ref, sin_ref,
                     wq_ref, bq_ref, wk_ref, bk_ref, wv_ref, bv_ref, ln1_ref,
                     q_ref, k_ref, v_ref,
                     *, num_heads, num_kv_heads, head_dim, eps, use_roll):
    x = x_ref[0].astype(jnp.float32)                        # (T, H)
    var = jnp.mean(x * x, axis=-1, keepdims=True)
    h = x * jax.lax.rsqrt(var + eps) * ln1_ref[...]         # input RMSNorm (f32)
    hb = h.astype(jnp.bfloat16)                             # bf16 operands for MXU

    q = jnp.dot(hb, wq_ref[...], preferred_element_type=jnp.float32) + bq_ref[...]
    k = jnp.dot(hb, wk_ref[...], preferred_element_type=jnp.float32) + bk_ref[...]
    v = jnp.dot(hb, wv_ref[...], preferred_element_type=jnp.float32) + bv_ref[...]
    v_ref[0] = v.astype(v_ref.dtype)

    cos = cos_ref[0]                                        # (T, hd) f32
    sin = sin_ref[0]                                        # (T, hd) f32, sign-folded
    hd = head_dim
    for hh in range(num_heads):                             # static, unrolled
        qh = q[:, hh * hd:(hh + 1) * hd]
        qh = qh * cos + _rotate_within_head(qh, hd, use_roll) * sin
        q_ref[0, :, hh * hd:(hh + 1) * hd] = qh.astype(q_ref.dtype)
    for hh in range(num_kv_heads):
        kh = k[:, hh * hd:(hh + 1) * hd]
        kh = kh * cos + _rotate_within_head(kh, hd, use_roll) * sin
        k_ref[0, :, hh * hd:(hh + 1) * hd] = kh.astype(k_ref.dtype)


# ------------------ kernel 2: attention + o_proj + RMSNorm + MLP ----------------

def _attn_mlp_kernel(x_ref, q_ref, k_ref, v_ref,
                     wo_ref, ln2_ref, wg_ref, wu_ref, wd_ref,
                     out_ref, ctx_ref,
                     *, num_heads, num_kv_heads, head_dim, eps):
    tq = q_ref.shape[1]
    s_len = k_ref.shape[1]
    hd = head_dim
    n_rep = num_heads // num_kv_heads
    scale = 1.0 / math.sqrt(hd)

    # causal additive mask generated in-kernel (query rows offset by the seq tile)
    row = (jax.lax.broadcasted_iota(jnp.int32, (tq, s_len), 0)
           + pl.program_id(1) * tq)
    col = jax.lax.broadcasted_iota(jnp.int32, (tq, s_len), 1)
    neg = jnp.where(col <= row, 0.0, -1e9).astype(jnp.float32)

    dims = (((1,), (1,)), ((), ()))                         # contract head_dim
    for hh in range(num_heads):                             # static, unrolled
        g = hh // n_rep                                     # GQA group (repeat_kv)
        q_h = q_ref[0, :, hh * hd:(hh + 1) * hd]            # (tq, hd)  bf16
        k_h = k_ref[0, :, g * hd:(g + 1) * hd]              # (s,  hd)  bf16
        v_h = v_ref[0, :, g * hd:(g + 1) * hd]              # (s,  hd)  bf16
        s = jax.lax.dot_general(q_h, k_h, dims,
                                preferred_element_type=jnp.float32) * scale + neg
        m = jnp.max(s, axis=-1, keepdims=True)              # f32 softmax
        p = jnp.exp(s - m)
        l = jnp.sum(p, axis=-1, keepdims=True)
        ctx = jnp.dot(p.astype(jnp.bfloat16), v_h,
                      preferred_element_type=jnp.float32)
        ctx = ctx * pl.reciprocal(l, approx=True)
        ctx_ref[:, hh * hd:(hh + 1) * hd] = ctx.astype(ctx_ref.dtype)

    # single o_proj matmul over the whole head slab
    attn = jnp.dot(ctx_ref[...], wo_ref[...], preferred_element_type=jnp.float32)
    h1 = x_ref[0].astype(jnp.float32) + attn                # residual 1

    var2 = jnp.mean(h1 * h1, axis=-1, keepdims=True)        # post-attn RMSNorm
    h2 = h1 * jax.lax.rsqrt(var2 + eps) * ln2_ref[...]
    h2b = h2.astype(jnp.bfloat16)
    gate = jnp.dot(h2b, wg_ref[...], preferred_element_type=jnp.float32)
    up = jnp.dot(h2b, wu_ref[...], preferred_element_type=jnp.float32)
    act = (gate * jax.lax.logistic(gate) * up).astype(jnp.bfloat16)   # SiLU * up
    mlp = jnp.dot(act, wd_ref[...], preferred_element_type=jnp.float32)
    out_ref[0] = (h1 + mlp).astype(out_ref.dtype)           # residual 2


# ------------------------------- wrapper ----------------------------------------

def rope_cos_sin(position_ids, head_dim, base=10000.0):
    """cos_cached[position_ids], sin_cached[position_ids] of BuDingRotaryEmbedding."""
    inv_freq = 1.0 / (base ** (jnp.arange(0, head_dim, 2, dtype=jnp.float32) / head_dim))
    t = position_ids.astype(jnp.float32)                    # (B, S)
    freqs = t[..., None] * inv_freq[None, None, :]          # (B, S, hd/2)
    emb = jnp.concatenate([freqs, freqs], axis=-1)          # (B, S, hd)
    return jnp.cos(emb), jnp.sin(emb)


def buding_decoder_layer(x, position_ids, params, *, num_heads, num_kv_heads,
                         eps=1e-6, rope_theta=10000.0, seq_tile=128, fast=True):
    B, S, H = x.shape
    hd = H // num_heads
    Hk = num_kv_heads * hd
    I = params["w_gate"].shape[1]
    T = min(seq_tile, S)
    assert S % T == 0, "seq_len must be a multiple of the sequence tile"

    bf16 = jnp.bfloat16
    wq, wk, wv = (params["w_q"].astype(bf16), params["w_k"].astype(bf16),
                  params["w_v"].astype(bf16))
    wo = params["w_o"].astype(bf16)
    wg, wu, wd = (params["w_gate"].astype(bf16), params["w_up"].astype(bf16),
                  params["w_down"].astype(bf16))
    bq, bk, bv = params["b_q"], params["b_k"], params["b_v"]
    ln1, ln2 = params["ln1"], params["ln2"]

    # RoPE tables; rotate_half's minus sign is folded into the sin table so the
    # kernel only needs a within-head roll.
    cos, sin = rope_cos_sin(position_ids, hd, rope_theta)
    sign = jnp.concatenate([-jnp.ones((hd // 2,), jnp.float32),
                            jnp.ones((hd // 2,), jnp.float32)])
    sin_signed = sin * sign

    def const_spec(shape):
        n = len(shape)

        def idx(b, s):
            return (0,) * n

        if fast:
            # weights never change across the grid -> single-buffer them
            return pl.BlockSpec(shape, idx, pipeline_mode=pl.Buffered(1))
        return pl.BlockSpec(shape, idx)

    def seq_spec(last):
        return pl.BlockSpec((1, T, last), lambda b, s: (b, s, 0))

    parallel2 = pltpu.CompilerParams(
        dimension_semantics=("parallel", "parallel"))

    qkv_kernel = functools.partial(
        _qkv_rope_kernel, num_heads=num_heads, num_kv_heads=num_kv_heads,
        head_dim=hd, eps=eps, use_roll=fast)
    q_rot, k_rot, v_pr = pl.pallas_call(
        qkv_kernel,
        grid=(B, S // T),
        in_specs=[seq_spec(H), seq_spec(hd), seq_spec(hd),
                  const_spec((H, H)), const_spec((1, H)),
                  const_spec((H, Hk)), const_spec((1, Hk)),
                  const_spec((H, Hk)), const_spec((1, Hk)),
                  const_spec((1, H))],
        out_specs=(seq_spec(H), seq_spec(Hk), seq_spec(Hk)),
        out_shape=(jax.ShapeDtypeStruct((B, S, H), bf16),
                   jax.ShapeDtypeStruct((B, S, Hk), bf16),
                   jax.ShapeDtypeStruct((B, S, Hk), bf16)),
        compiler_params=parallel2,
    )(x, cos, sin_signed, wq, bq, wk, bk, wv, bv, ln1)

    attn_kernel = functools.partial(
        _attn_mlp_kernel, num_heads=num_heads, num_kv_heads=num_kv_heads,
        head_dim=hd, eps=eps)
    out = pl.pallas_call(
        attn_kernel,
        grid=(B, S // T),
        in_specs=[seq_spec(H), seq_spec(H),
                  pl.BlockSpec((1, S, Hk), lambda b, s: (b, 0, 0)),
                  pl.BlockSpec((1, S, Hk), lambda b, s: (b, 0, 0)),
                  const_spec((H, H)), const_spec((1, H)),
                  const_spec((H, I)), const_spec((H, I)), const_spec((I, H))],
        out_specs=seq_spec(H),
        out_shape=jax.ShapeDtypeStruct((B, S, H), x.dtype),
        scratch_shapes=[pltpu.VMEM((T, H), bf16)],
        compiler_params=parallel2,
    )(x, q_rot, k_rot, v_pr, wo, ln2, wg, wu, wd)
    return out


# ------------------------------ reference ---------------------------------------

def reference_decoder_layer(x, position_ids, params, *, num_heads, num_kv_heads,
                            eps=1e-6, rope_theta=10000.0):
    B, S, H = x.shape
    hd = H // num_heads
    n_rep = num_heads // num_kv_heads

    def rms(y, w):
        v = jnp.mean(y ** 2, axis=-1, keepdims=True)
        return y * jax.lax.rsqrt(v + eps) * w[0]

    h = rms(x, params["ln1"])
    q = h @ params["w_q"] + params["b_q"][0]
    k = h @ params["w_k"] + params["b_k"][0]
    v = h @ params["w_v"] + params["b_v"][0]
    q = q.reshape(B, S, num_heads, hd).transpose(0, 2, 1, 3)
    k = k.reshape(B, S, num_kv_heads, hd).transpose(0, 2, 1, 3)
    v = v.reshape(B, S, num_kv_heads, hd).transpose(0, 2, 1, 3)

    cos, sin = rope_cos_sin(position_ids, hd, rope_theta)
    cos = cos[:, None]
    sin = sin[:, None]

    def rot(t):
        return jnp.concatenate([-t[..., hd // 2:], t[..., :hd // 2]], axis=-1)

    q = q * cos + rot(q) * sin
    k = k * cos + rot(k) * sin
    k = jnp.repeat(k, n_rep, axis=1)
    v = jnp.repeat(v, n_rep, axis=1)

    mask = jnp.where(jnp.tril(jnp.ones((S, S), dtype=bool)), 0.0, -1e9)
    s = jnp.einsum("bhqd,bhkd->bhqk", q, k) / math.sqrt(hd) + mask
    p = jax.nn.softmax(s.astype(jnp.float32), axis=-1)
    o = jnp.einsum("bhqk,bhkd->bhqd", p, v)
    o = o.transpose(0, 2, 1, 3).reshape(B, S, H) @ params["w_o"]

    h1 = x + o
    h2 = rms(h1, params["ln2"])
    gate = h2 @ params["w_gate"]
    up = h2 @ params["w_up"]
    return h1 + (gate * jax.nn.sigmoid(gate) * up) @ params["w_down"]


# --------------------------------- main ------------------------------------------

if __name__ == "__main__":
    # Small but layout-realistic shapes (multiples of 128 on seq/hidden).
    B, S, H = 2, 256, 256
    num_heads, num_kv_heads = 4, 2
    head_dim = H // num_heads
    Hk = num_kv_heads * head_dim
    intermediate = 512
    eps = 1e-6
    rope_theta = 10000.0

    key = jax.random.PRNGKey(0)
    ks = jax.random.split(key, 16)
    sc = 0.05
    params = {
        "w_q": sc * jax.random.normal(ks[0], (H, H), jnp.float32),
        "b_q": sc * jax.random.normal(ks[1], (1, H), jnp.float32),
        "w_k": sc * jax.random.normal(ks[2], (H, Hk), jnp.float32),
        "b_k": sc * jax.random.normal(ks[3], (1, Hk), jnp.float32),
        "w_v": sc * jax.random.normal(ks[4], (H, Hk), jnp.float32),
        "b_v": sc * jax.random.normal(ks[5], (1, Hk), jnp.float32),
        "w_o": sc * jax.random.normal(ks[6], (H, H), jnp.float32),
        "w_gate": sc * jax.random.normal(ks[7], (H, intermediate), jnp.float32),
        "w_up": sc * jax.random.normal(ks[8], (H, intermediate), jnp.float32),
        "w_down": sc * jax.random.normal(ks[9], (intermediate, H), jnp.float32),
        "ln1": 1.0 + 0.01 * jax.random.normal(ks[10], (1, H), jnp.float32),
        "ln2": 1.0 + 0.01 * jax.random.normal(ks[11], (1, H), jnp.float32),
    }
    x = jax.random.normal(ks[12], (B, S, H), jnp.float32)
    position_ids = jnp.broadcast_to(jnp.arange(S, dtype=jnp.int32)[None, :], (B, S))

    ref = reference_decoder_layer(
        x, position_ids, params, num_heads=num_heads,
        num_kv_heads=num_kv_heads, eps=eps, rope_theta=rope_theta)
    ref = np.asarray(jax.block_until_ready(ref))

    def run_and_check(fast):
        out = buding_decoder_layer(
            x, position_ids, params, num_heads=num_heads,
            num_kv_heads=num_kv_heads, eps=eps, rope_theta=rope_theta,
            seq_tile=128, fast=fast)
        out = np.asarray(jax.block_until_ready(out))
        # bf16 MXU operands vs the f32 reference -> loose-but-meaningful tolerance
        np.testing.assert_allclose(out, ref, rtol=5e-2, atol=5e-2)
        return out

    try:
        run_and_check(fast=True)
    except Exception:
        # Fallback if pl.Buffered(1) / pltpu.roll are unavailable in the local
        # jax version: default double-buffered specs + concatenate-based rotate.
        run_and_check(fast=False)

    print("KERNEL_OK")
</pallas_src>

<mosaic_0001>
module attributes {stable_mosaic.version = 11 : i64} {
  func.func @_qkv_rope_kernel(%arg0: i32, %arg1: i32, %arg2: memref<1x128x256xf32, #tpu.memory_space<vmem>>, %arg3: memref<1x128x64xf32, #tpu.memory_space<vmem>>, %arg4: memref<1x128x64xf32, #tpu.memory_space<vmem>>, %arg5: memref<256x256xbf16, #tpu.memory_space<vmem>>, %arg6: memref<1x256xf32, #tpu.memory_space<vmem>>, %arg7: memref<256x128xbf16, #tpu.memory_space<vmem>>, %arg8: memref<1x128xf32, #tpu.memory_space<vmem>>, %arg9: memref<256x128xbf16, #tpu.memory_space<vmem>>, %arg10: memref<1x128xf32, #tpu.memory_space<vmem>>, %arg11: memref<1x256xf32, #tpu.memory_space<vmem>>, %arg12: memref<1x128x256xbf16, #tpu.memory_space<vmem>>, %arg13: memref<1x128x128xbf16, #tpu.memory_space<vmem>>, %arg14: memref<1x128x128xbf16, #tpu.memory_space<vmem>>) attributes {dimension_semantics = [#tpu.dimension_semantics<parallel>, #tpu.dimension_semantics<parallel>], iteration_bounds = array<i64: 2, 2>, scalar_prefetch = 0 : i64, scratch_operands = 0 : i64, tpu.core_type = #tpu.core_type<tc>, window_params = [{transform_indices = @transform_0, window_bounds = array<i64: 1, 128, 256>}, {transform_indices = @transform_1, window_bounds = array<i64: 1, 128, 64>}, {transform_indices = @transform_2, window_bounds = array<i64: 1, 128, 64>}, {pipeline_mode = #tpu.pipeline_mode<synchronous>, transform_indices = @transform_3, window_bounds = array<i64: 256, 256>}, {pipeline_mode = #tpu.pipeline_mode<synchronous>, transform_indices = @transform_4, window_bounds = array<i64: 1, 256>}, {pipeline_mode = #tpu.pipeline_mode<synchronous>, transform_indices = @transform_5, window_bounds = array<i64: 256, 128>}, {pipeline_mode = #tpu.pipeline_mode<synchronous>, transform_indices = @transform_6, window_bounds = array<i64: 1, 128>}, {pipeline_mode = #tpu.pipeline_mode<synchronous>, transform_indices = @transform_7, window_bounds = array<i64: 256, 128>}, {pipeline_mode = #tpu.pipeline_mode<synchronous>, transform_indices = @transform_8, window_bounds = array<i64: 1, 128>}, {pipeline_mode = #tpu.pipeline_mode<synchronous>, transform_indices = @transform_9, window_bounds = array<i64: 1, 256>}, {transform_indices = @transform_10, window_bounds = array<i64: 1, 128, 256>}, {transform_indices = @transform_11, window_bounds = array<i64: 1, 128, 128>}, {transform_indices = @transform_12, window_bounds = array<i64: 1, 128, 128>}]} {
    %c0 = arith.constant 0 : index
    %c0_0 = arith.constant 0 : index
    %c0_1 = arith.constant 0 : index
    %0 = vector.load %arg2[%c0, %c0_0, %c0_1] : memref<1x128x256xf32, #tpu.memory_space<vmem>>, vector<1x128x256xf32>
    %1 = vector.shape_cast %0 : vector<1x128x256xf32> to vector<128x256xf32>
    %2 = arith.mulf %1, %1 : vector<128x256xf32>
    %cst = arith.constant dense<0.000000e+00> : vector<128xf32>
    %3 = vector.multi_reduction <add>, %2, %cst [1] : vector<128x256xf32> to vector<128xf32>
    %4 = vector.shape_cast %3 : vector<128xf32> to vector<128x1xf32>
    %cst_2 = arith.constant 2.560000e+02 : f32
    %5 = vector.broadcast %cst_2 : f32 to vector<128x1xf32>
    %6 = arith.divf %4, %5 : vector<128x1xf32>
    %cst_3 = arith.constant 9.99999997E-7 : f32
    %7 = vector.broadcast %cst_3 : f32 to vector<128x1xf32>
    %8 = arith.addf %6, %7 : vector<128x1xf32>
    %9 = math.rsqrt %8 : vector<128x1xf32>
    %10 = vector.broadcast %9 : vector<128x1xf32> to vector<128x256xf32>
    %11 = arith.mulf %1, %10 : vector<128x256xf32>
    %c0_4 = arith.constant 0 : index
    %c0_5 = arith.constant 0 : index
    %12 = vector.load %arg11[%c0_4, %c0_5] : memref<1x256xf32, #tpu.memory_space<vmem>>, vector<1x256xf32>
    %13 = vector.broadcast %12 : vector<1x256xf32> to vector<128x256xf32>
    %14 = arith.mulf %11, %13 : vector<128x256xf32>
    %15 = arith.truncf %14 : vector<128x256xf32> to vector<128x256xbf16>
    %c0_6 = arith.constant 0 : index
    %c0_7 = arith.constant 0 : index
    %16 = vector.load %arg5[%c0_6, %c0_7] : memref<256x256xbf16, #tpu.memory_space<vmem>>, vector<256x256xbf16>
    %cst_8 = arith.constant dense<0.000000e+00> : vector<128x256xf32>
    %17 = tpu.matmul %15, %16, %cst_8 {dimension_numbers = #tpu.dot_dimension_numbers<[1], [0], [0], [1], [0, 0, 1, 1], [], []>} : vector<128x256xbf16>, vector<256x256xbf16>, vector<128x256xf32> -> vector<128x256xf32>
    %c0_9 = arith.constant 0 : index
    %c0_10 = arith.constant 0 : index
    %18 = vector.load %arg6[%c0_9, %c0_10] : memref<1x256xf32, #tpu.memory_space<vmem>>, vector<1x256xf32>
    %19 = vector.broadcast %18 : vector<1x256xf32> to vector<128x256xf32>
    %20 = arith.addf %17, %19 : vector<128x256xf32>
    %c0_11 = arith.constant 0 : index
    %c0_12 = arith.constant 0 : index
    %21 = vector.load %arg7[%c0_11, %c0_12] : memref<256x128xbf16, #tpu.memory_space<vmem>>, vector<256x128xbf16>
    %cst_13 = arith.constant dense<0.000000e+00> : vector<128x128xf32>
    %22 = tpu.matmul %15, %21, %cst_13 {dimension_numbers = #tpu.dot_dimension_numbers<[1], [0], [0], [1], [0, 0, 1, 1], [], []>} : vector<128x256xbf16>, vector<256x128xbf16>, vector<128x128xf32> -> vector<128x128xf32>
    %c0_14 = arith.constant 0 : index
    %c0_15 = arith.constant 0 : index
    %23 = vector.load %arg8[%c0_14, %c0_15] : memref<1x128xf32, #tpu.memory_space<vmem>>, vector<1x128xf32>
    %24 = vector.broadcast %23 : vector<1x128xf32> to vector<128x128xf32>
    %25 = arith.addf %22, %24 : vector<128x128xf32>
    %c0_16 = arith.constant 0 : index
    %c0_17 = arith.constant 0 : index
    %26 = vector.load %arg9[%c0_16, %c0_17] : memref<256x128xbf16, #tpu.memory_space<vmem>>, vector<256x128xbf16>
    %cst_18 = arith.constant dense<0.000000e+00> : vector<128x128xf32>
    %27 = tpu.matmul %15, %26, %cst_18 {dimension_numbers = #tpu.dot_dimension_numbers<[1], [0], [0], [1], [0, 0, 1, 1], [], []>} : vector<128x256xbf16>, vector<256x128xbf16>, vector<128x128xf32> -> vector<128x128xf32>
    %c0_19 = arith.constant 0 : index
    %c0_20 = arith.constant 0 : index
    %28 = vector.load %arg10[%c0_19, %c0_20] : memref<1x128xf32, #tpu.memory_space<vmem>>, vector<1x128xf32>
    %29 = vector.broadcast %28 : vector<1x128xf32> to vector<128x128xf32>
    %30 = arith.addf %27, %29 : vector<128x128xf32>
    %31 = arith.truncf %30 : vector<128x128xf32> to vector<128x128xbf16>
    %c0_21 = arith.constant 0 : index
    %c0_22 = arith.constant 0 : index
    %c0_23 = arith.constant 0 : index
    %32 = vector.load %arg14[%c0_21, %c0_22, %c0_23] : memref<1x128x128xbf16, #tpu.memory_space<vmem>>, vector<1x128x128xbf16>
    %33 = vector.shape_cast %32 : vector<1x128x128xbf16> to vector<128x128xbf16>
    %34 = vector.shape_cast %31 : vector<128x128xbf16> to vector<1x128x128xbf16>
    tpu.vector_store %arg14[%c0_21, %c0_22, %c0_23], %34 {strides = array<i32>} : memref<1x128x128xbf16, #tpu.memory_space<vmem>>, vector<1x128x128xbf16>,
    %c0_24 = arith.constant 0 : index
    %c0_25 = arith.constant 0 : index
    %c0_26 = arith.constant 0 : index
    %35 = vector.load %arg3[%c0_24, %c0_25, %c0_26] : memref<1x128x64xf32, #tpu.memory_space<vmem>>, vector<1x128x64xf32>
    %36 = vector.shape_cast %35 : vector<1x128x64xf32> to vector<128x64xf32>
    %c0_27 = arith.constant 0 : index
    %c0_28 = arith.constant 0 : index
    %c0_29 = arith.constant 0 : index
    %37 = vector.load %arg4[%c0_27, %c0_28, %c0_29] : memref<1x128x64xf32, #tpu.memory_space<vmem>>, vector<1x128x64xf32>
    %38 = vector.shape_cast %37 : vector<1x128x64xf32> to vector<128x64xf32>
    %39 = vector.extract_strided_slice %20 {offsets = [0, 0], sizes = [128, 64], strides = [1, 1]} : vector<128x256xf32> to vector<128x64xf32>
    %40 = arith.mulf %39, %36 : vector<128x64xf32>
    %c32_i32 = arith.constant 32 : i32
    %41 = tpu.dynamic_rotate %39 by %c32_i32 dim 1 : vector<128x64xf32>, i32 -> vector<128x64xf32>
    %42 = arith.mulf %41, %38 : vector<128x64xf32>
    %43 = arith.addf %40, %42 : vector<128x64xf32>
    %44 = arith.truncf %43 : vector<128x64xf32> to vector<128x64xbf16>
    %c0_30 = arith.constant 0 : index
    %c0_31 = arith.constant 0 : index
    %c0_32 = arith.constant 0 : index
    %45 = vector.load %arg12[%c0_30, %c0_31, %c0_32] : memref<1x128x256xbf16, #tpu.memory_space<vmem>>, vector<1x128x64xbf16>
    %46 = vector.shape_cast %45 : vector<1x128x64xbf16> to vector<128x64xbf16>
    %47 = vector.shape_cast %44 : vector<128x64xbf16> to vector<1x128x64xbf16>
    tpu.vector_store %arg12[%c0_30, %c0_31, %c0_32], %47 {strides = array<i32>} : memref<1x128x256xbf16, #tpu.memory_space<vmem>>, vector<1x128x64xbf16>,
    %48 = vector.extract_strided_slice %20 {offsets = [0, 64], sizes = [128, 64], strides = [1, 1]} : vector<128x256xf32> to vector<128x64xf32>
    %49 = arith.mulf %48, %36 : vector<128x64xf32>
    %c32_i32_33 = arith.constant 32 : i32
    %50 = tpu.dynamic_rotate %48 by %c32_i32_33 dim 1 : vector<128x64xf32>, i32 -> vector<128x64xf32>
    %51 = arith.mulf %50, %38 : vector<128x64xf32>
    %52 = arith.addf %49, %51 : vector<128x64xf32>
    %53 = arith.truncf %52 : vector<128x64xf32> to vector<128x64xbf16>
    %c0_34 = arith.constant 0 : index
    %c0_35 = arith.constant 0 : index
    %c64 = arith.constant 64 : index
    %54 = vector.load %arg12[%c0_34, %c0_35, %c64] : memref<1x128x256xbf16, #tpu.memory_space<vmem>>, vector<1x128x64xbf16>
    %55 = vector.shape_cast %54 : vector<1x128x64xbf16> to vector<128x64xbf16>
    %56 = vector.shape_cast %53 : vector<128x64xbf16> to vector<1x128x64xbf16>
    tpu.vector_store %arg12[%c0_34, %c0_35, %c64], %56 {strides = array<i32>} : memref<1x128x256xbf16, #tpu.memory_space<vmem>>, vector<1x128x64xbf16>,
    %57 = vector.extract_strided_slice %20 {offsets = [0, 128], sizes = [128, 64], strides = [1, 1]} : vector<128x256xf32> to vector<128x64xf32>
    %58 = arith.mulf %57, %36 : vector<128x64xf32>
    %c32_i32_36 = arith.constant 32 : i32
    %59 = tpu.dynamic_rotate %57 by %c32_i32_36 dim 1 : vector<128x64xf32>, i32 -> vector<128x64xf32>
    %60 = arith.mulf %59, %38 : vector<128x64xf32>
    %61 = arith.addf %58, %60 : vector<128x64xf32>
    %62 = arith.truncf %61 : vector<128x64xf32> to vector<128x64xbf16>
    %c0_37 = arith.constant 0 : index
    %c0_38 = arith.constant 0 : index
    %c128 = arith.constant 128 : index
    %63 = vector.load %arg12[%c0_37, %c0_38, %c128] : memref<1x128x256xbf16, #tpu.memory_space<vmem>>, vector<1x128x64xbf16>
    %64 = vector.shape_cast %63 : vector<1x128x64xbf16> to vector<128x64xbf16>
    %65 = vector.shape_cast %62 : vector<128x64xbf16> to vector<1x128x64xbf16>
    tpu.vector_store %arg12[%c0_37, %c0_38, %c128], %65 {strides = array<i32>} : memref<1x128x256xbf16, #tpu.memory_space<vmem>>, vector<1x128x64xbf16>,
    %66 = vector.extract_strided_slice %20 {offsets = [0, 192], sizes = [128, 64], strides = [1, 1]} : vector<128x256xf32> to vector<128x64xf32>
    %67 = arith.mulf %66, %36 : vector<128x64xf32>
    %c32_i32_39 = arith.constant 32 : i32
    %68 = tpu.dynamic_rotate %66 by %c32_i32_39 dim 1 : vector<128x64xf32>, i32 -> vector<128x64xf32>
    %69 = arith.mulf %68, %38 : vector<128x64xf32>
    %70 = arith.addf %67, %69 : vector<128x64xf32>
    %71 = arith.truncf %70 : vector<128x64xf32> to vector<128x64xbf16>
    %c0_40 = arith.constant 0 : index
    %c0_41 = arith.constant 0 : index
    %c192 = arith.constant 192 : index
    %72 = vector.load %arg12[%c0_40, %c0_41, %c192] : memref<1x128x256xbf16, #tpu.memory_space<vmem>>, vector<1x128x64xbf16>
    %73 = vector.shape_cast %72 : vector<1x128x64xbf16> to vector<128x64xbf16>
    %74 = vector.shape_cast %71 : vector<128x64xbf16> to vector<1x128x64xbf16>
    tpu.vector_store %arg12[%c0_40, %c0_41, %c192], %74 {strides = array<i32>} : memref<1x128x256xbf16, #tpu.memory_space<vmem>>, vector<1x128x64xbf16>,
    %75 = vector.extract_strided_slice %25 {offsets = [0, 0], sizes = [128, 64], strides = [1, 1]} : vector<128x128xf32> to vector<128x64xf32>
    %76 = arith.mulf %75, %36 : vector<128x64xf32>
    %c32_i32_42 = arith.constant 32 : i32
    %77 = tpu.dynamic_rotate %75 by %c32_i32_42 dim 1 : vector<128x64xf32>, i32 -> vector<128x64xf32>
    %78 = arith.mulf %77, %38 : vector<128x64xf32>
    %79 = arith.addf %76, %78 : vector<128x64xf32>
    %80 = arith.truncf %79 : vector<128x64xf32> to vector<128x64xbf16>
    %c0_43 = arith.constant 0 : index
    %c0_44 = arith.constant 0 : index
    %c0_45 = arith.constant 0 : index
    %81 = vector.load %arg13[%c0_43, %c0_44, %c0_45] : memref<1x128x128xbf16, #tpu.memory_space<vmem>>, vector<1x128x64xbf16>
    %82 = vector.shape_cast %81 : vector<1x128x64xbf16> to vector<128x64xbf16>
    %83 = vector.shape_cast %80 : vector<128x64xbf16> to vector<1x128x64xbf16>
    tpu.vector_store %arg13[%c0_43, %c0_44, %c0_45], %83 {strides = array<i32>} : memref<1x128x128xbf16, #tpu.memory_space<vmem>>, vector<1x128x64xbf16>,
    %84 = vector.extract_strided_slice %25 {offsets = [0, 64], sizes = [128, 64], strides = [1, 1]} : vector<128x128xf32> to vector<128x64xf32>
    %85 = arith.mulf %84, %36 : vector<128x64xf32>
    %c32_i32_46 = arith.constant 32 : i32
    %86 = tpu.dynamic_rotate %84 by %c32_i32_46 dim 1 : vector<128x64xf32>, i32 -> vector<128x64xf32>
    %87 = arith.mulf %86, %38 : vector<128x64xf32>
    %88 = arith.addf %85, %87 : vector<128x64xf32>
    %89 = arith.truncf %88 : vector<128x64xf32> to vector<128x64xbf16>
    %c0_47 = arith.constant 0 : index
    %c0_48 = arith.constant 0 : index
    %c64_49 = arith.constant 64 : index
    %90 = vector.load %arg13[%c0_47, %c0_48, %c64_49] : memref<1x128x128xbf16, #tpu.memory_space<vmem>>, vector<1x128x64xbf16>
    %91 = vector.shape_cast %90 : vector<1x128x64xbf16> to vector<128x64xbf16>
    %92 = vector.shape_cast %89 : vector<128x64xbf16> to vector<1x128x64xbf16>
    tpu.vector_store %arg13[%c0_47, %c0_48, %c64_49], %92 {strides = array<i32>} : memref<1x128x128xbf16, #tpu.memory_space<vmem>>, vector<1x128x64xbf16>,
    return
  }
  func.func @transform_0(%arg0: i32, %arg1: i32) -> (i32, i32, i32) {
    %c0_i32 = arith.constant 0 : i32
    %c0_i32_0 = arith.constant 0 : i32
    return %arg0, %arg1, %c0_i32 : i32, i32, i32
  }
  func.func @transform_1(%arg0: i32, %arg1: i32) -> (i32, i32, i32) {
    %c0_i32 = arith.constant 0 : i32
    %c0_i32_0 = arith.constant 0 : i32
    return %arg0, %arg1, %c0_i32 : i32, i32, i32
  }
  func.func @transform_2(%arg0: i32, %arg1: i32) -> (i32, i32, i32) {
    %c0_i32 = arith.constant 0 : i32
    %c0_i32_0 = arith.constant 0 : i32
    return %arg0, %arg1, %c0_i32 : i32, i32, i32
  }
  func.func @transform_3(%arg0: i32, %arg1: i32) -> (i32, i32) {
    %c0_i32 = arith.constant 0 : i32
    %c0_i32_0 = arith.constant 0 : i32
    %c0_i32_1 = arith.constant 0 : i32
    return %c0_i32, %c0_i32_0 : i32, i32
  }
  func.func @transform_4(%arg0: i32, %arg1: i32) -> (i32, i32) {
    %c0_i32 = arith.constant 0 : i32
    %c0_i32_0 = arith.constant 0 : i32
    %c0_i32_1 = arith.constant 0 : i32
    return %c0_i32, %c0_i32_0 : i32, i32
  }
  func.func @transform_5(%arg0: i32, %arg1: i32) -> (i32, i32) {
    %c0_i32 = arith.constant 0 : i32
    %c0_i32_0 = arith.constant 0 : i32
    %c0_i32_1 = arith.constant 0 : i32
    return %c0_i32, %c0_i32_0 : i32, i32
  }
  func.func @transform_6(%arg0: i32, %arg1: i32) -> (i32, i32) {
    %c0_i32 = arith.constant 0 : i32
    %c0_i32_0 = arith.constant 0 : i32
    %c0_i32_1 = arith.constant 0 : i32
    return %c0_i32, %c0_i32_0 : i32, i32
  }
  func.func @transform_7(%arg0: i32, %arg1: i32) -> (i32, i32) {
    %c0_i32 = arith.constant 0 : i32
    %c0_i32_0 = arith.constant 0 : i32
    %c0_i32_1 = arith.constant 0 : i32
    return %c0_i32, %c0_i32_0 : i32, i32
  }
  func.func @transform_8(%arg0: i32, %arg1: i32) -> (i32, i32) {
    %c0_i32 = arith.constant 0 : i32
    %c0_i32_0 = arith.constant 0 : i32
    %c0_i32_1 = arith.constant 0 : i32
    return %c0_i32, %c0_i32_0 : i32, i32
  }
  func.func @transform_9(%arg0: i32, %arg1: i32) -> (i32, i32) {
    %c0_i32 = arith.constant 0 : i32
    %c0_i32_0 = arith.constant 0 : i32
    %c0_i32_1 = arith.constant 0 : i32
    return %c0_i32, %c0_i32_0 : i32, i32
  }
  func.func @transform_10(%arg0: i32, %arg1: i32) -> (i32, i32, i32) {
    %c0_i32 = arith.constant 0 : i32
    %c0_i32_0 = arith.constant 0 : i32
    return %arg0, %arg1, %c0_i32 : i32, i32, i32
  }
  func.func @transform_11(%arg0: i32, %arg1: i32) -> (i32, i32, i32) {
    %c0_i32 = arith.constant 0 : i32
    %c0_i32_0 = arith.constant 0 : i32
    return %arg0, %arg1, %c0_i32 : i32, i32, i32
  }
  func.func @transform_12(%arg0: i32, %arg1: i32) -> (i32, i32, i32) {
    %c0_i32 = arith.constant 0 : i32
    %c0_i32_0 = arith.constant 0 : i32
    return %arg0, %arg1, %c0_i32 : i32, i32, i32
  }
}

module attributes {stable_mosaic.version = 11 : i64} {
  func.func @_qkv_rope_kernel(%arg0: i32, %arg1: i32, %arg2: memref<1x128x256xf32, #tpu.memory_space<vmem>>, %arg3: memref<1x128x64xf32, #tpu.memory_space<vmem>>, %arg4: memref<1x128x64xf32, #tpu.memory_space<vmem>>, %arg5: memref<256x256xbf16, #tpu.memory_space<vmem>>, %arg6: memref<1x256xf32, #tpu.memory_space<vmem>>, %arg7: memref<256x128xbf16, #tpu.memory_space<vmem>>, %arg8: memref<1x128xf32, #tpu.memory_space<vmem>>, %arg9: memref<256x128xbf16, #tpu.memory_space<vmem>>, %arg10: memref<1x128xf32, #tpu.memory_space<vmem>>, %arg11: memref<1x256xf32, #tpu.memory_space<vmem>>, %arg12: memref<1x128x256xbf16, #tpu.memory_space<vmem>>, %arg13: memref<1x128x128xbf16, #tpu.memory_space<vmem>>, %arg14: memref<1x128x128xbf16, #tpu.memory_space<vmem>>) attributes {dimension_semantics = [#tpu.dimension_semantics<parallel>, #tpu.dimension_semantics<parallel>], iteration_bounds = array<i64: 2, 2>, scalar_prefetch = 0 : i64, scratch_operands = 0 : i64, tpu.core_type = #tpu.core_type<tc>, window_params = [{transform_indices = @transform_0, window_bounds = array<i64: 1, 128, 256>}, {transform_indices = @transform_1, window_bounds = array<i64: 1, 128, 64>}, {transform_indices = @transform_2, window_bounds = array<i64: 1, 128, 64>}, {pipeline_mode = #tpu.pipeline_mode<synchronous>, transform_indices = @transform_3, window_bounds = array<i64: 256, 256>}, {pipeline_mode = #tpu.pipeline_mode<synchronous>, transform_indices = @transform_4, window_bounds = array<i64: 1, 256>}, {pipeline_mode = #tpu.pipeline_mode<synchronous>, transform_indices = @transform_5, window_bounds = array<i64: 256, 128>}, {pipeline_mode = #tpu.pipeline_mode<synchronous>, transform_indices = @transform_6, window_bounds = array<i64: 1, 128>}, {pipeline_mode = #tpu.pipeline_mode<synchronous>, transform_indices = @transform_7, window_bounds = array<i64: 256, 128>}, {pipeline_mode = #tpu.pipeline_mode<synchronous>, transform_indices = @transform_8, window_bounds = array<i64: 1, 128>}, {pipeline_mode = #tpu.pipeline_mode<synchronous>, transform_indices = @transform_9, window_bounds = array<i64: 1, 256>}, {transform_indices = @transform_10, window_bounds = array<i64: 1, 128, 256>}, {transform_indices = @transform_11, window_bounds = array<i64: 1, 128, 128>}, {transform_indices = @transform_12, window_bounds = array<i64: 1, 128, 128>}]} {
    %c0 = arith.constant 0 : index
    %c0_0 = arith.constant 0 : index
    %c0_1 = arith.constant 0 : index
    %0 = vector.load %arg2[%c0, %c0_0, %c0_1] : memref<1x128x256xf32, #tpu.memory_space<vmem>>, vector<1x128x256xf32>
    %1 = vector.shape_cast %0 : vector<1x128x256xf32> to vector<128x256xf32>
    %2 = arith.mulf %1, %1 : vector<128x256xf32>
    %cst = arith.constant dense<0.000000e+00> : vector<128xf32>
    %3 = vector.multi_reduction <add>, %2, %cst [1] : vector<128x256xf32> to vector<128xf32>
    %4 = vector.shape_cast %3 : vector<128xf32> to vector<128x1xf32>
    %cst_2 = arith.constant 2.560000e+02 : f32
    %5 = vector.broadcast %cst_2 : f32 to vector<128x1xf32>
    %6 = arith.divf %4, %5 : vector<128x1xf32>
    %cst_3 = arith.constant 9.99999997E-7 : f32
    %7 = vector.broadcast %cst_3 : f32 to vector<128x1xf32>
    %8 = arith.addf %6, %7 : vector<128x1xf32>
    %9 = math.rsqrt %8 : vector<128x1xf32>
    %10 = vector.broadcast %9 : vector<128x1xf32> to vector<128x256xf32>
    %11 = arith.mulf %1, %10 : vector<128x256xf32>
    %c0_4 = arith.constant 0 : index
    %c0_5 = arith.constant 0 : index
    %12 = vector.load %arg11[%c0_4, %c0_5] : memref<1x256xf32, #tpu.memory_space<vmem>>, vector<1x256xf32>
    %13 = vector.broadcast %12 : vector<1x256xf32> to vector<128x256xf32>
    %14 = arith.mulf %11, %13 : vector<128x256xf32>
    %15 = arith.truncf %14 : vector<128x256xf32> to vector<128x256xbf16>
    %c0_6 = arith.constant 0 : index
    %c0_7 = arith.constant 0 : index
    %16 = vector.load %arg5[%c0_6, %c0_7] : memref<256x256xbf16, #tpu.memory_space<vmem>>, vector<256x256xbf16>
    %cst_8 = arith.constant dense<0.000000e+00> : vector<128x256xf32>
    %17 = tpu.matmul %15, %16, %cst_8 {dimension_numbers = #tpu.dot_dimension_numbers<[1], [0], [0], [1], [0, 0, 1, 1], [], []>} : vector<128x256xbf16>, vector<256x256xbf16>, vector<128x256xf32> -> vector<128x256xf32>
    %c0_9 = arith.constant 0 : index
    %c0_10 = arith.constant 0 : index
    %18 = vector.load %arg6[%c0_9, %c0_10] : memref<1x256xf32, #tpu.memory_space<vmem>>, vector<1x256xf32>
    %19 = vector.broadcast %18 : vector<1x256xf32> to vector<128x256xf32>
    %20 = arith.addf %17, %19 : vector<128x256xf32>
    %c0_11 = arith.constant 0 : index
    %c0_12 = arith.constant 0 : index
    %21 = vector.load %arg7[%c0_11, %c0_12] : memref<256x128xbf16, #tpu.memory_space<vmem>>, vector<256x128xbf16>
    %cst_13 = arith.constant dense<0.000000e+00> : vector<128x128xf32>
    %22 = tpu.matmul %15, %21, %cst_13 {dimension_numbers = #tpu.dot_dimension_numbers<[1], [0], [0], [1], [0, 0, 1, 1], [], []>} : vector<128x256xbf16>, vector<256x128xbf16>, vector<128x128xf32> -> vector<128x128xf32>
    %c0_14 = arith.constant 0 : index
    %c0_15 = arith.constant 0 : index
    %23 = vector.load %arg8[%c0_14, %c0_15] : memref<1x128xf32, #tpu.memory_space<vmem>>, vector<1x128xf32>
    %24 = vector.broadcast %23 : vector<1x128xf32> to vector<128x128xf32>
    %25 = arith.addf %22, %24 : vector<128x128xf32>
    %c0_16 = arith.constant 0 : index
    %c0_17 = arith.constant 0 : index
    %26 = vector.load %arg9[%c0_16, %c0_17] : memref<256x128xbf16, #tpu.memory_space<vmem>>, vector<256x128xbf16>
    %cst_18 = arith.constant dense<0.000000e+00> : vector<128x128xf32>
    %27 = tpu.matmul %15, %26, %cst_18 {dimension_numbers = #tpu.dot_dimension_numbers<[1], [0], [0], [1], [0, 0, 1, 1], [], []>} : vector<128x256xbf16>, vector<256x128xbf16>, vector<128x128xf32> -> vector<128x128xf32>
    %c0_19 = arith.constant 0 : index
    %c0_20 = arith.constant 0 : index
    %28 = vector.load %arg10[%c0_19, %c0_20] : memref<1x128xf32, #tpu.memory_space<vmem>>, vector<1x128xf32>
    %29 = vector.broadcast %28 : vector<1x128xf32> to vector<128x128xf32>
    %30 = arith.addf %27, %29 : vector<128x128xf32>
    %31 = arith.truncf %30 : vector<128x128xf32> to vector<128x128xbf16>
    %c0_21 = arith.constant 0 : index
    %c0_22 = arith.constant 0 : index
    %c0_23 = arith.constant 0 : index
    %32 = vector.load %arg14[%c0_21, %c0_22, %c0_23] : memref<1x128x128xbf16, #tpu.memory_space<vmem>>, vector<1x128x128xbf16>
    %33 = vector.shape_cast %32 : vector<1x128x128xbf16> to vector<128x128xbf16>
    %34 = vector.shape_cast %31 : vector<128x128xbf16> to vector<1x128x128xbf16>
    tpu.vector_store %arg14[%c0_21, %c0_22, %c0_23], %34 {strides = array<i32>} : memref<1x128x128xbf16, #tpu.memory_space<vmem>>, vector<1x128x128xbf16>,
    %c0_24 = arith.constant 0 : index
    %c0_25 = arith.constant 0 : index
    %c0_26 = arith.constant 0 : index
    %35 = vector.load %arg3[%c0_24, %c0_25, %c0_26] : memref<1x128x64xf32, #tpu.memory_space<vmem>>, vector<1x128x64xf32>
    %36 = vector.shape_cast %35 : vector<1x128x64xf32> to vector<128x64xf32>
    %c0_27 = arith.constant 0 : index
    %c0_28 = arith.constant 0 : index
    %c0_29 = arith.constant 0 : index
    %37 = vector.load %arg4[%c0_27, %c0_28, %c0_29] : memref<1x128x64xf32, #tpu.memory_space<vmem>>, vector<1x128x64xf32>
    %38 = vector.shape_cast %37 : vector<1x128x64xf32> to vector<128x64xf32>
    %39 = vector.extract_strided_slice %20 {offsets = [0, 0], sizes = [128, 64], strides = [1, 1]} : vector<128x256xf32> to vector<128x64xf32>
    %40 = arith.mulf %39, %36 : vector<128x64xf32>
    %41 = vector.extract_strided_slice %39 {offsets = [0, 32], sizes = [128, 32], strides = [1, 1]} : vector<128x64xf32> to vector<128x32xf32>
    %42 = vector.extract_strided_slice %39 {offsets = [0, 0], sizes = [128, 32], strides = [1, 1]} : vector<128x64xf32> to vector<128x32xf32>
    %43 = tpu.concatenate %41, %42 in 1 : vector<128x32xf32>, vector<128x32xf32> -> vector<128x64xf32>
    %44 = arith.mulf %43, %38 : vector<128x64xf32>
    %45 = arith.addf %40, %44 : vector<128x64xf32>
    %46 = arith.truncf %45 : vector<128x64xf32> to vector<128x64xbf16>
    %c0_30 = arith.constant 0 : index
    %c0_31 = arith.constant 0 : index
    %c0_32 = arith.constant 0 : index
    %47 = vector.load %arg12[%c0_30, %c0_31, %c0_32] : memref<1x128x256xbf16, #tpu.memory_space<vmem>>, vector<1x128x64xbf16>
    %48 = vector.shape_cast %47 : vector<1x128x64xbf16> to vector<128x64xbf16>
    %49 = vector.shape_cast %46 : vector<128x64xbf16> to vector<1x128x64xbf16>
    tpu.vector_store %arg12[%c0_30, %c0_31, %c0_32], %49 {strides = array<i32>} : memref<1x128x256xbf16, #tpu.memory_space<vmem>>, vector<1x128x64xbf16>,
    %50 = vector.extract_strided_slice %20 {offsets = [0, 64], sizes = [128, 64], strides = [1, 1]} : vector<128x256xf32> to vector<128x64xf32>
    %51 = arith.mulf %50, %36 : vector<128x64xf32>
    %52 = vector.extract_strided_slice %50 {offsets = [0, 32], sizes = [128, 32], strides = [1, 1]} : vector<128x64xf32> to vector<128x32xf32>
    %53 = vector.extract_strided_slice %50 {offsets = [0, 0], sizes = [128, 32], strides = [1, 1]} : vector<128x64xf32> to vector<128x32xf32>
    %54 = tpu.concatenate %52, %53 in 1 : vector<128x32xf32>, vector<128x32xf32> -> vector<128x64xf32>
    %55 = arith.mulf %54, %38 : vector<128x64xf32>
    %56 = arith.addf %51, %55 : vector<128x64xf32>
    %57 = arith.truncf %56 : vector<128x64xf32> to vector<128x64xbf16>
    %c0_33 = arith.constant 0 : index
    %c0_34 = arith.constant 0 : index
    %c64 = arith.constant 64 : index
    %58 = vector.load %arg12[%c0_33, %c0_34, %c64] : memref<1x128x256xbf16, #tpu.memory_space<vmem>>, vector<1x128x64xbf16>
    %59 = vector.shape_cast %58 : vector<1x128x64xbf16> to vector<128x64xbf16>
    %60 = vector.shape_cast %57 : vector<128x64xbf16> to vector<1x128x64xbf16>
    tpu.vector_store %arg12[%c0_33, %c0_34, %c64], %60 {strides = array<i32>} : memref<1x128x256xbf16, #tpu.memory_space<vmem>>, vector<1x128x64xbf16>,
    %61 = vector.extract_strided_slice %20 {offsets = [0, 128], sizes = [128, 64], strides = [1, 1]} : vector<128x256xf32> to vector<128x64xf32>
    %62 = arith.mulf %61, %36 : vector<128x64xf32>
    %63 = vector.extract_strided_slice %61 {offsets = [0, 32], sizes = [128, 32], strides = [1, 1]} : vector<128x64xf32> to vector<128x32xf32>
    %64 = vector.extract_strided_slice %61 {offsets = [0, 0], sizes = [128, 32], strides = [1, 1]} : vector<128x64xf32> to vector<128x32xf32>
    %65 = tpu.concatenate %63, %64 in 1 : vector<128x32xf32>, vector<128x32xf32> -> vector<128x64xf32>
    %66 = arith.mulf %65, %38 : vector<128x64xf32>
    %67 = arith.addf %62, %66 : vector<128x64xf32>
    %68 = arith.truncf %67 : vector<128x64xf32> to vector<128x64xbf16>
    %c0_35 = arith.constant 0 : index
    %c0_36 = arith.constant 0 : index
    %c128 = arith.constant 128 : index
    %69 = vector.load %arg12[%c0_35, %c0_36, %c128] : memref<1x128x256xbf16, #tpu.memory_space<vmem>>, vector<1x128x64xbf16>
    %70 = vector.shape_cast %69 : vector<1x128x64xbf16> to vector<128x64xbf16>
    %71 = vector.shape_cast %68 : vector<128x64xbf16> to vector<1x128x64xbf16>
    tpu.vector_store %arg12[%c0_35, %c0_36, %c128], %71 {strides = array<i32>} : memref<1x128x256xbf16, #tpu.memory_space<vmem>>, vector<1x128x64xbf16>,
    %72 = vector.extract_strided_slice %20 {offsets = [0, 192], sizes = [128, 64], strides = [1, 1]} : vector<128x256xf32> to vector<128x64xf32>
    %73 = arith.mulf %72, %36 : vector<128x64xf32>
    %74 = vector.extract_strided_slice %72 {offsets = [0, 32], sizes = [128, 32], strides = [1, 1]} : vector<128x64xf32> to vector<128x32xf32>
    %75 = vector.extract_strided_slice %72 {offsets = [0, 0], sizes = [128, 32], strides = [1, 1]} : vector<128x64xf32> to vector<128x32xf32>
    %76 = tpu.concatenate %74, %75 in 1 : vector<128x32xf32>, vector<128x32xf32> -> vector<128x64xf32>
    %77 = arith.mulf %76, %38 : vector<128x64xf32>
    %78 = arith.addf %73, %77 : vector<128x64xf32>
    %79 = arith.truncf %78 : vector<128x64xf32> to vector<128x64xbf16>
    %c0_37 = arith.constant 0 : index
    %c0_38 = arith.constant 0 : index
    %c192 = arith.constant 192 : index
    %80 = vector.load %arg12[%c0_37, %c0_38, %c192] : memref<1x128x256xbf16, #tpu.memory_space<vmem>>, vector<1x128x64xbf16>
    %81 = vector.shape_cast %80 : vector<1x128x64xbf16> to vector<128x64xbf16>
    %82 = vector.shape_cast %79 : vector<128x64xbf16> to vector<1x128x64xbf16>
    tpu.vector_store %arg12[%c0_37, %c0_38, %c192], %82 {strides = array<i32>} : memref<1x128x256xbf16, #tpu.memory_space<vmem>>, vector<1x128x64xbf16>,
    %83 = vector.extract_strided_slice %25 {offsets = [0, 0], sizes = [128, 64], strides = [1, 1]} : vector<128x128xf32> to vector<128x64xf32>
    %84 = arith.mulf %83, %36 : vector<128x64xf32>
    %85 = vector.extract_strided_slice %83 {offsets = [0, 32], sizes = [128, 32], strides = [1, 1]} : vector<128x64xf32> to vector<128x32xf32>
    %86 = vector.extract_strided_slice %83 {offsets = [0, 0], sizes = [128, 32], strides = [1, 1]} : vector<128x64xf32> to vector<128x32xf32>
    %87 = tpu.concatenate %85, %86 in 1 : vector<128x32xf32>, vector<128x32xf32> -> vector<128x64xf32>
    %88 = arith.mulf %87, %38 : vector<128x64xf32>
    %89 = arith.addf %84, %88 : vector<128x64xf32>
    %90 = arith.truncf %89 : vector<128x64xf32> to vector<128x64xbf16>
    %c0_39 = arith.constant 0 : index
    %c0_40 = arith.constant 0 : index
    %c0_41 = arith.constant 0 : index
    %91 = vector.load %arg13[%c0_39, %c0_40, %c0_41] : memref<1x128x128xbf16, #tpu.memory_space<vmem>>, vector<1x128x64xbf16>
    %92 = vector.shape_cast %91 : vector<1x128x64xbf16> to vector<128x64xbf16>
    %93 = vector.shape_cast %90 : vector<128x64xbf16> to vector<1x128x64xbf16>
    tpu.vector_store %arg13[%c0_39, %c0_40, %c0_41], %93 {strides = array<i32>} : memref<1x128x128xbf16, #tpu.memory_space<vmem>>, vector<1x128x64xbf16>,
    %94 = vector.extract_strided_slice %25 {offsets = [0, 64], sizes = [128, 64], strides = [1, 1]} : vector<128x128xf32> to vector<128x64xf32>
    %95 = arith.mulf %94, %36 : vector<128x64xf32>
    %96 = vector.extract_strided_slice %94 {offsets = [0, 32], sizes = [128, 32], strides = [1, 1]} : vector<128x64xf32> to vector<128x32xf32>
    %97 = vector.extract_strided_slice %94 {offsets = [0, 0], sizes = [128, 32], strides = [1, 1]} : vector<128x64xf32> to vector<128x32xf32>
    %98 = tpu.concatenate %96, %97 in 1 : vector<128x32xf32>, vector<128x32xf32> -> vector<128x64xf32>
    %99 = arith.mulf %98, %38 : vector<128x64xf32>
    %100 = arith.addf %95, %99 : vector<128x64xf32>
    %101 = arith.truncf %100 : vector<128x64xf32> to vector<128x64xbf16>
    %c0_42 = arith.constant 0 : index
    %c0_43 = arith.constant 0 : index
    %c64_44 = arith.constant 64 : index
    %102 = vector.load %arg13[%c0_42, %c0_43, %c64_44] : memref<1x128x128xbf16, #tpu.memory_space<vmem>>, vector<1x128x64xbf16>
    %103 = vector.shape_cast %102 : vector<1x128x64xbf16> to vector<128x64xbf16>
    %104 = vector.shape_cast %101 : vector<128x64xbf16> to vector<1x128x64xbf16>
    tpu.vector_store %arg13[%c0_42, %c0_43, %c64_44], %104 {strides = array<i32>} : memref<1x128x128xbf16, #tpu.memory_space<vmem>>, vector<1x128x64xbf16>,
    return
  }
  func.func @transform_0(%arg0: i32, %arg1: i32) -> (i32, i32, i32) {
    %c0_i32 = arith.constant 0 : i32
    %c0_i32_0 = arith.constant 0 : i32
    return %arg0, %arg1, %c0_i32 : i32, i32, i32
  }
  func.func @transform_1(%arg0: i32, %arg1: i32) -> (i32, i32, i32) {
    %c0_i32 = arith.constant 0 : i32
    %c0_i32_0 = arith.constant 0 : i32
    return %arg0, %arg1, %c0_i32 : i32, i32, i32
  }
  func.func @transform_2(%arg0: i32, %arg1: i32) -> (i32, i32, i32) {
    %c0_i32 = arith.constant 0 : i32
    %c0_i32_0 = arith.constant 0 : i32
    return %arg0, %arg1, %c0_i32 : i32, i32, i32
  }
  func.func @transform_3(%arg0: i32, %arg1: i32) -> (i32, i32) {
    %c0_i32 = arith.constant 0 : i32
    %c0_i32_0 = arith.constant 0 : i32
    %c0_i32_1 = arith.constant 0 : i32
    return %c0_i32, %c0_i32_0 : i32, i32
  }
  func.func @transform_4(%arg0: i32, %arg1: i32) -> (i32, i32) {
    %c0_i32 = arith.constant 0 : i32
    %c0_i32_0 = arith.constant 0 : i32
    %c0_i32_1 = arith.constant 0 : i32
    return %c0_i32, %c0_i32_0 : i32, i32
  }
  func.func @transform_5(%arg0: i32, %arg1: i32) -> (i32, i32) {
    %c0_i32 = arith.constant 0 : i32
    %c0_i32_0 = arith.constant 0 : i32
    %c0_i32_1 = arith.constant 0 : i32
    return %c0_i32, %c0_i32_0 : i32, i32
  }
  func.func @transform_6(%arg0: i32, %arg1: i32) -> (i32, i32) {
    %c0_i32 = arith.constant 0 : i32
    %c0_i32_0 = arith.constant 0 : i32
    %c0_i32_1 = arith.constant 0 : i32
    return %c0_i32, %c0_i32_0 : i32, i32
  }
  func.func @transform_7(%arg0: i32, %arg1: i32) -> (i32, i32) {
    %c0_i32 = arith.constant 0 : i32
    %c0_i32_0 = arith.constant 0 : i32
    %c0_i32_1 = arith.constant 0 : i32
    return %c0_i32, %c0_i32_0 : i32, i32
  }
  func.func @transform_8(%arg0: i32, %arg1: i32) -> (i32, i32) {
    %c0_i32 = arith.constant 0 : i32
    %c0_i32_0 = arith.constant 0 : i32
    %c0_i32_1 = arith.constant 0 : i32
    return %c0_i32, %c0_i32_0 : i32, i32
  }
  func.func @transform_9(%arg0: i32, %arg1: i32) -> (i32, i32) {
    %c0_i32 = arith.constant 0 : i32
    %c0_i32_0 = arith.constant 0 : i32
    %c0_i32_1 = arith.constant 0 : i32
    return %c0_i32, %c0_i32_0 : i32, i32
  }
  func.func @transform_10(%arg0: i32, %arg1: i32) -> (i32, i32, i32) {
    %c0_i32 = arith.constant 0 : i32
    %c0_i32_0 = arith.constant 0 : i32
    return %arg0, %arg1, %c0_i32 : i32, i32, i32
  }
  func.func @transform_11(%arg0: i32, %arg1: i32) -> (i32, i32, i32) {
    %c0_i32 = arith.constant 0 : i32
    %c0_i32_0 = arith.constant 0 : i32
    return %arg0, %arg1, %c0_i32 : i32, i32, i32
  }
  func.func @transform_12(%arg0: i32, %arg1: i32) -> (i32, i32, i32) {
    %c0_i32 = arith.constant 0 : i32
    %c0_i32_0 = arith.constant 0 : i32
    return %arg0, %arg1, %c0_i32 : i32, i32, i32
  }
}

</mosaic_0001>

<bundles_post_ra>
// kernel: tpu_custom_call.1
= control target key start
LH: loop header
LB: loop body
LE: loop exit
PB: predicated region body
PF: predicated region fallthrough
CT: control target
= control target key end

     0   :  { %s8177_s0 = inlined_call_operand.vmem [shape: f32[2,256,256], index: 0, kind: input, shape index: {}]   ;;  %s8178_s1 = inlined_call_operand.vmem [shape: f32[2,256,64], index: 1, kind: input, shape index: {}]   ;;  %s8179_s2 = inlined_call_operand.vmem [shape: f32[2,256,64], index: 2, kind: input, shape index: {}]   ;;  %s8180_s3 = inlined_call_operand.vmem [shape: bf16[256,256], index: 3, kind: input, shape index: {}]   ;;  %s8181_s4 = inlined_call_operand.hbm [shape: f32[1,256], index: 4, kind: input, shape index: {}]   ;;  %s8182_s5 = inlined_call_operand.hbm [shape: bf16[256,128], index: 5, kind: input, shape index: {}]   ;;  %s8183_s6 = inlined_call_operand.hbm [shape: f32[1,128], index: 6, kind: input, shape index: {}]   ;;  %s8184_s7 = inlined_call_operand.hbm [shape: bf16[256,128], index: 7, kind: input, shape index: {}]   ;;  %s8185_s8 = inlined_call_operand.hbm [shape: f32[1,128], index: 8, kind: input, shape index: {}]   ;;  %s8186_s9 = inlined_call_operand.hbm [shape: f32[1,256], index: 9, kind: input, shape index: {}]   ;;  %s8187_s10 = inlined_call_operand.hbm [shape: bf16[2,256,256], index: 10, kind: output, shape index: {0}]   ;;  %s8188_s11 = inlined_call_operand.hbm [shape: bf16[2,256,128], index: 11, kind: output, shape index: {1}]   ;;  %s8189_s12 = inlined_call_operand.hbm [shape: bf16[2,256,128], index: 12, kind: output, shape index: {2}]  }
   0x1   :  { %8371 = sst [smem:[#allocation121_spill]] %s8182_s5 }
   0x2   :  { %8372 = sst [smem:[#allocation122_spill]] %s8188_s11 }
   0x3   :  { %8373 = sst [smem:[#allocation123_spill]] %s8189_s12 }
   0x4   :  { %18 = vsyncpa [#allocation3], 0 }
   0x5   :  { %19 = vsyncpa [#allocation6], 0 }
   0x6   :  { %20 = vsyncpa [#allocation9], 0 }
   0x7   :  { %21 = vsyncpa [#allocation12], 0 }
   0x8   :  { %22 = vsyncpa [#allocation4], 0 }
   0x9   :  { %24 = vsyncpa [#allocation4 + $0x1], 0 }
   0xa   :  { %25 = vsyncpa [#allocation15], 0 }
   0xb   :  { %27 = vsyncpa [#allocation15 + $0x1], 0  ;;  %s5099_s21 = smov 0   ;;  %s5101_s22 = smov 0  }
   0xc   :  { %s5103_s23 = smov 0   ;;  %s5105_s24 = smov 0  }
   0xd   :  { %s5107_s25 = smov 0   ;;  %s5109_s26 = smov 0  }
   0xe   :  { %s5111_s27 = smov 0   ;;  %s5113_s28 = smov 0  }
   0xf LB: > { %8374 = sst [smem:[#allocation23_spill]] %s4989_s21  ;;  %s5140_s29 = sadd.s32 4294967295, %s5017_s28   ;;  %s5017_s28 = sphi %s5113_s28, %s33_s28   ;;  %s5013_s27 = sphi %s5111_s27, %s8644_s27   ;;  %s5009_s26 = sphi %s5109_s26, %s8643_s26   ;;  %s5005_s25 = sphi %s5107_s25, %s8642_s25   ;;  %s5001_s24 = sphi %s5105_s24, %s8641_s24   ;;  %s4997_s23 = sphi %s5103_s23, %s8640_s23   ;;  %s4993_s22 = sphi %s5101_s22, %s8646_s22   ;;  %s4989_s21 = sphi %s5099_s21, %s8645_s21  }
  0x10   : > { %8375 = sst [smem:[#allocation24_spill]] %s4997_s23  ;;  %s8191_s30 = sadd.s32 4294967294, %s5017_s28  }
  0x11   : > { %8376 = sst [smem:[#allocation25_spill]] %s5009_s26  ;;  %s42_s13 = sadd.s32 1, %s5009_s26 }
  0x12   : > { %8377 = sst [smem:[#allocation26_spill]] %s5013_s27  ;;  %s45_s14 = sadd.s32 1, %s5013_s27 }
  0x13   : > { %8378 = sst [smem:[#allocation27_spill]] %s5017_s28  ;;  %p43_p0 = scmp.ge.s32.totalorder %s42_s13, 2 }
  0x14   : > { %s285_s15 = sadd.s32 1, %s4997_s23  ;;  %p295_p1 = scmp.ne.s32.totalorder %s4997_s23, %s4993_s22 }
  0x15   : > { %p296_p2 = scmp.eq.s32.totalorder %s5140_s29, 3  ;;  %s8648_s13 = smov (%p43_p0, %s42_s13), 0 }
  0x16   : > { %8379 = sst [smem:[#allocation28_spill]] %s8648_s13  ;;  %s8650_s14 = smov (!%p43_p0, %s45_s14), %s5013_s27 }
  0x17   : > { %s281_s16 = ssub.s32 %s5009_s26, %s8648_s13  ;;  %p5154_p3 = por %p296_p2, %p295_p1 }
  0x18   : > { %p47_p4 = scmp.ge.s32.totalorder %s8650_s14, 2  ;;  %p301_p5 = scmp.ne.s32.totalorder %s4993_s22, %s4989_s21 }
  0x19   : > { %p302_p6 = scmp.eq.s32.totalorder %s8191_s30, 3  ;;  %p4031_p7 = scmp.ge.s32.totalorder %s5017_s28, 1 }
  0x1a   : > { %s8652_s14 = smov (%p47_p4, %s8650_s14), 0  ;;  %p365_p9 = scmp.lt.s32.totalorder %s5017_s28, 5 }
  0x1b   : > { %8381 = sst [smem:[#allocation29_spill]] %s8652_s14  ;;  %p5165_p8 = por %p302_p6, %p301_p5 }
  0x1c   : > { %s280_s19 = ssub.s32 %s5013_s27, %s8652_s14  ;;  %p5172_p10 = pnand %p4031_p7, %p365_p9 }
  0x1d   : > { %s8382_s18 = scalar_select %p5165_p8, 1, 0 }
  0x1e   : > { %s282_s20 = sor.u32 %s281_s16, %s280_s19  ;;  %p4501_p12 = scmp.eq.s32.totalorder %s5140_s29, 0 }
  0x1f   : > { %8383 = sst [smem:[#allocation30_spill]] %s8382_s18  ;;  %p283_p11 = scmp.eq.s32.totalorder %s282_s20, 0 }
  0x20   : > { %p4472_p13 = pneg %p5172_p10  ;;  %s8385_s5 = sld [smem:[#allocation121_spill]] }
  0x21   : > { %s5183_s12 = scalar_select %p283_p11, %s4997_s23, %s285_s15  }
  0x22   : > { %p5187_p0 = pnand %p4501_p12, %p4472_p13  ;;  %s5019_s16 = smov [#allocation5]  }
  0x23   : > { %8386 = sst [smem:[#allocation31_spill]] %s5183_s12  ;;  %s393_s19 = sshll.u32 %s5019_s16, 4  ;;  %s394_s19 = int_to_ptr.vmem [resolvable:$true] %s393_s19 }
  0x24   : > { %s5020_s20 = smov 64   ;;  %s5021_s14 = smov 4  }
  0x25   : > { %s417_s15 = sshll.u32 %s8184_s7, 4  ;;  %s380_s16 = sshll.u32 %s8181_s4, 4  ;;  %s418_s15 = int_to_ptr.hbm [resolvable:$true] %s417_s15  ;;  %s381_s16 = int_to_ptr.hbm [resolvable:$true] %s380_s16 }
  0x26   : > { %s391_s21 = sshll.u32 %s8385_s5, 4  ;;  %s5022_s5 = smov [#allocation8]   ;;  %s392_s21 = int_to_ptr.hbm [resolvable:$true] %s391_s21 }
  0x27   : > { %4478 = dma.hbm_to_vmem [thread:$0]  (!%p5187_p0), %s392_s21, 2048, %s394_s19, [#allocation6], %s5020_s20, %s5020_s20, %s5021_s14  }
  0x28   : > { %s419_s27 = sshll.u32 %s5022_s5, 4  ;;  %s5023_s28 = smov [#allocation2]   ;;  %s420_s27 = int_to_ptr.vmem [resolvable:$true] %s419_s27 }
  0x29   : > { %4484 = dma.hbm_to_vmem [thread:$0]  (!%p5187_p0), %s418_s15, 2048, %s420_s27, [#allocation9], %s5020_s20, %s5020_s20, %s5021_s14  }
  0x2a   : > { %s382_s11 = sshll.u32 %s5023_s28, 4  ;;  %s406_s26 = sshll.u32 %s8183_s6, 4  ;;  %s383_s11 = int_to_ptr.vmem [resolvable:$true] %s382_s11  ;;  %s407_s26 = int_to_ptr.hbm [resolvable:$true] %s406_s26 }
  0x2b   : > { %4475 = dma.hbm_to_vmem [thread:$0]  (!%p5187_p0), %s381_s16, 32, %s383_s11, [#allocation3]  }
  0x2c   : > { %s432_s27 = sshll.u32 %s8185_s8, 4  ;;  %s5024_s14 = smov [#allocation7]   ;;  %s433_s27 = int_to_ptr.hbm [resolvable:$true] %s432_s27 }
  0x2d   : > { %s408_s12 = sshll.u32 %s5024_s14, 4  ;;  %s5025_s23 = smov [#allocation10]   ;;  %s409_s12 = int_to_ptr.vmem [resolvable:$true] %s408_s12 }
  0x2e   : > { %4481 = dma.hbm_to_vmem [thread:$0]  (!%p5187_p0), %s407_s26, 16, %s409_s12, [#allocation6]  }
  0x2f   : > { %s434_s28 = sshll.u32 %s5025_s23, 4  ;;  %s444_s21 = sshll.u32 %s8186_s9, 4  ;;  %s435_s28 = int_to_ptr.vmem [resolvable:$true] %s434_s28  ;;  %s445_s21 = int_to_ptr.hbm [resolvable:$true] %s444_s21 }
  0x30   : > { %4487 = dma.hbm_to_vmem [thread:$0]  (!%p5187_p0), %s433_s27, 16, %s435_s28, [#allocation9]  }
  0x31   : > { %s5026_s11 = smov [#allocation11]   ;;  %499 = sbr.rel (%p5172_p10) target bundleno = 1745 (0x6d1), region = 60 }
  0x32   : > { %s446_s16 = sshll.u32 %s5026_s11, 4  ;;  %s447_s16 = int_to_ptr.vmem [resolvable:$true] %s446_s16 }
  0x33   : > { %4490 = dma.hbm_to_vmem [thread:$0]  (!%p5187_p0), %s445_s21, 32, %s447_s16, [#allocation12]  }
  0x36   : > { %4964 = dma.done.wait (%p4501_p12), [#allocation3], 32  }
  0x37   : > { %4966 = vsyncadd (%p4501_p12), [#allocation3], 4294967264 }
  0x38   : > { %4968 = dma.done.wait (%p4501_p12), [#allocation6], 2064  }
  0x39   : > { %4970 = vsyncadd (%p4501_p12), [#allocation6], 4294965232 }
  0x3a   : > { %4972 = dma.done.wait (%p4501_p12), [#allocation9], 2064  }
  0x3b   : > { %4974 = vsyncadd (%p4501_p12), [#allocation9], 4294965232 }
  0x3c   : > { %4976 = dma.done.wait (%p4501_p12), [#allocation12], 32  }
  0x3d   : > { %4978 = vsyncadd (%p4501_p12), [#allocation12], 4294967264  ;;  %s5237_s13 = sshll.u32 %s5001_s24, 4  ;;  %p601_p1 = scmp.lt.s32.totalorder %s5005_s25, 1 }
  0x3e   : > { %p603_p2 = scmp.lt.s32.totalorder %s5237_s13, 31  ;;  %s5028_s15 = smov 32  }
  0x3f   : > { %s602_s18 = scalar_select %p601_p1, %s5005_s25, 1 }
  0x40   : > { %s604_s19 = scalar_select %p603_p2, %s5237_s13, 31 }
  0x41   : > { %s4051_s26 = sshll.u32 %s602_s18, 6  ;;  %s4054_s28 = sshll.u32 %s602_s18, 5 }
  0x42   : > { %s4050_s5 = sshll.u32 %s604_s19, 1  ;;  %s5266_s20 = sadd.s32 %s4054_s28, %s604_s19 }
  0x43   : > { %s607_s30 = sadd.s32 %s4051_s26, %s4050_s5  ;;  %s4055_s16 = sshll.u32 %s5266_s20, 3 }
  0x44   : > { %s4052_s27 = sshll.u32 %s607_s30, 3  ;;  %s5418_s26 = scalar_lea.vmem %s8179_s2, %s4055_s16 }
  0x45   : > { %s5246_s23 = scalar_lea.vmem %s8177_s0, %s4052_s27  ;;  %s5618_s27 = scalar_lea.vmem %s8178_s1, %s4055_s16 }
  0x46   : > { %v5249_v0 = vld [vmem:[%s5246_s23 + $0x20] sm:$0xff]  ;;  %v5252_v1 = vld [vmem:[%s5246_s23 + $0x28] sm:$0xff]  ;;  %v5271_v8 = vld [vmem:[%s5246_s23 + $0x30] sm:$0xff]  ;;  %s5029_s20 = smov 64   ;;  %s5030_s14 = smov 96  }
  0x47   : > { %v5255_v2 = vld [vmem:[%s5246_s23] sm:$0xff]  ;;  %v670_v3 = vmul.f32 %v5249_v0, %v5249_v0  ;;  %v671_v4 = vmul.f32 %v5252_v1, %v5252_v1  ;;  %v5262_v5 = vld [vmem:[%s5246_s23 + $0x8] sm:$0xff]  ;;  %v5274_v9 = vld [vmem:[%s5246_s23 + $0x38] sm:$0xff]  ;;  %v672_v18 = vmul.f32 %v5271_v8, %v5271_v8  ;;  %s4394_s11 = sshll.u32 %s5001_s24, 5  ;;  %s4320_s18 = sshll.u32 %s5005_s25, 6 }
  0x48   : > { %v666_v6 = vmul.f32 %v5255_v2, %v5255_v2  ;;  %v667_v7 = vmul.f32 %v5262_v5, %v5262_v5  ;;  %v5277_v10 = vld [vmem:[%s5246_s23 + $0x40] sm:$0xff]  ;;  %v5280_v12 = vld [vmem:[%s5246_s23 + $0x10] sm:$0xff]  ;;  %v5283_v13 = vld [vmem:[%s5246_s23 + $0x18] sm:$0xff]  ;;  %v673_v19 = vmul.f32 %v5274_v9, %v5274_v9  ;;  %s3735_s19 = sadd.s32 %s4394_s11, %s4320_s18 }
  0x49   : > { %v704_v11 = vadd.f32 %v671_v4, %v670_v3  ;;  %v5286_v14 = vld [vmem:[%s5246_s23 + $0x48] sm:$0xff]  ;;  %v674_v15 = vmul.f32 %v5277_v10, %v5277_v10  ;;  %v5297_v20 = vld [vmem:[%s5246_s23 + $0x50] sm:$0xff]  ;;  %v5300_v21 = vld [vmem:[%s5246_s23 + $0x58] sm:$0xff]  ;;  %v668_v22 = vmul.f32 %v5280_v12, %v5280_v12  ;;  %v669_v23 = vmul.f32 %v5283_v13, %v5283_v13  ;;  %s4321_s5 = sshll.u32 %s3735_s19, 2 }
  0x4a   : > { %v698_v16 = vadd.f32 %v667_v7, %v666_v6  ;;  %v675_v17 = vmul.f32 %v5286_v14, %v5286_v14  ;;  %v676_v25 = vmul.f32 %v5297_v20, %v5297_v20  ;;  %v677_v26 = vmul.f32 %v5300_v21, %v5300_v21  ;;  %v5311_v29 = vld [vmem:[%s5246_s23 + $0x70] sm:$0xff]  ;;  %v5314_v30 = vld [vmem:[%s5246_s23 + $0x78] sm:$0xff]  ;;  %v5317_v31 = vld [vmem:[%s5246_s23 + $0x60] sm:$0xff] }
  0x4b   : > { %705 = vadd.xlane.f32.xlu1 %v704_v11  ;;  %v707_v27 = vadd.f32 %v673_v19, %v672_v18  ;;  %v701_v28 = vadd.f32 %v669_v23, %v668_v22  ;;  %v5320_v32 = vld [vmem:[%s5246_s23 + $0x68] sm:$0xff]  ;;  %v680_v34 = vmul.f32 %v5311_v29, %v5311_v29  ;;  %v681_v35 = vmul.f32 %v5314_v30, %v5314_v30  ;;  %v5327_v36 = vld [vmem:[%s5246_s23 + $0x80] sm:$0xff]  ;;  %v5343_v46 = vld [vmem:[%s5246_s23 + $0x90] sm:$0xff] }
  0x4c   : > { %699 = vadd.xlane.f32.xlu0 %v698_v16  ;;  %v710_v24 = vadd.f32 %v675_v17, %v674_v15  ;;  %v713_v33 = vadd.f32 %v677_v26, %v676_v25  ;;  %v5330_v37 = vld [vmem:[%s5246_s23 + $0x88] sm:$0xff]  ;;  %v678_v38 = vmul.f32 %v5317_v31, %v5317_v31  ;;  %v679_v39 = vmul.f32 %v5320_v32, %v5320_v32  ;;  %v654_v44 = vld [vmem:[%s5246_s23 + $0xa0] sm:$0xff]  ;;  %v5346_v47 = vld [vmem:[%s5246_s23 + $0x98] sm:$0xff] }
  0x4d   : > { %v682_v40 = vmul.f32 %v5327_v36, %v5327_v36  ;;  %v683_v41 = vmul.f32 %v5330_v37, %v5330_v37  ;;  %v719_v42 = vadd.f32 %v681_v35, %v680_v34  ;;  %v655_v45 = vld [vmem:[%s5246_s23 + $0xa8] sm:$0xff]  ;;  %v5349_v49 = vld [vmem:[%s5246_s23 + $0xb0] sm:$0xff]  ;;  %v5352_v50 = vld [vmem:[%s5246_s23 + $0xb8] sm:$0xff]  ;;  %v686_v51 = vmul.f32 %v654_v44, %v654_v44 }
  0x4e   : > { %711 = vadd.xlane.f32.xlu2 %v710_v24  ;;  %v716_v43 = vadd.f32 %v679_v39, %v678_v38  ;;  %v687_v52 = vmul.f32 %v655_v45, %v655_v45  ;;  %v684_v53 = vmul.f32 %v5343_v46, %v5343_v46  ;;  %v685_v54 = vmul.f32 %v5346_v47, %v5346_v47  ;;  %v660_v59 = vld [vmem:[%s5246_s23 + $0xd0] sm:$0xff]  ;;  %v661_v60 = vld [vmem:[%s5246_s23 + $0xd8] sm:$0xff]  ;;  %v658_v61 = vld [vmem:[%s5246_s23 + $0xc0] sm:$0xff] }
  0x4f   : > { %v722_v48 = vadd.f32 %v683_v41, %v682_v40  ;;  %v688_v55 = vmul.f32 %v5349_v49, %v5349_v49  ;;  %v689_v56 = vmul.f32 %v5352_v50, %v5352_v50  ;;  %v659_v62 = vld [vmem:[%s5246_s23 + $0xc8] sm:$0xff]  ;;  %v692_v3 = vmul.f32 %v660_v59, %v660_v59  ;;  %v664_v16 = vld [vmem:[%s5246_s23 + $0xf0] sm:$0xff]  ;;  %v665_v17 = vld [vmem:[%s5246_s23 + $0xf8] sm:$0xff] }
  0x50   : > { %v728_v57 = vadd.f32 %v687_v52, %v686_v51  ;;  %v725_v58 = vadd.f32 %v685_v54, %v684_v53  ;;  %v693_v4 = vmul.f32 %v661_v60, %v661_v60  ;;  %v690_v6 = vmul.f32 %v658_v61, %v658_v61  ;;  %v662_v23 = vld [vmem:[%s5246_s23 + $0xe0] sm:$0xff]  ;;  %v663_v24 = vld [vmem:[%s5246_s23 + $0xe8] sm:$0xff]  ;;  %v4181_v34 = vld [vmem:[%s8180_s3 + $0xf0] sm:$0xf] }
  0x51   : > { %v731_v63 = vadd.f32 %v689_v56, %v688_v55  ;;  %v691_v7 = vmul.f32 %v659_v62, %v659_v62  ;;  %v696_v18 = vmul.f32 %v664_v16, %v664_v16  ;;  %v697_v19 = vmul.f32 %v665_v17, %v665_v17  ;;  %v4361_v38 = vld [vmem:[%s8180_s3 + $0xf4] sm:$0xf0]  ;;  %v4344_v39 = vld [vmem:[%s8180_s3 + $0x74] sm:$0xf]  ;;  %v4119_v40 = vld [vmem:[%s8180_s3 + $0x78] sm:$0xf0] }
  0x52   : > { %v737_v11 = vadd.f32 %v693_v4, %v692_v3  ;;  %v694_v25 = vmul.f32 %v662_v23, %v662_v23  ;;  %v695_v26 = vmul.f32 %v663_v24, %v663_v24  ;;  %v5027_v41 = vmov 256.0   ;;  %v4360_v44 = vld [vmem:[%s8180_s3 + $0xf4] sm:$0xf]  ;;  %v4183_v45 = vld [vmem:[%s8180_s3 + $0xf8] sm:$0xf0]  ;;  %v1933_v4 = vld [vmem:[%s5418_s26] sm:$0xff] }
  0x53   : > { %708 = vadd.xlane.f32.xlu1 %v707_v27  ;;  %v734_v15 = vadd.f32 %v691_v7, %v690_v6  ;;  %v743_v22 = vadd.f32 %v697_v19, %v696_v18  ;;  %4595 = vrcp.f32 %v5027_v41  ;;  %v4109_v51 = vld [vmem:[%s8180_s3 + $0x60] sm:$0xf]  ;;  %v4343_v52 = vld [vmem:[%s8180_s3 + $0x64] sm:$0xf0]  ;;  %v4342_v56 = vld [vmem:[%s8180_s3 + $0x64] sm:$0xf] }
  0x54   : > { %702 = vadd.xlane.f32.xlu0 %v701_v28  ;;  %v740_v27 = vadd.f32 %v695_v26, %v694_v25  ;;  %v4117_v28 = vld [vmem:[%s8180_s3 + $0x70] sm:$0xf]  ;;  %v4173_v53 = vld [vmem:[%s8180_s3 + $0xe0] sm:$0xf]  ;;  %v4110_v54 = vor.u32 %v4343_v52, %v4109_v51  ;;  %v4359_v55 = vld [vmem:[%s8180_s3 + $0xe4] sm:$0xf0] }
  0x55   : > { %v4358_v60 = vld [vmem:[%s8180_s3 + $0xe4] sm:$0xf]  ;;  %v4175_v61 = vld [vmem:[%s8180_s3 + $0xe8] sm:$0xf0]  ;;  %v1935_v3 = vld [vmem:[%s5418_s26 + $0x10] sm:$0xff] }
  0x56   : > { %714 = vadd.xlane.f32.xlu2 %v713_v33  ;;  %v4345_v33 = vld [vmem:[%s8180_s3 + $0x74] sm:$0xf0]  ;;  %v4178_v62 = vor.u32 %v4358_v60, %v4175_v61  ;;  %v4101_v6 = vld [vmem:[%s8180_s3 + $0x50] sm:$0xf]  ;;  %v4340_v18 = vld [vmem:[%s8180_s3 + $0x54] sm:$0xf] }
  0x57   : > { %v4118_v35 = vor.u32 %v4345_v33, %v4117_v28  ;;  %v4341_v7 = vld [vmem:[%s8180_s3 + $0x54] sm:$0xf0]  ;;  %v4103_v19 = vld [vmem:[%s8180_s3 + $0x58] sm:$0xf0]  ;;  %v4339_v28 = vld [vmem:[%s8180_s3 + $0x44] sm:$0xf0] }
  0x58   : > { %v4102_v16 = vor.u32 %v4341_v7, %v4101_v6  ;;  %v4106_v24 = vor.u32 %v4340_v18, %v4103_v19  ;;  %v4167_v25 = vld [vmem:[%s8180_s3 + $0xd8] sm:$0xf0]  ;;  %v4157_v33 = vld [vmem:[%s8180_s3 + $0xc0] sm:$0xf]  ;;  %v4085_v52 = vld [vmem:[%s8180_s3 + $0x30] sm:$0xf] }
  0x59   : > { %1229 = vmatpush.bf16.msra.mxu0 %v4118_v35  ;;  %v4355_v35 = vld [vmem:[%s8180_s3 + $0xc4] sm:$0xf0]  ;;  %v1936_v51 = vld [vmem:[%s5418_s26 + $0x18] sm:$0xff]  ;;  %v4352_v60 = vld [vmem:[%s8180_s3 + $0xb4] sm:$0xf] }
  0x5a   : > { %v4077_v6 = vld [vmem:[%s8180_s3 + $0x20] sm:$0xf]  ;;  %v4335_v7 = vld [vmem:[%s8180_s3 + $0x24] sm:$0xf0]  ;;  %v4079_v18 = vld [vmem:[%s8180_s3 + $0x28] sm:$0xf0] }
  0x5b   : > { %720 = vadd.xlane.f32.xlu1 %v719_v42  ;;  %v4182_v42 = vor.u32 %v4361_v38, %v4181_v34  ;;  %v4338_v38 = vld [vmem:[%s8180_s3 + $0x44] sm:$0xf] }
  0x5c   : > { %717 = vadd.xlane.f32.xlu0 %v716_v43  ;;  %v4122_v43 = vor.u32 %v4344_v39, %v4119_v40  ;;  %v4095_v39 = vld [vmem:[%s8180_s3 + $0x48] sm:$0xf0]  ;;  %v4158_v40 = vor.u32 %v4355_v35, %v4157_v33  ;;  %v4069_v33 = vld [vmem:[%s8180_s3 + $0x10] sm:$0xf] }
  0x5d   : > { %1278 = vmatpush.bf16.msra.mxu1 %v4182_v42  ;;  %1230 = vmatpush.bf16.msra.mxu0 %v4110_v54  ;;  %v4098_v41 = vor.u32 %v4338_v38, %v4095_v39  ;;  %v4354_v42 = vld [vmem:[%s8180_s3 + $0xc4] sm:$0xf]  ;;  %v4149_v54 = vld [vmem:[%s8180_s3 + $0xb0] sm:$0xf]  ;;  %v4349_v38 = vld [vmem:[%s8180_s3 + $0x94] sm:$0xf0] }
  0x5e   : > { %723 = vadd.xlane.f32.xlu2 %v722_v48  ;;  %v4186_v48 = vor.u32 %v4360_v44, %v4183_v45  ;;  %1327 = vmatpush.bf16.msra.mxu2 %v4122_v43  ;;  %v4159_v43 = vld [vmem:[%s8180_s3 + $0xc8] sm:$0xf0]  ;;  %v4133_v35 = vld [vmem:[%s8180_s3 + $0x90] sm:$0xf] }
  0x5f   : > { %v4162_v45 = vor.u32 %v4354_v42, %v4159_v43  ;;  %v4071_v42 = vld [vmem:[%s8180_s3 + $0x18] sm:$0xf0]  ;;  %v4348_v43 = vld [vmem:[%s8180_s3 + $0x94] sm:$0xf] }
  0x60   : > { %1376 = vmatpush.bf16.msra.mxu3 %v4186_v48  ;;  %v1938_v48 = vld [vmem:[%s5418_s26 + $0x28] sm:$0xff] }
  0x61   : > { %1231 = vmatpush.bf16.msra.mxu0 %v4102_v16  ;;  %v4351_v16 = vld [vmem:[%s8180_s3 + $0xa4] sm:$0xf0] }
  0x63   : > { %729 = vadd.xlane.f32.xlu1 %v728_v57  ;;  %v4111_v57 = vld [vmem:[%s8180_s3 + $0x68] sm:$0xf0] }
  0x64   : > { %726 = vadd.xlane.f32.xlu0 %v725_v58  ;;  %v4174_v58 = vor.u32 %v4359_v55, %v4173_v53  ;;  %v4114_v59 = vor.u32 %v4342_v56, %v4111_v57  ;;  %1377 = vmatpush.bf16.msra.mxu3 %v4178_v62  ;;  %v4337_v53 = vld [vmem:[%s8180_s3 + $0x34] sm:$0xf0] }
  0x65   : > { %v4353_v55 = vld [vmem:[%s8180_s3 + $0xb4] sm:$0xf0]  ;;  %v4086_v56 = vor.u32 %v4337_v53, %v4085_v52  ;;  %v4061_v53 = vld [vmem:[%s8180_s3] sm:$0xf] }
  0x66   : > { %732 = vadd.xlane.f32.xlu2 %v731_v63  ;;  %v5426_v63 = vpop.eup %4595  ;;  %1279 = vmatpush.bf16.msra.mxu1 %v4174_v58  ;;  %v4150_v57 = vor.u32 %v4353_v55, %v4149_v54  ;;  %v4336_v58 = vld [vmem:[%s8180_s3 + $0x34] sm:$0xf]  ;;  %v4331_v54 = vld [vmem:[%s8180_s3 + $0x4] sm:$0xf0] }
  0x67   : > { %1328 = vmatpush.bf16.msra.mxu2 %v4114_v59  ;;  %v747_v23 = vmul.f32 256.0, %v5426_v63  ;;  %v4087_v59 = vld [vmem:[%s8180_s3 + $0x38] sm:$0xf0]  ;;  %vm751_vm0 = vweird.f32 %v5426_v63 }
  0x68   : > { %v4090_v62 = vor.u32 %v4336_v58, %v4087_v59  ;;  %v4330_v58 = vld [vmem:[%s8180_s3 + $0x4] sm:$0xf]  ;;  %v4063_v59 = vld [vmem:[%s8180_s3 + $0x8] sm:$0xf0] }
  0x69   : > { %v748_v44 = vsub.f32 1.0, %v747_v23  ;;  %v4350_v23 = vld [vmem:[%s8180_s3 + $0xa4] sm:$0xf] }
  0x6b   : > { %738 = vadd.xlane.f32.xlu1 %v737_v11  ;;  %v4165_v11 = vld [vmem:[%s8180_s3 + $0xd0] sm:$0xf]  ;;  %1329 = vmatpush.bf16.msra.mxu2 %v4106_v24  ;;  %v749_v61 = vmul.f32 %v5426_v63, %v748_v44  ;;  %v4143_v24 = vld [vmem:[%s8180_s3 + $0xa8] sm:$0xf0] }
  0x6c   : > { %735 = vadd.xlane.f32.xlu0 %v734_v15  ;;  %v4357_v15 = vld [vmem:[%s8180_s3 + $0xd4] sm:$0xf0] }
  0x6d   : > { %v4166_v17 = vor.u32 %v4357_v15, %v4165_v11  ;;  %v4141_v11 = vld [vmem:[%s8180_s3 + $0xa0] sm:$0xf]  ;;  %v4078_v15 = vor.u32 %v4335_v7, %v4077_v6 }
  0x6e   : > { %741 = vadd.xlane.f32.xlu2 %v740_v27  ;;  %v4093_v27 = vld [vmem:[%s8180_s3 + $0x40] sm:$0xf]  ;;  %v4142_v19 = vor.u32 %v4351_v16, %v4141_v11  ;;  %v1942_v16 = vld [vmem:[%s5418_s26 + $0x48] sm:$0xff] }
  0x6f   : > { %1280 = vmatpush.bf16.msra.mxu1 %v4166_v17  ;;  %v4094_v34 = vor.u32 %v4339_v28, %v4093_v27  ;;  %1330 = vmatpush.bf16.msra.mxu2 %v4098_v41  ;;  %v4334_v17 = vld [vmem:[%s8180_s3 + $0x24] sm:$0xf]  ;;  %v1939_v28 = vld [vmem:[%s5418_s26 + $0x30] sm:$0xff] }
  0x70   : > { %v1941_v27 = vld [vmem:[%s5418_s26 + $0x40] sm:$0xff]  ;;  %v4332_v41 = vld [vmem:[%s8180_s3 + $0x14] sm:$0xf] }
  0x71   : > { %1232 = vmatpush.bf16.msra.mxu0 %v4094_v34  ;;  %v4333_v34 = vld [vmem:[%s8180_s3 + $0x14] sm:$0xf0] }
  0x72   : > { %v4070_v39 = vor.u32 %v4333_v34, %v4069_v33 }
  0x73   : > { %1281 = vmatpush.bf16.msra.mxu1 %v4158_v40  ;;  %1331 = vmatpush.bf16.msra.mxu2 %v4090_v62  ;;  %v4134_v40 = vor.u32 %v4349_v38, %v4133_v35  ;;  %v4066_v62 = vor.u32 %v4330_v58, %v4063_v59  ;;  %v1937_v59 = vld [vmem:[%s5418_s26 + $0x20] sm:$0xff] }
  0x74   : > { %744 = vadd.xlane.f32.xlu0 %v743_v22  ;;  %v4356_v22 = vld [vmem:[%s8180_s3 + $0xd4] sm:$0xf] }
  0x75   : > { %v4170_v26 = vor.u32 %v4356_v22, %v4167_v25  ;;  %1233 = vmatpush.bf16.msra.mxu0 %v4086_v56  ;;  %v4082_v22 = vor.u32 %v4334_v17, %v4079_v18  ;;  %v750_v25 = vadd.f32 %v5426_v63, %v749_v61  ;;  %v4062_v56 = vor.u32 %v4331_v54, %v4061_v53 }
  0x77   : > { %1378 = vmatpush.bf16.msra.mxu3 %v4170_v26  ;;  %1282 = vmatpush.bf16.msra.mxu1 %v4150_v57  ;;  %v4146_v26 = vor.u32 %v4350_v23, %v4143_v24  ;;  %v5564_v44 = vsel %vm751_vm0, %v5426_v63, %v750_v25  ;;  %v4125_v63 = vld [vmem:[%s8180_s3 + $0x80] sm:$0xf]  ;;  %v4347_v57 = vld [vmem:[%s8180_s3 + $0x84] sm:$0xf0] }
  0x78   : > { %1332 = vmatpush.bf16.msra.mxu2 %v4082_v22  ;;  %v4126_v61 = vor.u32 %v4347_v57, %v4125_v63 }
  0x79   : > { %1234 = vmatpush.bf16.msra.mxu0 %v4078_v15  ;;  %v1944_v15 = vld [vmem:[%s5418_s26 + $0x58] sm:$0xff] }
  0x7b   : > { %1379 = vmatpush.bf16.msra.mxu3 %v4162_v45  ;;  %1283 = vmatpush.bf16.msra.mxu1 %v4142_v19  ;;  %v4074_v45 = vor.u32 %v4332_v41, %v4071_v42  ;;  %v1934_v19 = vld [vmem:[%s5418_s26 + $0x8] sm:$0xff] }
  0x7d   : > { %1235 = vmatpush.bf16.msra.mxu0 %v4070_v39  ;;  %1333 = vmatpush.bf16.msra.mxu2 %v4074_v45 }
  0x7f   : > { %1284 = vmatpush.bf16.msra.mxu1 %v4134_v40 }
  0x81   : > { %1236 = vmatpush.bf16.msra.mxu0 %v4062_v56  ;;  %1334 = vmatpush.bf16.msra.mxu2 %v4066_v62 }
  0x83   : > { %1285 = vmatpush.bf16.msra.mxu1 %v4126_v61 }
  0x84   : > { %2082 = vrot.lane.b32.xlu1 %v1935_v3, %s5028_s15  ;;  %v4151_v3 = vld [vmem:[%s8180_s3 + $0xb8] sm:$0xf0] }
  0x86   : > { %2080 = vrot.lane.b32.xlu2 %v1934_v19, %s5028_s15 }
  0x88   : > { %2078 = vrot.lane.b32.xlu0 %v1933_v4, %s5028_s15  ;;  %v4154_v4 = vor.u32 %v4352_v60, %v4151_v3  ;;  %v4346_v3 = vld [vmem:[%s8180_s3 + $0x84] sm:$0xf] }
  0x8a   : > { %1380 = vmatpush.bf16.msra.mxu3 %v4154_v4  ;;  %v4127_v4 = vld [vmem:[%s8180_s3 + $0x88] sm:$0xf0] }
  0x8b   : > { %v4130_v7 = vor.u32 %v4346_v3, %v4127_v4 }
  0x8c   : > { %2088 = vrot.lane.b32.xlu1 %v1938_v48, %s5028_s15  ;;  %v4135_v48 = vld [vmem:[%s8180_s3 + $0x98] sm:$0xf0] }
  0x8d   : > { %v4138_v52 = vor.u32 %v4348_v43, %v4135_v48  ;;  %v1917_v43 = vld [vmem:[%s5618_s27] sm:$0xff] }
  0x8e   : > { %1381 = vmatpush.bf16.msra.mxu3 %v4146_v26  ;;  %v1947_v26 = vld [vmem:[%s5418_s26 + $0x70] sm:$0xff]  ;;  %2086 = vrot.lane.b32.xlu2 %v1937_v59, %s5028_s15  ;;  %v1920_v59 = vld [vmem:[%s5618_s27 + $0x18] sm:$0xff] }
  0x90   : > { %2084 = vrot.lane.b32.xlu0 %v1936_v51, %s5028_s15 }
  0x92   : > { %1382 = vmatpush.bf16.msra.mxu3 %v4138_v52 }
  0x94   : > { %2094 = vrot.lane.b32.xlu1 %v1941_v27, %s5028_s15 }
  0x96   : > { %1383 = vmatpush.bf16.msra.mxu3 %v4130_v7  ;;  %v977_v7 = vld [vmem:[#allocation11] sm:$0x3] }
  0x98   : > { %2090 = vrot.lane.b32.xlu0 %v1939_v28, %s5028_s15  ;;  %v1945_v28 = vld [vmem:[%s5418_s26 + $0x60] sm:$0xff] }
  0x9c   : > { %2100 = vrot.lane.b32.xlu1 %v1944_v15, %s5028_s15  ;;  %v1918_v15 = vld [vmem:[%s5618_s27 + $0x8] sm:$0xff] }
  0xa0   : > { %2096 = vrot.lane.b32.xlu0 %v1942_v16, %s5028_s15 }
  0xa4   : > { %2106 = vrot.lane.b32.xlu1 %v1947_v26, %s5028_s15  ;;  %v5650_v26 = vperm.slane %v977_v7, 1 }
  0xa8   : > { %2102 = vrot.lane.b32.xlu0 %v1945_v28, %s5028_s15 }
  0xac   : > { %2271 = vrot.lane.b32.xlu1 %v1917_v43, %s5029_s20 }
  0xb4   : > { %2277 = vrot.lane.b32.xlu1 %v1920_v59, %s5029_s20 }
  0xbe   : > { %v706_v51 = vpop.xlane.xlu1 %705 }
  0xbf   : > { %v700_v55 = vpop.xlane.xlu0 %699  ;;  %v755_v6 = vmul.f32 %v5564_v44, %v706_v51  ;;  %v1948_v51 = vld [vmem:[%s5418_s26 + $0x78] sm:$0xff] }
  0xc0   : > { %v753_v60 = vmul.f32 %v5564_v44, %v700_v55  ;;  %2108 = vrot.lane.b32.xlu0 %v1948_v51, %s5028_s15 }
  0xc1   : > { %v5599_v17 = vadd.f32 1e-06, %v755_v6  ;;  %v712_v18 = vpop.xlane.xlu2 %711 }
  0xc2   : > { %v769_v11 = vadd.f32 1e-06, %v753_v60  ;;  %v757_v42 = vmul.f32 %v5564_v44, %v712_v18 }
  0xc3   : > { %vm811_vm7 = vweird.f32 %v5599_v17 }
  0xc4   : > { %4597 = vrsqrt.f32 %v769_v11  ;;  %v5633_v56 = vadd.f32 1e-06, %v757_v42  ;;  %vm791_vm2 = vweird.f32 %v769_v11 }
  0xc5   : > { %4599 = vrsqrt.f32 %v5599_v17 }
  0xc6   : > { %v709_v22 = vpop.xlane.xlu1 %708  ;;  %vm831_vm13 = vweird.f32 %v5633_v56 }
  0xc7   : > { %v756_v23 = vmul.f32 %v5564_v44, %v709_v22  ;;  %v703_v24 = vpop.xlane.xlu0 %702 }
  0xc8   : > { %v754_v25 = vmul.f32 %v5564_v44, %v703_v24  ;;  %2273 = vrot.lane.b32.xlu0 %v1918_v15, %s5029_s20 }
  0xc9   : > { %v5607_v27 = vadd.f32 1e-06, %v756_v23  ;;  %v715_v41 = vpop.xlane.xlu2 %714 }
  0xca   : > { %v4598_v33 = vpop.eup %4597  ;;  %v770_v34 = vadd.f32 1e-06, %v754_v25  ;;  %v758_v54 = vmul.f32 %v5564_v44, %v715_v41  ;;  %v5648_v25 = vperm.slane %v977_v7, 0 }
  0xcb   : > { %v786_v35 = vmul.f32 %v4598_v33, %v769_v11  ;;  %4601 = vrsqrt.f32 %v5607_v27  ;;  %v5620_v39 = vpop.eup %4599  ;;  %vm792_vm1 = vweird.f32 %v4598_v33  ;;  %v1940_v11 = vld [vmem:[%s5418_s26 + $0x38] sm:$0xff]  ;;  %vm821_vm9 = vweird.f32 %v5607_v27 }
  0xcc   : > { %4603 = vrsqrt.f32 %v770_v34  ;;  %v806_v53 = vmul.f32 %v5620_v39, %v5599_v17  ;;  %v5638_v61 = vadd.f32 1e-06, %v758_v54  ;;  %vm793_vm3 = vmor %vm791_vm2, %vm792_vm1  ;;  %vm801_vm5 = vweird.f32 %v770_v34  ;;  %2092 = vrot.lane.b32.xlu2 %v1940_v11, %s5028_s15  ;;  %v1943_v17 = vld [vmem:[%s5418_s26 + $0x50] sm:$0xff] }
  0xcd   : > { %v787_v38 = vmul.f32 %v4598_v33, %v786_v35  ;;  %4605 = vrsqrt.f32 %v5633_v56  ;;  %vm812_vm8 = vweird.f32 %v5620_v39 }
  0xce   : > { %v807_v60 = vmul.f32 %v5620_v39, %v806_v53  ;;  %4607 = vrsqrt.f32 %v5638_v61  ;;  %v721_v22 = vpop.xlane.xlu1 %720  ;;  %vm813_vm11 = vmor %vm811_vm7, %vm812_vm8  ;;  %vm841_vm15 = vweird.f32 %v5638_v61 }
  0xcf   : > { %v788_v40 = vmul.f32 0.5, %v787_v38  ;;  %v718_v28 = vpop.xlane.xlu0 %717 }
  0xd0   : > { %v808_v16 = vmul.f32 0.5, %v807_v60  ;;  %v759_v41 = vmul.f32 %v5564_v44, %v718_v28 }
  0xd1   : > { %v5624_v45 = vpop.eup %4601  ;;  %v789_v48 = vsub.f32 1.5, %v788_v40 }
  0xd2   : > { %v4604_v52 = vpop.eup %4603  ;;  %v816_v63 = vmul.f32 %v5624_v45, %v5607_v27  ;;  %v809_v38 = vsub.f32 1.5, %v808_v16  ;;  %vm822_vm10 = vweird.f32 %v5624_v45 }
  0xd3   : > { %v796_v55 = vmul.f32 %v4604_v52, %v770_v34  ;;  %v790_v57 = vmul.f32 %v4598_v33, %v789_v48  ;;  %vm802_vm4 = vweird.f32 %v4604_v52  ;;  %v5653_v35 = vpop.eup %4605  ;;  %vm823_vm12 = vmor %vm821_vm9, %vm822_vm10 }
  0xd4   : > { %v817_v62 = vmul.f32 %v5624_v45, %v816_v63  ;;  %vm803_vm6 = vmor %vm801_vm5, %vm802_vm4  ;;  %v5662_v42 = vpop.eup %4607  ;;  %v826_v51 = vmul.f32 %v5653_v35, %v5633_v56  ;;  %2098 = vrot.lane.b32.xlu2 %v1943_v17, %s5028_s15  ;;  %vm832_vm14 = vweird.f32 %v5653_v35 }
  0xd5   : > { %v797_v58 = vmul.f32 %v4604_v52, %v796_v55  ;;  %v794_v4 = vsel %vm793_vm3, %v4598_v33, %v790_v57  ;;  %v836_v55 = vmul.f32 %v5662_v42, %v5638_v61  ;;  %v5686_v57 = vadd.f32 1e-06, %v759_v41  ;;  %vm833_vm1 = vmor %vm831_vm13, %vm832_vm14 }
  0xd6   : > { %v818_v18 = vmul.f32 0.5, %v817_v62  ;;  %v945_v23 = vmul.f32 %v794_v4, %v5255_v2  ;;  %v946_v24 = vmul.f32 %v794_v4, %v5262_v5  ;;  %v760_v2 = vmul.f32 %v5564_v44, %v721_v22  ;;  %v1921_v62 = vld [vmem:[%s5618_s27 + $0x20] sm:$0xff]  ;;  %v1946_v22 = vld [vmem:[%s5418_s26 + $0x68] sm:$0xff] }
  0xd7   : > { %v798_v3 = vmul.f32 0.5, %v797_v58  ;;  %v827_v58 = vmul.f32 %v5653_v35, %v826_v51  ;;  %v837_v4 = vmul.f32 %v5662_v42, %v836_v55  ;;  %2279 = vrot.lane.b32.xlu0 %v1921_v62, %s5029_s20  ;;  %vm842_vm0 = vweird.f32 %v5662_v42  ;;  %v1923_v51 = vld [vmem:[%s5618_s27 + $0x30] sm:$0xff] }
  0xd8   : > { %v819_v5 = vsub.f32 1.5, %v818_v18  ;;  %v983_v43 = vmul.f32 %v5648_v25, %v945_v23  ;;  %v5677_v63 = vadd.f32 1e-06, %v760_v2  ;;  %vm843_vm2 = vmor %vm841_vm15, %vm842_vm0  ;;  %2283 = vrot.lane.b32.xlu1 %v1923_v51, %s5029_s20  ;;  %vm851_vm5 = vweird.f32 %v5686_v57 }
  0xd9   : > { %v799_v6 = vsub.f32 1.5, %v798_v3  ;;  %v828_v7 = vmul.f32 0.5, %v827_v58  ;;  %v838_v18 = vmul.f32 0.5, %v837_v4 }
  0xda   : > { %v820_v27 = vmul.f32 %v5624_v45, %v819_v5  ;;  %4609 = vrsqrt.f32 %v5677_v63  ;;  %vm861_vm3 = vweird.f32 %v5677_v63 }
  0xdb   : > { %v800_v19 = vmul.f32 %v4604_v52, %v799_v6  ;;  %4611 = vrsqrt.f32 %v5686_v57 }
  0xdc   : > { %v824_v3 = vsel %vm823_vm12, %v5624_v45, %v820_v27  ;;  %v727_v45 = vpop.xlane.xlu0 %726  ;;  %2104 = vrot.lane.b32.xlu2 %v1946_v22, %s5028_s15 }
  0xdd   : > { %v804_v33 = vsel %vm803_vm6, %v4604_v52, %v800_v19  ;;  %v810_v52 = vmul.f32 %v5620_v39, %v809_v38  ;;  %v951_v15 = vmul.f32 %v824_v3, %v5271_v8  ;;  %v952_v16 = vmul.f32 %v824_v3, %v5274_v9  ;;  %v724_v19 = vpop.xlane.xlu2 %723 }
  0xde   : > { %v947_v34 = vmul.f32 %v804_v33, %v5280_v12  ;;  %v948_v40 = vmul.f32 %v804_v33, %v5283_v13  ;;  %v984_v12 = vmul.f32 %v5650_v26, %v946_v24  ;;  %v829_v24 = vsub.f32 1.5, %v828_v7 }
  0xdf   : > { %v814_v60 = vsel %vm813_vm11, %v5620_v39, %v810_v52  ;;  %v761_v8 = vmul.f32 %v5564_v44, %v724_v19  ;;  %v839_v9 = vsub.f32 1.5, %v838_v18 }
  0xe0   : > { %v985_v48 = vmul.f32 %v5648_v25, %v947_v34  ;;  %v986_v13 = vmul.f32 %v5650_v26, %v948_v40  ;;  %v949_v6 = vmul.f32 %v814_v60, %v5249_v0  ;;  %v950_v39 = vmul.f32 %v814_v60, %v5252_v1  ;;  %v5709_v11 = vpop.eup %4609 }
  0xe1   : > { %v5711_v23 = vpop.eup %4611  ;;  %v989_v0 = vmul.f32 %v5648_v25, %v951_v15  ;;  %v990_v1 = vmul.f32 %v5650_v26, %v952_v16  ;;  %v856_v38 = vmul.f32 %v5709_v11, %v5677_v63  ;;  %v762_v34 = vmul.f32 %v5564_v44, %v727_v45 }
  0xe2   : > { %v5673_v53 = vpack.c.bf16 %v985_v48, %v983_v43  ;;  %v5675_v54 = vpack.c.bf16 %v986_v13, %v984_v12  ;;  %v987_v28 = vmul.f32 %v5648_v25, %v949_v6  ;;  %v988_v33 = vmul.f32 %v5650_v26, %v950_v39  ;;  %v1919_v13 = vld [vmem:[%s5618_s27 + $0x10] sm:$0xff] }
  0xe3   : > { %v846_v40 = vmul.f32 %v5711_v23, %v5686_v57  ;;  %v830_v2 = vmul.f32 %v5653_v35, %v829_v24  ;;  %v5733_v43 = vadd.f32 1e-06, %v761_v8  ;;  %v840_v56 = vmul.f32 %v5662_v42, %v839_v9  ;;  %v1924_v8 = vld [vmem:[%s5618_s27 + $0x38] sm:$0xff] }
  0xe4   : > { %1237 = vmatmul.bf16.vlgmr.msra.gmra.mxu0 %v5673_v53  ;;  %1286 = vmatmul.bf16.vlgmr.msra.gmra.mxu1 %v5675_v54  ;;  %v5729_v5 = vpack.c.bf16 %v989_v0, %v987_v28  ;;  %v5731_v41 = vpack.c.bf16 %v990_v1, %v988_v33  ;;  %v857_v48 = vmul.f32 %v5709_v11, %v856_v38  ;;  %v5737_v12 = vadd.f32 1e-06, %v762_v34 }
  0xe5   : > { %1335 = vmatmul.bf16.vlgmr.msra.gmra.mxu2 %v5673_v53  ;;  %1384 = vmatmul.bf16.vlgmr.msra.gmra.mxu3 %v5675_v54  ;;  %v847_v61 = vmul.f32 %v5711_v23, %v846_v40  ;;  %v834_v52 = vsel %vm833_vm1, %v5653_v35, %v830_v2  ;;  %4613 = vrsqrt.f32 %v5733_v43  ;;  %v844_v27 = vsel %vm843_vm2, %v5662_v42, %v840_v56  ;;  %v733_v6 = vpop.xlane.xlu2 %732 }
  0xe6   : > { %2275 = vrot.lane.b32.xlu2 %v1919_v13, %s5029_s20  ;;  %v858_v55 = vmul.f32 0.5, %v857_v48  ;;  %4615 = vrsqrt.f32 %v5737_v12  ;;  %v953_v17 = vmul.f32 %v834_v52, %v5277_v10  ;;  %v954_v59 = vmul.f32 %v834_v52, %v5286_v14  ;;  %v730_v14 = vpop.xlane.xlu1 %729  ;;  %2285 = vrot.lane.b32.xlu0 %v1924_v8, %s5029_s20 }
  0xe7   : > { %v848_v58 = vmul.f32 0.5, %v847_v61  ;;  %v955_v60 = vmul.f32 %v844_v27, %v5297_v20  ;;  %v956_v35 = vmul.f32 %v844_v27, %v5300_v21  ;;  %vm862_vm4 = vweird.f32 %v5709_v11 }
  0xe8   : > { %v859_v62 = vsub.f32 1.5, %v858_v55  ;;  %v991_v42 = vmul.f32 %v5648_v25, %v953_v17  ;;  %v992_v10 = vmul.f32 %v5650_v26, %v954_v59  ;;  %vm852_vm6 = vweird.f32 %v5711_v23  ;;  %vm863_vm7 = vmor %vm861_vm3, %vm862_vm4 }
  0xe9   : > { %v849_v4 = vsub.f32 1.5, %v848_v58  ;;  %v993_v20 = vmul.f32 %v5648_v25, %v955_v60  ;;  %v994_v21 = vmul.f32 %v5650_v26, %v956_v35  ;;  %v764_v15 = vmul.f32 %v5564_v44, %v733_v6  ;;  %vm853_vm8 = vmor %vm851_vm5, %vm852_vm6 }
  0xea   : > { %v860_v39 = vmul.f32 %v5709_v11, %v859_v62  ;;  %v763_v18 = vmul.f32 %v5564_v44, %v730_v14  ;;  %vm871_vm9 = vweird.f32 %v5733_v43  ;;  %vm881_vm11 = vweird.f32 %v5737_v12  ;;  %v1926_v14 = vld [vmem:[%s5618_s27 + $0x48] sm:$0xff] }
  0xeb   : > { %v5756_v3 = vpop.eup %4613  ;;  %v850_v63 = vmul.f32 %v5711_v23, %v849_v4  ;;  %v5776_v19 = vpack.c.bf16 %v993_v20, %v991_v42  ;;  %v5778_v22 = vpack.c.bf16 %v994_v21, %v992_v10  ;;  %v5781_v24 = vadd.f32 1e-06, %v764_v15  ;;  %2289 = vrot.lane.b32.xlu1 %v1926_v14, %s5029_s20  ;;  %v4383_v14 = vld [vmem:[#allocation8 + $0x28] sm:$0xff] }
  0xec   : > { %v5758_v7 = vpop.eup %4615  ;;  %v866_v16 = vmul.f32 %v5756_v3, %v5733_v43  ;;  %v864_v45 = vsel %vm863_vm7, %v5709_v11, %v860_v39  ;;  %v5788_v1 = vadd.f32 1e-06, %v763_v18  ;;  %v1922_v11 = vld [vmem:[%s5618_s27 + $0x28] sm:$0xff]  ;;  %vm872_vm10 = vweird.f32 %v5756_v3 }
  0xed   : > { %v876_v57 = vmul.f32 %v5758_v7, %v5737_v12  ;;  %v854_v28 = vsel %vm853_vm8, %v5711_v23, %v850_v63  ;;  %v959_v9 = vmul.f32 %v864_v45, %v5311_v29  ;;  %v960_v23 = vmul.f32 %v864_v45, %v5314_v30  ;;  %vm873_vm13 = vmor %vm871_vm9, %vm872_vm10 }
  0xee   : > { %v867_v0 = vmul.f32 %v5756_v3, %v866_v16  ;;  %2281 = vrot.lane.b32.xlu2 %v1922_v11, %s5029_s20  ;;  %v957_v38 = vmul.f32 %v854_v28, %v5317_v31  ;;  %v958_v34 = vmul.f32 %v854_v28, %v5320_v32  ;;  %4617 = vrsqrt.f32 %v5781_v24  ;;  %v739_v51 = vpop.xlane.xlu1 %738  ;;  %v736_v32 = vpop.xlane.xlu0 %735 }
  0xef   : > { %v877_v33 = vmul.f32 %v5758_v7, %v876_v57  ;;  %4619 = vrsqrt.f32 %v5788_v1  ;;  %v997_v29 = vmul.f32 %v5648_v25, %v959_v9  ;;  %v998_v61 = vmul.f32 %v5650_v26, %v960_v23  ;;  %v742_v28 = vpop.xlane.xlu2 %741 }
  0xf0   : > { %v868_v40 = vmul.f32 0.5, %v867_v0  ;;  %v995_v56 = vmul.f32 %v5648_v25, %v957_v38  ;;  %v996_v48 = vmul.f32 %v5650_v26, %v958_v34  ;;  %vm882_vm12 = vweird.f32 %v5758_v7 }
  0xf1   : > { %v878_v2 = vmul.f32 0.5, %v877_v33  ;;  %v766_v58 = vmul.f32 %v5564_v44, %v739_v51  ;;  %v765_v60 = vmul.f32 %v5564_v44, %v736_v32  ;;  %vm883_vm14 = vmor %vm881_vm11, %vm882_vm12  ;;  %vm901_vm15 = vweird.f32 %v5781_v24  ;;  %v4368_v51 = vld [vmem:[#allocation5 + $0x30] sm:$0xff] }
  0xf2   : > { %v869_v13 = vsub.f32 1.5, %v868_v40  ;;  %v5814_v27 = vpack.c.bf16 %v997_v29, %v995_v56  ;;  %v5816_v55 = vpack.c.bf16 %v998_v61, %v996_v48  ;;  %vm891_vm1 = vweird.f32 %v5788_v1  ;;  %v4377_v56 = vld [vmem:[#allocation5 + $0x78] sm:$0xff] }
  0xf3   : > { %v879_v30 = vsub.f32 1.5, %v878_v2  ;;  %v5826_v35 = vadd.f32 1e-06, %v766_v58  ;;  %v5833_v42 = vadd.f32 1e-06, %v765_v60  ;;  %v4385_v61 = vld [vmem:[#allocation8 + $0x38] sm:$0xff]  ;;  %1606 = vmatpush.bf16.msrb.mxu1 %v4377_v56 }
  0xf4   : > { %1242 = vmatmul.bf16.gmra.mxu0 %v5729_v5  ;;  %1291 = vmatmul.bf16.gmra.mxu1 %v5731_v41  ;;  %v5806_v31 = vpop.eup %4617  ;;  %v870_v17 = vmul.f32 %v5756_v3, %v869_v13  ;;  %v4393_v13 = vld [vmem:[#allocation8 + $0x78] sm:$0xff]  ;;  %v4384_v58 = vld [vmem:[#allocation8 + $0x30] sm:$0xff]  ;;  %v4630_v60 = vld [vmem:[%s5246_s23 + $0xa8] sm:$0xff] }
  0xf5   : > { %1340 = vmatmul.bf16.gmra.mxu2 %v5729_v5  ;;  %1389 = vmatmul.bf16.gmra.mxu3 %v5731_v41  ;;  %v5810_v52 = vpop.eup %4619  ;;  %v880_v43 = vmul.f32 %v5758_v7, %v879_v30  ;;  %v896_v59 = vmul.f32 %v5806_v31, %v5781_v24  ;;  %4621 = vrsqrt.f32 %v5826_v35  ;;  %vm902_vm0 = vweird.f32 %v5806_v31  ;;  %v1927_v30 = vld [vmem:[%s5618_s27 + $0x50] sm:$0xff]  ;;  %v1929_v56 = vld [vmem:[%s5618_s27 + $0x60] sm:$0xff] }
  0xf6   : > { %v886_v12 = vmul.f32 %v5810_v52, %v5788_v1  ;;  %v874_v62 = vsel %vm873_vm13, %v5756_v3, %v870_v17  ;;  %4623 = vrsqrt.f32 %v5833_v42  ;;  %vm892_vm2 = vweird.f32 %v5810_v52  ;;  %vm903_vm3 = vmor %vm901_vm15, %vm902_vm0  ;;  %1787 = vmatpush.bf16.msrb.mxu2 %v4385_v61  ;;  %1836 = vmatpush.bf16.msrb.mxu3 %v4393_v13  ;;  %v4392_v17 = vld [vmem:[#allocation8 + $0x70] sm:$0xff] }
  0xf7   : > { %v884_v4 = vsel %vm883_vm14, %v5758_v7, %v880_v43  ;;  %v897_v6 = vmul.f32 %v5806_v31, %v896_v59  ;;  %v961_v3 = vmul.f32 %v874_v62, %v5327_v36  ;;  %v962_v20 = vmul.f32 %v874_v62, %v5330_v37  ;;  %vm893_vm4 = vmor %vm891_vm1, %vm892_vm2  ;;  %v4629_v43 = vld [vmem:[%s5246_s23 + $0xa0] sm:$0xff]  ;;  %2291 = vrot.lane.b32.xlu0 %v1927_v30, %s5029_s20  ;;  %v4631_v61 = vld [vmem:[%s5246_s23 + $0xd0] sm:$0xff] }
  0xf8   : > { %v887_v10 = vmul.f32 %v5810_v52, %v886_v12  ;;  %v963_v7 = vmul.f32 %v884_v4, %v5343_v46  ;;  %v964_v21 = vmul.f32 %v884_v4, %v5346_v47  ;;  %v745_v47 = vpop.xlane.xlu0 %744  ;;  %v767_v24 = vmul.f32 %v5564_v44, %v742_v28  ;;  %v1925_v4 = vld [vmem:[%s5618_s27 + $0x40] sm:$0xff]  ;;  %v4380_v13 = vld [vmem:[#allocation8 + $0x10] sm:$0xff]  ;;  %2295 = vrot.lane.b32.xlu1 %v1929_v56, %s5029_s20 }
  0xf9   : > { %v898_v39 = vmul.f32 0.5, %v897_v6  ;;  %v999_v63 = vmul.f32 %v5648_v25, %v961_v3  ;;  %v1000_v18 = vmul.f32 %v5650_v26, %v962_v20  ;;  %v768_v33 = vmul.f32 %v5564_v44, %v745_v47  ;;  %v4369_v44 = vld [vmem:[#allocation5 + $0x38] sm:$0xff]  ;;  %2287 = vrot.lane.b32.xlu2 %v1925_v4, %s5029_s20  ;;  %v4391_v3 = vld [vmem:[#allocation8 + $0x68] sm:$0xff] }
  0xfa   : > { %v888_v15 = vmul.f32 0.5, %v887_v10  ;;  %v1001_v16 = vmul.f32 %v5648_v25, %v963_v7  ;;  %v1002_v36 = vmul.f32 %v5650_v26, %v964_v21  ;;  %v5876_v2 = vadd.f32 1e-06, %v767_v24  ;;  %1557 = vmatpush.bf16.msrb.mxu0 %v4369_v44  ;;  %1788 = vmatpush.bf16.msrb.mxu2 %v4384_v58  ;;  %v4389_v44 = vld [vmem:[#allocation8 + $0x58] sm:$0xff]  ;;  %v4388_v30 = vld [vmem:[#allocation8 + $0x50] sm:$0xff]  ;;  %v4371_v4 = vld [vmem:[#allocation5 + $0x48] sm:$0xff] }
  0xfb   : > { %v899_v57 = vsub.f32 1.5, %v898_v39  ;;  %v5850_v46 = vpop.eup %4621  ;;  %v5870_v38 = vadd.f32 1e-06, %v768_v33  ;;  %1837 = vmatpush.bf16.msrb.mxu3 %v4392_v17  ;;  %vm921_vm5 = vweird.f32 %v5826_v35  ;;  %vm911_vm7 = vweird.f32 %v5833_v42  ;;  %v4634_v17 = vld [vmem:[%s5246_s23 + $0xc8] sm:$0xff] }
  0xfc   : > { %v889_v45 = vsub.f32 1.5, %v888_v15  ;;  %v5852_v37 = vpop.eup %4623  ;;  %v5858_v0 = vpack.c.bf16 %v1001_v16, %v999_v63  ;;  %v5862_v11 = vpack.c.bf16 %v1002_v36, %v1000_v18  ;;  %v916_v9 = vmul.f32 %v5850_v46, %v5826_v35  ;;  %v4374_v18 = vld [vmem:[#allocation5 + $0x60] sm:$0xff]  ;;  %v4365_v35 = vld [vmem:[#allocation5 + $0x18] sm:$0xff] }
  0xfd   : > { %v900_v8 = vmul.f32 %v5806_v31, %v899_v57  ;;  %v906_v1 = vmul.f32 %v5852_v37, %v5833_v42  ;;  %4625 = vrsqrt.f32 %v5870_v38  ;;  %vm922_vm6 = vweird.f32 %v5850_v46  ;;  %v4366_v57 = vld [vmem:[#allocation5 + $0x20] sm:$0xff] }
  0xfe   : > { %v890_v23 = vmul.f32 %v5810_v52, %v889_v45  ;;  %v917_v40 = vmul.f32 %v5850_v46, %v916_v9  ;;  %4627 = vrsqrt.f32 %v5876_v2  ;;  %1558 = vmatpush.bf16.msrb.mxu0 %v4368_v51  ;;  %vm912_vm8 = vweird.f32 %v5852_v37  ;;  %1789 = vmatpush.bf16.msrb.mxu2 %v4383_v14  ;;  %v4382_v36 = vld [vmem:[#allocation8 + $0x20] sm:$0xff]  ;;  %vm923_vm9 = vmor %vm921_vm5, %vm922_vm6  ;;  %v1928_v51 = vld [vmem:[%s5618_s27 + $0x58] sm:$0xff] }
  0xff   : > { %v904_v34 = vsel %vm903_vm3, %v5806_v31, %v900_v8  ;;  %v907_v48 = vmul.f32 %v5852_v37, %v906_v1  ;;  %v4376_v31 = vld [vmem:[#allocation5 + $0x70] sm:$0xff]  ;;  %1838 = vmatpush.bf16.msrb.mxu3 %v4391_v3  ;;  %v4390_v45 = vld [vmem:[#allocation8 + $0x60] sm:$0xff]  ;;  %vm913_vm10 = vmor %vm911_vm7, %vm912_vm8  ;;  %vm941_vm11 = vweird.f32 %v5870_v38  ;;  %vm931_vm13 = vweird.f32 %v5876_v2 }
 0x100   : > { %v894_v29 = vsel %vm893_vm4, %v5810_v52, %v890_v23  ;;  %v967_v32 = vmul.f32 %v904_v34, %v5349_v49  ;;  %v968_v52 = vmul.f32 %v904_v34, %v5352_v50  ;;  %v918_v62 = vmul.f32 0.5, %v917_v40  ;;  %1607 = vmatpush.bf16.msrb.mxu1 %v4376_v31  ;;  %v4367_v49 = vld [vmem:[#allocation5 + $0x28] sm:$0xff]  ;;  %v4373_v23 = vld [vmem:[#allocation5 + $0x58] sm:$0xff] }
 0x101   : > { %v965_v59 = vmul.f32 %v4629_v43, %v894_v29  ;;  %v966_v12 = vmul.f32 %v4630_v60, %v894_v29  ;;  %v908_v6 = vmul.f32 0.5, %v907_v48  ;;  %v4375_v50 = vld [vmem:[#allocation5 + $0x68] sm:$0xff]  ;;  %v4381_v1 = vld [vmem:[#allocation8 + $0x18] sm:$0xff]  ;;  %v4364_v29 = vld [vmem:[#allocation5 + $0x10] sm:$0xff]  ;;  %2293 = vrot.lane.b32.xlu2 %v1928_v51, %s5029_s20  ;;  %vm1965_vm1 = vcmask 1048064  }
 0x102   : > { %v1005_v10 = vmul.f32 %v5648_v25, %v967_v32  ;;  %v919_v7 = vsub.f32 1.5, %v918_v62  ;;  %v1006_v39 = vmul.f32 %v5650_v26, %v968_v52  ;;  %1559 = vmatpush.bf16.msrb.mxu0 %v4367_v49  ;;  %1790 = vmatpush.bf16.msrb.mxu2 %v4382_v36  ;;  %v4372_v48 = vld [vmem:[#allocation5 + $0x50] sm:$0xff]  ;;  %v4633_v52 = vld [vmem:[%s5246_s23 + $0xc0] sm:$0xff]  ;;  %v4363_v62 = vld [vmem:[#allocation5 + $0x8] sm:$0xff]  ;;  %vm2238_vm2 = vcmask 519168  }
 0x103   : > { %v1003_v20 = vmul.f32 %v5648_v25, %v965_v59  ;;  %v1004_v21 = vmul.f32 %v5650_v26, %v966_v12  ;;  %v5896_v15 = vpop.eup %4625  ;;  %v909_v63 = vsub.f32 1.5, %v908_v6  ;;  %1839 = vmatpush.bf16.msrb.mxu3 %v4390_v45  ;;  %v4632_v31 = vld [vmem:[%s5246_s23 + $0xd8] sm:$0xff]  ;;  %v1930_v12 = vld [vmem:[%s5618_s27 + $0x68] sm:$0xff]  ;;  %vm2607_vm3 = vcmask 1043968  }
 0x104   : > { %1247 = vmatmul.bf16.gmra.mxu0 %v5776_v19  ;;  %1296 = vmatmul.bf16.gmra.mxu1 %v5778_v22  ;;  %v5898_v16 = vpop.eup %4627  ;;  %v920_v28 = vmul.f32 %v5850_v46, %v919_v7  ;;  %v936_v42 = vmul.f32 %v5896_v15, %v5870_v38  ;;  %v4379_v6 = vld [vmem:[#allocation8 + $0x8] sm:$0xff]  ;;  %vm942_vm12 = vweird.f32 %v5896_v15  ;;  %v4378_v36 = vld [vmem:[#allocation8] sm:$0xff] }
 0x105   : > { %1345 = vmatmul.bf16.gmra.mxu2 %v5776_v19  ;;  %1394 = vmatmul.bf16.gmra.mxu3 %v5778_v22  ;;  %v5905_v47 = vpack.c.bf16 %v1005_v10, %v1003_v20  ;;  %v5907_v33 = vpack.c.bf16 %v1006_v39, %v1004_v21  ;;  %v910_v8 = vmul.f32 %v5852_v37, %v909_v63  ;;  %v4387_v49 = vld [vmem:[#allocation8 + $0x48] sm:$0xff]  ;;  %v1932_v21 = vld [vmem:[%s5618_s27 + $0x78] sm:$0xff]  ;;  %vm932_vm14 = vweird.f32 %v5898_v16  ;;  %vm943_vm15 = vmor %vm941_vm11, %vm942_vm12 }
 0x106   : > { %1608 = vmatpush.bf16.msrb.mxu1 %v4375_v50  ;;  %v926_v9 = vmul.f32 %v5898_v16, %v5876_v2  ;;  %1560 = vmatpush.bf16.msrb.mxu0 %v4366_v57  ;;  %v924_v24 = vsel %vm923_vm9, %v5850_v46, %v920_v28  ;;  %v937_v40 = vmul.f32 %v5896_v15, %v936_v42  ;;  %v4362_v57 = vld [vmem:[#allocation5] sm:$0xff]  ;;  %vm933_vm0 = vmor %vm931_vm13, %vm932_vm14 }
 0x107   : > { %v914_v34 = vsel %vm913_vm10, %v5852_v37, %v910_v8  ;;  %v971_v37 = vmul.f32 %v4631_v61, %v924_v24  ;;  %1791 = vmatpush.bf16.msrb.mxu2 %v4381_v1  ;;  %1840 = vmatpush.bf16.msrb.mxu3 %v4389_v44  ;;  %v972_v32 = vmul.f32 %v4632_v31, %v924_v24  ;;  %v4386_v28 = vld [vmem:[#allocation8 + $0x40] sm:$0xff]  ;;  %v1931_v8 = vld [vmem:[%s5618_s27 + $0x70] sm:$0xff]  ;;  %v1063_v61 = vld [vmem:[#allocation2] sm:$0x3]  ;;  %v5991_v31 = vpop.permute.xlu2 %2080 }
 0x108   : > { %v927_v46 = vmul.f32 %v5898_v16, %v926_v9  ;;  %v969_v58 = vmul.f32 %v4633_v52, %v914_v34  ;;  %v970_v43 = vmul.f32 %v4634_v17, %v914_v34  ;;  %v938_v59 = vmul.f32 0.5, %v937_v40  ;;  %2297 = vrot.lane.b32.xlu0 %v1930_v12, %s5029_s20  ;;  %2301 = vrot.lane.b32.xlu1 %v1932_v21, %s5029_s20  ;;  %v4635_v9 = vld [vmem:[%s5246_s23 + $0xf0] sm:$0xff]  ;;  %v4637_v1 = vld [vmem:[%s5246_s23 + $0xe0] sm:$0xff] }
 0x109   : > { %v1009_v10 = vmul.f32 %v5648_v25, %v971_v37  ;;  %v1010_v3 = vmul.f32 %v5650_v26, %v972_v32  ;;  %2299 = vrot.lane.b32.xlu2 %v1931_v8, %s5029_s20  ;;  %v4638_v40 = vld [vmem:[%s5246_s23 + $0xe8] sm:$0xff]  ;;  %v5976_v37 = vperm.slane %v1063_v61, 0  ;;  %v5985_v51 = vperm.slane %v1063_v61, 1  ;;  %8389 = vst [vmem:[#allocation33_spill] sm:$0xff] %v5991_v31 }
 0x10a   : > { %1609 = vmatpush.bf16.msrb.mxu1 %v4374_v18  ;;  %1561 = vmatpush.bf16.msrb.mxu0 %v4365_v35  ;;  %v928_v60 = vmul.f32 0.5, %v927_v46  ;;  %v1007_v50 = vmul.f32 %v5648_v25, %v969_v58  ;;  %v1008_v14 = vmul.f32 %v5650_v26, %v970_v43  ;;  %v939_v7 = vsub.f32 1.5, %v938_v59  ;;  %v4370_v18 = vld [vmem:[#allocation5 + $0x40] sm:$0xff]  ;;  %v4636_v35 = vld [vmem:[%s5246_s23 + $0xf8] sm:$0xff]  ;;  %s6283_s23 = sand.u32 1, %s4993_s22  }
 0x10b   : > { %1792 = vmatpush.bf16.msrb.mxu2 %v4380_v13  ;;  %1841 = vmatpush.bf16.msrb.mxu3 %v4388_v30  ;;  %s4047_s16 = sshll.u32 %s6283_s23, 6  ;;  %s4046_s12 = sshll.u32 %s6283_s23, 7 }
 0x10c   : > { %v929_v20 = vsub.f32 1.5, %v928_v60  ;;  %v5943_v39 = vpack.c.bf16 %v1009_v10, %v1007_v50  ;;  %v5945_v63 = vpack.c.bf16 %v1010_v3, %v1008_v14  ;;  %v940_v45 = vmul.f32 %v5896_v15, %v939_v7  ;;  %v6017_v7 = vpop.permute.xlu1 %2082  ;;  %s6313_s26 = scalar_lea.vmem [#allocation16], %s4047_s16  ;;  %s6903_s28 = scalar_lea.vmem [#allocation13], %s4046_s12 }
 0x10d   : > { %8394 = vst [vmem:[#allocation38_spill] sm:$0xff] %v6017_v7  ;;  %s7736_s21 = scalar_lea.vmem [#allocation14], %s4047_s16  ;;  %s3738_s16 = sshll.u32 %s6903_s28, 4  ;;  %s3739_s16 = int_to_ptr.vmem [resolvable:$true] %s3738_s16 }
 0x10e   : > { %1610 = vmatpush.bf16.msrb.mxu1 %v4373_v23  ;;  %1562 = vmatpush.bf16.msrb.mxu0 %v4364_v29  ;;  %v930_v2 = vmul.f32 %v5898_v16, %v929_v20  ;;  %v944_v38 = vsel %vm943_vm15, %v5896_v15, %v940_v45  ;;  %s3713_s12 = scalar_lea.sflag [#allocation4], %s6283_s23 }
 0x10f   : > { %1793 = vmatpush.bf16.msrb.mxu2 %v4379_v6  ;;  %1842 = vmatpush.bf16.msrb.mxu3 %v4387_v49  ;;  %v975_v24 = vmul.f32 %v4635_v9, %v944_v38  ;;  %v976_v23 = vmul.f32 %v4636_v35, %v944_v38 }
 0x110   : > { %v934_v42 = vsel %vm933_vm0, %v5898_v16, %v930_v2 }
 0x111   : > { %v973_v34 = vmul.f32 %v4637_v1, %v934_v42  ;;  %v974_v46 = vmul.f32 %v4638_v40, %v934_v42  ;;  %v1013_v15 = vmul.f32 %v5648_v25, %v975_v24  ;;  %v1014_v56 = vmul.f32 %v5650_v26, %v976_v23 }
 0x112   : > { %1611 = vmatpush.bf16.msrb.mxu1 %v4372_v48  ;;  %1563 = vmatpush.bf16.msrb.mxu0 %v4363_v62 }
 0x113   : > { %1794 = vmatpush.bf16.msrb.mxu2 %v4378_v36  ;;  %1843 = vmatpush.bf16.msrb.mxu3 %v4386_v28  ;;  %v1011_v44 = vmul.f32 %v5648_v25, %v973_v34  ;;  %v1012_v16 = vmul.f32 %v5650_v26, %v974_v46 }
 0x114   : > { %1252 = vmatmul.bf16.gmra.mxu0 %v5814_v27  ;;  %1301 = vmatmul.bf16.gmra.mxu1 %v5816_v55  ;;  %v6034_v28 = vpop.permute.xlu1 %2088 }
 0x115   : > { %1350 = vmatmul.bf16.gmra.mxu2 %v5814_v27  ;;  %1399 = vmatmul.bf16.gmra.mxu3 %v5816_v55  ;;  %v5968_v29 = vpack.c.bf16 %v1013_v15, %v1011_v44  ;;  %v5970_v48 = vpack.c.bf16 %v1014_v56, %v1012_v16  ;;  %8399 = vst [vmem:[#allocation43_spill] sm:$0xff] %v6034_v28 }
 0x116   : > { %1612 = vmatpush.bf16.msrb.mxu1 %v4371_v4  ;;  %1564 = vmatpush.bf16.msrb.mxu0 %v4362_v57  ;;  %v6000_v4 = vpop.permute.xlu2 %2086  ;;  %v6020_v57 = vpop.permute.xlu0 %2078 }
 0x117   : > { %8391 = vst [vmem:[#allocation35_spill] sm:$0xff] %v6000_v4 }
 0x118   : > { %8395 = vst [vmem:[#allocation39_spill] sm:$0xff] %v6020_v57 }
 0x11a   : > { %1613 = vmatpush.bf16.msrb.mxu1 %v4370_v18 }
 0x11c   : > { %v6056_v46 = vpop.permute.xlu1 %2094 }
 0x11d   : > { %8404 = vst [vmem:[#allocation48_spill] sm:$0xff] %v6056_v46 }
 0x11e   : > { %v6038_v38 = vpop.permute.xlu0 %2084 }
 0x11f   : > { %8400 = vst [vmem:[#allocation44_spill] sm:$0xff] %v6038_v38 }
 0x124   : > { %1257 = vmatmul.bf16.gmra.mxu0 %v5858_v0  ;;  %1306 = vmatmul.bf16.gmra.mxu1 %v5862_v11 }
 0x125   : > { %1355 = vmatmul.bf16.gmra.mxu2 %v5858_v0  ;;  %1404 = vmatmul.bf16.gmra.mxu3 %v5862_v11 }
 0x126   : > { %v6024_v36 = vpop.permute.xlu2 %2092 }
 0x127   : > { %8397 = vst [vmem:[#allocation41_spill] sm:$0xff] %v6024_v36 }
 0x12e   : > { %v6046_v42 = vpop.permute.xlu2 %2098 }
 0x12f   : > { %8401 = vst [vmem:[#allocation45_spill] sm:$0xff] %v6046_v42  ;;  %v6276_v42 = vld [vmem:[#allocation10] ss:$0 sm:$0xff] }
 0x134   : > { %1262 = vmatmul.bf16.gmra.mxu0 %v5905_v47  ;;  %1311 = vmatmul.bf16.gmra.mxu1 %v5907_v33 }
 0x135   : > { %1360 = vmatmul.bf16.gmra.mxu2 %v5905_v47  ;;  %1409 = vmatmul.bf16.gmra.mxu3 %v5907_v33 }
 0x136   : > { %v6068_v61 = vpop.permute.xlu2 %2104 }
 0x137   : > { %8406 = vst [vmem:[#allocation50_spill] sm:$0xff] %v6068_v61 }
 0x144   : > { %1267 = vmatmul.bf16.gmra.mxu0 %v5943_v39  ;;  %1316 = vmatmul.bf16.gmra.mxu1 %v5945_v63 }
 0x145   : > { %1365 = vmatmul.bf16.gmra.mxu2 %v5943_v39  ;;  %1414 = vmatmul.bf16.gmra.mxu3 %v5945_v63 }
 0x154   : > { %1272 = vmatmul.bf16.gmra.mxu0 %v5968_v29  ;;  %1321 = vmatmul.bf16.gmra.mxu1 %v5970_v48 }
 0x155   : > { %1370 = vmatmul.bf16.gmra.mxu2 %v5968_v29  ;;  %1419 = vmatmul.bf16.gmra.mxu3 %v5970_v48 }
 0x161   : > { %v1238_v25 = vpop.f32.mrf.mxu0  ;;  %v1287_v13 = vpop.f32.mrf.mxu1 }
 0x162   : > { %v1239_v30 = vadd.f32 %v1238_v25, %v5976_v37 }
 0x164   : > { %v5979_v26 = vadd.f32 %v1287_v13, %v1239_v30  ;;  %1565 = vmatmul.bf16.vlgmr.msrb.gmra.mxu0 %v5673_v53  ;;  %1614 = vmatmul.bf16.vlgmr.msrb.gmra.mxu1 %v5675_v54 }
 0x165   : > { %1795 = vmatmul.bf16.vlgmr.msrb.gmra.mxu2 %v5673_v53  ;;  %1844 = vmatmul.bf16.vlgmr.msrb.gmra.mxu3 %v5675_v54 }
 0x166   : > { %8388 = vst [vmem:[#allocation32_spill] sm:$0xff] %v5979_v26  ;;  %2351 = vrot.lane.b32.xlu0 %v5979_v26, %s5029_s20  ;;  %1966 = vrot.lane.b32.xlu1 %v5979_v26, %s5029_s20 }
 0x168   : > { %v1336_v32 = vpop.f32.mrf.mxu2  ;;  %v1385_v52 = vpop.f32.mrf.mxu3 }
 0x169   : > { %v1337_v58 = vadd.f32 %v1336_v32, %v5985_v51  ;;  %v1240_v17 = vpop.f32.mrf.mxu0  ;;  %v1289_v43 = vpop.f32.mrf.mxu1 }
 0x16a   : > { %v1241_v10 = vadd.f32 %v1240_v17, %v5976_v37 }
 0x16b   : > { %v5994_v59 = vadd.f32 %v1385_v52, %v1337_v58  ;;  %v6085_v58 = vpop.permute.xlu1 %2100 }
 0x16c   : > { %v6022_v18 = vadd.f32 %v1289_v43, %v1241_v10  ;;  %8410 = vst [vmem:[#allocation54_spill] sm:$0xff] %v6085_v58 }
 0x16d   : > { %8390 = vst [vmem:[#allocation34_spill] sm:$0xff] %v5994_v59  ;;  %2640 = vrot.lane.b32.xlu2 %v5994_v59, %s5029_s20 }
 0x16e   : > { %8396 = vst [vmem:[#allocation40_spill] sm:$0xff] %v6022_v18 }
 0x170   : > { %v1338_v53 = vpop.f32.mrf.mxu2  ;;  %v1387_v54 = vpop.f32.mrf.mxu3 }
 0x171   : > { %v1339_v60 = vadd.f32 %v1338_v53, %v5985_v51  ;;  %v1243_v12 = vpop.f32.mrf.mxu0  ;;  %v1292_v49 = vpop.f32.mrf.mxu1 }
 0x172   : > { %v1244_v62 = vadd.f32 %v1243_v12, %v5976_v37  ;;  %v6092_v12 = vpop.permute.xlu2 %2275 }
 0x173   : > { %v6002_v6 = vadd.f32 %v1387_v54, %v1339_v60  ;;  %8412 = vst [vmem:[#allocation56_spill] sm:$0xff] %v6092_v12  ;;  %v6102_v10 = vpop.permute.xlu1 %2106 }
 0x174   : > { %v6004_v50 = vadd.f32 %v1292_v49, %v1244_v62  ;;  %1570 = vmatmul.bf16.gmra.mxu0 %v5729_v5  ;;  %1619 = vmatmul.bf16.gmra.mxu1 %v5731_v41  ;;  %8414 = vst [vmem:[#allocation58_spill] sm:$0xff] %v6102_v10 }
 0x175   : > { %8392 = vst [vmem:[#allocation36_spill] sm:$0xff] %v6002_v6  ;;  %2896 = vrot.lane.b32.xlu2 %v5994_v59, %s5029_s20  ;;  %2643 = vrot.lane.b32.xlu1 %v6002_v6, %s5029_s20 }
 0x176   : > { %8393 = vst [vmem:[#allocation37_spill] sm:$0xff] %v6004_v50  ;;  %1800 = vmatmul.bf16.gmra.mxu2 %v5729_v5  ;;  %1849 = vmatmul.bf16.gmra.mxu3 %v5731_v41 }
 0x177   : > { %1972 = vrot.lane.b32.xlu0 %v6004_v50, %s5029_s20 }
 0x178   : > { %v1341_v14 = vpop.f32.mrf.mxu2  ;;  %v1390_v3 = vpop.f32.mrf.mxu3 }
 0x179   : > { %v1342_v20 = vadd.f32 %v1341_v14, %v5985_v51  ;;  %v1245_v21 = vpop.f32.mrf.mxu0  ;;  %v1294_v41 = vpop.f32.mrf.mxu1 }
 0x17a   : > { %v1246_v9 = vadd.f32 %v1245_v21, %v5976_v37 }
 0x17b   : > { %v6026_v5 = vadd.f32 %v1390_v3, %v1342_v20  ;;  %v6106_v3 = vpop.permute.xlu2 %2281 }
 0x17c   : > { %v6052_v34 = vadd.f32 %v1294_v41, %v1246_v9  ;;  %8416 = vst [vmem:[#allocation60_spill] sm:$0xff] %v6106_v3  ;;  %v6120_v9 = vpop.permute.xlu1 %2271 }
 0x17d   : > { %8398 = vst [vmem:[#allocation42_spill] sm:$0xff] %v6026_v5  ;;  %1969 = vrot.lane.b32.xlu2 %v6022_v18, %s5029_s20  ;;  %2898 = vrot.lane.b32.xlu1 %v6002_v6, %s5029_s20 }
 0x17e   : > { %8402 = vst [vmem:[#allocation46_spill] sm:$0xff] %v6052_v34 }
 0x17f   : > { %2646 = vrot.lane.b32.xlu0 %v6026_v5, %s5029_s20  ;;  %8417 = vst [vmem:[#allocation61_spill] sm:$0xff] %v6120_v9 }
 0x180   : > { %v1343_v45 = vpop.f32.mrf.mxu2  ;;  %v1392_v2 = vpop.f32.mrf.mxu3 }
 0x181   : > { %v1248_v8 = vpop.f32.mrf.mxu0  ;;  %v1297_v1 = vpop.f32.mrf.mxu1  ;;  %v1344_v44 = vadd.f32 %v1343_v45, %v5985_v51 }
 0x182   : > { %v1249_v24 = vadd.f32 %v1248_v8, %v5976_v37 }
 0x183   : > { %v6071_v13 = vadd.f32 %v1392_v2, %v1344_v44 }
 0x184   : > { %1575 = vmatmul.bf16.gmra.mxu0 %v5776_v19  ;;  %1624 = vmatmul.bf16.gmra.mxu1 %v5778_v22  ;;  %v6054_v40 = vadd.f32 %v1297_v1, %v1249_v24 }
 0x185   : > { %2353 = vrot.lane.b32.xlu2 %v6022_v18, %s5029_s20  ;;  %2355 = vrot.lane.b32.xlu1 %v6004_v50, %s5029_s20  ;;  %8407 = vst [vmem:[#allocation51_spill] sm:$0xff] %v6071_v13 }
 0x186   : > { %1805 = vmatmul.bf16.gmra.mxu2 %v5776_v19  ;;  %1854 = vmatmul.bf16.gmra.mxu3 %v5778_v22  ;;  %8403 = vst [vmem:[#allocation47_spill] sm:$0xff] %v6054_v40  ;;  %v6062_v22 = vpop.permute.xlu0 %2090 }
 0x187   : > { %2900 = vrot.lane.b32.xlu0 %v6026_v5, %s5029_s20  ;;  %8405 = vst [vmem:[#allocation49_spill] sm:$0xff] %v6062_v22 }
 0x188   : > { %v1346_v35 = vpop.f32.mrf.mxu2  ;;  %v1395_v23 = vpop.f32.mrf.mxu3 }
 0x189   : > { %v1250_v19 = vpop.f32.mrf.mxu0  ;;  %v1347_v15 = vadd.f32 %v1346_v35, %v5985_v51  ;;  %v1299_v32 = vpop.f32.mrf.mxu1 }
 0x18a   : > { %v1251_v25 = vadd.f32 %v1250_v19, %v5976_v37 }
 0x18b   : > { %v6073_v30 = vadd.f32 %v1395_v23, %v1347_v15  ;;  %v6126_v23 = vpop.permute.xlu2 %2287 }
 0x18c   : > { %v6077_v52 = vadd.f32 %v1299_v32, %v1251_v25  ;;  %8420 = vst [vmem:[#allocation64_spill] sm:$0xff] %v6126_v23 }
 0x18d   : > { %1975 = vrot.lane.b32.xlu2 %v6052_v34, %s5029_s20  ;;  %1978 = vrot.lane.b32.xlu1 %v6054_v40, %s5029_s20  ;;  %8408 = vst [vmem:[#allocation52_spill] sm:$0xff] %v6073_v30 }
 0x18e   : > { %8409 = vst [vmem:[#allocation53_spill] sm:$0xff] %v6077_v52  ;;  %v6089_v53 = vpop.permute.xlu0 %2096 }
 0x18f   : > { %2357 = vrot.lane.b32.xlu0 %v6052_v34, %s5029_s20  ;;  %8411 = vst [vmem:[#allocation55_spill] sm:$0xff] %v6089_v53 }
 0x190   : > { %v1348_v16 = vpop.f32.mrf.mxu2  ;;  %v1397_v56 = vpop.f32.mrf.mxu3 }
 0x191   : > { %v1349_v54 = vadd.f32 %v1348_v16, %v5985_v51  ;;  %v1253_v60 = vpop.f32.mrf.mxu0 }
 0x192   : > { %v1254_v21 = vadd.f32 %v1253_v60, %v5976_v37 }
 0x193   : > { %v6094_v62 = vadd.f32 %v1397_v56, %v1349_v54  ;;  %v6139_v56 = vpop.permute.xlu1 %2277  ;;  %v6145_v54 = vpop.permute.xlu2 %2293 }
 0x194   : > { %1580 = vmatmul.bf16.gmra.mxu0 %v5814_v27  ;;  %1629 = vmatmul.bf16.gmra.mxu1 %v5816_v55  ;;  %8422 = vst [vmem:[#allocation66_spill] sm:$0xff] %v6139_v56 }
 0x195   : > { %2649 = vrot.lane.b32.xlu2 %v6071_v13, %s5029_s20  ;;  %2652 = vrot.lane.b32.xlu1 %v6073_v30, %s5029_s20  ;;  %8413 = vst [vmem:[#allocation57_spill] sm:$0xff] %v6094_v62 }
 0x196   : > { %1810 = vmatmul.bf16.gmra.mxu2 %v5814_v27  ;;  %1859 = vmatmul.bf16.gmra.mxu3 %v5816_v55  ;;  %v1302_v27 = vpop.f32.mrf.mxu1  ;;  %v6104_v14 = vpop.permute.xlu0 %2102  ;;  %8424 = vst [vmem:[#allocation68_spill] sm:$0xff] %v6145_v54 }
 0x197   : > { %1981 = vrot.lane.b32.xlu0 %v6077_v52, %s5029_s20  ;;  %8415 = vst [vmem:[#allocation59_spill] sm:$0xff] %v6104_v14  ;;  %v6122_v24 = vadd.f32 %v1302_v27, %v1254_v21 }
 0x198   : > { %v1351_v17 = vpop.f32.mrf.mxu2  ;;  %v1400_v43 = vpop.f32.mrf.mxu3 }
 0x199   : > { %v1255_v20 = vpop.f32.mrf.mxu0  ;;  %8418 = vst [vmem:[#allocation62_spill] sm:$0xff] %v6122_v24 }
 0x19a   : > { %v1256_v41 = vadd.f32 %v1255_v20, %v5976_v37 }
 0x19b   : > { %v6162_v21 = vpop.permute.xlu1 %2283 }
 0x19c   : > { %8426 = vst [vmem:[#allocation70_spill] sm:$0xff] %v6162_v21 }
 0x19d   : > { %2902 = vrot.lane.b32.xlu2 %v6071_v13, %s5029_s20  ;;  %2904 = vrot.lane.b32.xlu1 %v6073_v30, %s5029_s20 }
 0x19e   : > { %v1304_v8 = vpop.f32.mrf.mxu1 }
 0x19f   : > { %2655 = vrot.lane.b32.xlu0 %v6094_v62, %s5029_s20  ;;  %v6124_v35 = vadd.f32 %v1304_v8, %v1256_v41 }
 0x1a0   : > { %v1353_v55 = vpop.f32.mrf.mxu2  ;;  %v1402_v49 = vpop.f32.mrf.mxu3 }
 0x1a1   : > { %8419 = vst [vmem:[#allocation63_spill] sm:$0xff] %v6124_v35  ;;  %v1354_v1 = vadd.f32 %v1353_v55, %v5985_v51  ;;  %v1258_v19 = vpop.f32.mrf.mxu0 }
 0x1a2   : > { %v1259_v16 = vadd.f32 %v1258_v19, %v5976_v37 }
 0x1a3   : > { %v6143_v32 = vadd.f32 %v1402_v49, %v1354_v1  ;;  %v6176_v1 = vpop.permute.xlu1 %2289 }
 0x1a4   : > { %1585 = vmatmul.bf16.gmra.mxu0 %v5858_v0  ;;  %1634 = vmatmul.bf16.gmra.mxu1 %v5862_v11  ;;  %8429 = vst [vmem:[#allocation73_spill] sm:$0xff] %v6176_v1 }
 0x1a5   : > { %2359 = vrot.lane.b32.xlu2 %v6054_v40, %s5029_s20  ;;  %2361 = vrot.lane.b32.xlu1 %v6077_v52, %s5029_s20 }
 0x1a6   : > { %1815 = vmatmul.bf16.gmra.mxu2 %v5858_v0  ;;  %1864 = vmatmul.bf16.gmra.mxu3 %v5862_v11  ;;  %v6128_v0 = vpop.permute.xlu0 %2108  ;;  %v1352_v11 = vadd.f32 %v1351_v17, %v5985_v51  ;;  %v1307_v60 = vpop.f32.mrf.mxu1 }
 0x1a7   : > { %2906 = vrot.lane.b32.xlu0 %v6094_v62, %s5029_s20  ;;  %8421 = vst [vmem:[#allocation65_spill] sm:$0xff] %v6128_v0  ;;  %v6149_v17 = vadd.f32 %v1307_v60, %v1259_v16 }
 0x1a8   : > { %v1356_v45 = vpop.f32.mrf.mxu2  ;;  %v1405_v2 = vpop.f32.mrf.mxu3  ;;  %v6141_v25 = vadd.f32 %v1400_v43, %v1352_v11 }
 0x1a9   : > { %v1357_v49 = vadd.f32 %v1356_v45, %v5985_v51  ;;  %v1260_v20 = vpop.f32.mrf.mxu0 }
 0x1aa   : > { %8423 = vst [vmem:[#allocation67_spill] sm:$0xff] %v6141_v25  ;;  %v1261_v16 = vadd.f32 %v1260_v20, %v5976_v37 }
 0x1ab   : > { %v6164_v41 = vadd.f32 %v1405_v2, %v1357_v49 }
 0x1ad   : > { %1987 = vrot.lane.b32.xlu1 %v6124_v35, %s5029_s20  ;;  %1984 = vrot.lane.b32.xlu2 %v6122_v24, %s5029_s20 }
 0x1ae   : > { %v6157_v43 = vpop.permute.xlu0 %2273  ;;  %v1309_v8 = vpop.f32.mrf.mxu1 }
 0x1af   : > { %2363 = vrot.lane.b32.xlu0 %v6122_v24, %s5029_s20  ;;  %8425 = vst [vmem:[#allocation69_spill] sm:$0xff] %v6157_v43  ;;  %v6198_v1 = vadd.f32 %v1309_v8, %v1261_v16 }
 0x1b0   : > { %v1358_v44 = vpop.f32.mrf.mxu2  ;;  %v1407_v15 = vpop.f32.mrf.mxu3 }
 0x1b1   : > { %v1263_v2 = vpop.f32.mrf.mxu0 }
 0x1b2   : > { %v1264_v60 = vadd.f32 %v1263_v2, %v5976_v37  ;;  %v1359_v2 = vadd.f32 %v1358_v44, %v5985_v51 }
 0x1b4   : > { %1590 = vmatmul.bf16.gmra.mxu0 %v5905_v47  ;;  %1639 = vmatmul.bf16.gmra.mxu1 %v5907_v33 }
 0x1b5   : > { %2661 = vrot.lane.b32.xlu1 %v6143_v32, %s5029_s20  ;;  %2658 = vrot.lane.b32.xlu2 %v6141_v25, %s5029_s20 }
 0x1b6   : > { %1820 = vmatmul.bf16.gmra.mxu2 %v5905_v47  ;;  %1869 = vmatmul.bf16.gmra.mxu3 %v5907_v33  ;;  %v6170_v47 = vpop.permute.xlu2 %2299  ;;  %v6172_v33 = vpop.permute.xlu0 %2279 }
 0x1b7   : > { %1990 = vrot.lane.b32.xlu0 %v6149_v17, %s5029_s20  ;;  %8427 = vst [vmem:[#allocation71_spill] sm:$0xff] %v6170_v47  ;;  %v1312_v23 = vpop.f32.mrf.mxu1 }
 0x1b8   : > { %v1361_v27 = vpop.f32.mrf.mxu2  ;;  %v1410_v55 = vpop.f32.mrf.mxu3  ;;  %8428 = vst [vmem:[#allocation72_spill] sm:$0xff] %v6172_v33 }
 0x1b9   : > { %v1265_v20 = vpop.f32.mrf.mxu0  ;;  %v1362_v21 = vadd.f32 %v1361_v27, %v5985_v51 }
 0x1ba   : > { %v1266_v16 = vadd.f32 %v1265_v20, %v5976_v37 }
 0x1bd   : > { %2910 = vrot.lane.b32.xlu1 %v6143_v32, %s5029_s20  ;;  %2908 = vrot.lane.b32.xlu2 %v6141_v25, %s5029_s20 }
 0x1be   : > { %v6186_v19 = vpop.permute.xlu0 %2285 }
 0x1bf   : > { %2664 = vrot.lane.b32.xlu0 %v6164_v41, %s5029_s20  ;;  %8430 = vst [vmem:[#allocation74_spill] sm:$0xff] %v6186_v19  ;;  %v1314_v56 = vpop.f32.mrf.mxu1 }
 0x1c0   : > { %v1363_v45 = vpop.f32.mrf.mxu2  ;;  %v1412_v11 = vpop.f32.mrf.mxu3  ;;  %v6223_v44 = vadd.f32 %v1314_v56, %v1266_v16 }
 0x1c1   : > { %v1364_v20 = vadd.f32 %v1363_v45, %v5985_v51 }
 0x1c2   : > { %8436 = vst [vmem:[#allocation80_spill] sm:$0xff] %v6223_v44 }
 0x1c3   : > { %v6240_v16 = vadd.f32 %v1412_v11, %v1364_v20 }
 0x1c4   : > { %1595 = vmatmul.bf16.gmra.mxu0 %v5943_v39  ;;  %1644 = vmatmul.bf16.gmra.mxu1 %v5945_v63 }
 0x1c5   : > { %2365 = vrot.lane.b32.xlu2 %v6124_v35, %s5029_s20  ;;  %2367 = vrot.lane.b32.xlu1 %v6149_v17, %s5029_s20  ;;  %8439 = vst [vmem:[#allocation83_spill] sm:$0xff] %v6240_v16 }
 0x1c6   : > { %1825 = vmatmul.bf16.gmra.mxu2 %v5943_v39  ;;  %1874 = vmatmul.bf16.gmra.mxu3 %v5945_v63  ;;  %v6200_v39 = vadd.f32 %v1312_v23, %v1264_v60  ;;  %v6202_v63 = vpop.permute.xlu1 %2295  ;;  %v6210_v19 = vpop.permute.xlu0 %2291  ;;  %v6217_v60 = vadd.f32 %v1407_v15, %v1359_v2 }
 0x1c7   : > { %v6190_v49 = vpop.permute.xlu2 %2640  ;;  %2912 = vrot.lane.b32.xlu0 %v6164_v41, %s5029_s20  ;;  %8432 = vst [vmem:[#allocation76_spill] sm:$0xff] %v6202_v63  ;;  %v6219_v63 = vadd.f32 %v1410_v55, %v1362_v21  ;;  %v1268_v2 = vpop.f32.mrf.mxu0 }
 0x1c8   : > { %v6194_v47 = vpop.f32.mrf.mxu2  ;;  %v6196_v54 = vpop.f32.mrf.mxu3  ;;  %8431 = vst [vmem:[#allocation75_spill] sm:$0xff] %v6200_v39 }
 0x1c9   : > { %8433 = vst [vmem:[#allocation77_spill] sm:$0xff] %v6210_v19  ;;  %v1269_v19 = vadd.f32 %v1268_v2, %v5976_v37 }
 0x1ca   : > { %8435 = vst [vmem:[#allocation79_spill] sm:$0xff] %v6219_v63 }
 0x1cd   : > { %1993 = vrot.lane.b32.xlu2 %v6198_v1, %s5029_s20  ;;  %1996 = vrot.lane.b32.xlu1 %v6200_v39, %s5029_s20 }
 0x1ce   : > { %v6225_v27 = vpop.permute.xlu1 %2301  ;;  %v6233_v15 = vpop.permute.xlu0 %2297 }
 0x1cf   : > { %v6212_v3 = vpop.permute.xlu2 %2896  ;;  %2369 = vrot.lane.b32.xlu0 %v6198_v1, %s5029_s20  ;;  %8437 = vst [vmem:[#allocation81_spill] sm:$0xff] %v6225_v27  ;;  %v1270_v20 = vpop.f32.mrf.mxu0 }
 0x1d0   : > { %8434 = vst [vmem:[#allocation78_spill] sm:$0xff] %v6212_v3  ;;  %v1368_v23 = vpop.f32.mrf.mxu2  ;;  %v1417_v8 = vpop.f32.mrf.mxu3  ;;  %v1271_v33 = vadd.f32 %v1270_v20, %v5976_v37  ;;  %v1367_v20 = vadd.f32 %v6194_v47, %v5985_v51 }
 0x1d1   : > { %8438 = vst [vmem:[#allocation82_spill] sm:$0xff] %v6233_v15 }
 0x1d4   : > { %1600 = vmatmul.bf16.gmra.mxu0 %v5968_v29  ;;  %1649 = vmatmul.bf16.gmra.mxu1 %v5970_v48 }
 0x1d5   : > { %2667 = vrot.lane.b32.xlu2 %v6217_v60, %s5029_s20  ;;  %2670 = vrot.lane.b32.xlu1 %v6219_v63, %s5029_s20 }
 0x1d6   : > { %1830 = vmatmul.bf16.gmra.mxu2 %v5968_v29  ;;  %1879 = vmatmul.bf16.gmra.mxu3 %v5970_v48  ;;  %v1317_v29 = vpop.f32.mrf.mxu1 }
 0x1d7   : > { %v6235_v55 = vpop.permute.xlu2 %1969  ;;  %1999 = vrot.lane.b32.xlu0 %v6223_v44, %s5029_s20  ;;  %v6272_v14 = vadd.f32 %v1317_v29, %v1269_v19  ;;  %v1273_v2 = vpop.f32.mrf.mxu0  ;;  %v1369_v19 = vadd.f32 %v1368_v23, %v5985_v51  ;;  %v6301_v23 = vadd.f32 %v6196_v54, %v1367_v20 }
 0x1d8   : > { %v1371_v56 = vpop.f32.mrf.mxu2  ;;  %v1420_v21 = vpop.f32.mrf.mxu3  ;;  %v1274_v36 = vadd.f32 %v1273_v2, %v5976_v37 }
 0x1d9   : > { %v6246_v48 = vpop.permute.xlu1 %1966  ;;  %v6256_v11 = vpop.permute.xlu0 %2351  ;;  %8442 = vst [vmem:[#allocation86_spill] sm:$0xff] %v6272_v14 }
 0x1da   : > { %8441 = vst [vmem:[#allocation85_spill] sm:$0xff] %v6256_v11 }
 0x1db   : > { %8445 = vst [vmem:[#allocation89_spill] sm:$0xff] %v6301_v23 }
 0x1dd   : > { %2914 = vrot.lane.b32.xlu2 %v6217_v60, %s5029_s20  ;;  %2916 = vrot.lane.b32.xlu1 %v6219_v63, %s5029_s20 }
 0x1de   : > { %v1319_v61 = vpop.f32.mrf.mxu1 }
 0x1df   : > { %v6248_v27 = vpop.permute.xlu2 %2353  ;;  %2673 = vrot.lane.b32.xlu0 %v6240_v16, %s5029_s20  ;;  %v6274_v58 = vadd.f32 %v1319_v61, %v1271_v33 }
 0x1e0   : > { %8440 = vst [vmem:[#allocation84_spill] sm:$0xff] %v6248_v27  ;;  %v6252_v15 = vpop.f32.mrf.mxu2  ;;  %v6254_v45 = vpop.f32.mrf.mxu3 }
 0x1e1   : > { %8443 = vst [vmem:[#allocation87_spill] sm:$0xff] %v6274_v58 }
 0x1e5   : > { %2371 = vrot.lane.b32.xlu2 %v6200_v39, %s5029_s20  ;;  %2373 = vrot.lane.b32.xlu1 %v6223_v44, %s5029_s20 }
 0x1e6   : > { %v1322_v38 = vpop.f32.mrf.mxu1 }
 0x1e7   : > { %v6264_v12 = vpop.permute.xlu2 %1975  ;;  %v6266_v9 = vpop.permute.xlu1 %2643  ;;  %2918 = vrot.lane.b32.xlu0 %v6240_v16, %s5029_s20  ;;  %v6305_v7 = vadd.f32 %v1322_v38, %v1274_v36 }
 0x1e8   : > { %v1796_v43 = vpop.f32.mrf.mxu2  ;;  %v1845_v0 = vpop.f32.mrf.mxu3 }
 0x1e9   : > { %v6270_v10 = vpop.permute.xlu0 %1972  ;;  %v1797_v61 = vadd.f32 %v6276_v42, %v1796_v43  ;;  %v6303_v43 = vadd.f32 %v1417_v8, %v1369_v19  ;;  %8447 = vst [vmem:[#allocation91_spill] sm:$0xff] %v6305_v7 }
 0x1eb   : > { %8446 = vst [vmem:[#allocation90_spill] sm:$0xff] %v6303_v43  ;;  %v1846_v28 = vadd.f32 %v1845_v0, %v1797_v61  ;;  %v1275_v61 = vpop.f32.mrf.mxu0 }
 0x1ed   : > { %2005 = vrot.lane.b32.xlu1 %v6274_v58, %s5029_s20  ;;  %2002 = vrot.lane.b32.xlu2 %v6272_v14, %s5029_s20 }
 0x1ef   : > { %v6289_v33 = vpop.permute.xlu2 %2649  ;;  %v6291_v29 = vpop.permute.xlu1 %2898  ;;  %2375 = vrot.lane.b32.xlu0 %v6272_v14, %s5029_s20 }
 0x1f0   : > { %8444 = vst [vmem:[#allocation88_spill] sm:$0xff] %v6291_v29  ;;  %v1798_v53 = vpop.f32.mrf.mxu2  ;;  %v1847_v46 = vpop.f32.mrf.mxu3 }
 0x1f1   : > { %v1799_v22 = vadd.f32 %v6276_v42, %v1798_v53  ;;  %v6298_v47 = vpop.permute.xlu0 %2646 }
 0x1f3   : > { %v1848_v4 = vadd.f32 %v1847_v46, %v1799_v22 }
 0x1f5   : > { %v4398_v31 = vpack.c.bf16 %v1848_v4, %v1846_v28  ;;  %2679 = vrot.lane.b32.xlu1 %v6303_v43, %s5029_s20  ;;  %2676 = vrot.lane.b32.xlu2 %v6301_v23, %s5029_s20  ;;  %v1372_v4 = vadd.f32 %v1371_v56, %v5985_v51 }
 0x1f7   : > { %4399 = vst [vmem:[%s6313_s26] sm:$0xff] %v4398_v31   ;;  %v6316_v53 = vpop.permute.xlu2 %2902  ;;  %v6318_v54 = vpop.permute.xlu1 %2355  ;;  %2008 = vrot.lane.b32.xlu0 %v6305_v7, %s5029_s20  ;;  %v6325_v46 = vadd.f32 %v1420_v21, %v1372_v4 }
 0x1f8   : > { %8448 = vst [vmem:[#allocation92_spill] sm:$0xff] %v6316_v53 }
 0x1f9   : > { %8449 = vst [vmem:[#allocation93_spill] sm:$0xff] %v6318_v54  ;;  %v1801_v36 = vpop.f32.mrf.mxu2  ;;  %v1850_v28 = vpop.f32.mrf.mxu3 }
 0x1fa   : > { %v6323_v38 = vpop.permute.xlu0 %2900  ;;  %8451 = vst [vmem:[#allocation95_spill] sm:$0xff] %v6325_v46  ;;  %v1802_v0 = vadd.f32 %v6276_v42, %v1801_v36  ;;  %v1276_v36 = vadd.f32 %v1275_v61, %v5976_v37 }
 0x1fb   : > { %8450 = vst [vmem:[#allocation94_spill] sm:$0xff] %v6323_v38 }
 0x1fc   : > { %v1851_v20 = vadd.f32 %v1850_v28, %v1802_v0 }
 0x1fd   : > { %2922 = vrot.lane.b32.xlu1 %v6303_v43, %s5029_s20  ;;  %2920 = vrot.lane.b32.xlu2 %v6301_v23, %s5029_s20 }
 0x1ff   : > { %v6331_v31 = vpop.permute.xlu2 %2359  ;;  %v6333_v22 = vpop.permute.xlu1 %1978  ;;  %2682 = vrot.lane.b32.xlu0 %v6325_v46, %s5029_s20 }
 0x200   : > { %8452 = vst [vmem:[#allocation96_spill] sm:$0xff] %v6331_v31 }
 0x201   : > { %v1803_v8 = vpop.f32.mrf.mxu2  ;;  %v1852_v56 = vpop.f32.mrf.mxu3 }
 0x202   : > { %v1804_v21 = vadd.f32 %v6276_v42, %v1803_v8  ;;  %v6339_v2 = vpop.permute.xlu0 %2357 }
 0x203   : > { %8453 = vst [vmem:[#allocation97_spill] sm:$0xff] %v6339_v2 }
 0x204   : > { %v1853_v19 = vadd.f32 %v1852_v56, %v1804_v21  ;;  %v1324_v56 = vpop.f32.mrf.mxu1  ;;  %v1968_v21 = vsel %vm1965_vm1, %v6246_v48, %v5979_v26 }
 0x205   : > { %2377 = vrot.lane.b32.xlu2 %v6274_v58, %s5029_s20  ;;  %2379 = vrot.lane.b32.xlu1 %v6305_v7, %s5029_s20  ;;  %v1971_v7 = vsel %vm1965_vm1, %v6235_v55, %v6022_v18  ;;  %v2642_v55 = vsel %vm1965_vm1, %v6190_v49, %v5994_v59 }
 0x206   : > { %v4403_v4 = vpack.c.bf16 %v1853_v19, %v1851_v20  ;;  %v6358_v20 = vadd.f32 %v1324_v56, %v1276_v36 }
 0x207   : > { %v6345_v57 = vpop.permute.xlu1 %2652  ;;  %v6347_v43 = vpop.permute.xlu2 %1984  ;;  %2924 = vrot.lane.b32.xlu0 %v6325_v46, %s5029_s20 }
 0x208   : > { %4435 = vst [vmem:[%s6313_s26 + $0x8] sm:$0xff] %v4403_v4  }
 0x209   : > { %v1806_v28 = vpop.f32.mrf.mxu2  ;;  %v1855_v0 = vpop.f32.mrf.mxu3  ;;  %8454 = vst [vmem:[#allocation98_spill] sm:$0xff] %v6358_v20 }
 0x20a   : > { %v6353_v8 = vpop.permute.xlu0 %1981  ;;  %v1807_v61 = vadd.f32 %v6276_v42, %v1806_v28  ;;  %v1374_v28 = vadd.f32 %v6252_v15, %v5985_v51 }
 0x20c   : > { %v1856_v56 = vadd.f32 %v1855_v0, %v1807_v61 }
 0x20d   : > { %2014 = vrot.lane.b32.xlu1 %v1968_v21, %s5029_s20  ;;  %2399 = vrot.lane.b32.xlu2 %v6256_v11, %s5029_s20 }
 0x20f   : > { %v6363_v19 = vpop.permute.xlu1 %2904  ;;  %v6365_v37 = vpop.permute.xlu2 %2658  ;;  %2381 = vrot.lane.b32.xlu0 %v6358_v20, %s5029_s20 }
 0x210   : > { %8455 = vst [vmem:[#allocation99_spill] sm:$0xff] %v6363_v19 }
 0x211   : > { %v1808_v4 = vpop.f32.mrf.mxu2  ;;  %v1857_v46 = vpop.f32.mrf.mxu3 }
 0x212   : > { %v1809_v48 = vadd.f32 %v6276_v42, %v1808_v4  ;;  %v6371_v36 = vpop.permute.xlu0 %2655 }
 0x214   : > { %v1858_v21 = vadd.f32 %v1857_v46, %v1809_v48  ;;  %v6391_v48 = vadd.f32 %v6254_v45, %v1374_v28 }
 0x215   : > { %2944 = vrot.lane.b32.xlu1 %v6212_v3, %s5029_s20  ;;  %2011 = vrot.lane.b32.xlu2 %v6358_v20, %s5029_s20 }
 0x216   : > { %v4408_v26 = vpack.c.bf16 %v1858_v21, %v1856_v56  ;;  %8459 = vst [vmem:[#allocation103_spill] sm:$0xff] %v6391_v48 }
 0x217   : > { %v6382_v11 = vpop.permute.xlu1 %2361  ;;  %v6384_v4 = vpop.permute.xlu2 %2908  ;;  %2016 = vrot.lane.b32.xlu0 %v1971_v7, %s5029_s20 }
 0x218   : > { %8456 = vst [vmem:[#allocation100_spill] sm:$0xff] %v6382_v11 }
 0x219   : > { %8457 = vst [vmem:[#allocation101_spill] sm:$0xff] %v6384_v4  ;;  %v1811_v46 = vpop.f32.mrf.mxu2  ;;  %v1860_v0 = vpop.f32.mrf.mxu3 }
 0x21a   : > { %4436 = vst [vmem:[%s6313_s26 + $0x10] sm:$0xff] %v4408_v26   ;;  %v6388_v61 = vpop.permute.xlu0 %2906  ;;  %v1812_v26 = vadd.f32 %v6276_v42, %v1811_v46 }
 0x21b   : > { %8458 = vst [vmem:[#allocation102_spill] sm:$0xff] %v6388_v61 }
 0x21c   : > { %v1861_v21 = vadd.f32 %v1860_v0, %v1812_v26 }
 0x21d   : > { %2688 = vrot.lane.b32.xlu1 %v2642_v55, %s5029_s20  ;;  %2685 = vrot.lane.b32.xlu2 %v6391_v48, %s5029_s20 }
 0x21f   : > { %v6399_v51 = vpop.permute.xlu1 %1987  ;;  %v6401_v7 = vpop.permute.xlu2 %2365  ;;  %2947 = vrot.lane.b32.xlu0 %v6291_v29, %s5029_s20  ;;  %v2645_v29 = vsel %vm1965_vm1, %v6266_v9, %v6002_v6  ;;  %v1980_v6 = vsel %vm1965_vm1, %v6333_v22, %v6054_v40 }
 0x220   : > { %8460 = vst [vmem:[#allocation104_spill] sm:$0xff] %v6401_v7 }
 0x221   : > { %v1813_v15 = vpop.f32.mrf.mxu2  ;;  %v1862_v45 = vpop.f32.mrf.mxu3 }
 0x222   : > { %v1814_v56 = vadd.f32 %v6276_v42, %v1813_v15  ;;  %v6407_v49 = vpop.permute.xlu0 %2363 }
 0x223   : > { %8461 = vst [vmem:[#allocation105_spill] sm:$0xff] %v6407_v49 }
 0x224   : > { %v1863_v28 = vadd.f32 %v1862_v45, %v1814_v56  ;;  %v1977_v45 = vsel %vm1965_vm1, %v6264_v12, %v6052_v34  ;;  %v1974_v56 = vsel %vm1965_vm1, %v6270_v10, %v6004_v50 }
 0x225   : > { %2402 = vrot.lane.b32.xlu1 %v6248_v27, %s5029_s20  ;;  %2926 = vrot.lane.b32.xlu2 %v6391_v48, %s5029_s20 }
 0x226   : > { %v4413_v55 = vpack.c.bf16 %v1863_v28, %v1861_v21 }
 0x227   : > { %v6416_v46 = vpop.permute.xlu1 %2661  ;;  %v6418_v59 = vpop.permute.xlu2 %1993  ;;  %2690 = vrot.lane.b32.xlu0 %v2645_v29, %s5029_s20 }
 0x228   : > { %4437 = vst [vmem:[%s6313_s26 + $0x18] sm:$0xff] %v4413_v55  }
 0x229   : > { %v1816_v0 = vpop.f32.mrf.mxu2  ;;  %v1865_v26 = vpop.f32.mrf.mxu3 }
 0x22a   : > { %v6422_v15 = vpop.permute.xlu0 %1990  ;;  %v1817_v21 = vadd.f32 %v6276_v42, %v1816_v0 }
 0x22c   : > { %v1866_v10 = vadd.f32 %v1865_v26, %v1817_v21 }
 0x22d   : > { %2020 = vrot.lane.b32.xlu1 %v1977_v45, %s5029_s20  ;;  %2018 = vrot.lane.b32.xlu2 %v1974_v56, %s5029_s20 }
 0x22f   : > { %v6432_v9 = vpop.permute.xlu1 %2910  ;;  %v6434_v29 = vpop.permute.xlu2 %2667  ;;  %2405 = vrot.lane.b32.xlu0 %v6318_v54, %s5029_s20 }
 0x231   : > { %v1818_v28 = vpop.f32.mrf.mxu2  ;;  %v1867_v12 = vpop.f32.mrf.mxu3 }
 0x232   : > { %v1819_v55 = vadd.f32 %v6276_v42, %v1818_v28  ;;  %v6440_v34 = vpop.permute.xlu0 %2664 }
 0x234   : > { %v1868_v45 = vadd.f32 %v1867_v12, %v1819_v55  ;;  %v2651_v12 = vsel %vm1965_vm1, %v6289_v33, %v6071_v13  ;;  %v2648_v55 = vsel %vm1965_vm1, %v6298_v47, %v6026_v5 }
 0x235   : > { %2953 = vrot.lane.b32.xlu1 %v6316_v53, %s5029_s20  ;;  %2950 = vrot.lane.b32.xlu2 %v6323_v38, %s5029_s20 }
 0x236   : > { %v4418_v56 = vpack.c.bf16 %v1868_v45, %v1866_v10 }
 0x237   : > { %v6449_v0 = vpop.permute.xlu2 %2914  ;;  %v6451_v54 = vpop.permute.xlu1 %2367  ;;  %2022 = vrot.lane.b32.xlu0 %v1980_v6, %s5029_s20 }
 0x238   : > { %8462 = vst [vmem:[#allocation106_spill] sm:$0xff] %v6449_v0 }
 0x239   : > { %4438 = vst [vmem:[%s6313_s26 + $0x20] sm:$0xff] %v4418_v56   ;;  %v1821_v26 = vpop.f32.mrf.mxu2  ;;  %v1870_v21 = vpop.f32.mrf.mxu3 }
 0x23a   : > { %v6455_v28 = vpop.permute.xlu0 %2912  ;;  %v1822_v10 = vadd.f32 %v6276_v42, %v1821_v26 }
 0x23b   : > { %8463 = vst [vmem:[#allocation107_spill] sm:$0xff] %v6455_v28 }
 0x23c   : > { %v1871_v47 = vadd.f32 %v1870_v21, %v1822_v10 }
 0x23d   : > { %2694 = vrot.lane.b32.xlu1 %v2651_v12, %s5029_s20  ;;  %2692 = vrot.lane.b32.xlu2 %v2648_v55, %s5029_s20 }
 0x23f   : > { %v6465_v22 = vpop.permute.xlu2 %2371  ;;  %v6467_v6 = vpop.permute.xlu1 %1996  ;;  %2956 = vrot.lane.b32.xlu0 %v6363_v19, %s5029_s20  ;;  %v2654_v19 = vsel %vm1965_vm1, %v6345_v57, %v6073_v30  ;;  %v1989_v30 = vsel %vm1965_vm1, %v6399_v51, %v6124_v35 }
 0x240   : > { %8464 = vst [vmem:[#allocation108_spill] sm:$0xff] %v6465_v22 }
 0x241   : > { %v1823_v45 = vpop.f32.mrf.mxu2  ;;  %v1872_v33 = vpop.f32.mrf.mxu3 }
 0x242   : > { %v1824_v56 = vadd.f32 %v6276_v42, %v1823_v45  ;;  %v6473_v40 = vpop.permute.xlu0 %2369 }
 0x243   : > { %8465 = vst [vmem:[#allocation109_spill] sm:$0xff] %v6473_v40 }
 0x244   : > { %v1873_v12 = vadd.f32 %v1872_v33, %v1824_v56  ;;  %v1986_v33 = vsel %vm1965_vm1, %v6347_v43, %v6122_v24  ;;  %v1983_v56 = vsel %vm1965_vm1, %v6353_v8, %v6077_v52 }
 0x245   : > { %2411 = vrot.lane.b32.xlu1 %v6331_v31, %s5029_s20  ;;  %2408 = vrot.lane.b32.xlu2 %v6339_v2, %s5029_s20 }
 0x246   : > { %v4423_v55 = vpack.c.bf16 %v1873_v12, %v1871_v47 }
 0x247   : > { %v6482_v26 = vpop.permute.xlu1 %2670  ;;  %v6484_v13 = vpop.permute.xlu2 %2002  ;;  %2696 = vrot.lane.b32.xlu0 %v2654_v19, %s5029_s20 }
 0x248   : > { %4439 = vst [vmem:[%s6313_s26 + $0x28] sm:$0xff] %v4423_v55  }
 0x249   : > { %v1826_v21 = vpop.f32.mrf.mxu2  ;;  %v1875_v10 = vpop.f32.mrf.mxu3 }
 0x24a   : > { %v6488_v45 = vpop.permute.xlu0 %1999  ;;  %v1827_v47 = vadd.f32 %v6276_v42, %v1826_v21 }
 0x24c   : > { %v1876_v8 = vadd.f32 %v1875_v10, %v1827_v47 }
 0x24d   : > { %2026 = vrot.lane.b32.xlu1 %v1986_v33, %s5029_s20  ;;  %2024 = vrot.lane.b32.xlu2 %v1983_v56, %s5029_s20 }
 0x24f   : > { %v6498_v57 = vpop.permute.xlu1 %2916  ;;  %v6500_v19 = vpop.permute.xlu2 %2676  ;;  %2414 = vrot.lane.b32.xlu0 %v6382_v11, %s5029_s20 }
 0x250   : > { %8466 = vst [vmem:[#allocation110_spill] sm:$0xff] %v6498_v57 }
 0x251   : > { %v1828_v12 = vpop.f32.mrf.mxu2  ;;  %v1877_v43 = vpop.f32.mrf.mxu3 }
 0x252   : > { %v1829_v55 = vadd.f32 %v6276_v42, %v1828_v12  ;;  %v6506_v24 = vpop.permute.xlu0 %2673 }
 0x254   : > { %v1878_v33 = vadd.f32 %v1877_v43, %v1829_v55  ;;  %v2660_v43 = vsel %vm1965_vm1, %v6365_v37, %v6141_v25  ;;  %v2657_v55 = vsel %vm1965_vm1, %v6371_v36, %v6094_v62 }
 0x255   : > { %2962 = vrot.lane.b32.xlu1 %v6384_v4, %s5029_s20  ;;  %2959 = vrot.lane.b32.xlu2 %v6388_v61, %s5029_s20 }
 0x256   : > { %v4428_v56 = vpack.c.bf16 %v1878_v33, %v1876_v8 }
 0x257   : > { %v6515_v21 = vpop.permute.xlu1 %2373  ;;  %v6517_v11 = vpop.permute.xlu2 %2920  ;;  %2028 = vrot.lane.b32.xlu0 %v1989_v30, %s5029_s20 }
 0x258   : > { %8467 = vst [vmem:[#allocation111_spill] sm:$0xff] %v6515_v21 }
 0x259   : > { %8468 = vst [vmem:[#allocation112_spill] sm:$0xff] %v6517_v11  ;;  %v1831_v10 = vpop.f32.mrf.mxu2  ;;  %v1880_v47 = vpop.f32.mrf.mxu3 }
 0x25a   : > { %4440 = vst [vmem:[%s6313_s26 + $0x30] sm:$0xff] %v4428_v56   ;;  %v6521_v12 = vpop.permute.xlu0 %2918  ;;  %v1832_v30 = vadd.f32 %v6276_v42, %v1831_v10 }
 0x25b   : > { %8469 = vst [vmem:[#allocation113_spill] sm:$0xff] %v6521_v12 }
 0x25c   : > { %v1881_v36 = vadd.f32 %v1880_v47, %v1832_v30 }
 0x25d   : > { %2700 = vrot.lane.b32.xlu1 %v2660_v43, %s5029_s20  ;;  %2698 = vrot.lane.b32.xlu2 %v2657_v55, %s5029_s20  ;;  %v2663_v55 = vsel %vm1965_vm1, %v6416_v46, %v6143_v32 }
 0x25f   : > { %v2006_v51 = vpop.permute.xlu1 %2005  ;;  %v6531_v8 = vpop.permute.xlu2 %2377  ;;  %2965 = vrot.lane.b32.xlu0 %v6432_v9, %s5029_s20 }
 0x260   : > { %8470 = vst [vmem:[#allocation114_spill] sm:$0xff] %v6531_v8 }
 0x261   : > { %v1833_v33 = vpop.f32.mrf.mxu2  ;;  %v1882_v35 = vpop.f32.mrf.mxu3 }
 0x262   : > { %v1834_v37 = vadd.f32 %v6276_v42, %v1833_v33  ;;  %v6537_v56 = vpop.permute.xlu0 %2375 }
 0x263   : > { %8471 = vst [vmem:[#allocation115_spill] sm:$0xff] %v6537_v56 }
 0x264   : > { %v1883_v25 = vadd.f32 %v1882_v35, %v1834_v37  ;;  %v1995_v35 = vsel %vm1965_vm1, %v6418_v59, %v6198_v1  ;;  %v1998_v59 = vsel %vm1965_vm1, %v6467_v6, %v6200_v39 }
 0x265   : > { %2420 = vrot.lane.b32.xlu1 %v6401_v7, %s5029_s20  ;;  %2417 = vrot.lane.b32.xlu2 %v6407_v49, %s5029_s20 }
 0x266   : > { %v4433_v43 = vpack.c.bf16 %v1883_v25, %v1881_v36  ;;  %v1992_v25 = vsel %vm1965_vm1, %v6422_v15, %v6149_v17 }
 0x267   : > { %v2680_v10 = vpop.permute.xlu1 %2679  ;;  %2702 = vrot.lane.b32.xlu0 %v2663_v55, %s5029_s20  ;;  %v6547_v42 = vpop.permute.xlu2 %2399  ;;  %v2666_v55 = vsel %vm1965_vm1, %v6440_v34, %v6164_v41  ;;  %v2672_v34 = vsel %vm1965_vm1, %v6482_v26, %v6219_v63  ;;  %v8479_v63 = vld [vmem:[#allocation91_spill] sm:$0xff] }
 0x268   : > { %4441 = vst [vmem:[%s6313_s26 + $0x38] sm:$0xff] %v4433_v43   ;;  %v2669_v43 = vsel %vm1965_vm1, %v6434_v29, %v6217_v60 }
 0x26a   : > { %v6550_v33 = vpop.permute.xlu0 %2008 }
 0x26d   : > { %2032 = vrot.lane.b32.xlu1 %v1995_v35, %s5029_s20  ;;  %2030 = vrot.lane.b32.xlu2 %v1992_v25, %s5029_s20 }
 0x26f   : > { %v6560_v46 = vpop.permute.xlu1 %2922  ;;  %2423 = vrot.lane.b32.xlu0 %v6451_v54, %s5029_s20  ;;  %v6564_v47 = vpop.permute.xlu2 %2011 }
 0x270   : > { %8472 = vst [vmem:[#allocation116_spill] sm:$0xff] %v6560_v46 }
 0x272   : > { %v6566_v30 = vpop.permute.xlu0 %2682 }
 0x275   : > { %2971 = vrot.lane.b32.xlu1 %v6449_v0, %s5029_s20  ;;  %2968 = vrot.lane.b32.xlu2 %v6455_v28, %s5029_s20 }
 0x277   : > { %v6575_v15 = vpop.permute.xlu1 %2379  ;;  %2034 = vrot.lane.b32.xlu0 %v1998_v59, %s5029_s20  ;;  %v6578_v37 = vpop.permute.xlu2 %2685 }
 0x278   : > { %8473 = vst [vmem:[#allocation117_spill] sm:$0xff] %v6575_v15 }
 0x27a   : > { %v6580_v36 = vpop.permute.xlu0 %2924 }
 0x27b   : > { %8474 = vst [vmem:[#allocation118_spill] sm:$0xff] %v6580_v36 }
 0x27d   : > { %2706 = vrot.lane.b32.xlu1 %v2669_v43, %s5029_s20  ;;  %2704 = vrot.lane.b32.xlu2 %v2666_v55, %s5029_s20  ;;  %v2004_v55 = vsel %vm1965_vm1, %v6484_v13, %v6272_v14  ;;  %v2007_v13 = vsel %vm1965_vm1, %v2006_v51, %v6274_v58  ;;  %v2678_v14 = vsel %vm1965_vm1, %v6500_v19, %v6301_v23 }
 0x27f   : > { %v2015_v6 = vpop.permute.xlu1 %2014  ;;  %2974 = vrot.lane.b32.xlu0 %v6498_v57, %s5029_s20  ;;  %v6592_v35 = vpop.permute.xlu2 %2926  ;;  %v2001_v57 = vsel %vm1965_vm1, %v6488_v45, %v6223_v44 }
 0x280   : > { %8475 = vst [vmem:[#allocation119_spill] sm:$0xff] %v6592_v35 }
 0x282   : > { %v6594_v25 = vpop.permute.xlu0 %2381 }
 0x283   : > { %8476 = vst [vmem:[#allocation120_spill] sm:$0xff] %v6594_v25 }
 0x285   : > { %2429 = vrot.lane.b32.xlu1 %v6465_v22, %s5029_s20  ;;  %2426 = vrot.lane.b32.xlu2 %v6473_v40, %s5029_s20 }
 0x287   : > { %v2945_v29 = vpop.permute.xlu1 %2944  ;;  %2708 = vrot.lane.b32.xlu0 %v2672_v34, %s5029_s20  ;;  %v6604_v59 = vpop.permute.xlu2 %2018 }
 0x28a   : > { %v2017_v43 = vpop.permute.xlu0 %2016 }
 0x28d   : > { %2038 = vrot.lane.b32.xlu1 %v2004_v55, %s5029_s20  ;;  %2036 = vrot.lane.b32.xlu2 %v2001_v57, %s5029_s20 }
 0x28f   : > { %v2689_v39 = vpop.permute.xlu1 %2688  ;;  %2432 = vrot.lane.b32.xlu0 %v6515_v21, %s5029_s20  ;;  %v6616_v26 = vpop.permute.xlu2 %2950 }
 0x292   : > { %v6618_v34 = vpop.permute.xlu0 %2947 }
 0x295   : > { %2980 = vrot.lane.b32.xlu1 %v6517_v11, %s5029_s20  ;;  %2977 = vrot.lane.b32.xlu2 %v6521_v12, %s5029_s20  ;;  %v2675_v11 = vsel %vm1965_vm1, %v6506_v24, %v6240_v16  ;;  %v8477_v24 = vld [vmem:[#allocation90_spill] sm:$0xff]  ;;  %v2010_v16 = vsel %vm1965_vm1, %v6550_v33, %v8479_v63 }
 0x297   : > { %v2403_v45 = vpop.permute.xlu1 %2402  ;;  %2040 = vrot.lane.b32.xlu0 %v2007_v13, %s5029_s20  ;;  %v6627_v57 = vpop.permute.xlu2 %2692 }
 0x29a   : > { %v6629_v55 = vpop.permute.xlu0 %2690 }
 0x29d   : > { %2712 = vrot.lane.b32.xlu1 %v2678_v14, %s5029_s20  ;;  %2710 = vrot.lane.b32.xlu2 %v2675_v11, %s5029_s20  ;;  %v2681_v14 = vsel %vm1965_vm1, %v2680_v10, %v8477_v24 }
 0x29f   : > { %v6639_v51 = vpop.permute.xlu1 %2020  ;;  %2983 = vrot.lane.b32.xlu0 %v6560_v46, %s5029_s20  ;;  %v6643_v13 = vpop.permute.xlu2 %2408  ;;  %v8478_v46 = vld [vmem:[#allocation85_spill] sm:$0xff] }
 0x2a0   : > { %v2401_v23 = vsel %vm1965_vm1, %v6547_v42, %v8478_v46  ;;  %v2013_v42 = vsel %vm1965_vm1, %v6564_v47, %v6358_v20 }
 0x2a2   : > { %v6645_v12 = vpop.permute.xlu0 %2405 }
 0x2a5   : > { %2438 = vrot.lane.b32.xlu1 %v6531_v8, %s5029_s20  ;;  %2435 = vrot.lane.b32.xlu2 %v6537_v56, %s5029_s20  ;;  %v8481_v8 = vld [vmem:[#allocation39_spill] sm:$0xff] }
 0x2a7   : > { %v2954_v19 = vpop.permute.xlu1 %2953  ;;  %2714 = vrot.lane.b32.xlu0 %v2681_v14, %s5029_s20  ;;  %v6654_v11 = vpop.permute.xlu2 %2024 }
 0x2aa   : > { %v6656_v58 = vpop.permute.xlu0 %2022 }
 0x2ad   : > { %2447 = vrot.lane.b32.xlu1 %v2401_v23, %s5029_s20  ;;  %2042 = vrot.lane.b32.xlu2 %v2010_v16, %s5029_s20  ;;  %v2946_v16 = vsel %vm1965_vm1, %v2945_v29, %v6212_v3  ;;  %v2404_v29 = vsel %vm1965_vm1, %v2403_v45, %v6248_v27  ;;  %v8482_v3 = vld [vmem:[#allocation34_spill] sm:$0xff] }
 0x2af   : > { %v2695_v10 = vpop.permute.xlu1 %2694  ;;  %2441 = vrot.lane.b32.xlu0 %v6575_v15, %s5029_s20  ;;  %v6668_v14 = vpop.permute.xlu2 %2959  ;;  %v8480_v15 = vld [vmem:[#allocation32_spill] sm:$0xff] }
 0x2b0   : > { %v2046_v46 = vsel %vm1965_vm1, %v2015_v6, %v8480_v15  ;;  %v2047_v6 = vsel %vm1965_vm1, %v2017_v43, %v6022_v18 }
 0x2b1   : > { %v2126_v47 = vmul.f32 %v8481_v8, %v2046_v46  ;;  %v2720_v46 = vsel %vm1965_vm1, %v2689_v39, %v8482_v3  ;;  %v2048_v39 = vsel %vm1965_vm1, %v6604_v59, %v6004_v50 }
 0x2b2   : > { %v6670_v24 = vpop.permute.xlu0 %2956  ;;  %v2736_v27 = vmul.f32 %v2720_v46, %v8481_v8  ;;  %v8485_v46 = vld [vmem:[#allocation38_spill] sm:$0xff] }
 0x2b5   : > { %2044 = vrot.lane.b32.xlu1 %v2013_v42, %s5029_s20  ;;  %2986 = vrot.lane.b32.xlu2 %v6580_v36, %s5029_s20 }
 0x2b7   : > { %v2412_v23 = vpop.permute.xlu1 %2411  ;;  %2992 = vrot.lane.b32.xlu0 %v2946_v16, %s5029_s20  ;;  %v6681_v33 = vpop.permute.xlu2 %2698 }
 0x2ba   : > { %v6685_v63 = vpop.permute.xlu0 %2696 }
 0x2bd   : > { %2989 = vrot.lane.b32.xlu1 %v6592_v35, %s5029_s20  ;;  %2158 = vrot.lane.b32.xlu2 %v2126_v47, %s5030_s14  ;;  %v8483_v35 = vld [vmem:[#allocation33_spill] sm:$0xff]  ;;  %v8484_v47 = vld [vmem:[#allocation95_spill] sm:$0xff] }
 0x2be   : > { %v2127_v20 = vmul.f32 %v8483_v35, %v2047_v6  ;;  %v2684_v45 = vsel %vm1965_vm1, %v6566_v30, %v8484_v47  ;;  %v2687_v30 = vsel %vm1965_vm1, %v6578_v37, %v6391_v48  ;;  %v2128_v47 = vmul.f32 %v8485_v46, %v2048_v39  ;;  %v8486_v37 = vld [vmem:[#allocation88_spill] sm:$0xff] }
 0x2bf   : > { %v6693_v42 = vpop.permute.xlu1 %2026  ;;  %2449 = vrot.lane.b32.xlu0 %v2404_v29, %s5029_s20  ;;  %v6696_v16 = vpop.permute.xlu2 %2417  ;;  %v2949_v39 = vsel %vm1965_vm1, %v6618_v34, %v8486_v37 }
 0x2c2   : > { %v6702_v36 = vpop.permute.xlu0 %2414 }
 0x2c5   : > { %2716 = vrot.lane.b32.xlu2 %v2684_v45, %s5029_s20  ;;  %2160 = vrot.lane.b32.xlu1 %v2127_v20, %s5030_s14  ;;  %v2952_v45 = vsel %vm1965_vm1, %v6616_v26, %v6323_v38  ;;  %v2410_v26 = vsel %vm1965_vm1, %v6643_v13, %v6339_v2  ;;  %v8487_v38 = vld [vmem:[#allocation93_spill] sm:$0xff]  ;;  %v2722_v13 = vsel %vm1965_vm1, %v6627_v57, %v6026_v5  ;;  %v8491_v2 = vld [vmem:[#allocation46_spill] sm:$0xff] }
 0x2c6   : > { %v2407_v34 = vsel %vm1965_vm1, %v6645_v12, %v8487_v38  ;;  %v8492_v38 = vld [vmem:[#allocation47_spill] sm:$0xff] }
 0x2c7   : > { %v2963_v29 = vpop.permute.xlu1 %2962  ;;  %2768 = vrot.lane.b32.xlu0 %v2736_v27, %s5030_s14  ;;  %v6712_v43 = vpop.permute.xlu2 %2030 }
 0x2ca   : > { %v6717_v6 = vpop.permute.xlu0 %2028 }
 0x2cd   : > { %2444 = vrot.lane.b32.xlu2 %v6594_v25, %s5029_s20  ;;  %2718 = vrot.lane.b32.xlu1 %v2687_v30, %s5029_s20  ;;  %v2955_v30 = vsel %vm1965_vm1, %v2954_v19, %v6316_v53  ;;  %v2413_v19 = vsel %vm1965_vm1, %v2412_v23, %v6331_v31  ;;  %v2738_v23 = vmul.f32 %v2722_v13, %v8485_v46  ;;  %v8494_v46 = vld [vmem:[#allocation43_spill] sm:$0xff] }
 0x2ce   : > { %v2050_v13 = vsel %vm1965_vm1, %v6656_v58, %v8492_v38 }
 0x2cf   : > { %v6726_v27 = vpop.permute.xlu1 %2700  ;;  %2162 = vrot.lane.b32.xlu0 %v2128_v47, %s5030_s14  ;;  %v6729_v20 = vpop.permute.xlu2 %2968 }
 0x2d2   : > { %v6731_v59 = vpop.permute.xlu0 %2965 }
 0x2d5   : > { %2996 = vrot.lane.b32.xlu1 %v2952_v45, %s5029_s20  ;;  %2994 = vrot.lane.b32.xlu2 %v2949_v39, %s5029_s20 }
 0x2d7   : > { %v2421_v47 = vpop.permute.xlu1 %2420  ;;  %2998 = vrot.lane.b32.xlu0 %v2955_v30, %s5029_s20  ;;  %v6744_v48 = vpop.permute.xlu2 %2704  ;;  %v8488_v30 = vld [vmem:[#allocation36_spill] sm:$0xff] }
 0x2d8   : > { %v2721_v12 = vsel %vm1965_vm1, %v6629_v55, %v8488_v30 }
 0x2d9   : > { %v2737_v31 = vmul.f32 %v2721_v12, %v8483_v35  ;;  %v2051_v12 = vsel %vm1965_vm1, %v6654_v11, %v6077_v52  ;;  %v2961_v11 = vsel %vm1965_vm1, %v6668_v14, %v6388_v61  ;;  %v2419_v14 = vsel %vm1965_vm1, %v6696_v16, %v6407_v49  ;;  %v8496_v61 = vld [vmem:[#allocation100_spill] sm:$0xff] }
 0x2da   : > { %v6746_v8 = vpop.permute.xlu0 %2702  ;;  %v2131_v35 = vmul.f32 %v8494_v46, %v2051_v12  ;;  %v2964_v12 = vsel %vm1965_vm1, %v2963_v29, %v6384_v4  ;;  %v2422_v29 = vsel %vm1965_vm1, %v2421_v47, %v6401_v7  ;;  %v2725_v16 = vsel %vm1965_vm1, %v6681_v33, %v6094_v62  ;;  %v8499_v7 = vld [vmem:[#allocation49_spill] sm:$0xff] }
 0x2db   : > { %v2741_v47 = vmul.f32 %v2725_v16, %v8494_v46  ;;  %v8503_v46 = vld [vmem:[#allocation48_spill] sm:$0xff] }
 0x2dd   : > { %2453 = vrot.lane.b32.xlu1 %v2410_v26, %s5029_s20  ;;  %2451 = vrot.lane.b32.xlu2 %v2407_v34, %s5029_s20  ;;  %v8489_v26 = vld [vmem:[#allocation51_spill] sm:$0xff] }
 0x2de   : > { %v2723_v34 = vsel %vm1965_vm1, %v2695_v10, %v8489_v26  ;;  %v2049_v10 = vsel %vm1965_vm1, %v6639_v51, %v8491_v2 }
 0x2df   : > { %v6758_v45 = vpop.permute.xlu1 %2032  ;;  %2455 = vrot.lane.b32.xlu0 %v2413_v19, %s5029_s20  ;;  %v6761_v39 = vpop.permute.xlu2 %2426  ;;  %v8490_v19 = vld [vmem:[#allocation44_spill] sm:$0xff] }
 0x2e0   : > { %v2739_v37 = vmul.f32 %v2723_v34, %v8490_v19 }
 0x2e2   : > { %v6771_v53 = vpop.permute.xlu0 %2423 }
 0x2e5   : > { %2772 = vrot.lane.b32.xlu1 %v2738_v23, %s5030_s14  ;;  %2770 = vrot.lane.b32.xlu2 %v2737_v31, %s5030_s14  ;;  %v2129_v31 = vmul.f32 %v8490_v19, %v2049_v10  ;;  %v8493_v23 = vld [vmem:[#allocation35_spill] sm:$0xff] }
 0x2e6   : > { %v8495_v10 = vld [vmem:[#allocation99_spill] sm:$0xff] }
 0x2e7   : > { %v6778_v57 = vpop.permute.xlu1 %2971  ;;  %2774 = vrot.lane.b32.xlu0 %v2739_v37, %s5030_s14  ;;  %v6781_v55 = vpop.permute.xlu2 %2036  ;;  %v2130_v37 = vmul.f32 %v8493_v23, %v2050_v13  ;;  %v2958_v13 = vsel %vm1965_vm1, %v6670_v24, %v8495_v10  ;;  %v2416_v24 = vsel %vm1965_vm1, %v6702_v36, %v8496_v61  ;;  %v8500_v10 = vld [vmem:[#allocation62_spill] sm:$0xff] }
 0x2ea   : > { %v6792_v34 = vpop.permute.xlu0 %2034 }
 0x2ed   : > { %2164 = vrot.lane.b32.xlu2 %v2129_v31, %s5030_s14  ;;  %2166 = vrot.lane.b32.xlu1 %v2130_v37, %s5030_s14 }
 0x2ef   : > { %v6799_v51 = vpop.permute.xlu1 %2706  ;;  %2168 = vrot.lane.b32.xlu0 %v2131_v35, %s5030_s14  ;;  %v6802_v58 = vpop.permute.xlu2 %2977 }
 0x2f2   : > { %v6804_v38 = vpop.permute.xlu0 %2974 }
 0x2f5   : > { %3002 = vrot.lane.b32.xlu1 %v2961_v11, %s5029_s20  ;;  %3000 = vrot.lane.b32.xlu2 %v2958_v13, %s5029_s20 }
 0x2f7   : > { %v2430_v35 = vpop.permute.xlu1 %2429  ;;  %3004 = vrot.lane.b32.xlu0 %v2964_v12, %s5029_s20  ;;  %v6817_v31 = vpop.permute.xlu2 %2710  ;;  %v8497_v12 = vld [vmem:[#allocation52_spill] sm:$0xff] }
 0x2f8   : > { %v2724_v36 = vsel %vm1965_vm1, %v6685_v63, %v8497_v12 }
 0x2fa   : > { %v6819_v37 = vpop.permute.xlu0 %2708 }
 0x2fd   : > { %2459 = vrot.lane.b32.xlu1 %v2419_v14, %s5029_s20  ;;  %2457 = vrot.lane.b32.xlu2 %v2416_v24, %s5029_s20  ;;  %v8498_v14 = vld [vmem:[#allocation67_spill] sm:$0xff] }
 0x2fe   : > { %v2726_v24 = vsel %vm1965_vm1, %v6726_v27, %v8498_v14  ;;  %v2052_v27 = vsel %vm1965_vm1, %v6693_v42, %v8500_v10  ;;  %v8501_v14 = vld [vmem:[#allocation63_spill] sm:$0xff] }
 0x2ff   : > { %v6831_v11 = vpop.permute.xlu1 %2038  ;;  %2461 = vrot.lane.b32.xlu0 %v2422_v29, %s5029_s20  ;;  %v6834_v13 = vpop.permute.xlu2 %2435  ;;  %v2740_v29 = vmul.f32 %v2724_v36, %v8493_v23  ;;  %v2742_v49 = vmul.f32 %v2726_v24, %v8499_v7  ;;  %v2053_v16 = vsel %vm1965_vm1, %v6717_v6, %v8501_v14  ;;  %v2054_v36 = vsel %vm1965_vm1, %v6712_v43, %v6149_v17 }
 0x300   : > { %v2134_v23 = vmul.f32 %v8503_v46, %v2054_v36  ;;  %v4639_v36 = vld [vmem:[%s5618_s27] sm:$0xff] }
 0x302   : > { %v6845_v4 = vpop.permute.xlu0 %2432 }
 0x305   : > { %2778 = vrot.lane.b32.xlu1 %v2741_v47, %s5030_s14  ;;  %2776 = vrot.lane.b32.xlu2 %v2740_v29, %s5030_s14  ;;  %v8502_v47 = vld [vmem:[#allocation41_spill] sm:$0xff] }
 0x306   : > { %v2133_v29 = vmul.f32 %v8502_v47, %v2053_v16  ;;  %v2967_v16 = vsel %vm1965_vm1, %v6731_v59, %v6432_v9 }
 0x307   : > { %v6852_v33 = vpop.permute.xlu1 %2980  ;;  %2780 = vrot.lane.b32.xlu0 %v2742_v49, %s5030_s14  ;;  %v6855_v63 = vpop.permute.xlu2 %2042  ;;  %v2132_v49 = vmul.f32 %v8499_v7, %v2052_v27  ;;  %v2970_v27 = vsel %vm1965_vm1, %v6729_v20, %v6455_v28 }
 0x30a   : > { %v6866_v24 = vpop.permute.xlu0 %2040 }
 0x30d   : > { %2170 = vrot.lane.b32.xlu2 %v2132_v49, %s5030_s14  ;;  %2172 = vrot.lane.b32.xlu1 %v2133_v29, %s5030_s14  ;;  %v1949_v49 = vmul.f32 %v4639_v36, %v8480_v15  ;;  %v8507_v15 = vld [vmem:[#allocation54_spill] sm:$0xff] }
 0x30f   : > { %v6873_v42 = vpop.permute.xlu1 %2712  ;;  %2174 = vrot.lane.b32.xlu0 %v2134_v23, %s5030_s14  ;;  %v6876_v6 = vpop.permute.xlu2 %2986  ;;  %v2973_v23 = vsel %vm1965_vm1, %v6778_v57, %v6449_v0  ;;  %v2425_v57 = vsel %vm1965_vm1, %v6771_v53, %v6451_v54  ;;  %v2728_v53 = vsel %vm1965_vm1, %v6744_v48, %v6164_v41 }
 0x312   : > { %v6878_v43 = vpop.permute.xlu0 %2983 }
 0x315   : > { %3008 = vrot.lane.b32.xlu1 %v2970_v27, %s5029_s20  ;;  %3006 = vrot.lane.b32.xlu2 %v2967_v16, %s5029_s20  ;;  %v2428_v27 = vsel %vm1965_vm1, %v6761_v39, %v6473_v40 }
 0x317   : > { %v2439_v29 = vpop.permute.xlu1 %2438  ;;  %3010 = vrot.lane.b32.xlu0 %v2973_v23, %s5029_s20  ;;  %v2159_v20 = vpop.permute.xlu2 %2158  ;;  %v2729_v23 = vsel %vm1965_vm1, %v6799_v51, %v6217_v60  ;;  %v2055_v51 = vsel %vm1965_vm1, %v6758_v45, %v6198_v1 }
 0x318   : > { %v2206_v28 = vadd.f32 %v2159_v20, %v1949_v49 }
 0x31a   : > { %v2222_v7 = vpack.c.bf16 %v2206_v28, %v2206_v28  ;;  %v6895_v59 = vpop.permute.xlu0 %2714  ;;  %v2431_v28 = vsel %vm1965_vm1, %v2430_v35, %v6465_v22  ;;  %v2744_v35 = vmul.f32 %v2728_v53, %v8503_v46 }
 0x31c   : > { %2239 = vst.msk [vmem:[%s6903_s28] sm:$0xf] %vm2238_vm2, %v2222_v7  ;;  %v2727_v7 = vsel %vm1965_vm1, %v6746_v8, %v6143_v32 }
 0x31d   : > { %2465 = vrot.lane.b32.xlu1 %v2428_v27, %s5029_s20  ;;  %2463 = vrot.lane.b32.xlu2 %v2425_v57, %s5029_s20  ;;  %v2743_v20 = vmul.f32 %v2727_v7, %v8502_v47  ;;  %v8504_v27 = vld [vmem:[#allocation55_spill] sm:$0xff]  ;;  %v2057_v7 = vsel %vm1965_vm1, %v6781_v55, %v6223_v44 }
 0x31e   : > { %v2745_v57 = vmul.f32 %v2729_v23, %v8504_v27  ;;  %v2137_v22 = vmul.f32 %v8507_v15, %v2057_v7  ;;  %v8508_v7 = vld [vmem:[#allocation114_spill] sm:$0xff] }
 0x31f   : > { %v6911_v16 = vpop.permute.xlu1 %2447  ;;  %2467 = vrot.lane.b32.xlu0 %v2431_v28, %s5029_s20  ;;  %v6914_v39 = vpop.permute.xlu2 %2716  ;;  %v8505_v28 = vld [vmem:[#allocation75_spill] sm:$0xff] }
 0x320   : > { %v2056_v53 = vsel %vm1965_vm1, %v6792_v34, %v8505_v28 }
 0x322   : > { %v6925_v49 = vpop.permute.xlu0 %2441 }
 0x325   : > { %2784 = vrot.lane.b32.xlu1 %v2744_v35, %s5030_s14  ;;  %2782 = vrot.lane.b32.xlu2 %v2743_v20, %s5030_s14  ;;  %v2135_v35 = vmul.f32 %v8504_v27, %v2055_v51  ;;  %v8506_v20 = vld [vmem:[#allocation45_spill] sm:$0xff]  ;;  %v2437_v51 = vsel %vm1965_vm1, %v6834_v13, %v6537_v56  ;;  %v8509_v13 = vld [vmem:[#allocation83_spill] sm:$0xff] }
 0x326   : > { %v8510_v56 = vld [vmem:[#allocation79_spill] sm:$0xff] }
 0x327   : > { %v6932_v48 = vpop.permute.xlu1 %2044  ;;  %2786 = vrot.lane.b32.xlu0 %v2745_v57, %s5030_s14  ;;  %v6935_v8 = vpop.permute.xlu2 %2444  ;;  %v2136_v57 = vmul.f32 %v8506_v20, %v2056_v53  ;;  %v2434_v53 = vsel %vm1965_vm1, %v6845_v4, %v6515_v21  ;;  %v2731_v4 = vsel %vm1965_vm1, %v6817_v31, %v8509_v13  ;;  %v8512_v13 = vld [vmem:[#allocation59_spill] sm:$0xff] }
 0x328   : > { %v2747_v28 = vmul.f32 %v2731_v4, %v8507_v15  ;;  %v8514_v4 = vld [vmem:[#allocation87_spill] sm:$0xff] }
 0x32a   : > { %v6946_v23 = vpop.permute.xlu0 %2992 }
 0x32d   : > { %2176 = vrot.lane.b32.xlu2 %v2135_v35, %s5030_s14  ;;  %2178 = vrot.lane.b32.xlu1 %v2136_v57, %s5030_s14  ;;  %v2440_v35 = vsel %vm1965_vm1, %v2439_v29, %v8508_v7  ;;  %v2624_v29 = vmul.f32 %v4639_v36, %v8482_v3  ;;  %v8511_v7 = vld [vmem:[#allocation89_spill] sm:$0xff] }
 0x32e   : > { %v2732_v21 = vsel %vm1965_vm1, %v6873_v42, %v8511_v7 }
 0x32f   : > { %v6953_v45 = vpop.permute.xlu1 %2989  ;;  %2180 = vrot.lane.b32.xlu0 %v2137_v22, %s5030_s14  ;;  %v6956_v34 = vpop.permute.xlu2 %2994  ;;  %v4640_v22 = vld [vmem:[%s5618_s27 + $0x8] sm:$0xff]  ;;  %v2748_v40 = vmul.f32 %v2732_v21, %v8512_v13  ;;  %v2059_v21 = vsel %vm1965_vm1, %v6866_v24, %v8514_v4 }
 0x330   : > { %v1950_v57 = vmul.f32 %v4640_v22, %v6022_v18 }
 0x332   : > { %v6958_v55 = vpop.permute.xlu0 %2449 }
 0x335   : > { %2471 = vrot.lane.b32.xlu1 %v2437_v51, %s5029_s20  ;;  %2469 = vrot.lane.b32.xlu2 %v2434_v53, %s5029_s20  ;;  %v2730_v51 = vsel %vm1965_vm1, %v6819_v37, %v8510_v56 }
 0x336   : > { %v2746_v27 = vmul.f32 %v2730_v51, %v8506_v20  ;;  %v8515_v51 = vld [vmem:[#allocation91_spill] sm:$0xff] }
 0x337   : > { %2473 = vrot.lane.b32.xlu0 %v2440_v35, %s5029_s20  ;;  %v2161_v44 = vpop.permute.xlu1 %2160  ;;  %v6973_v0 = vpop.permute.xlu2 %2451 }
 0x338   : > { %v2207_v53 = vadd.f32 %v2161_v44, %v1950_v57  ;;  %v2625_v44 = vmul.f32 %v4640_v22, %v8488_v30  ;;  %v8513_v57 = vld [vmem:[#allocation86_spill] sm:$0xff] }
 0x339   : > { %v8517_v30 = vld [vmem:[#allocation58_spill] sm:$0xff] }
 0x33a   : > { %v2223_v35 = vpack.c.bf16 %v2207_v53, %v2207_v53  ;;  %v2769_v18 = vpop.permute.xlu0 %2768 }
 0x33b   : > { %v2816_v31 = vadd.f32 %v2769_v18, %v2624_v29  ;;  %v2058_v18 = vsel %vm1965_vm1, %v6831_v11, %v8513_v57 }
 0x33c   : > { %2240 = vst.msk [vmem:[%s6903_s28 + $0x8] sm:$0xf] %vm2238_vm2, %v2223_v35  ;;  %v2138_v35 = vmul.f32 %v8512_v13, %v2058_v18 }
 0x33d   : > { %v2832_v37 = vpack.c.bf16 %v2816_v31, %v2816_v31  ;;  %2790 = vrot.lane.b32.xlu1 %v2747_v28, %s5030_s14  ;;  %2788 = vrot.lane.b32.xlu2 %v2746_v27, %s5030_s14  ;;  %v4641_v27 = vld [vmem:[%s5618_s27 + $0x10] sm:$0xff]  ;;  %v8516_v31 = vld [vmem:[#allocation50_spill] sm:$0xff] }
 0x33e   : > { %v1951_v22 = vmul.f32 %v4641_v27, %v6004_v50  ;;  %v2139_v11 = vmul.f32 %v8516_v31, %v2059_v21 }
 0x33f   : > { %2848 = vst.msk [vmem:[%s6903_s28 + $0x4] sm:$0xf] %vm2238_vm2, %v2832_v37  ;;  %2792 = vrot.lane.b32.xlu0 %v2748_v40, %s5030_s14  ;;  %v2719_v42 = vpop.permute.xlu1 %2718  ;;  %v2771_v36 = vpop.permute.xlu2 %2770  ;;  %v2060_v40 = vsel %vm1965_vm1, %v6855_v63, %v8515_v51 }
 0x340   : > { %v2817_v28 = vadd.f32 %v2771_v36, %v2625_v44  ;;  %v2140_v24 = vmul.f32 %v8517_v30, %v2060_v40  ;;  %v4642_v36 = vld [vmem:[%s5618_s27 + $0x18] sm:$0xff] }
 0x341   : > { %v1952_v63 = vmul.f32 %v4642_v36, %v8491_v2  ;;  %v8527_v2 = vld [vmem:[#allocation113_spill] sm:$0xff] }
 0x342   : > { %v2833_v53 = vpack.c.bf16 %v2817_v28, %v2817_v28  ;;  %v2163_v29 = vpop.permute.xlu0 %2162  ;;  %v2979_v3 = vsel %vm1965_vm1, %v6802_v58, %v8527_v2 }
 0x343   : > { %v2208_v37 = vadd.f32 %v2163_v29, %v1951_v22  ;;  %v8518_v22 = vld [vmem:[#allocation85_spill] sm:$0xff] }
 0x344   : > { %2849 = vst.msk [vmem:[%s6903_s28 + $0xc] sm:$0xf] %vm2238_vm2, %v2833_v53  ;;  %v2479_v40 = vsel %vm1965_vm1, %v6911_v16, %v8518_v22 }
 0x345   : > { %v2224_v44 = vpack.c.bf16 %v2208_v37, %v2208_v37  ;;  %2182 = vrot.lane.b32.xlu2 %v2138_v35, %s5030_s14  ;;  %2184 = vrot.lane.b32.xlu1 %v2139_v11, %s5030_s14  ;;  %v8519_v35 = vld [vmem:[#allocation117_spill] sm:$0xff]  ;;  %v2446_v37 = vsel %vm1965_vm1, %v6935_v8, %v6594_v25  ;;  %v8525_v25 = vld [vmem:[#allocation103_spill] sm:$0xff] }
 0x346   : > { %v2443_v11 = vsel %vm1965_vm1, %v6925_v49, %v8519_v35 }
 0x347   : > { %2241 = vst.msk [vmem:[%s6903_s28 + $0x10] sm:$0xf] %vm2238_vm2, %v2224_v44  ;;  %2186 = vrot.lane.b32.xlu0 %v2140_v24, %s5030_s14  ;;  %v7019_v18 = vpop.permute.xlu1 %2996  ;;  %v2165_v21 = vpop.permute.xlu2 %2164  ;;  %v8520_v24 = vld [vmem:[#allocation39_spill] sm:$0xff] }
 0x348   : > { %v2209_v28 = vadd.f32 %v2165_v21, %v1952_v63  ;;  %v2495_v44 = vmul.f32 %v2479_v40, %v8520_v24  ;;  %v8521_v21 = vld [vmem:[#allocation90_spill] sm:$0xff] }
 0x349   : > { %v2733_v49 = vsel %vm1965_vm1, %v6895_v59, %v8521_v21  ;;  %v2626_v59 = vmul.f32 %v4641_v27, %v6026_v5  ;;  %v8526_v27 = vld [vmem:[#allocation65_spill] sm:$0xff] }
 0x34a   : > { %v2225_v53 = vpack.c.bf16 %v2209_v28, %v2209_v28  ;;  %v7024_v29 = vpop.permute.xlu0 %2998  ;;  %v8522_v28 = vld [vmem:[#allocation95_spill] sm:$0xff]  ;;  %v2749_v40 = vmul.f32 %v2733_v49, %v8516_v31  ;;  %v8524_v49 = vld [vmem:[#allocation98_spill] sm:$0xff] }
 0x34b   : > { %v2734_v8 = vsel %vm1965_vm1, %v6914_v39, %v8522_v28 }
 0x34c   : > { %2242 = vst.msk [vmem:[%s6903_s28 + $0x18] sm:$0xf] %vm2238_vm2, %v2225_v53  ;;  %v2750_v53 = vmul.f32 %v2734_v8, %v8517_v30  ;;  %v2061_v8 = vsel %vm1965_vm1, %v6932_v48, %v8524_v49  ;;  %v2735_v30 = vsel %vm1965_vm1, %v2719_v42, %v8525_v25  ;;  %v4643_v42 = vld [vmem:[%s5618_s27 + $0x20] sm:$0xff] }
 0x34d   : > { %2477 = vrot.lane.b32.xlu1 %v2446_v37, %s5029_s20  ;;  %2475 = vrot.lane.b32.xlu2 %v2443_v11, %s5029_s20  ;;  %v8523_v11 = vld [vmem:[#allocation112_spill] sm:$0xff]  ;;  %v2141_v5 = vmul.f32 %v8526_v27, %v2061_v8  ;;  %v2751_v48 = vmul.f32 %v2735_v30, %v8526_v27  ;;  %v2628_v8 = vmul.f32 %v4643_v42, %v8497_v12  ;;  %v8531_v27 = vld [vmem:[#allocation33_spill] sm:$0xff] }
 0x34e   : > { %v2982_v37 = vsel %vm1965_vm1, %v6852_v33, %v8523_v11 }
 0x34f   : > { %2527 = vrot.lane.b32.xlu0 %v2495_v44, %s5028_s15  ;;  %v2454_v16 = vpop.permute.xlu1 %2453  ;;  %v7038_v63 = vpop.permute.xlu2 %3000 }
 0x352   : > { %v7046_v22 = vpop.permute.xlu0 %2455 }
 0x355   : > { %2796 = vrot.lane.b32.xlu1 %v2750_v53, %s5030_s14  ;;  %2794 = vrot.lane.b32.xlu2 %v2749_v40, %s5030_s14  ;;  %v2627_v40 = vmul.f32 %v4642_v36, %v8489_v26  ;;  %v8528_v36 = vld [vmem:[#allocation47_spill] sm:$0xff] }
 0x357   : > { %3016 = vrot.lane.b32.xlu0 %v2982_v37, %s5029_s20  ;;  %v2773_v39 = vpop.permute.xlu1 %2772  ;;  %v7057_v44 = vpop.permute.xlu2 %2457 }
 0x358   : > { %v2818_v53 = vadd.f32 %v2773_v39, %v2626_v59  ;;  %v1953_v39 = vmul.f32 %v4643_v42, %v8528_v36  ;;  %v8532_v36 = vld [vmem:[#allocation38_spill] sm:$0xff] }
 0x35a   : > { %v2834_v33 = vpack.c.bf16 %v2818_v53, %v2818_v53  ;;  %v2775_v35 = vpop.permute.xlu0 %2774  ;;  %v8529_v53 = vld [vmem:[#allocation84_spill] sm:$0xff] }
 0x35b   : > { %v2819_v37 = vadd.f32 %v2775_v35, %v2627_v40  ;;  %v2480_v30 = vsel %vm1965_vm1, %v6958_v55, %v8529_v53  ;;  %v8533_v55 = vld [vmem:[#allocation119_spill] sm:$0xff]  ;;  %v7104_v53 = vpop.f32.mrf.mxu0 }
 0x35c   : > { %2850 = vst.msk [vmem:[%s6903_s28 + $0x14] sm:$0xf] %vm2238_vm2, %v2834_v33  ;;  %v2496_v26 = vmul.f32 %v2480_v30, %v8531_v27 }
 0x35d   : > { %v2835_v59 = vpack.c.bf16 %v2819_v37, %v2819_v37  ;;  %3014 = vrot.lane.b32.xlu1 %v2979_v3, %s5029_s20  ;;  %2188 = vrot.lane.b32.xlu2 %v2141_v5, %s5030_s14  ;;  %v8530_v3 = vld [vmem:[#allocation93_spill] sm:$0xff]  ;;  %v4644_v37 = vld [vmem:[%s5618_s27 + $0x28] sm:$0xff] }
 0x35e   : > { %v2481_v5 = vsel %vm1965_vm1, %v6973_v0, %v8530_v3 }
 0x35f   : > { %2851 = vst.msk [vmem:[%s6903_s28 + $0x1c] sm:$0xf] %vm2238_vm2, %v2835_v59  ;;  %2798 = vrot.lane.b32.xlu0 %v2751_v48, %s5030_s14  ;;  %v2167_v58 = vpop.permute.xlu1 %2166  ;;  %v2777_v35 = vpop.permute.xlu2 %2776  ;;  %v1954_v59 = vmul.f32 %v4644_v37, %v6077_v52  ;;  %v2497_v50 = vmul.f32 %v2481_v5, %v8532_v36  ;;  %v8535_v5 = vld [vmem:[#allocation110_spill] sm:$0xff] }
 0x360   : > { %v2210_v40 = vadd.f32 %v2167_v58, %v1953_v39  ;;  %v2820_v33 = vadd.f32 %v2777_v35, %v2628_v8  ;;  %v2991_v39 = vsel %vm1965_vm1, %v6953_v45, %v8533_v55  ;;  %v4645_v8 = vld [vmem:[%s5618_s27 + $0x30] sm:$0xff]  ;;  %v2976_v45 = vsel %vm1965_vm1, %v6804_v38, %v8535_v5  ;;  %v8537_v38 = vld [vmem:[#allocation88_spill] sm:$0xff] }
 0x361   : > { %v1955_v58 = vmul.f32 %v4645_v8, %v8500_v10  ;;  %v8544_v10 = vld [vmem:[#allocation43_spill] sm:$0xff] }
 0x362   : > { %v2226_v42 = vpack.c.bf16 %v2210_v40, %v2210_v40  ;;  %v2836_v48 = vpack.c.bf16 %v2820_v33, %v2820_v33  ;;  %v2169_v12 = vpop.permute.xlu0 %2168  ;;  %v8536_v40 = vld [vmem:[#allocation118_spill] sm:$0xff] }
 0x363   : > { %v2211_v31 = vadd.f32 %v2169_v12, %v1954_v59  ;;  %v2988_v33 = vsel %vm1965_vm1, %v6876_v6, %v8536_v40  ;;  %v7129_v6 = vpop.f32.mrf.mxu0 }
 0x364   : > { %2243 = vst.msk [vmem:[%s6903_s28 + $0x20] sm:$0xf] %vm2238_vm2, %v2226_v42 }
 0x365   : > { %2852 = vst.msk [vmem:[%s6903_s28 + $0x24] sm:$0xf] %vm2238_vm2, %v2836_v48  ;;  %v2227_v0 = vpack.c.bf16 %v2211_v31, %v2211_v31  ;;  %2531 = vrot.lane.b32.xlu1 %v2497_v50, %s5028_s15  ;;  %2529 = vrot.lane.b32.xlu2 %v2496_v26, %s5028_s15  ;;  %v8534_v50 = vld [vmem:[#allocation97_spill] sm:$0xff] }
 0x366   : > { %v2482_v30 = vsel %vm1965_vm1, %v2454_v16, %v8534_v50  ;;  %v7121_v16 = vpop.f32.mrf.mxu1  ;;  %v8539_v50 = vld [vmem:[#allocation116_spill] sm:$0xff] }
 0x367   : > { %2244 = vst.msk [vmem:[%s6903_s28 + $0x28] sm:$0xf] %vm2238_vm2, %v2227_v0  ;;  %3022 = vrot.lane.b32.xlu0 %v2991_v39, %s5029_s20  ;;  %v3003_v12 = vpop.permute.xlu1 %3002  ;;  %v2171_v35 = vpop.permute.xlu2 %2170  ;;  %v2498_v59 = vmul.f32 %v2482_v30, %v8490_v19  ;;  %v3025_v0 = vsel %vm1965_vm1, %v6956_v34, %v8537_v38  ;;  %v8538_v39 = vld [vmem:[#allocation94_spill] sm:$0xff]  ;;  %v2985_v30 = vsel %vm1965_vm1, %v6878_v43, %v8539_v50 }
 0x368   : > { %v2212_v31 = vadd.f32 %v2171_v35, %v1955_v58  ;;  %v3026_v58 = vsel %vm1965_vm1, %v7019_v18, %v8538_v39  ;;  %v2629_v34 = vmul.f32 %v4644_v37, %v6094_v62  ;;  %v2484_v43 = vsel %vm1965_vm1, %v7057_v44, %v8496_v61  ;;  %v8541_v39 = vld [vmem:[#allocation67_spill] sm:$0xff]  ;;  %v8542_v37 = vld [vmem:[#allocation102_spill] sm:$0xff] }
 0x369   : > { %v2500_v62 = vmul.f32 %v2484_v43, %v8544_v10  ;;  %v8546_v43 = vld [vmem:[#allocation99_spill] sm:$0xff] }
 0x36a   : > { %v2228_v26 = vpack.c.bf16 %v2212_v31, %v2212_v31  ;;  %v7108_v3 = vpop.permute.xlu0 %3004  ;;  %v3041_v31 = vmul.f32 %v3025_v0, %v8531_v27 }
 0x36c   : > { %2245 = vst.msk [vmem:[%s6903_s28 + $0x30] sm:$0xf] %vm2238_vm2, %v2228_v26  ;;  %v3042_v26 = vmul.f32 %v3026_v58, %v8532_v36  ;;  %v2630_v58 = vmul.f32 %v4645_v8, %v8541_v39  ;;  %v8543_v36 = vld [vmem:[#allocation35_spill] sm:$0xff]  ;;  %v4646_v8 = vld [vmem:[%s5618_s27 + $0x38] sm:$0xff] }
 0x36d   : > { %3020 = vrot.lane.b32.xlu1 %v2988_v33, %s5029_s20  ;;  %3012 = vrot.lane.b32.xlu2 %v2976_v45, %s5029_s20 }
 0x36e   : > { %v1617_v33 = vpop.f32.mrf.mxu1 }
 0x36f   : > { %2533 = vrot.lane.b32.xlu0 %v2498_v59, %s5028_s15  ;;  %v2460_v42 = vpop.permute.xlu1 %2459  ;;  %v7124_v48 = vpop.permute.xlu2 %3006  ;;  %v8540_v59 = vld [vmem:[#allocation96_spill] sm:$0xff] }
 0x370   : > { %v2483_v38 = vsel %vm1965_vm1, %v7046_v22, %v8540_v59  ;;  %v7158_v22 = vpop.f32.mrf.mxu0 }
 0x371   : > { %v2499_v27 = vmul.f32 %v2483_v38, %v8543_v36  ;;  %v8545_v38 = vld [vmem:[#allocation78_spill] sm:$0xff] }
 0x372   : > { %v7134_v35 = vpop.permute.xlu0 %2461 }
 0x375   : > { %3074 = vrot.lane.b32.xlu1 %v3041_v31, %s5028_s15  ;;  %3018 = vrot.lane.b32.xlu2 %v2985_v30, %s5029_s20  ;;  %v3029_v31 = vsel %vm1965_vm1, %v3003_v12, %v8542_v37  ;;  %v1956_v12 = vmul.f32 %v4646_v8, %v8501_v14 }
 0x376   : > { %v3045_v61 = vmul.f32 %v3029_v31, %v8544_v10  ;;  %v7179_v31 = vpop.f32.mrf.mxu1 }
 0x377   : > { %3076 = vrot.lane.b32.xlu0 %v3042_v26, %s5028_s15  ;;  %v2779_v18 = vpop.permute.xlu1 %2778  ;;  %v7145_v45 = vpop.permute.xlu2 %2463 }
 0x378   : > { %v2821_v0 = vadd.f32 %v2779_v18, %v2629_v34  ;;  %v2631_v34 = vmul.f32 %v4646_v8, %v6143_v32 }
 0x37a   : > { %v2837_v30 = vpack.c.bf16 %v2821_v0, %v2821_v0  ;;  %v2781_v26 = vpop.permute.xlu0 %2780 }
 0x37b   : > { %v2822_v52 = vadd.f32 %v2781_v26, %v2630_v58  ;;  %v4647_v58 = vld [vmem:[%s5618_s27 + $0x40] sm:$0xff] }
 0x37c   : > { %2853 = vst.msk [vmem:[%s6903_s28 + $0x2c] sm:$0xf] %vm2238_vm2, %v2837_v30  ;;  %v1957_v37 = vmul.f32 %v4647_v58, %v6149_v17  ;;  %v8547_v30 = vld [vmem:[#allocation105_spill] sm:$0xff] }
 0x37d   : > { %v2838_v44 = vpack.c.bf16 %v2822_v52, %v2822_v52  ;;  %2537 = vrot.lane.b32.xlu1 %v2500_v62, %s5028_s15  ;;  %2535 = vrot.lane.b32.xlu2 %v2499_v27, %s5028_s15  ;;  %v3024_v52 = vsel %vm1965_vm1, %v6946_v23, %v8545_v38  ;;  %v3028_v62 = vsel %vm1965_vm1, %v7038_v63, %v8546_v43  ;;  %v7196_v43 = vld [vmem:[#allocation7] ss:$0 sm:$0xff] }
 0x37e   : > { %v2485_v26 = vsel %vm1965_vm1, %v2460_v42, %v8547_v30  ;;  %v3040_v8 = vmul.f32 %v3024_v52, %v8520_v24  ;;  %v3044_v38 = vmul.f32 %v3028_v62, %v8543_v36  ;;  %v7192_v42 = vpop.f32.mrf.mxu0  ;;  %v3031_v30 = vsel %vm1965_vm1, %v7124_v48, %v6432_v9 }
 0x37f   : > { %2854 = vst.msk [vmem:[%s6903_s28 + $0x34] sm:$0xf] %vm2238_vm2, %v2838_v44  ;;  %3082 = vrot.lane.b32.xlu0 %v3045_v61, %s5028_s15  ;;  %v2173_v18 = vpop.permute.xlu1 %2172  ;;  %v2783_v59 = vpop.permute.xlu2 %2782 }
 0x380   : > { %v2213_v27 = vadd.f32 %v2173_v18, %v1956_v12  ;;  %v2823_v0 = vadd.f32 %v2783_v59, %v2631_v34  ;;  %v8548_v12 = vld [vmem:[#allocation49_spill] sm:$0xff]  ;;  %v4648_v59 = vld [vmem:[%s5618_s27 + $0x48] sm:$0xff] }
 0x381   : > { %v2501_v34 = vmul.f32 %v2485_v26, %v8548_v12  ;;  %v1958_v52 = vmul.f32 %v4648_v59, %v6198_v1 }
 0x382   : > { %v2229_v61 = vpack.c.bf16 %v2213_v27, %v2213_v27  ;;  %v2839_v44 = vpack.c.bf16 %v2823_v0, %v2823_v0  ;;  %v2175_v23 = vpop.permute.xlu0 %2174  ;;  %v8549_v0 = vld [vmem:[#allocation92_spill] sm:$0xff] }
 0x383   : > { %v2214_v63 = vadd.f32 %v2175_v23, %v1957_v37  ;;  %v3027_v37 = vsel %vm1965_vm1, %v7024_v29, %v8549_v0 }
 0x384   : > { %2246 = vst.msk [vmem:[%s6903_s28 + $0x38] sm:$0xf] %vm2238_vm2, %v2229_v61  ;;  %v1569_v61 = vadd.f32 %v7196_v43, %v7129_v6  ;;  %v8550_v6 = vld [vmem:[#allocation104_spill] sm:$0xff] }
 0x385   : > { %2855 = vst.msk [vmem:[%s6903_s28 + $0x3c] sm:$0xf] %vm2238_vm2, %v2839_v44  ;;  %v2230_v18 = vpack.c.bf16 %v2214_v63, %v2214_v63  ;;  %3080 = vrot.lane.b32.xlu1 %v3044_v38, %s5028_s15  ;;  %3072 = vrot.lane.b32.xlu2 %v3040_v8, %s5028_s15  ;;  %v3043_v8 = vmul.f32 %v3027_v37, %v8490_v19  ;;  %v7211_v63 = vpop.f32.mrf.mxu1 }
 0x386   : > { %v3047_v38 = vmul.f32 %v3031_v30, %v8502_v47  ;;  %v1576_v48 = vpop.f32.mrf.mxu0 }
 0x387   : > { %2247 = vst.msk [vmem:[%s6903_s28 + $0x40] sm:$0xf] %vm2238_vm2, %v2230_v18  ;;  %2539 = vrot.lane.b32.xlu0 %v2501_v34, %s5028_s15  ;;  %v3009_v62 = vpop.permute.xlu1 %3008  ;;  %v2177_v27 = vpop.permute.xlu2 %2176  ;;  %v7215_v34 = vadd.f32 %v1617_v33, %v1569_v61  ;;  %v2486_v18 = vsel %vm1965_vm1, %v7134_v35, %v8550_v6  ;;  %v2487_v33 = vsel %vm1965_vm1, %v7145_v45, %v6451_v54 }
 0x388   : > { %v2215_v26 = vadd.f32 %v2177_v27, %v1958_v52  ;;  %v8551_v52 = vld [vmem:[#allocation107_spill] sm:$0xff]  ;;  %v2502_v37 = vmul.f32 %v2486_v18, %v8502_v47  ;;  %v2503_v30 = vmul.f32 %v2487_v33, %v8503_v46  ;;  %v2632_v35 = vmul.f32 %v4647_v58, %v6164_v41 }
 0x389   : > { %v3032_v27 = vsel %vm1965_vm1, %v3009_v62, %v8551_v52  ;;  %v1567_v45 = vadd.f32 %v7196_v43, %v7104_v53  ;;  %v2633_v58 = vmul.f32 %v4648_v59, %v6217_v60 }
 0x38a   : > { %v2231_v44 = vpack.c.bf16 %v2215_v26, %v2215_v26  ;;  %v3011_v23 = vpop.permute.xlu0 %3010  ;;  %v3048_v26 = vmul.f32 %v3032_v27, %v8503_v46  ;;  %v8553_v27 = vld [vmem:[#allocation109_spill] sm:$0xff] }
 0x38b   : > { %v7251_v19 = vadd.f32 %v7121_v16, %v1567_v45  ;;  %v4650_v16 = vld [vmem:[%s5618_s27 + $0x60] sm:$0xff] }
 0x38c   : > { %2248 = vst.msk [vmem:[%s6903_s28 + $0x48] sm:$0xf] %vm2238_vm2, %v2231_v44  ;;  %v4649_v44 = vld [vmem:[%s5618_s27 + $0x50] sm:$0xff]  ;;  %v1961_v45 = vmul.f32 %v4650_v16, %v8513_v57 }
 0x38d   : > { %3086 = vrot.lane.b32.xlu1 %v3047_v38, %s5028_s15  ;;  %3078 = vrot.lane.b32.xlu2 %v3043_v8, %s5028_s15  ;;  %v1625_v61 = vpop.f32.mrf.mxu1  ;;  %v2634_v54 = vmul.f32 %v4649_v44, %v8510_v56  ;;  %v8552_v38 = vld [vmem:[#allocation101_spill] sm:$0xff] }
 0x38e   : > { %v3030_v6 = vsel %vm1965_vm1, %v7108_v3, %v8552_v38  ;;  %v7246_v52 = vpop.f32.mrf.mxu0 }
 0x38f   : > { %3187 = vrot.lane.b32.xlu0 %v7215_v34, %s5029_s20  ;;  %v2466_v9 = vpop.permute.xlu1 %2465  ;;  %v7221_v29 = vpop.permute.xlu2 %2469  ;;  %v3046_v46 = vmul.f32 %v3030_v6, %v8548_v12 }
 0x390   : > { %v2488_v53 = vsel %vm1965_vm1, %v2466_v9, %v8553_v27  ;;  %v8555_v9 = vld [vmem:[#allocation75_spill] sm:$0xff]  ;;  %v7274_v27 = vld [vmem:[%s5618_s27 + $0x58] sm:$0xff] }
 0x391   : > { %8557 = vst [vmem:[#allocation100_spill] sm:$0xff] %v7274_v27 }
 0x392   : > { %v2468_v0 = vpop.permute.xlu0 %2467 }
 0x395   : > { %2543 = vrot.lane.b32.xlu1 %v2503_v30, %s5028_s15  ;;  %2541 = vrot.lane.b32.xlu2 %v2502_v37, %s5028_s15  ;;  %v7268_v6 = vpop.f32.mrf.mxu1 }
 0x396   : > { %v7279_v12 = vpop.f32.mrf.mxu0 }
 0x397   : > { %3088 = vrot.lane.b32.xlu0 %v3048_v26, %s5028_s15  ;;  %v2785_v62 = vpop.permute.xlu1 %2784  ;;  %v2789_v8 = vpop.permute.xlu2 %2788 }
 0x398   : > { %v2824_v18 = vadd.f32 %v2785_v62, %v2632_v35  ;;  %v2826_v33 = vadd.f32 %v2789_v8, %v2634_v54  ;;  %v8554_v35 = vld [vmem:[#allocation55_spill] sm:$0xff]  ;;  %v1959_v62 = vmul.f32 %v4649_v44, %v8555_v9  ;;  %v1577_v44 = vadd.f32 %v7196_v43, %v1576_v48 }
 0x399   : > { %v2504_v59 = vmul.f32 %v2488_v53, %v8554_v35  ;;  %v8558_v53 = vld [vmem:[#allocation80_spill] sm:$0xff] }
 0x39a   : > { %v2840_v37 = vpack.c.bf16 %v2824_v18, %v2824_v18  ;;  %v2842_v30 = vpack.c.bf16 %v2826_v33, %v2826_v33  ;;  %v2787_v26 = vpop.permute.xlu0 %2786  ;;  %v8556_v18 = vld [vmem:[#allocation106_spill] sm:$0xff] }
 0x39b   : > { %v2825_v3 = vadd.f32 %v2787_v26, %v2633_v58  ;;  %v3033_v33 = vsel %vm1965_vm1, %v3011_v23, %v8556_v18  ;;  %v7283_v23 = vadd.f32 %v1625_v61, %v1577_v44 }
 0x39c   : > { %2856 = vst.msk [vmem:[%s6903_s28 + $0x44] sm:$0xf] %vm2238_vm2, %v2840_v37  ;;  %v1960_v37 = vmul.f32 %v7274_v27, %v8558_v53 }
 0x39d   : > { %2858 = vst.msk [vmem:[%s6903_s28 + $0x54] sm:$0xf] %vm2238_vm2, %v2842_v30  ;;  %v2841_v54 = vpack.c.bf16 %v2825_v3, %v2825_v3  ;;  %3184 = vrot.lane.b32.xlu1 %v7251_v19, %s5029_s20  ;;  %3084 = vrot.lane.b32.xlu2 %v3046_v46, %s5028_s15  ;;  %v7298_v18 = vpop.f32.mrf.mxu1 }
 0x39f   : > { %2857 = vst.msk [vmem:[%s6903_s28 + $0x4c] sm:$0xf] %vm2238_vm2, %v2841_v54  ;;  %2545 = vrot.lane.b32.xlu0 %v2504_v59, %s5028_s15  ;;  %v2179_v8 = vpop.permute.xlu1 %2178  ;;  %v2183_v38 = vpop.permute.xlu2 %2182  ;;  %v3049_v59 = vmul.f32 %v3033_v33, %v8554_v35 }
 0x3a0   : > { %v2216_v58 = vadd.f32 %v2179_v8, %v1959_v62  ;;  %v2218_v46 = vadd.f32 %v2183_v38, %v1961_v45  ;;  %v8559_v8 = vld [vmem:[#allocation108_spill] sm:$0xff] }
 0x3a1   : > { %v2489_v38 = vsel %vm1965_vm1, %v2468_v0, %v8559_v8 }
 0x3a2   : > { %v2232_v30 = vpack.c.bf16 %v2216_v58, %v2216_v58  ;;  %v2234_v26 = vpack.c.bf16 %v2218_v46, %v2218_v46  ;;  %v2181_v3 = vpop.permute.xlu0 %2180  ;;  %v2505_v33 = vmul.f32 %v2489_v38, %v8506_v20  ;;  %v7304_v58 = vpop.f32.mrf.mxu0  ;;  %v8560_v46 = vld [vmem:[#allocation83_spill] sm:$0xff] }
 0x3a3   : > { %v2217_v54 = vadd.f32 %v2181_v3, %v1960_v37  ;;  %v2635_v44 = vmul.f32 %v7274_v27, %v8560_v46  ;;  %v7309_v37 = vld [vmem:[%s5618_s27 + $0x68] sm:$0xff] }
 0x3a4   : > { %2249 = vst.msk [vmem:[%s6903_s28 + $0x50] sm:$0xf] %vm2238_vm2, %v2232_v30  ;;  %v2637_v0 = vmul.f32 %v7309_v37, %v8521_v21  ;;  %v1572_v30 = vadd.f32 %v7196_v43, %v7158_v22 }
 0x3a5   : > { %2251 = vst.msk [vmem:[%s6903_s28 + $0x60] sm:$0xf] %vm2238_vm2, %v2234_v26  ;;  %v2233_v48 = vpack.c.bf16 %v2217_v54, %v2217_v54  ;;  %3090 = vrot.lane.b32.xlu2 %v3049_v59, %s5028_s15  ;;  %v7319_v47 = vpop.f32.mrf.mxu1 }
 0x3a6   : > { %8561 = vst [vmem:[#allocation63_spill] sm:$0xff] %v7309_v37  ;;  %v7317_v27 = vadd.f32 %v7179_v31, %v1572_v30 }
 0x3a7   : > { %2250 = vst.msk [vmem:[%s6903_s28 + $0x58] sm:$0xf] %vm2238_vm2, %v2233_v48  ;;  %3196 = vrot.lane.b32.xlu0 %v7283_v23, %s5029_s20  ;;  %v7292_v62 = vpop.permute.xlu1 %2471  ;;  %v7294_v45 = vpop.permute.xlu2 %2475  ;;  %v2636_v48 = vmul.f32 %v4650_v16, %v8511_v7  ;;  %v1962_v16 = vmul.f32 %v7309_v37, %v8514_v4 }
 0x3aa   : > { %v7300_v61 = vpop.permute.xlu0 %2473 }
 0x3ad   : > { %2547 = vrot.lane.b32.xlu2 %v2505_v33, %s5028_s15  ;;  %v7347_v37 = vpop.f32.mrf.mxu1 }
 0x3af   : > { %v2791_v26 = vpop.permute.xlu1 %2790  ;;  %v2795_v3 = vpop.permute.xlu2 %2794 }
 0x3b0   : > { %v2827_v59 = vadd.f32 %v2791_v26, %v2635_v44  ;;  %v2829_v54 = vadd.f32 %v2795_v3, %v2637_v0  ;;  %v7330_v44 = vld [vmem:[%s5618_s27 + $0x78] sm:$0xff]  ;;  %v7336_v26 = vpop.f32.mrf.mxu0 }
 0x3b1   : > { %8562 = vst [vmem:[#allocation79_spill] sm:$0xff] %v7330_v44  ;;  %v1964_v31 = vmul.f32 %v7330_v44, %v8524_v49 }
 0x3b2   : > { %v2843_v8 = vpack.c.bf16 %v2827_v59, %v2827_v59  ;;  %v2845_v38 = vpack.c.bf16 %v2829_v54, %v2829_v54  ;;  %v2793_v33 = vpop.permute.xlu0 %2792  ;;  %v7339_v59 = vld [vmem:[%s5618_s27 + $0x70] sm:$0xff] }
 0x3b3   : > { %v2828_v35 = vadd.f32 %v2793_v33, %v2636_v48  ;;  %8563 = vst [vmem:[#allocation89_spill] sm:$0xff] %v7339_v59  ;;  %v1963_v54 = vmul.f32 %v7339_v59, %v8515_v51 }
 0x3b4   : > { %2859 = vst.msk [vmem:[%s6903_s28 + $0x5c] sm:$0xf] %vm2238_vm2, %v2843_v8 }
 0x3b5   : > { %2861 = vst.msk [vmem:[%s6903_s28 + $0x6c] sm:$0xf] %vm2238_vm2, %v2845_v38  ;;  %v2844_v22 = vpack.c.bf16 %v2828_v35, %v2828_v35  ;;  %3190 = vrot.lane.b32.xlu2 %v7317_v27, %s5029_s20 }
 0x3b7   : > { %2860 = vst.msk [vmem:[%s6903_s28 + $0x64] sm:$0xf] %vm2238_vm2, %v2844_v22  ;;  %v2185_v0 = vpop.permute.xlu1 %2184  ;;  %v2189_v30 = vpop.permute.xlu2 %2188 }
 0x3b8   : > { %v2219_v35 = vadd.f32 %v2185_v0, %v1962_v16  ;;  %v2221_v3 = vadd.f32 %v2189_v30, %v1964_v31  ;;  %v8564_v16 = vld [vmem:[#allocation40_spill] sm:$0xff]  ;;  %v8565_v31 = vld [vmem:[#allocation69_spill] sm:$0xff] }
 0x3b9   : > { %v2320_v0 = vmul.f32 %v8565_v31, %v8564_v16 }
 0x3ba   : > { %v2235_v48 = vpack.c.bf16 %v2219_v35, %v2219_v35  ;;  %v2237_v8 = vpack.c.bf16 %v2221_v3, %v2221_v3  ;;  %v2187_v38 = vpop.permute.xlu0 %2186 }
 0x3bb   : > { %v2220_v33 = vadd.f32 %v2187_v38, %v1963_v54  ;;  %v8566_v54 = vld [vmem:[#allocation32_spill] sm:$0xff]  ;;  %v8567_v38 = vld [vmem:[#allocation61_spill] sm:$0xff] }
 0x3bc   : > { %2252 = vst.msk [vmem:[%s6903_s28 + $0x68] sm:$0xf] %vm2238_vm2, %v2235_v48  ;;  %v2319_v10 = vmul.f32 %v8567_v38, %v8566_v54  ;;  %v7357_v48 = vpop.f32.mrf.mxu0 }
 0x3bd   : > { %2254 = vst.msk [vmem:[%s6903_s28 + $0x78] sm:$0xf] %vm2238_vm2, %v2237_v8  ;;  %v2236_v22 = vpack.c.bf16 %v2220_v33, %v2220_v33 }
 0x3bf   : > { %2253 = vst.msk [vmem:[%s6903_s28 + $0x70] sm:$0xf] %vm2238_vm2, %v2236_v22  ;;  %v7353_v30 = vpop.permute.xlu1 %2477  ;;  %v2530_v35 = vpop.permute.xlu2 %2529  ;;  %v2638_v22 = vmul.f32 %v7339_v59, %v8522_v28  ;;  %v8568_v59 = vld [vmem:[#allocation111_spill] sm:$0xff] }
 0x3c0   : > { %v2576_v3 = vadd.f32 %v2530_v35, %v2320_v0  ;;  %v7365_v35 = vpop.f32.mrf.mxu1 }
 0x3c2   : > { %v2592_v8 = vpack.c.bf16 %v2576_v3, %v2576_v3  ;;  %v2528_v33 = vpop.permute.xlu0 %2527 }
 0x3c3   : > { %v2575_v24 = vadd.f32 %v2528_v33, %v2319_v10 }
 0x3c4   : > { %2609 = vst.msk [vmem:[%s6903_s28 + $0x8] sm:$0xf] %vm2607_vm3, %v2592_v8  ;;  %v7373_v8 = vpop.f32.mrf.mxu0 }
 0x3c5   : > { %v2591_v36 = vpack.c.bf16 %v2575_v24, %v2575_v24 }
 0x3c7   : > { %2608 = vst.msk [vmem:[%s6903_s28] sm:$0xf] %vm2607_vm3, %v2591_v36  ;;  %v2797_v16 = vpop.permute.xlu1 %2796  ;;  %v3013_v0 = vpop.permute.xlu2 %3012 }
 0x3c8   : > { %v2830_v49 = vadd.f32 %v2797_v16, %v2638_v22  ;;  %v3034_v54 = vsel %vm1965_vm1, %v3013_v0, %v8535_v5  ;;  %v2490_v22 = vsel %vm1965_vm1, %v7221_v29, %v8568_v59  ;;  %v8569_v0 = vld [vmem:[#allocation114_spill] sm:$0xff]  ;;  %v7391_v29 = vpop.f32.mrf.mxu1 }
 0x3c9   : > { %v3050_v3 = vmul.f32 %v3034_v54, %v8506_v20  ;;  %v2492_v54 = vsel %vm1965_vm1, %v7300_v61, %v8569_v0  ;;  %v8572_v0 = vld [vmem:[#allocation37_spill] sm:$0xff] }
 0x3ca   : > { %v2846_v10 = vpack.c.bf16 %v2830_v49, %v2830_v49  ;;  %v3017_v33 = vpop.permute.xlu0 %3016 }
 0x3cb   : > { %v3036_v24 = vsel %vm1965_vm1, %v3017_v33, %v8523_v11  ;;  %3092 = vrot.lane.b32.xlu1 %v3050_v3, %s5028_s15  ;;  %v2506_v11 = vmul.f32 %v2490_v22, %v8507_v15 }
 0x3cc   : > { %2862 = vst.msk [vmem:[%s6903_s28 + $0x74] sm:$0xf] %vm2238_vm2, %v2846_v10  ;;  %v3052_v36 = vmul.f32 %v3036_v24, %v8512_v13  ;;  %v2639_v10 = vmul.f32 %v7330_v44, %v8525_v25  ;;  %v7398_v22 = vpop.f32.mrf.mxu0  ;;  %v8575_v44 = vld [vmem:[#allocation72_spill] sm:$0xff] }
 0x3ce   : > { %3096 = vrot.lane.b32.xlu2 %v3052_v36, %s5028_s15  ;;  %v1574_v36 = vadd.f32 %v7196_v43, %v7192_v42 }
 0x3cf   : > { %v3015_v5 = vpop.permute.xlu1 %3014  ;;  %v3019_v49 = vpop.permute.xlu2 %3018 }
 0x3d0   : > { %v3035_v16 = vsel %vm1965_vm1, %v3015_v5, %v8527_v2  ;;  %v8570_v2 = vld [vmem:[#allocation50_spill] sm:$0xff]  ;;  %v8571_v5 = vld [vmem:[#allocation115_spill] sm:$0xff] }
 0x3d1   : > { %v3051_v3 = vmul.f32 %v3035_v16, %v8507_v15  ;;  %v2508_v24 = vmul.f32 %v2492_v54, %v8570_v2  ;;  %v2491_v16 = vsel %vm1965_vm1, %v7292_v62, %v8571_v5  ;;  %v7413_v62 = vadd.f32 %v7211_v63, %v1574_v36 }
 0x3d2   : > { %v2799_v59 = vpop.permute.xlu0 %2798  ;;  %v1584_v63 = vadd.f32 %v7196_v43, %v7304_v58 }
 0x3d3   : > { %v2831_v33 = vadd.f32 %v2799_v59, %v2639_v10  ;;  %3094 = vrot.lane.b32.xlu0 %v3051_v3, %s5028_s15  ;;  %2549 = vrot.lane.b32.xlu1 %v2506_v11, %s5028_s15  ;;  %v8573_v10 = vld [vmem:[#allocation56_spill] sm:$0xff]  ;;  %v8574_v3 = vld [vmem:[#allocation47_spill] sm:$0xff] }
 0x3d4   : > { %v2321_v59 = vmul.f32 %v8573_v10, %v8572_v0  ;;  %v2323_v11 = vmul.f32 %v8575_v44, %v8574_v3  ;;  %v7422_v3 = vpop.f32.mrf.mxu1  ;;  %v7439_v58 = vadd.f32 %v7319_v47, %v1584_v63  ;;  %v8579_v63 = vld [vmem:[#allocation117_spill] sm:$0xff] }
 0x3d5   : > { %v2847_v61 = vpack.c.bf16 %v2831_v33, %v2831_v33  ;;  %v1579_v33 = vadd.f32 %v7196_v43, %v7246_v52 }
 0x3d6   : > { %2553 = vrot.lane.b32.xlu2 %v2508_v24, %s5028_s15  ;;  %v2507_v24 = vmul.f32 %v2491_v16, %v8512_v13  ;;  %v1587_v16 = vadd.f32 %v7196_v43, %v7336_v26 }
 0x3d7   : > { %2863 = vst.msk [vmem:[%s6903_s28 + $0x7c] sm:$0xf] %vm2238_vm2, %v2847_v61  ;;  %v2532_v54 = vpop.permute.xlu1 %2531  ;;  %v2536_v42 = vpop.permute.xlu2 %2535  ;;  %v7420_v61 = vadd.f32 %v7268_v6, %v1579_v33 }
 0x3d8   : > { %v2577_v20 = vadd.f32 %v2532_v54, %v2321_v59  ;;  %v2579_v15 = vadd.f32 %v2536_v42, %v2323_v11  ;;  %v7441_v11 = vpop.f32.mrf.mxu0  ;;  %v8578_v54 = vld [vmem:[#allocation66_spill] sm:$0xff]  ;;  %v7450_v26 = vadd.f32 %v7347_v37, %v1587_v16  ;;  %v8581_v37 = vld [vmem:[#allocation51_spill] sm:$0xff] }
 0x3d9   : > { %v2867_v16 = vmul.f32 %v8578_v54, %v8581_v37 }
 0x3da   : > { %v2593_v5 = vpack.c.bf16 %v2577_v20, %v2577_v20  ;;  %v2595_v0 = vpack.c.bf16 %v2579_v15, %v2579_v15  ;;  %v3023_v28 = vpop.permute.xlu0 %3022  ;;  %v3037_v15 = vsel %vm1965_vm1, %v3019_v49, %v8539_v50  ;;  %v8576_v20 = vld [vmem:[#allocation34_spill] sm:$0xff] }
 0x3db   : > { %2551 = vrot.lane.b32.xlu0 %v2507_v24, %s5028_s15  ;;  %3193 = vrot.lane.b32.xlu1 %v7413_v62, %s5029_s20  ;;  %v2864_v52 = vmul.f32 %v8567_v38, %v8576_v20  ;;  %v3053_v50 = vmul.f32 %v3037_v15, %v8570_v2  ;;  %v8577_v49 = vld [vmem:[#allocation46_spill] sm:$0xff]  ;;  %v2493_v15 = vsel %vm1965_vm1, %v7294_v45, %v8579_v63 }
 0x3dc   : > { %2610 = vst.msk [vmem:[%s6903_s28 + $0x10] sm:$0xf] %vm2607_vm3, %v2593_v5  ;;  %v2322_v42 = vmul.f32 %v8578_v54, %v8577_v49 }
 0x3dd   : > { %2612 = vst.msk [vmem:[%s6903_s28 + $0x20] sm:$0xf] %vm2607_vm3, %v2595_v0  ;;  %v7454_v0 = vpop.f32.mrf.mxu1 }
 0x3de   : > { %3199 = vrot.lane.b32.xlu2 %v7420_v61, %s5029_s20 }
 0x3df   : > { %v3021_v6 = vpop.permute.xlu1 %3020  ;;  %v3073_v36 = vpop.permute.xlu2 %3072 }
 0x3e0   : > { %v3120_v59 = vadd.f32 %v3073_v36, %v2864_v52  ;;  %v3038_v20 = vsel %vm1965_vm1, %v3021_v6, %v8536_v40  ;;  %v8580_v52 = vld [vmem:[#allocation36_spill] sm:$0xff]  ;;  %v3039_v40 = vsel %vm1965_vm1, %v3023_v28, %v8533_v55  ;;  %v1598_v37 = vpop.f32.mrf.mxu0  ;;  %v1582_v28 = vadd.f32 %v7196_v43, %v7279_v12 }
 0x3e1   : > { %v2865_v36 = vmul.f32 %v8565_v31, %v8580_v52 }
 0x3e2   : > { %v3136_v33 = vpack.c.bf16 %v3120_v59, %v3120_v59  ;;  %v2534_v24 = vpop.permute.xlu0 %2533 }
 0x3e3   : > { %v2578_v5 = vadd.f32 %v2534_v24, %v2322_v42  ;;  %3205 = vrot.lane.b32.xlu0 %v7439_v58, %s5029_s20  ;;  %3098 = vrot.lane.b32.xlu1 %v3053_v50, %s5028_s15  ;;  %v8582_v42 = vld [vmem:[#allocation58_spill] sm:$0xff] }
 0x3e4   : > { %3152 = vst.msk [vmem:[%s6903_s28 + $0x4] sm:$0xf] %vm2607_vm3, %v3136_v33  ;;  %v2509_v33 = vmul.f32 %v2493_v15, %v8582_v42  ;;  %v3054_v6 = vmul.f32 %v3038_v20, %v8582_v42  ;;  %v8583_v24 = vld [vmem:[#allocation42_spill] sm:$0xff]  ;;  %v8585_v20 = vld [vmem:[#allocation120_spill] sm:$0xff] }
 0x3e5   : > { %v2594_v47 = vpack.c.bf16 %v2578_v5, %v2578_v5  ;;  %v2866_v5 = vmul.f32 %v8573_v10, %v8583_v24 }
 0x3e6   : > { %3208 = vrot.lane.b32.xlu2 %v7450_v26, %s5029_s20 }
 0x3e7   : > { %2611 = vst.msk [vmem:[%s6903_s28 + $0x18] sm:$0xf] %vm2607_vm3, %v2594_v47  ;;  %v3075_v59 = vpop.permute.xlu1 %3074  ;;  %v3079_v50 = vpop.permute.xlu2 %3078 }
 0x3e8   : > { %v3121_v49 = vadd.f32 %v3075_v59, %v2865_v36  ;;  %v3123_v45 = vadd.f32 %v3079_v50, %v2867_v16  ;;  %v8584_v36 = vld [vmem:[#allocation65_spill] sm:$0xff]  ;;  %v2494_v16 = vsel %vm1965_vm1, %v7353_v30, %v8585_v20  ;;  %v8587_v50 = vld [vmem:[#allocation60_spill] sm:$0xff]  ;;  %v7497_v30 = vadd.f32 %v7298_v18, %v1582_v28 }
 0x3e9   : > { %v3055_v15 = vmul.f32 %v3039_v40, %v8584_v36  ;;  %v8586_v59 = vld [vmem:[#allocation53_spill] sm:$0xff]  ;;  %v1589_v18 = vadd.f32 %v7196_v43, %v7357_v48  ;;  %v1592_v28 = vadd.f32 %v7196_v43, %v7373_v8 }
 0x3ea   : > { %v3137_v63 = vpack.c.bf16 %v3121_v49, %v3121_v49  ;;  %v3139_v52 = vpack.c.bf16 %v3123_v45, %v3123_v45  ;;  %v3077_v47 = vpop.permute.xlu0 %3076  ;;  %v2324_v49 = vmul.f32 %v8587_v50, %v8586_v59  ;;  %v8588_v45 = vld [vmem:[#allocation74_spill] sm:$0xff] }
 0x3eb   : > { %v3122_v54 = vadd.f32 %v3077_v47, %v2866_v5  ;;  %3100 = vrot.lane.b32.xlu0 %v3054_v6, %s5028_s15  ;;  %2555 = vrot.lane.b32.xlu1 %v2509_v33, %s5028_s15  ;;  %v2326_v33 = vmul.f32 %v8588_v45, %v8501_v14  ;;  %v1647_v5 = vpop.f32.mrf.mxu1 }
 0x3ec   : > { %3153 = vst.msk [vmem:[%s6903_s28 + $0xc] sm:$0xf] %vm2607_vm3, %v3137_v63  ;;  %v2510_v63 = vmul.f32 %v2494_v16, %v8584_v36  ;;  %v1601_v16 = vpop.f32.mrf.mxu0 }
 0x3ed   : > { %3155 = vst.msk [vmem:[%s6903_s28 + $0x1c] sm:$0xf] %vm2607_vm3, %v3139_v52  ;;  %v3138_v55 = vpack.c.bf16 %v3122_v54, %v3122_v54  ;;  %v1594_v54 = vadd.f32 %v7196_v43, %v7398_v22  ;;  %v8589_v52 = vld [vmem:[#allocation57_spill] sm:$0xff]  ;;  %v1602_v8 = vadd.f32 %v7196_v43, %v1601_v16  ;;  %v2871_v16 = vmul.f32 %v8588_v45, %v6143_v32 }
 0x3ee   : > { %3102 = vrot.lane.b32.xlu2 %v3055_v15, %s5028_s15  ;;  %v2869_v14 = vmul.f32 %v8587_v50, %v8589_v52  ;;  %v8593_v52 = vld [vmem:[#allocation62_spill] sm:$0xff] }
 0x3ef   : > { %3154 = vst.msk [vmem:[%s6903_s28 + $0x14] sm:$0xf] %vm2607_vm3, %v3138_v55  ;;  %v2538_v40 = vpop.permute.xlu1 %2537  ;;  %v2542_v12 = vpop.permute.xlu2 %2541  ;;  %v7506_v22 = vadd.f32 %v7422_v3, %v1594_v54  ;;  %v8592_v3 = vld [vmem:[#allocation70_spill] sm:$0xff] }
 0x3f0   : > { %v2580_v6 = vadd.f32 %v2538_v40, %v2324_v49  ;;  %v2582_v24 = vadd.f32 %v2542_v12, %v2326_v33  ;;  %v8591_v49 = vld [vmem:[#allocation52_spill] sm:$0xff]  ;;  %v2870_v40 = vmul.f32 %v8592_v3, %v8541_v39 }
 0x3f1   : > { %8590 = vst [vmem:[#allocation59_spill] sm:$0xff] %v7506_v22  ;;  %v2868_v33 = vmul.f32 %v8575_v44, %v8591_v49 }
 0x3f2   : > { %v2596_v47 = vpack.c.bf16 %v2580_v6, %v2580_v6  ;;  %v2598_v15 = vpack.c.bf16 %v2582_v24, %v2582_v24  ;;  %v3083_v55 = vpop.permute.xlu0 %3082  ;;  %v7526_v24 = vadd.f32 %v7365_v35, %v1589_v18  ;;  %v1599_v18 = vadd.f32 %v7196_v43, %v1598_v37 }
 0x3f3   : > { %v3125_v20 = vadd.f32 %v3083_v55, %v2869_v14  ;;  %2557 = vrot.lane.b32.xlu0 %v2510_v63, %s5028_s15  ;;  %3202 = vrot.lane.b32.xlu1 %v7497_v30, %s5029_s20  ;;  %v7529_v63 = vadd.f32 %v7391_v29, %v1592_v28  ;;  %v2325_v14 = vmul.f32 %v8592_v3, %v8593_v52  ;;  %v1650_v55 = vpop.f32.mrf.mxu1 }
 0x3f4   : > { %2613 = vst.msk [vmem:[%s6903_s28 + $0x28] sm:$0xf] %vm2607_vm3, %v2596_v47  ;;  %v7537_v35 = vadd.f32 %v1650_v55, %v1602_v8  ;;  %v1597_v29 = vadd.f32 %v7196_v43, %v7441_v11  ;;  %v1603_v8 = vpop.f32.mrf.mxu0 }
 0x3f5   : > { %2615 = vst.msk [vmem:[%s6903_s28 + $0x38] sm:$0xf] %vm2607_vm3, %v2598_v15  ;;  %v3141_v59 = vpack.c.bf16 %v3125_v20, %v3125_v20  ;;  %v1604_v32 = vadd.f32 %v7196_v43, %v1603_v8 }
 0x3f6   : > { %3217 = vrot.lane.b32.xlu2 %v7506_v22, %s5029_s20  ;;  %8594 = vst [vmem:[#allocation86_spill] sm:$0xff] %v7537_v35 }
 0x3f7   : > { %3157 = vst.msk [vmem:[%s6903_s28 + $0x2c] sm:$0xf] %vm2607_vm3, %v3141_v59  ;;  %v3081_v12 = vpop.permute.xlu1 %3080  ;;  %v3085_v48 = vpop.permute.xlu2 %3084  ;;  %v8595_v59 = vld [vmem:[#allocation73_spill] sm:$0xff] }
 0x3f8   : > { %v3124_v54 = vadd.f32 %v3081_v12, %v2868_v33  ;;  %v3126_v6 = vadd.f32 %v3085_v48, %v2870_v40  ;;  %v2873_v49 = vmul.f32 %v8595_v59, %v6217_v60  ;;  %v7555_v12 = vadd.f32 %v7454_v0, %v1597_v29  ;;  %v8597_v0 = vld [vmem:[#allocation64_spill] sm:$0xff] }
 0x3f9   : > { %v7557_v48 = vadd.f32 %v1647_v5, %v1599_v18  ;;  %v2327_v5 = vmul.f32 %v8597_v0, %v6149_v17  ;;  %v2872_v18 = vmul.f32 %v8597_v0, %v6164_v41 }
 0x3fa   : > { %v3140_v39 = vpack.c.bf16 %v3124_v54, %v3124_v54  ;;  %v3142_v47 = vpack.c.bf16 %v3126_v6, %v3126_v6  ;;  %v2540_v15 = vpop.permute.xlu0 %2539  ;;  %8596 = vst [vmem:[#allocation87_spill] sm:$0xff] %v7555_v12 }
 0x3fb   : > { %v2581_v20 = vadd.f32 %v2540_v15, %v2325_v14  ;;  %3214 = vrot.lane.b32.xlu0 %v7529_v63, %s5029_s20  ;;  %3211 = vrot.lane.b32.xlu1 %v7526_v24, %s5029_s20  ;;  %v8598_v14 = vld [vmem:[#allocation77_spill] sm:$0xff]  ;;  %v1652_v55 = vpop.f32.mrf.mxu1 }
 0x3fc   : > { %3156 = vst.msk [vmem:[%s6903_s28 + $0x24] sm:$0xf] %vm2607_vm3, %v3140_v39  ;;  %v2329_v39 = vmul.f32 %v8598_v14, %v8555_v9  ;;  %v7575_v29 = vadd.f32 %v1652_v55, %v1604_v32 }
 0x3fd   : > { %3158 = vst.msk [vmem:[%s6903_s28 + $0x34] sm:$0xf] %vm2607_vm3, %v3142_v47  ;;  %v2597_v28 = vpack.c.bf16 %v2581_v20, %v2581_v20 }
 0x3fe   : > { %3226 = vrot.lane.b32.xlu2 %v7537_v35, %s5029_s20  ;;  %8599 = vst [vmem:[#allocation91_spill] sm:$0xff] %v7575_v29 }
 0x3ff   : > { %2614 = vst.msk [vmem:[%s6903_s28 + $0x30] sm:$0xf] %vm2607_vm3, %v2597_v28  ;;  %v3087_v33 = vpop.permute.xlu1 %3086  ;;  %v3091_v11 = vpop.permute.xlu2 %3090 }
 0x400   : > { %v3127_v40 = vadd.f32 %v3087_v33, %v2871_v16  ;;  %v3129_v37 = vadd.f32 %v3091_v11, %v2873_v49 }
 0x402   : > { %v3143_v54 = vpack.c.bf16 %v3127_v40, %v3127_v40  ;;  %v3145_v6 = vpack.c.bf16 %v3129_v37, %v3129_v37  ;;  %v3188_v52 = vpop.permute.xlu0 %3187  ;;  %v2328_v40 = vmul.f32 %v8595_v59, %v6198_v1 }
 0x403   : > { %3223 = vrot.lane.b32.xlu0 %v7557_v48, %s5029_s20  ;;  %3220 = vrot.lane.b32.xlu1 %v7555_v12, %s5029_s20  ;;  %v3189_v60 = vsel %vm1965_vm1, %v3188_v52, %v7215_v34 }
 0x404   : > { %3159 = vst.msk [vmem:[%s6903_s28 + $0x3c] sm:$0xf] %vm2607_vm3, %v3143_v54 }
 0x405   : > { %3161 = vst.msk [vmem:[%s6903_s28 + $0x4c] sm:$0xf] %vm2607_vm3, %v3145_v6 }
 0x406   : > { %3234 = vrot.lane.b32.xlu2 %v3189_v60, %s5029_s20  ;;  %v8600_v60 = vld [vmem:[#allocation76_spill] sm:$0xff] }
 0x407   : > { %v2544_v47 = vpop.permute.xlu1 %2543  ;;  %v2548_v15 = vpop.permute.xlu2 %2547  ;;  %v2876_v1 = vmul.f32 %v8600_v60, %v8511_v7  ;;  %v2874_v7 = vmul.f32 %v8598_v14, %v8510_v56 }
 0x408   : > { %v2583_v43 = vadd.f32 %v2544_v47, %v2327_v5  ;;  %v2585_v20 = vadd.f32 %v2548_v15, %v2329_v39  ;;  %v8601_v15 = vld [vmem:[#allocation82_spill] sm:$0xff] }
 0x409   : > { %v2332_v55 = vmul.f32 %v8601_v15, %v8514_v4 }
 0x40a   : > { %v2599_v28 = vpack.c.bf16 %v2583_v43, %v2583_v43  ;;  %v2601_v16 = vpack.c.bf16 %v2585_v20, %v2585_v20  ;;  %v3089_v49 = vpop.permute.xlu0 %3088 }
 0x40b   : > { %v3128_v33 = vadd.f32 %v3089_v49, %v2872_v18  ;;  %3229 = vrot.lane.b32.xlu1 %v7575_v29, %s5029_s20 }
 0x40c   : > { %2616 = vst.msk [vmem:[%s6903_s28 + $0x40] sm:$0xf] %vm2607_vm3, %v2599_v28 }
 0x40d   : > { %2618 = vst.msk [vmem:[%s6903_s28 + $0x50] sm:$0xf] %vm2607_vm3, %v2601_v16  ;;  %v3144_v17 = vpack.c.bf16 %v3128_v33, %v3128_v33 }
 0x40f   : > { %3160 = vst.msk [vmem:[%s6903_s28 + $0x44] sm:$0xf] %vm2607_vm3, %v3144_v17  ;;  %v3185_v9 = vpop.permute.xlu1 %3184  ;;  %v3191_v11 = vpop.permute.xlu2 %3190 }
 0x410   : > { %v3186_v41 = vsel %vm1965_vm1, %v3185_v9, %v7251_v19  ;;  %v3192_v37 = vsel %vm1965_vm1, %v3191_v11, %v7317_v27  ;;  %v8602_v11 = vld [vmem:[#allocation68_spill] sm:$0xff] }
 0x411   : > { %3232 = vrot.lane.b32.xlu0 %v3186_v41, %s5029_s20  ;;  %v2330_v41 = vmul.f32 %v8602_v11, %v8558_v53  ;;  %v2875_v56 = vmul.f32 %v8602_v11, %v8560_v46  ;;  %v2331_v46 = vmul.f32 %v8600_v60, %v8513_v57  ;;  %v2877_v57 = vmul.f32 %v8601_v15, %v8521_v21  ;;  %v8604_v21 = vld [vmem:[#allocation71_spill] sm:$0xff] }
 0x412   : > { %v2546_v8 = vpop.permute.xlu0 %2545 }
 0x413   : > { %v2584_v54 = vadd.f32 %v2546_v8, %v2328_v40  ;;  %3236 = vrot.lane.b32.xlu1 %v3192_v37, %s5029_s20 }
 0x415   : > { %v2600_v6 = vpack.c.bf16 %v2584_v54, %v2584_v54 }
 0x417   : > { %2617 = vst.msk [vmem:[%s6903_s28 + $0x48] sm:$0xf] %vm2607_vm3, %v2600_v6  ;;  %v8603_v6 = vld [vmem:[#allocation81_spill] sm:$0xff] }
 0x41a   : > { %v3197_v52 = vpop.permute.xlu0 %3196 }
 0x41b   : > { %v3198_v32 = vsel %vm1965_vm1, %v3197_v52, %v7283_v23  ;;  %v2879_v52 = vmul.f32 %v8603_v6, %v8525_v25 }
 0x41c   : > { %3240 = vrot.lane.b32.xlu2 %v3198_v32, %s5029_s20 }
 0x428   : > { %v3097_v5 = vpop.permute.xlu2 %3096 }
 0x429   : > { %v3132_v39 = vadd.f32 %v3097_v5, %v2876_v1 }
 0x42b   : > { %v3148_v47 = vpack.c.bf16 %v3132_v39, %v3132_v39 }
 0x42d   : > { %3164 = vst.msk [vmem:[%s6903_s28 + $0x64] sm:$0xf] %vm2607_vm3, %v3148_v47 }
 0x430   : > { %v2554_v43 = vpop.permute.xlu2 %2553 }
 0x431   : > { %v2588_v20 = vadd.f32 %v2554_v43, %v2332_v55 }
 0x433   : > { %v2604_v18 = vpack.c.bf16 %v2588_v20, %v2588_v20 }
 0x435   : > { %2621 = vst.msk [vmem:[%s6903_s28 + $0x68] sm:$0xf] %vm2607_vm3, %v2604_v18 }
 0x438   : > { %v3200_v28 = vpop.permute.xlu2 %3199 }
 0x439   : > { %v3201_v16 = vsel %vm1965_vm1, %v3200_v28, %v7420_v61 }
 0x43a   : > { %3242 = vrot.lane.b32.xlu1 %v3201_v16, %s5029_s20 }
 0x43d   : > { %v3093_v49 = vpop.permute.xlu1 %3092 }
 0x43e   : > { %v3130_v33 = vadd.f32 %v3093_v49, %v2874_v7 }
 0x440   : > { %v3146_v17 = vpack.c.bf16 %v3130_v33, %v3130_v33  ;;  %v3209_v9 = vpop.permute.xlu2 %3208 }
 0x441   : > { %v3210_v4 = vsel %vm1965_vm1, %v3209_v9, %v7450_v26 }
 0x442   : > { %3162 = vst.msk [vmem:[%s6903_s28 + $0x54] sm:$0xf] %vm2607_vm3, %v3146_v17  ;;  %3248 = vrot.lane.b32.xlu1 %v3210_v4, %s5029_s20 }
 0x445   : > { %v2550_v40 = vpop.permute.xlu1 %2549  ;;  %v3095_v37 = vpop.permute.xlu0 %3094 }
 0x446   : > { %v2586_v8 = vadd.f32 %v2550_v40, %v2330_v41  ;;  %v3131_v54 = vadd.f32 %v3095_v37, %v2875_v56  ;;  %v2333_v41 = vmul.f32 %v8604_v21, %v8515_v51  ;;  %v8605_v56 = vld [vmem:[#allocation95_spill] sm:$0xff]  ;;  %v8607_v51 = vld [vmem:[#allocation98_spill] sm:$0xff] }
 0x447   : > { %v2878_v40 = vmul.f32 %v8604_v21, %v8605_v56  ;;  %v8608_v56 = vld [vmem:[#allocation35_spill] sm:$0xff] }
 0x448   : > { %v2602_v32 = vpack.c.bf16 %v2586_v8, %v2586_v8  ;;  %v3147_v1 = vpack.c.bf16 %v3131_v54, %v3131_v54  ;;  %v3103_v5 = vpop.permute.xlu2 %3102 }
 0x449   : > { %v3135_v39 = vadd.f32 %v3103_v5, %v2879_v52 }
 0x44a   : > { %2619 = vst.msk [vmem:[%s6903_s28 + $0x58] sm:$0xf] %vm2607_vm3, %v2602_v32 }
 0x44b   : > { %3163 = vst.msk [vmem:[%s6903_s28 + $0x5c] sm:$0xf] %vm2607_vm3, %v3147_v1  ;;  %v3151_v53 = vpack.c.bf16 %v3135_v39, %v3135_v39 }
 0x44d   : > { %3167 = vst.msk [vmem:[%s6903_s28 + $0x7c] sm:$0xf] %vm2607_vm3, %v3151_v53  ;;  %v3194_v47 = vpop.permute.xlu1 %3193  ;;  %v2552_v55 = vpop.permute.xlu0 %2551  ;;  %v8606_v53 = vld [vmem:[#allocation33_spill] sm:$0xff] }
 0x44e   : > { %v3195_v25 = vsel %vm1965_vm1, %v3194_v47, %v7413_v62  ;;  %v2587_v43 = vadd.f32 %v2552_v55, %v2331_v46  ;;  %v2334_v47 = vmul.f32 %v8603_v6, %v8607_v51 }
 0x44f   : > { %3238 = vrot.lane.b32.xlu0 %v3195_v25, %s5029_s20 }
 0x450   : > { %v2603_v20 = vpack.c.bf16 %v2587_v43, %v2587_v43  ;;  %v3218_v18 = vpop.permute.xlu2 %3217 }
 0x451   : > { %v3219_v28 = vsel %vm1965_vm1, %v3218_v18, %v7506_v22 }
 0x452   : > { %2620 = vst.msk [vmem:[%s6903_s28 + $0x60] sm:$0xf] %vm2607_vm3, %v2603_v20  ;;  %3254 = vrot.lane.b32.xlu1 %v3219_v28, %s5029_s20 }
 0x455   : > { %v3099_v16 = vpop.permute.xlu1 %3098  ;;  %v3206_v7 = vpop.permute.xlu0 %3205 }
 0x456   : > { %v3133_v49 = vadd.f32 %v3099_v16, %v2877_v57  ;;  %v3207_v33 = vsel %vm1965_vm1, %v3206_v7, %v7439_v58 }
 0x457   : > { %3246 = vrot.lane.b32.xlu2 %v3207_v33, %s5029_s20 }
 0x458   : > { %v3149_v17 = vpack.c.bf16 %v3133_v49, %v3133_v49  ;;  %v3227_v9 = vpop.permute.xlu2 %3226 }
 0x459   : > { %v3228_v4 = vsel %vm1965_vm1, %v3227_v9, %v7537_v35 }
 0x45a   : > { %3165 = vst.msk [vmem:[%s6903_s28 + $0x6c] sm:$0xf] %vm2607_vm3, %v3149_v17  ;;  %3260 = vrot.lane.b32.xlu1 %v3228_v4, %s5029_s20 }
 0x45d   : > { %v2556_v37 = vpop.permute.xlu1 %2555  ;;  %v3101_v8 = vpop.permute.xlu0 %3100 }
 0x45e   : > { %v2589_v54 = vadd.f32 %v2556_v37, %v2333_v41  ;;  %v3134_v52 = vadd.f32 %v3101_v8, %v2878_v40 }
 0x460   : > { %v2605_v32 = vpack.c.bf16 %v2589_v54, %v2589_v54  ;;  %v3150_v1 = vpack.c.bf16 %v3134_v52, %v3134_v52  ;;  %v3235_v5 = vpop.permute.xlu2 %3234 }
 0x461   : > { %v3265_v39 = vsel %vm1965_vm1, %v3235_v5, %v7215_v34 }
 0x462   : > { %2622 = vst.msk [vmem:[%s6903_s28 + $0x70] sm:$0xf] %vm2607_vm3, %v2605_v32  ;;  %v3281_v46 = vmul.f32 %v3265_v39, %v8606_v53  ;;  %v8609_v32 = vld [vmem:[#allocation39_spill] sm:$0xff] }
 0x463   : > { %3166 = vst.msk [vmem:[%s6903_s28 + $0x74] sm:$0xf] %vm2607_vm3, %v3150_v1 }
 0x464   : > { %3314 = vrot.lane.b32.xlu1 %v3281_v46, %s5030_s14  ;;  %v8610_v46 = vld [vmem:[#allocation38_spill] sm:$0xff] }
 0x465   : > { %v3203_v55 = vpop.permute.xlu1 %3202  ;;  %v2558_v25 = vpop.permute.xlu0 %2557 }
 0x466   : > { %v3204_v43 = vsel %vm1965_vm1, %v3203_v55, %v7497_v30  ;;  %v2590_v20 = vadd.f32 %v2558_v25, %v2334_v47  ;;  %v8611_v25 = vld [vmem:[#allocation43_spill] sm:$0xff] }
 0x467   : > { %3244 = vrot.lane.b32.xlu0 %v3204_v43, %s5029_s20 }
 0x468   : > { %v2606_v18 = vpack.c.bf16 %v2590_v20, %v2590_v20 }
 0x46a   : > { %2623 = vst.msk [vmem:[%s6903_s28 + $0x78] sm:$0xf] %vm2607_vm3, %v2606_v18 }
 0x46d   : > { %v3212_v28 = vpop.permute.xlu1 %3211  ;;  %v3215_v57 = vpop.permute.xlu0 %3214 }
 0x46e   : > { %v3213_v16 = vsel %vm1965_vm1, %v3212_v28, %v7526_v24  ;;  %v3216_v7 = vsel %vm1965_vm1, %v3215_v57, %v7529_v63  ;;  %v8612_v28 = vld [vmem:[#allocation41_spill] sm:$0xff] }
 0x46f   : > { %3250 = vrot.lane.b32.xlu0 %v3213_v16, %s5029_s20  ;;  %3252 = vrot.lane.b32.xlu2 %v3216_v7, %s5029_s20 }
 0x475   : > { %v3221_v49 = vpop.permute.xlu1 %3220  ;;  %v3224_v33 = vpop.permute.xlu0 %3223 }
 0x476   : > { %v3222_v17 = vsel %vm1965_vm1, %v3221_v49, %v7555_v12  ;;  %v3241_v9 = vpop.permute.xlu2 %3240  ;;  %v3225_v4 = vsel %vm1965_vm1, %v3224_v33, %v7557_v48  ;;  %v8613_v49 = vld [vmem:[#allocation48_spill] sm:$0xff] }
 0x477   : > { %v3268_v41 = vsel %vm1965_vm1, %v3241_v9, %v7283_v23  ;;  %3256 = vrot.lane.b32.xlu0 %v3222_v17, %s5029_s20  ;;  %3258 = vrot.lane.b32.xlu2 %v3225_v4, %s5029_s20  ;;  %v8614_v4 = vld [vmem:[#allocation44_spill] sm:$0xff] }
 0x478   : > { %v3284_v40 = vmul.f32 %v3268_v41, %v8608_v56 }
 0x47a   : > { %3320 = vrot.lane.b32.xlu1 %v3284_v40, %s5030_s14 }
 0x47d   : > { %v3230_v37 = vpop.permute.xlu1 %3229 }
 0x47e   : > { %v3231_v8 = vsel %vm1965_vm1, %v3230_v37, %v7575_v29 }
 0x47f   : > { %3262 = vrot.lane.b32.xlu0 %v3231_v8, %s5029_s20  ;;  %v8615_v8 = vld [vmem:[#allocation54_spill] sm:$0xff] }
 0x483   : > { %v3233_v54 = vpop.permute.xlu0 %3232 }
 0x484   : > { %v3264_v52 = vsel %vm1965_vm1, %v3233_v54, %v7251_v19 }
 0x485   : > { %v3280_v1 = vmul.f32 %v3264_v52, %v8609_v32  ;;  %v3237_v5 = vpop.permute.xlu1 %3236 }
 0x486   : > { %v3266_v39 = vsel %vm1965_vm1, %v3237_v5, %v7317_v27  ;;  %v8616_v5 = vld [vmem:[#allocation45_spill] sm:$0xff] }
 0x487   : > { %v3282_v51 = vmul.f32 %v3266_v39, %v8610_v46  ;;  %3312 = vrot.lane.b32.xlu2 %v3280_v1, %s5030_s14 }
 0x489   : > { %3316 = vrot.lane.b32.xlu0 %v3282_v51, %s5030_s14 }
 0x4ac   : > { %v3243_v47 = vpop.permute.xlu1 %3242 }
 0x4ad   : > { %v3269_v55 = vsel %vm1965_vm1, %v3243_v47, %v7420_v61 }
 0x4ae   : > { %v3285_v43 = vmul.f32 %v3269_v55, %v8611_v25 }
 0x4b0   : > { %3322 = vrot.lane.b32.xlu0 %v3285_v43, %s5030_s14 }
 0x4b1   : > { %v3247_v20 = vpop.permute.xlu2 %3246 }
 0x4b2   : > { %v3271_v18 = vsel %vm1965_vm1, %v3247_v20, %v7439_v58 }
 0x4b3   : > { %v3287_v57 = vmul.f32 %v3271_v18, %v8612_v28 }
 0x4b4   : > { %v3249_v16 = vpop.permute.xlu1 %3248 }
 0x4b5   : > { %v3272_v7 = vsel %vm1965_vm1, %v3249_v16, %v7450_v26  ;;  %3326 = vrot.lane.b32.xlu1 %v3287_v57, %s5030_s14  ;;  %v4655_v57 = vld [vmem:[%s5618_s27 + $0x8] sm:$0xff] }
 0x4b6   : > { %v3288_v33 = vmul.f32 %v3272_v7, %v8613_v49  ;;  %v3169_v16 = vmul.f32 %v4655_v57, %v7215_v34 }
 0x4b8   : > { %3328 = vrot.lane.b32.xlu0 %v3288_v33, %s5030_s14 }
 0x4c1   : > { %v3239_v17 = vpop.permute.xlu0 %3238 }
 0x4c2   : > { %v3267_v9 = vsel %vm1965_vm1, %v3239_v17, %v7413_v62 }
 0x4c3   : > { %v3283_v41 = vmul.f32 %v3267_v9, %v8614_v4 }
 0x4c4   : > { %v3255_v40 = vpop.permute.xlu1 %3254 }
 0x4c5   : > { %v3275_v37 = vsel %vm1965_vm1, %v3255_v40, %v7506_v22  ;;  %3318 = vrot.lane.b32.xlu2 %v3283_v41, %s5030_s14  ;;  %v8617_v40 = vld [vmem:[#allocation49_spill] sm:$0xff] }
 0x4c6   : > { %v3291_v54 = vmul.f32 %v3275_v37, %v8615_v8 }
 0x4c8   : > { %3334 = vrot.lane.b32.xlu0 %v3291_v54, %s5030_s14  ;;  %v4656_v54 = vld [vmem:[%s5618_s27] sm:$0xff] }
 0x4c9   : > { %v3253_v52 = vpop.permute.xlu2 %3252 }
 0x4ca   : > { %v3274_v1 = vsel %vm1965_vm1, %v3253_v52, %v7529_v63  ;;  %v3168_v52 = vmul.f32 %v4656_v54, %v7251_v19 }
 0x4cb   : > { %v3290_v39 = vmul.f32 %v3274_v1, %v8616_v5 }
 0x4cc   : > { %v3261_v51 = vpop.permute.xlu1 %3260 }
 0x4cd   : > { %v3278_v47 = vsel %vm1965_vm1, %v3261_v51, %v7537_v35  ;;  %3332 = vrot.lane.b32.xlu1 %v3290_v39, %s5030_s14 }
 0x4ce   : > { %v3294_v55 = vmul.f32 %v3278_v47, %v8582_v42 }
 0x4d0   : > { %3340 = vrot.lane.b32.xlu0 %v3294_v55, %s5030_s14  ;;  %v8618_v55 = vld [vmem:[#allocation55_spill] sm:$0xff] }
 0x4d1   : > { %v3259_v43 = vpop.permute.xlu2 %3258 }
 0x4d2   : > { %v3277_v20 = vsel %vm1965_vm1, %v3259_v43, %v7557_v48 }
 0x4d3   : > { %v3293_v18 = vmul.f32 %v3277_v20, %v8570_v2 }
 0x4d5   : > { %3338 = vrot.lane.b32.xlu1 %v3293_v18, %s5030_s14 }
 0x4d6   : > { %v3315_v7 = vpop.permute.xlu1 %3314 }
 0x4d7   : > { %v3361_v33 = vadd.f32 %v3315_v7, %v3169_v16  ;;  %v4657_v7 = vld [vmem:[%s5618_s27 + $0x20] sm:$0xff] }
 0x4d8   : > { %3442 = vrot.lane.b32.xlu0 %v7215_v34, %s5029_s20 }
 0x4d9   : > { %v3377_v17 = vpack.c.bf16 %v3361_v33, %v3361_v33  ;;  %v3245_v9 = vpop.permute.xlu0 %3244  ;;  %v3172_v33 = vmul.f32 %v4657_v7, %v7283_v23  ;;  %v4660_v7 = vld [vmem:[%s5618_s27 + $0x28] sm:$0xff] }
 0x4da   : > { %v3270_v41 = vsel %vm1965_vm1, %v3245_v9, %v7497_v30 }
 0x4db   : > { %3393 = vst.msk [vmem:[%s7736_s21 + $0x4] sm:$0xf] %vm2238_vm2, %v3377_v17  ;;  %v3286_v37 = vmul.f32 %v3270_v41, %v8617_v40 }
 0x4dd   : > { %3440 = vrot.lane.b32.xlu1 %v7251_v19, %s5029_s20  ;;  %3324 = vrot.lane.b32.xlu2 %v3286_v37, %s5030_s14 }
 0x4e0   : > { %3448 = vrot.lane.b32.xlu0 %v7283_v23, %s5029_s20 }
 0x4e1   : > { %v3313_v1 = vpop.permute.xlu2 %3312  ;;  %v3251_v39 = vpop.permute.xlu0 %3250 }
 0x4e2   : > { %v3360_v51 = vadd.f32 %v3313_v1, %v3168_v52  ;;  %v3273_v47 = vsel %vm1965_vm1, %v3251_v39, %v7526_v24  ;;  %v4658_v1 = vld [vmem:[%s5618_s27 + $0x10] sm:$0xff] }
 0x4e3   : > { %v3289_v43 = vmul.f32 %v3273_v47, %v8618_v55  ;;  %v3170_v39 = vmul.f32 %v4658_v1, %v7317_v27 }
 0x4e4   : > { %v3376_v20 = vpack.c.bf16 %v3360_v51, %v3360_v51 }
 0x4e5   : > { %3446 = vrot.lane.b32.xlu1 %v7413_v62, %s5029_s20  ;;  %3330 = vrot.lane.b32.xlu2 %v3289_v43, %s5030_s14 }
 0x4e6   : > { %3392 = vst.msk [vmem:[%s7736_s21] sm:$0xf] %vm2238_vm2, %v3376_v20  ;;  %v4659_v20 = vld [vmem:[%s5618_s27 + $0x18] sm:$0xff] }
 0x4e8   : > { %3454 = vrot.lane.b32.xlu0 %v7439_v58, %s5029_s20 }
 0x4e9   : > { %v3257_v18 = vpop.permute.xlu0 %3256 }
 0x4ea   : > { %v3276_v57 = vsel %vm1965_vm1, %v3257_v18, %v7555_v12  ;;  %v3171_v18 = vmul.f32 %v4659_v20, %v7413_v62 }
 0x4eb   : > { %v3292_v16 = vmul.f32 %v3276_v57, %v8512_v13 }
 0x4ec   : > { %v3321_v17 = vpop.permute.xlu1 %3320 }
 0x4ed   : > { %v3364_v9 = vadd.f32 %v3321_v17, %v3172_v33  ;;  %3452 = vrot.lane.b32.xlu1 %v7497_v30, %s5029_s20  ;;  %3336 = vrot.lane.b32.xlu2 %v3292_v16, %s5030_s14  ;;  %v3173_v33 = vmul.f32 %v4660_v7, %v7420_v61 }
 0x4ef   : > { %v3380_v41 = vpack.c.bf16 %v3364_v9, %v3364_v9 }
 0x4f0   : > { %3460 = vrot.lane.b32.xlu0 %v7529_v63, %s5029_s20 }
 0x4f1   : > { %3396 = vst.msk [vmem:[%s7736_s21 + $0x10] sm:$0xf] %vm2238_vm2, %v3380_v41  ;;  %v3263_v37 = vpop.permute.xlu0 %3262 }
 0x4f2   : > { %v3279_v54 = vsel %vm1965_vm1, %v3263_v37, %v7575_v29 }
 0x4f3   : > { %v3295_v52 = vmul.f32 %v3279_v54, %v8584_v36  ;;  %v4661_v54 = vld [vmem:[%s5618_s27 + $0x38] sm:$0xff] }
 0x4f5   : > { %3458 = vrot.lane.b32.xlu1 %v7526_v24, %s5029_s20  ;;  %3342 = vrot.lane.b32.xlu2 %v3295_v52, %s5030_s14  ;;  %v3175_v52 = vmul.f32 %v4661_v54, %v7439_v58 }
 0x4f8   : > { %3466 = vrot.lane.b32.xlu0 %v7557_v48, %s5029_s20 }
 0x4fb   : > { %v3317_v51 = vpop.permute.xlu0 %3316 }
 0x4fc   : > { %v3362_v47 = vadd.f32 %v3317_v51, %v3170_v39  ;;  %v4662_v51 = vld [vmem:[%s5618_s27 + $0x40] sm:$0xff] }
 0x4fd   : > { %3464 = vrot.lane.b32.xlu1 %v7555_v12, %s5029_s20  ;;  %3444 = vrot.lane.b32.xlu2 %v7317_v27, %s5029_s20 }
 0x4fe   : > { %v3378_v43 = vpack.c.bf16 %v3362_v47, %v3362_v47  ;;  %v3176_v47 = vmul.f32 %v4662_v51, %v7450_v26 }
 0x500   : > { %3394 = vst.msk [vmem:[%s7736_s21 + $0x8] sm:$0xf] %vm2238_vm2, %v3378_v43 }
 0x505   : > { %3470 = vrot.lane.b32.xlu1 %v7575_v29, %s5029_s20  ;;  %3450 = vrot.lane.b32.xlu2 %v7420_v61, %s5029_s20 }
 0x50d   : > { %3456 = vrot.lane.b32.xlu2 %v7450_v26, %s5029_s20 }
 0x515   : > { %3462 = vrot.lane.b32.xlu2 %v7506_v22, %s5029_s20 }
 0x51d   : > { %3468 = vrot.lane.b32.xlu2 %v7537_v35, %s5029_s20 }
 0x51f   : > { %v3319_v57 = vpop.permute.xlu2 %3318 }
 0x520   : > { %v3363_v16 = vadd.f32 %v3319_v57, %v3171_v18 }
 0x522   : > { %v3379_v17 = vpack.c.bf16 %v3363_v16, %v3363_v16  ;;  %v3323_v9 = vpop.permute.xlu0 %3322  ;;  %v4663_v16 = vld [vmem:[%s5618_s27 + $0x30] sm:$0xff] }
 0x523   : > { %v3365_v41 = vadd.f32 %v3323_v9, %v3173_v33  ;;  %v3174_v7 = vmul.f32 %v4663_v16, %v7497_v30  ;;  %v8619_v9 = vld [vmem:[#allocation100_spill] sm:$0xff] }
 0x524   : > { %3395 = vst.msk [vmem:[%s7736_s21 + $0xc] sm:$0xf] %vm2238_vm2, %v3379_v17 }
 0x525   : > { %v3381_v37 = vpack.c.bf16 %v3365_v41, %v3365_v41  ;;  %v3179_v41 = vmul.f32 %v8619_v9, %v7506_v22 }
 0x527   : > { %3397 = vst.msk [vmem:[%s7736_s21 + $0x14] sm:$0xf] %vm2238_vm2, %v3381_v37  ;;  %v3327_v1 = vpop.permute.xlu1 %3326 }
 0x528   : > { %v3367_v39 = vadd.f32 %v3327_v1, %v3175_v52 }
 0x52a   : > { %v3383_v43 = vpack.c.bf16 %v3367_v39, %v3367_v39  ;;  %v3329_v20 = vpop.permute.xlu0 %3328  ;;  %v4664_v39 = vld [vmem:[%s5618_s27 + $0x50] sm:$0xff] }
 0x52b   : > { %v3368_v18 = vadd.f32 %v3329_v20, %v3176_v47  ;;  %v3178_v51 = vmul.f32 %v4664_v39, %v7529_v63  ;;  %v4665_v47 = vld [vmem:[%s5618_s27 + $0x48] sm:$0xff]  ;;  %v4666_v39 = vld [vmem:[%s5618_s27 + $0x60] sm:$0xff]  ;;  %s3737_s27 = scalar_lea.hbm %s8187_s10, %s4321_s5  ;;  %s4867_s5 = scalar_lea.hbm %s8187_s10, 512 }
 0x52c   : > { %3399 = vst.msk [vmem:[%s7736_s21 + $0x1c] sm:$0xf] %vm2238_vm2, %v3383_v43  ;;  %v3177_v43 = vmul.f32 %v4665_v47, %v7526_v24  ;;  %s3740_s14 = sshll.u32 %s3737_s27, 4  ;;  %s3741_s14 = int_to_ptr.hbm [resolvable:$true] %s3740_s14 }
 0x52d   : > { %v3384_v57 = vpack.c.bf16 %v3368_v18, %v3368_v18  ;;  %s4861_s11 = sshra.s32 %s3741_s14, 4  ;;  %s4862_s11 = int_to_ptr.hbm [resolvable:$true] %s4861_s11 }
 0x52e   : > { %s4863_s18 = scalar_lea.hbm %s4862_s11, 128  ;;  %p4868_p7 = scmp.lt.s32.totalorder %s4862_s11, %s8187_s10 }
 0x52f   : > { %3400 = vst.msk [vmem:[%s7736_s21 + $0x20] sm:$0xf] %vm2238_vm2, %v3384_v57  ;;  %p4864_p4 = scmp.ne.s32.totalorder %s4862_s11, %s4863_s18  ;;  %p4869_p9 = scmp.lt.s32.totalorder %s4867_s5, %s4863_s18 }
 0x531   : > { %p4865_p5 = pnand %p4864_p4, %p5154_p3  ;;  %p4870_p10 = por %p4869_p9, %p4868_p7 }
 0x533   : > { %p4866_p6 = pneg %p4865_p5 }
 0x535   : > { %p4871_p11 = pnand %p4870_p10, %p4866_p6 }
 0x537   : > { %v3325_v33 = vpop.permute.xlu2 %3324 }
 0x538   : > { %v3366_v17 = vadd.f32 %v3325_v33, %v3174_v7  ;;  %v8620_v7 = vld [vmem:[#allocation89_spill] sm:$0xff] }
 0x539   : > { %v3182_v33 = vmul.f32 %v8620_v7, %v7537_v35 }
 0x53a   : > { %v3382_v37 = vpack.c.bf16 %v3366_v17, %v3366_v17  ;;  %v3335_v54 = vpop.permute.xlu0 %3334 }
 0x53b   : > { %v3371_v52 = vadd.f32 %v3335_v54, %v3179_v41 }
 0x53c   : > { %3398 = vst.msk [vmem:[%s7736_s21 + $0x18] sm:$0xf] %vm2238_vm2, %v3382_v37 }
 0x53d   : > { %v3387_v1 = vpack.c.bf16 %v3371_v52, %v3371_v52  ;;  %v8621_v52 = vld [vmem:[#allocation63_spill] sm:$0xff] }
 0x53f   : > { %3403 = vst.msk [vmem:[%s7736_s21 + $0x2c] sm:$0xf] %vm2238_vm2, %v3387_v1  ;;  %v3333_v20 = vpop.permute.xlu1 %3332  ;;  %v3331_v18 = vpop.permute.xlu2 %3330  ;;  %v3181_v1 = vmul.f32 %v8621_v52, %v7557_v48 }
 0x540   : > { %v3370_v57 = vadd.f32 %v3333_v20, %v3178_v51  ;;  %v3369_v16 = vadd.f32 %v3331_v18, %v3177_v43  ;;  %v3180_v51 = vmul.f32 %v4666_v39, %v7555_v12 }
 0x542   : > { %v3386_v17 = vpack.c.bf16 %v3370_v57, %v3370_v57  ;;  %v3385_v9 = vpack.c.bf16 %v3369_v16, %v3369_v16  ;;  %v3341_v41 = vpop.permute.xlu0 %3340 }
 0x543   : > { %v3374_v37 = vadd.f32 %v3341_v41, %v3182_v33  ;;  %v8622_v33 = vld [vmem:[#allocation79_spill] sm:$0xff] }
 0x544   : > { %3402 = vst.msk [vmem:[%s7736_s21 + $0x28] sm:$0xf] %vm2238_vm2, %v3386_v17  ;;  %v3183_v17 = vmul.f32 %v8622_v33, %v7575_v29 }
 0x545   : > { %3401 = vst.msk [vmem:[%s7736_s21 + $0x24] sm:$0xf] %vm2238_vm2, %v3385_v9  ;;  %v3390_v54 = vpack.c.bf16 %v3374_v37, %v3374_v37 }
 0x547   : > { %3406 = vst.msk [vmem:[%s7736_s21 + $0x38] sm:$0xf] %vm2238_vm2, %v3390_v54  ;;  %v3339_v47 = vpop.permute.xlu1 %3338  ;;  %v3337_v43 = vpop.permute.xlu2 %3336 }
 0x548   : > { %v3373_v20 = vadd.f32 %v3339_v47, %v3181_v1  ;;  %v3372_v18 = vadd.f32 %v3337_v43, %v3180_v51 }
 0x54a   : > { %v3389_v57 = vpack.c.bf16 %v3373_v20, %v3373_v20  ;;  %v3388_v16 = vpack.c.bf16 %v3372_v18, %v3372_v18  ;;  %v7836_v7 = vpop.permute.xlu0 %3442 }
 0x54b   : > { %3491 = vrot.lane.b32.xlu2 %v7836_v7, %s5029_s20 }
 0x54c   : > { %3405 = vst.msk [vmem:[%s7736_s21 + $0x34] sm:$0xf] %vm2238_vm2, %v3389_v57 }
 0x54d   : > { %3404 = vst.msk [vmem:[%s7736_s21 + $0x30] sm:$0xf] %vm2238_vm2, %v3388_v16 }
 0x54f   : > { %v7846_v9 = vpop.permute.xlu1 %3440  ;;  %v3343_v41 = vpop.permute.xlu2 %3342 }
 0x550   : > { %v3375_v37 = vadd.f32 %v3343_v41, %v3183_v17  ;;  %3488 = vrot.lane.b32.xlu0 %v7846_v9, %s5029_s20 }
 0x552   : > { %v3391_v54 = vpack.c.bf16 %v3375_v37, %v3375_v37  ;;  %v7850_v52 = vpop.permute.xlu0 %3448 }
 0x553   : > { %3500 = vrot.lane.b32.xlu2 %v7850_v52, %s5029_s20 }
 0x554   : > { %3407 = vst.msk [vmem:[%s7736_s21 + $0x3c] sm:$0xf] %vm2238_vm2, %v3391_v54 }
 0x557   : > { %v7856_v1 = vpop.permute.xlu1 %3446  ;;  %v7858_v39 = vpop.permute.xlu2 %3444 }
 0x558   : > { %3497 = vrot.lane.b32.xlu0 %v7856_v1, %s5029_s20  ;;  %3494 = vrot.lane.b32.xlu1 %v7858_v39, %s5029_s20 }
 0x55a   : > { %v7864_v51 = vpop.permute.xlu0 %3454 }
 0x55b   : > { %3509 = vrot.lane.b32.xlu2 %v7864_v51, %s5029_s20 }
 0x55f   : > { %v7868_v47 = vpop.permute.xlu1 %3452  ;;  %v7870_v43 = vpop.permute.xlu2 %3450 }
 0x560   : > { %3506 = vrot.lane.b32.xlu0 %v7868_v47, %s5029_s20  ;;  %3503 = vrot.lane.b32.xlu1 %v7870_v43, %s5029_s20 }
 0x562   : > { %v7876_v20 = vpop.permute.xlu0 %3460 }
 0x563   : > { %3518 = vrot.lane.b32.xlu2 %v7876_v20, %s5029_s20 }
 0x567   : > { %v7880_v18 = vpop.permute.xlu1 %3458  ;;  %v7882_v57 = vpop.permute.xlu2 %3456 }
 0x568   : > { %3515 = vrot.lane.b32.xlu0 %v7880_v18, %s5029_s20  ;;  %3512 = vrot.lane.b32.xlu1 %v7882_v57, %s5029_s20 }
 0x56a   : > { %v7888_v16 = vpop.permute.xlu0 %3466 }
 0x56b   : > { %3527 = vrot.lane.b32.xlu2 %v7888_v16, %s5029_s20 }
 0x56f   : > { %v7892_v33 = vpop.permute.xlu1 %3464  ;;  %v7894_v17 = vpop.permute.xlu2 %3462 }
 0x570   : > { %3524 = vrot.lane.b32.xlu0 %v7892_v33, %s5029_s20  ;;  %3521 = vrot.lane.b32.xlu1 %v7894_v17, %s5029_s20 }
 0x577   : > { %v7900_v41 = vpop.permute.xlu1 %3470  ;;  %v7902_v37 = vpop.permute.xlu2 %3468 }
 0x578   : > { %3533 = vrot.lane.b32.xlu0 %v7900_v41, %s5029_s20  ;;  %3530 = vrot.lane.b32.xlu1 %v7902_v37, %s5029_s20 }
 0x5a5   : > { %v3492_v54 = vpop.permute.xlu2 %3491 }
 0x5a6   : > { %v3493_v21 = vsel %vm1965_vm1, %v3492_v54, %v7836_v7 }
 0x5a7   : > { %3538 = vrot.lane.b32.xlu1 %v3493_v21, %s5029_s20 }
 0x5ad   : > { %v3501_v35 = vpop.permute.xlu2 %3500 }
 0x5ae   : > { %v3502_v6 = vsel %vm1965_vm1, %v3501_v35, %v7850_v52 }
 0x5af   : > { %3544 = vrot.lane.b32.xlu1 %v3502_v6, %s5029_s20 }
 0x5b5   : > { %v3510_v29 = vpop.permute.xlu2 %3509 }
 0x5b6   : > { %v3511_v11 = vsel %vm1965_vm1, %v3510_v29, %v7864_v51 }
 0x5b7   : > { %3550 = vrot.lane.b32.xlu1 %v3511_v11, %s5029_s20 }
 0x5bd   : > { %v3519_v22 = vpop.permute.xlu2 %3518 }
 0x5be   : > { %v3520_v60 = vsel %vm1965_vm1, %v3519_v22, %v7876_v20 }
 0x5bf   : > { %3556 = vrot.lane.b32.xlu1 %v3520_v60, %s5029_s20 }
 0x5c2   : > { %v3489_v54 = vpop.permute.xlu0 %3488 }
 0x5c3   : > { %v3490_v21 = vsel %vm1965_vm1, %v3489_v54, %v7846_v9 }
 0x5c4   : > { %3536 = vrot.lane.b32.xlu2 %v3490_v21, %s5029_s20 }
 0x5c5   : > { %v3528_v35 = vpop.permute.xlu2 %3527 }
 0x5c6   : > { %v3529_v6 = vsel %vm1965_vm1, %v3528_v35, %v7888_v16 }
 0x5c7   : > { %3562 = vrot.lane.b32.xlu1 %v3529_v6, %s5029_s20 }
 0x5ca   : > { %v3495_v29 = vpop.permute.xlu1 %3494  ;;  %v3498_v11 = vpop.permute.xlu0 %3497 }
 0x5cb   : > { %v3496_v12 = vsel %vm1965_vm1, %v3495_v29, %v7858_v39  ;;  %v3499_v22 = vsel %vm1965_vm1, %v3498_v11, %v7856_v1 }
 0x5cc   : > { %3540 = vrot.lane.b32.xlu0 %v3496_v12, %s5029_s20  ;;  %3542 = vrot.lane.b32.xlu2 %v3499_v22, %s5029_s20 }
 0x5d2   : > { %v3504_v60 = vpop.permute.xlu1 %3503  ;;  %v3507_v54 = vpop.permute.xlu0 %3506 }
 0x5d3   : > { %v3505_v21 = vsel %vm1965_vm1, %v3504_v60, %v7870_v43  ;;  %v3508_v35 = vsel %vm1965_vm1, %v3507_v54, %v7868_v47 }
 0x5d4   : > { %3546 = vrot.lane.b32.xlu0 %v3505_v21, %s5029_s20  ;;  %3548 = vrot.lane.b32.xlu2 %v3508_v35, %s5029_s20 }
 0x5da   : > { %v3513_v6 = vpop.permute.xlu1 %3512  ;;  %v3516_v29 = vpop.permute.xlu0 %3515 }
 0x5db   : > { %v3514_v11 = vsel %vm1965_vm1, %v3513_v6, %v7882_v57  ;;  %v3517_v12 = vsel %vm1965_vm1, %v3516_v29, %v7880_v18 }
 0x5dc   : > { %3552 = vrot.lane.b32.xlu0 %v3514_v11, %s5029_s20  ;;  %3554 = vrot.lane.b32.xlu2 %v3517_v12, %s5029_s20 }
 0x5e2   : > { %v3522_v22 = vpop.permute.xlu1 %3521  ;;  %v3525_v60 = vpop.permute.xlu0 %3524 }
 0x5e3   : > { %v3523_v54 = vsel %vm1965_vm1, %v3522_v22, %v7894_v17  ;;  %v3526_v21 = vsel %vm1965_vm1, %v3525_v60, %v7892_v33 }
 0x5e4   : > { %3558 = vrot.lane.b32.xlu0 %v3523_v54, %s5029_s20  ;;  %3560 = vrot.lane.b32.xlu2 %v3526_v21, %s5029_s20 }
 0x5ea   : > { %v3531_v35 = vpop.permute.xlu1 %3530  ;;  %v3534_v6 = vpop.permute.xlu0 %3533 }
 0x5eb   : > { %v3532_v29 = vsel %vm1965_vm1, %v3531_v35, %v7902_v37  ;;  %v3535_v11 = vsel %vm1965_vm1, %v3534_v6, %v7900_v41 }
 0x5ec   : > { %3564 = vrot.lane.b32.xlu0 %v3532_v29, %s5029_s20  ;;  %3566 = vrot.lane.b32.xlu2 %v3535_v11, %s5029_s20 }
 0x619   : > { %v3539_v12 = vpop.permute.xlu1 %3538 }
 0x61a   : > { %v3569_v22 = vsel %vm1965_vm1, %v3539_v12, %v7836_v7 }
 0x61b   : > { %v3585_v60 = vmul.f32 %v3569_v22, %v8606_v53 }
 0x61d   : > { %3618 = vrot.lane.b32.xlu0 %v3585_v60, %s5028_s15 }
 0x61e   : > { %v3537_v54 = vpop.permute.xlu2 %3536 }
 0x61f   : > { %v3568_v21 = vsel %vm1965_vm1, %v3537_v54, %v7846_v9 }
 0x620   : > { %v3584_v35 = vmul.f32 %v3568_v21, %v8609_v32 }
 0x621   : > { %v3545_v15 = vpop.permute.xlu1 %3544 }
 0x622   : > { %v3572_v6 = vsel %vm1965_vm1, %v3545_v15, %v7850_v52  ;;  %3616 = vrot.lane.b32.xlu1 %v3584_v35, %s5028_s15 }
 0x623   : > { %v3588_v29 = vmul.f32 %v3572_v6, %v8608_v56 }
 0x625   : > { %3624 = vrot.lane.b32.xlu0 %v3588_v29, %s5028_s15 }
 0x626   : > { %v3543_v7 = vpop.permute.xlu2 %3542 }
 0x627   : > { %v3571_v53 = vsel %vm1965_vm1, %v3543_v7, %v7856_v1 }
 0x628   : > { %v3587_v11 = vmul.f32 %v3571_v53, %v8614_v4 }
 0x629   : > { %v3551_v12 = vpop.permute.xlu1 %3550 }
 0x62a   : > { %v3575_v32 = vsel %vm1965_vm1, %v3551_v12, %v7864_v51  ;;  %3622 = vrot.lane.b32.xlu1 %v3587_v11, %s5028_s15 }
 0x62b   : > { %v3591_v15 = vmul.f32 %v3575_v32, %v8612_v28 }
 0x62d   : > { %3630 = vrot.lane.b32.xlu0 %v3591_v15, %s5028_s15 }
 0x62e   : > { %v3549_v9 = vpop.permute.xlu2 %3548 }
 0x62f   : > { %v3574_v56 = vsel %vm1965_vm1, %v3549_v9, %v7868_v47 }
 0x630   : > { %v3590_v52 = vmul.f32 %v3574_v56, %v8617_v40 }
 0x631   : > { %v3557_v1 = vpop.permute.xlu1 %3556 }
 0x632   : > { %v3578_v4 = vsel %vm1965_vm1, %v3557_v1, %v7876_v20  ;;  %3628 = vrot.lane.b32.xlu1 %v3590_v52, %s5028_s15 }
 0x633   : > { %v3594_v51 = vmul.f32 %v3578_v4, %v8616_v5 }
 0x635   : > { %3636 = vrot.lane.b32.xlu0 %v3594_v51, %s5028_s15 }
 0x636   : > { %v3555_v28 = vpop.permute.xlu2 %3554 }
 0x637   : > { %v3577_v22 = vsel %vm1965_vm1, %v3555_v28, %v7880_v18 }
 0x638   : > { %v3593_v47 = vmul.f32 %v3577_v22, %v8618_v55 }
 0x639   : > { %v3563_v60 = vpop.permute.xlu1 %3562 }
 0x63a   : > { %v3581_v40 = vsel %vm1965_vm1, %v3563_v60, %v7888_v16  ;;  %3634 = vrot.lane.b32.xlu1 %v3593_v47, %s5028_s15 }
 0x63b   : > { %v3597_v20 = vmul.f32 %v3581_v40, %v8570_v2 }
 0x63d   : > { %3642 = vrot.lane.b32.xlu0 %v3597_v20, %s5028_s15 }
 0x63e   : > { %v3561_v5 = vpop.permute.xlu2 %3560  ;;  %v3541_v54 = vpop.permute.xlu0 %3540 }
 0x63f   : > { %v3580_v21 = vsel %vm1965_vm1, %v3561_v5, %v7892_v33  ;;  %v3570_v55 = vsel %vm1965_vm1, %v3541_v54, %v7858_v39 }
 0x640   : > { %v3596_v18 = vmul.f32 %v3580_v21, %v8512_v13  ;;  %v3586_v16 = vmul.f32 %v3570_v55, %v8610_v46 }
 0x642   : > { %3640 = vrot.lane.b32.xlu1 %v3596_v18, %s5028_s15  ;;  %3620 = vrot.lane.b32.xlu2 %v3586_v16, %s5028_s15 }
 0x646   : > { %v3567_v2 = vpop.permute.xlu2 %3566  ;;  %v3547_v39 = vpop.permute.xlu0 %3546 }
 0x647   : > { %v3583_v13 = vsel %vm1965_vm1, %v3567_v2, %v7900_v41  ;;  %v3573_v46 = vsel %vm1965_vm1, %v3547_v39, %v7870_v43 }
 0x648   : > { %v3599_v33 = vmul.f32 %v3583_v13, %v8584_v36  ;;  %v3589_v35 = vmul.f32 %v3573_v46, %v8611_v25 }
 0x649   : > { %4874 = shalt.err (!%p4871_p11)
}
 0x64a   : > { %s5031_s23 = smov 128   ;;  %s5032_s27 = smov 8   ;;  %3646 = vrot.lane.b32.xlu1 %v3599_v33, %s5028_s15  ;;  %3626 = vrot.lane.b32.xlu2 %v3589_v35, %s5028_s15  ;;  %v3415_v4 = vmul.f32 %v8588_v45, %v7439_v58  ;;  %v3418_v20 = vmul.f32 %v8598_v14, %v7529_v63  ;;  %v8624_v16 = vld [vmem:[#allocation82_spill] sm:$0xff]  ;;  %v8627_v35 = vld [vmem:[#allocation59_spill] sm:$0xff] }
 0x64b   : > { %4466 = dma.vmem_to_hbm [thread:$0]  (%p5154_p3), %s3739_s16, 2048, %s3741_s14, %s3713_s12, %s5031_s23, %s5031_s23, %s5032_s27   ;;  %v3421_v2 = vmul.f32 %v8624_v16, %v7557_v48 }
 0x64c   : > { %s8629_s11 = sld [smem:[#allocation122_spill]]  ;;  %s3717_s30 = sand.u32 1, %s5140_s29  }
 0x64d   : > { %s8634_s19 = sld [smem:[#allocation123_spill]]  ;;  %s3757_s24 = sshll.u32 %s7736_s21, 4  ;;  %s3758_s24 = int_to_ptr.vmem [resolvable:$true] %s3757_s24 }
 0x64e   : > { %v3553_v36 = vpop.permute.xlu0 %3552  ;;  %s3776_s27 = sshll.u32 %s6313_s26, 4  ;;  %s8116_s29 = scalar_lea.sflag [#allocation15], %s3717_s30  ;;  %s8108_s27 = int_to_ptr.vmem [resolvable:$true] %s3776_s27 }
 0x64f   : > { %v3576_v25 = vsel %vm1965_vm1, %v3553_v36, %v7882_v57  ;;  %v8628_v36 = vld [vmem:[#allocation68_spill] sm:$0xff] }
 0x650   : > { %v3592_v43 = vmul.f32 %v3576_v25, %v8613_v49  ;;  %v3409_v49 = vmul.f32 %v8565_v31, %v7215_v34  ;;  %v8623_v31 = vld [vmem:[#allocation66_spill] sm:$0xff]  ;;  %v3419_v25 = vmul.f32 %v8628_v36, %v8627_v35 }
 0x651   : > { %v3411_v52 = vmul.f32 %v8623_v31, %v7413_v62  ;;  %v3413_v62 = vmul.f32 %v8587_v50, %v7420_v61  ;;  %v3417_v50 = vmul.f32 %v8595_v59, %v7526_v24  ;;  %v8625_v24 = vld [vmem:[#allocation87_spill] sm:$0xff]  ;;  %v8626_v59 = vld [vmem:[#allocation76_spill] sm:$0xff] }
 0x652   : > { %3632 = vrot.lane.b32.xlu2 %v3592_v43, %s5028_s15  ;;  %s4895_s12 = scalar_lea.hbm %s8629_s11, 256 }
 0x656   : > { %v3559_v41 = vpop.permute.xlu0 %3558 }
 0x657   : > { %v3579_v6 = vsel %vm1965_vm1, %v3559_v41, %v7894_v17 }
 0x658   : > { %v3595_v29 = vmul.f32 %v3579_v6, %v8615_v8  ;;  %v3408_v8 = vmul.f32 %v8567_v38, %v7251_v19  ;;  %v3410_v19 = vmul.f32 %v8573_v10, %v7317_v27  ;;  %v3414_v10 = vmul.f32 %v8592_v3, %v7497_v30 }
 0x659   : > { %v3416_v30 = vmul.f32 %v8597_v0, %v7450_v26  ;;  %v3420_v0 = vmul.f32 %v8626_v59, %v8625_v24 }
 0x65a   : > { %3638 = vrot.lane.b32.xlu2 %v3595_v29, %s5028_s15 }
 0x65e   : > { %v3565_v7 = vpop.permute.xlu0 %3564 }
 0x65f   : > { %v3582_v53 = vsel %vm1965_vm1, %v3565_v7, %v7902_v37  ;;  %v3412_v37 = vmul.f32 %v8575_v44, %v7283_v23 }
 0x660   : > { %v3598_v57 = vmul.f32 %v3582_v53, %v8582_v42  ;;  %v8630_v53 = vld [vmem:[#allocation91_spill] sm:$0xff] }
 0x662   : > { %3644 = vrot.lane.b32.xlu2 %v3598_v57, %s5028_s15  ;;  %s4323_s15 = sshll.u32 %s5005_s25, 5  ;;  %v8631_v57 = vld [vmem:[#allocation81_spill] sm:$0xff] }
 0x663   : > { %s3754_s16 = sadd.s32 %s4323_s15, %s5237_s13 }
 0x664   : > { %s4324_s25 = sshll.u32 %s3754_s16, 2 }
 0x665   : > { %s3756_s18 = scalar_lea.hbm %s8629_s11, %s4324_s25  ;;  %s3775_s5 = scalar_lea.hbm %s8634_s19, %s4324_s25 }
 0x666   : > { %s3759_s23 = sshll.u32 %s3756_s18, 4  ;;  %s3778_s15 = sshll.u32 %s3775_s5, 4  ;;  %s3760_s23 = int_to_ptr.hbm [resolvable:$true] %s3759_s23  ;;  %s8112_s15 = int_to_ptr.hbm [resolvable:$true] %s3778_s15 }
 0x667   : > { %s4889_s16 = sshra.s32 %s3760_s23, 4  ;;  %s4890_s16 = int_to_ptr.hbm [resolvable:$true] %s4889_s16 }
 0x668   : > { %s4891_s25 = scalar_lea.hbm %s4890_s16, 64  ;;  %p4896_p1 = scmp.lt.s32.totalorder %s4890_s16, %s8629_s11 }
 0x669   : > { %p4892_p12 = scmp.ne.s32.totalorder %s4890_s16, %s4891_s25  ;;  %p4897_p2 = scmp.lt.s32.totalorder %s4895_s12, %s4891_s25 }
 0x66b   : > { %p4893_p13 = pnand %p4892_p12, %p5154_p3  ;;  %p4898_p4 = por %p4897_p2, %p4896_p1 }
 0x66d   : > { %p4894_p0 = pneg %p4893_p13 }
 0x66f   : > { %p4899_p5 = pnand %p4898_p4, %p4894_p0 }
 0x68f   : > { %v3619_v11 = vpop.permute.xlu0 %3618 }
 0x690   : > { %v3665_v12 = vadd.f32 %v3619_v11, %v3409_v49  ;;  %v3423_v49 = vmul.f32 %v8631_v57, %v8630_v53  ;;  %v8632_v11 = vld [vmem:[#allocation86_spill] sm:$0xff] }
 0x692   : > { %v3681_v17 = vpack.c.bf16 %v3665_v12, %v3665_v12  ;;  %v8633_v12 = vld [vmem:[#allocation71_spill] sm:$0xff] }
 0x694   : > { %3697 = vst.msk [vmem:[%s7736_s21 + $0x4] sm:$0xf] %vm2607_vm3, %v3681_v17  ;;  %v3617_v32 = vpop.permute.xlu1 %3616  ;;  %v3422_v17 = vmul.f32 %v8633_v12, %v8632_v11 }
 0x695   : > { %v3664_v15 = vadd.f32 %v3617_v32, %v3408_v8 }
 0x697   : > { %v3680_v42 = vpack.c.bf16 %v3664_v15, %v3664_v15  ;;  %v3625_v9 = vpop.permute.xlu0 %3624 }
 0x698   : > { %v3668_v56 = vadd.f32 %v3625_v9, %v3412_v37 }
 0x699   : > { %3696 = vst.msk [vmem:[%s7736_s21] sm:$0xf] %vm2607_vm3, %v3680_v42 }
 0x69a   : > { %v3684_v34 = vpack.c.bf16 %v3668_v56, %v3668_v56 }
 0x69c   : > { %3700 = vst.msk [vmem:[%s7736_s21 + $0x10] sm:$0xf] %vm2607_vm3, %v3684_v34  ;;  %v3623_v38 = vpop.permute.xlu1 %3622  ;;  %v3621_v1 = vpop.permute.xlu2 %3620 }
 0x69d   : > { %v3667_v23 = vadd.f32 %v3623_v38, %v3411_v52  ;;  %v3666_v44 = vadd.f32 %v3621_v1, %v3410_v19 }
 0x69f   : > { %v3683_v51 = vpack.c.bf16 %v3667_v23, %v3667_v23  ;;  %v3682_v28 = vpack.c.bf16 %v3666_v44, %v3666_v44  ;;  %v3631_v22 = vpop.permute.xlu0 %3630 }
 0x6a0   : > { %v3671_v47 = vadd.f32 %v3631_v22, %v3415_v4 }
 0x6a1   : > { %3699 = vst.msk [vmem:[%s7736_s21 + $0xc] sm:$0xf] %vm2607_vm3, %v3683_v51 }
 0x6a2   : > { %3698 = vst.msk [vmem:[%s7736_s21 + $0x8] sm:$0xf] %vm2607_vm3, %v3682_v28  ;;  %v3687_v27 = vpack.c.bf16 %v3671_v47, %v3671_v47 }
 0x6a4   : > { %3703 = vst.msk [vmem:[%s7736_s21 + $0x1c] sm:$0xf] %vm2607_vm3, %v3687_v27  ;;  %v3629_v58 = vpop.permute.xlu1 %3628  ;;  %v3627_v45 = vpop.permute.xlu2 %3626 }
 0x6a5   : > { %v3670_v60 = vadd.f32 %v3629_v58, %v3414_v10  ;;  %v3669_v40 = vadd.f32 %v3627_v45, %v3413_v62 }
 0x6a7   : > { %v3686_v5 = vpack.c.bf16 %v3670_v60, %v3670_v60  ;;  %v3685_v54 = vpack.c.bf16 %v3669_v40, %v3669_v40  ;;  %v3637_v21 = vpop.permute.xlu0 %3636 }
 0x6a8   : > { %v3674_v55 = vadd.f32 %v3637_v21, %v3418_v20 }
 0x6a9   : > { %3702 = vst.msk [vmem:[%s7736_s21 + $0x18] sm:$0xf] %vm2607_vm3, %v3686_v5 }
 0x6aa   : > { %3701 = vst.msk [vmem:[%s7736_s21 + $0x14] sm:$0xf] %vm2607_vm3, %v3685_v54  ;;  %v3690_v61 = vpack.c.bf16 %v3674_v55, %v3674_v55 }
 0x6ac   : > { %3706 = vst.msk [vmem:[%s7736_s21 + $0x28] sm:$0xf] %vm2607_vm3, %v3690_v61  ;;  %v3635_v3 = vpop.permute.xlu1 %3634  ;;  %v3633_v63 = vpop.permute.xlu2 %3632 }
 0x6ad   : > { %v3673_v14 = vadd.f32 %v3635_v3, %v3417_v50  ;;  %v3672_v18 = vadd.f32 %v3633_v63, %v3416_v30 }
 0x6af   : > { %v3689_v39 = vpack.c.bf16 %v3673_v14, %v3673_v14  ;;  %v3688_v13 = vpack.c.bf16 %v3672_v18, %v3672_v18  ;;  %v3643_v46 = vpop.permute.xlu0 %3642 }
 0x6b0   : > { %v3677_v33 = vadd.f32 %v3643_v46, %v3421_v2 }
 0x6b1   : > { %3705 = vst.msk [vmem:[%s7736_s21 + $0x24] sm:$0xf] %vm2607_vm3, %v3689_v39 }
 0x6b2   : > { %3704 = vst.msk [vmem:[%s7736_s21 + $0x20] sm:$0xf] %vm2607_vm3, %v3688_v13  ;;  %v3693_v26 = vpack.c.bf16 %v3677_v33, %v3677_v33 }
 0x6b4   : > { %3709 = vst.msk [vmem:[%s7736_s21 + $0x34] sm:$0xf] %vm2607_vm3, %v3693_v26  ;;  %v3641_v48 = vpop.permute.xlu1 %3640  ;;  %v3639_v43 = vpop.permute.xlu2 %3638 }
 0x6b5   : > { %v3676_v41 = vadd.f32 %v3641_v48, %v3420_v0  ;;  %v3675_v6 = vadd.f32 %v3639_v43, %v3419_v25 }
 0x6b7   : > { %v3692_v29 = vpack.c.bf16 %v3676_v41, %v3676_v41  ;;  %v3691_v7 = vpack.c.bf16 %v3675_v6, %v3675_v6 }
 0x6b9   : > { %3708 = vst.msk [vmem:[%s7736_s21 + $0x30] sm:$0xf] %vm2607_vm3, %v3692_v29 }
 0x6ba   : > { %3707 = vst.msk [vmem:[%s7736_s21 + $0x2c] sm:$0xf] %vm2607_vm3, %v3691_v7 }
 0x6bc   : > { %v3647_v8 = vpop.permute.xlu1 %3646  ;;  %v3645_v32 = vpop.permute.xlu2 %3644 }
 0x6bd   : > { %v3679_v15 = vadd.f32 %v3647_v8, %v3423_v49  ;;  %v3678_v37 = vadd.f32 %v3645_v32, %v3422_v17 }
 0x6bf   : > { %v3695_v42 = vpack.c.bf16 %v3679_v15, %v3679_v15  ;;  %v3694_v9 = vpack.c.bf16 %v3678_v37, %v3678_v37 }
 0x6c1   : > { %3711 = vst.msk [vmem:[%s7736_s21 + $0x3c] sm:$0xf] %vm2607_vm3, %v3695_v42 }
 0x6c2   : > { %3710 = vst.msk [vmem:[%s7736_s21 + $0x38] sm:$0xf] %vm2607_vm3, %v3694_v9 }
 0x6c3   : > { %4902 = shalt.err (!%p4899_p5)
}
 0x6c4   : > { %s5033_s21 = smov 4   ;;  %s4917_s28 = sshra.s32 %s8112_s15, 4  ;;  %s4918_s28 = int_to_ptr.hbm [resolvable:$true] %s4917_s28 }
 0x6c5   : > { %4467 = dma.vmem_to_hbm [thread:$0]  (%p5154_p3), %s3758_s24, 1024, %s3760_s23, %s8116_s29, %s5029_s20, %s5029_s20, %s5033_s21  }
 0x6c6   : > { %s4919_s5 = scalar_lea.hbm %s4918_s28, 64  ;;  %s4923_s25 = scalar_lea.hbm %s8634_s19, 256 }
 0x6c7   : > { %p4920_p6 = scmp.ne.s32.totalorder %s4918_s28, %s4919_s5  ;;  %p4924_p10 = scmp.lt.s32.totalorder %s4918_s28, %s8634_s19 }
 0x6c8   : > { %p4925_p11 = scmp.lt.s32.totalorder %s4923_s25, %s4919_s5 }
 0x6c9   : > { %p4921_p7 = pnand %p4920_p6, %p5154_p3 }
 0x6ca   : > { %p4926_p12 = por %p4925_p11, %p4924_p10 }
 0x6cb   : > { %p4922_p9 = pneg %p4921_p7 }
 0x6cd   : > { %p4927_p13 = pnand %p4926_p12, %p4922_p9 }
 0x6cf   : > { %4930 = shalt.err (!%p4927_p13)
}
 0x6d0   : > { %4468 = dma.vmem_to_hbm [thread:$0]  (%p5154_p3), %s8108_s27, 1024, %s8112_s15, %s8116_s29, %s5029_s20, %s5029_s20, %s5033_s21  }
 0x6d1 PF: > { %s8635_s24 = sld [smem:[#allocation27_spill]] }
 0x6d2   : > { %s8636_s23 = sld [smem:[#allocation23_spill]] }
 0x6d7   : > { %p4513_p0 = scmp.ge.s32.totalorder %s8635_s24, 2 }
 0x6d8   : > { %s3793_s18 = sand.u32 1, %s8636_s23  }
 0x6d9   : > { %p4492_p1 = pnand %p4513_p0, %p5165_p8  ;;  %s3794_s13 = scalar_lea.sflag [#allocation4], %s3793_s18 }
 0x6db   : > { %p4493_p2 = pneg %p4492_p1 }
 0x6dd   : > { %4980 = dma.done.wait (%p4493_p2), %s3794_s13, 2048  }
 0x6de   : > { %4982 = vsyncadd (%p4493_p2), %s3794_s13, 4294965248  ;;  %s8638_s17 = sadd.s32 4294967294, %s8635_s24  }
 0x6df   : > { %s3803_s28 = sand.u32 1, %s8638_s17  }
 0x6e0   : > { %s3804_s5 = scalar_lea.sflag [#allocation15], %s3803_s28 }
 0x6e1   : > { %4984 = dma.done.wait (%p4493_p2), %s3804_s5, 2048  }
 0x6e2   : > { %4986 = vsyncadd (%p4493_p2), %s3804_s5, 4294965248  ;;  %s33_s28 = sadd.s32 1, %s8635_s24   ;;  %s8639_s20 = sld [smem:[#allocation24_spill]] }
 0x6e3   : > { %p30_p3 = scmp.ge.s32.totalorder %s33_s28, 6   ;;  %s8640_s23 = sld [smem:[#allocation31_spill]] }
 0x6e4   : > { %s8641_s24 = sld [smem:[#allocation25_spill]]  ;;  %s8645_s21 = smov %s4993_s22 }
 0x6e5   : > { %s8642_s25 = sld [smem:[#allocation26_spill]]  ;;  %32 = sbr.rel (!%p30_p3) target bundleno = 15 (0xf), region = 158 }
 0x6e6   : > { %s8643_s26 = sld [smem:[#allocation28_spill]] }
 0x6e7   : > { %s8644_s27 = sld [smem:[#allocation29_spill]] }
 0x6e8   : > { %s8646_s22 = smov %s8639_s20 }
 0x6ea   :  { %3820 = vsyncpa [#allocation3], 1 }
 0x6eb   :  { %3822 = vsyncpa [#allocation3 + $0x1], 1 }
 0x6ec   :  { %3823 = vsyncpa [#allocation6], 1 }
 0x6ed   :  { %3824 = vsyncpa [#allocation9], 1 }
 0x6ee   :  { %3825 = vsyncpa [#allocation12], 1 }
 0x6ef   :  { %3826 = vsyncpa [#allocation4], 1 }
 0x6f0   :  { %3828 = vsyncpa [#allocation4 + $0x1], 1 }
 0x6f1   :  { %3829 = vsyncpa [#allocation15], 1 }
 0x6f2   :  { %3831 = vsyncpa [#allocation15 + $0x1], 1 }

// kernel: tpu_custom_call.1
= control target key start
LH: loop header
LB: loop body
LE: loop exit
PB: predicated region body
PF: predicated region fallthrough
CT: control target
= control target key end

     0   :  { %s6917_s0 = inlined_call_operand.vmem [shape: f32[2,256,256], index: 0, kind: input, shape index: {}]   ;;  %s6918_s1 = inlined_call_operand.vmem [shape: f32[2,256,64], index: 1, kind: input, shape index: {}]   ;;  %s6919_s2 = inlined_call_operand.vmem [shape: f32[2,256,64], index: 2, kind: input, shape index: {}]   ;;  %s6920_s3 = inlined_call_operand.vmem [shape: bf16[256,256], index: 3, kind: input, shape index: {}]   ;;  %s6921_s4 = inlined_call_operand.hbm [shape: f32[1,256], index: 4, kind: input, shape index: {}]   ;;  %s6922_s5 = inlined_call_operand.hbm [shape: bf16[256,128], index: 5, kind: input, shape index: {}]   ;;  %s6923_s6 = inlined_call_operand.hbm [shape: f32[1,128], index: 6, kind: input, shape index: {}]   ;;  %s6924_s7 = inlined_call_operand.hbm [shape: bf16[256,128], index: 7, kind: input, shape index: {}]   ;;  %s6925_s8 = inlined_call_operand.hbm [shape: f32[1,128], index: 8, kind: input, shape index: {}]   ;;  %s6926_s9 = inlined_call_operand.hbm [shape: f32[1,256], index: 9, kind: input, shape index: {}]   ;;  %s6927_s10 = inlined_call_operand.hbm [shape: bf16[2,256,256], index: 10, kind: output, shape index: {0}]   ;;  %s6928_s11 = inlined_call_operand.hbm [shape: bf16[2,256,128], index: 11, kind: output, shape index: {1}]   ;;  %s6929_s12 = inlined_call_operand.hbm [shape: bf16[2,256,128], index: 12, kind: output, shape index: {2}]  }
   0x1   :  { %7004 = sst [smem:[#allocation80_spill]] %s6917_s0 }
   0x2   :  { %7005 = sst [smem:[#allocation81_spill]] %s6922_s5 }
   0x3   :  { %7006 = sst [smem:[#allocation82_spill]] %s6928_s11 }
   0x4   :  { %7007 = sst [smem:[#allocation83_spill]] %s6929_s12 }
   0x5   :  { %18 = vsyncpa [#allocation3], 0 }
   0x6   :  { %19 = vsyncpa [#allocation6], 0 }
   0x7   :  { %20 = vsyncpa [#allocation9], 0 }
   0x8   :  { %21 = vsyncpa [#allocation12], 0 }
   0x9   :  { %22 = vsyncpa [#allocation4], 0 }
   0xa   :  { %24 = vsyncpa [#allocation4 + $0x1], 0 }
   0xb   :  { %25 = vsyncpa [#allocation15], 0 }
   0xc   :  { %27 = vsyncpa [#allocation15 + $0x1], 0  ;;  %s4511_s21 = smov 0   ;;  %s4513_s22 = smov 0  }
   0xd   :  { %s4515_s23 = smov 0   ;;  %s4517_s24 = smov 0  }
   0xe   :  { %s4519_s25 = smov 0   ;;  %s4521_s26 = smov 0  }
   0xf   :  { %s4523_s27 = smov 0   ;;  %s4525_s28 = smov 0  }
  0x10 LB: > { %7008 = sst [smem:[#allocation23_spill]] %s4401_s21  ;;  %s4552_s29 = sadd.s32 4294967295, %s4429_s28   ;;  %s4429_s28 = sphi %s4525_s28, %s33_s28   ;;  %s4425_s27 = sphi %s4523_s27, %s7145_s27   ;;  %s4421_s26 = sphi %s4521_s26, %s7144_s26   ;;  %s4417_s25 = sphi %s4519_s25, %s7148_s25   ;;  %s4413_s24 = sphi %s4517_s24, %s7142_s24   ;;  %s4409_s23 = sphi %s4515_s23, %s7141_s23   ;;  %s4405_s22 = sphi %s4513_s22, %s7147_s22   ;;  %s4401_s21 = sphi %s4511_s21, %s7146_s21  }
  0x11   : > { %7009 = sst [smem:[#allocation24_spill]] %s4409_s23  ;;  %s6931_s30 = sadd.s32 4294967294, %s4429_s28  }
  0x12   : > { %7010 = sst [smem:[#allocation25_spill]] %s4421_s26  ;;  %s42_s13 = sadd.s32 1, %s4421_s26 }
  0x13   : > { %7011 = sst [smem:[#allocation26_spill]] %s4425_s27  ;;  %s45_s14 = sadd.s32 1, %s4425_s27 }
  0x14   : > { %7012 = sst [smem:[#allocation27_spill]] %s4429_s28  ;;  %p43_p0 = scmp.ge.s32.totalorder %s42_s13, 2 }
  0x15   : > { %s285_s15 = sadd.s32 1, %s4409_s23  ;;  %p295_p1 = scmp.ne.s32.totalorder %s4409_s23, %s4405_s22 }
  0x16   : > { %p296_p2 = scmp.eq.s32.totalorder %s4552_s29, 3  ;;  %s7150_s13 = smov (%p43_p0, %s42_s13), 0 }
  0x17   : > { %7013 = sst [smem:[#allocation28_spill]] %s7150_s13  ;;  %s7152_s14 = smov (!%p43_p0, %s45_s14), %s4425_s27 }
  0x18   : > { %s281_s16 = ssub.s32 %s4421_s26, %s7150_s13  ;;  %p4566_p3 = por %p296_p2, %p295_p1 }
  0x19   : > { %p47_p4 = scmp.ge.s32.totalorder %s7152_s14, 2  ;;  %p301_p5 = scmp.ne.s32.totalorder %s4405_s22, %s4401_s21 }
  0x1a   : > { %p302_p6 = scmp.eq.s32.totalorder %s6931_s30, 3  ;;  %p3439_p7 = scmp.ge.s32.totalorder %s4429_s28, 1 }
  0x1b   : > { %s7154_s14 = smov (%p47_p4, %s7152_s14), 0  ;;  %p365_p9 = scmp.lt.s32.totalorder %s4429_s28, 5 }
  0x1c   : > { %7015 = sst [smem:[#allocation29_spill]] %s7154_s14  ;;  %p4577_p8 = por %p302_p6, %p301_p5 }
  0x1d   : > { %s280_s19 = ssub.s32 %s4425_s27, %s7154_s14  ;;  %p4584_p10 = pnand %p3439_p7, %p365_p9 }
  0x1e   : > { %s7016_s18 = scalar_select %p4577_p8, 1, 0 }
  0x1f   : > { %s282_s20 = sor.u32 %s281_s16, %s280_s19  ;;  %p3909_p12 = scmp.eq.s32.totalorder %s4552_s29, 0 }
  0x20   : > { %7017 = sst [smem:[#allocation30_spill]] %s7016_s18  ;;  %p283_p11 = scmp.eq.s32.totalorder %s282_s20, 0 }
  0x21   : > { %p3880_p13 = pneg %p4584_p10  ;;  %s7019_s5 = sld [smem:[#allocation81_spill]] }
  0x22   : > { %s4595_s12 = scalar_select %p283_p11, %s4409_s23, %s285_s15  }
  0x23   : > { %p4599_p0 = pnand %p3909_p12, %p3880_p13  ;;  %s4431_s16 = smov [#allocation5]  }
  0x24   : > { %7020 = sst [smem:[#allocation31_spill]] %s4595_s12  ;;  %s393_s19 = sshll.u32 %s4431_s16, 4  ;;  %s394_s19 = int_to_ptr.vmem [resolvable:$true] %s393_s19 }
  0x25   : > { %s4432_s20 = smov 64   ;;  %s4433_s14 = smov 4  }
  0x26   : > { %s417_s15 = sshll.u32 %s6924_s7, 4  ;;  %s380_s16 = sshll.u32 %s6921_s4, 4  ;;  %s418_s15 = int_to_ptr.hbm [resolvable:$true] %s417_s15  ;;  %s381_s16 = int_to_ptr.hbm [resolvable:$true] %s380_s16 }
  0x27   : > { %s391_s21 = sshll.u32 %s7019_s5, 4  ;;  %s4434_s5 = smov [#allocation8]   ;;  %s392_s21 = int_to_ptr.hbm [resolvable:$true] %s391_s21 }
  0x28   : > { %3886 = dma.hbm_to_vmem [thread:$0]  (!%p4599_p0), %s392_s21, 2048, %s394_s19, [#allocation6], %s4432_s20, %s4432_s20, %s4433_s14  }
  0x29   : > { %s419_s27 = sshll.u32 %s4434_s5, 4  ;;  %s4435_s28 = smov [#allocation2]   ;;  %s420_s27 = int_to_ptr.vmem [resolvable:$true] %s419_s27 }
  0x2a   : > { %3892 = dma.hbm_to_vmem [thread:$0]  (!%p4599_p0), %s418_s15, 2048, %s420_s27, [#allocation9], %s4432_s20, %s4432_s20, %s4433_s14  }
  0x2b   : > { %s382_s11 = sshll.u32 %s4435_s28, 4  ;;  %s406_s26 = sshll.u32 %s6923_s6, 4  ;;  %s383_s11 = int_to_ptr.vmem [resolvable:$true] %s382_s11  ;;  %s407_s26 = int_to_ptr.hbm [resolvable:$true] %s406_s26 }
  0x2c   : > { %3883 = dma.hbm_to_vmem [thread:$0]  (!%p4599_p0), %s381_s16, 32, %s383_s11, [#allocation3]  }
  0x2d   : > { %s432_s27 = sshll.u32 %s6925_s8, 4  ;;  %s4436_s14 = smov [#allocation7]   ;;  %s433_s27 = int_to_ptr.hbm [resolvable:$true] %s432_s27 }
  0x2e   : > { %s408_s12 = sshll.u32 %s4436_s14, 4  ;;  %s4437_s23 = smov [#allocation10]   ;;  %s409_s12 = int_to_ptr.vmem [resolvable:$true] %s408_s12 }
  0x2f   : > { %3889 = dma.hbm_to_vmem [thread:$0]  (!%p4599_p0), %s407_s26, 16, %s409_s12, [#allocation6]  }
  0x30   : > { %s434_s28 = sshll.u32 %s4437_s23, 4  ;;  %s444_s21 = sshll.u32 %s6926_s9, 4  ;;  %s435_s28 = int_to_ptr.vmem [resolvable:$true] %s434_s28  ;;  %s445_s21 = int_to_ptr.hbm [resolvable:$true] %s444_s21 }
  0x31   : > { %3895 = dma.hbm_to_vmem [thread:$0]  (!%p4599_p0), %s433_s27, 16, %s435_s28, [#allocation9]  }
  0x32   : > { %s4438_s11 = smov [#allocation11]   ;;  %499 = sbr.rel (%p4584_p10) target bundleno = 951 (0x3b7), region = 60 }
  0x33   : > { %s446_s16 = sshll.u32 %s4438_s11, 4  ;;  %s447_s16 = int_to_ptr.vmem [resolvable:$true] %s446_s16 }
  0x34   : > { %3898 = dma.hbm_to_vmem [thread:$0]  (!%p4599_p0), %s445_s21, 32, %s447_s16, [#allocation12]  }
  0x37   : > { %4376 = dma.done.wait (%p3909_p12), [#allocation3], 32  }
  0x38   : > { %4378 = vsyncadd (%p3909_p12), [#allocation3], 4294967264 }
  0x39   : > { %4380 = dma.done.wait (%p3909_p12), [#allocation6], 2064  }
  0x3a   : > { %4382 = vsyncadd (%p3909_p12), [#allocation6], 4294965232 }
  0x3b   : > { %4384 = dma.done.wait (%p3909_p12), [#allocation9], 2064  }
  0x3c   : > { %4386 = vsyncadd (%p3909_p12), [#allocation9], 4294965232 }
  0x3d   : > { %4388 = dma.done.wait (%p3909_p12), [#allocation12], 32  }
  0x3e   : > { %4390 = vsyncadd (%p3909_p12), [#allocation12], 4294967264  ;;  %s4649_s13 = sshll.u32 %s4413_s24, 4  ;;  %p601_p1 = scmp.lt.s32.totalorder %s4417_s25, 1 }
  0x3f   : > { %p603_p2 = scmp.lt.s32.totalorder %s4649_s13, 31  ;;  %s7022_s0 = sld [smem:[#allocation80_spill]] }
  0x40   : > { %s4654_s18 = scalar_select %p601_p1, %s4417_s25, 1 }
  0x41   : > { %s4657_s19 = scalar_select %p603_p2, %s4649_s13, 31 }
  0x42   : > { %s3459_s26 = sshll.u32 %s4654_s18, 6  ;;  %s3462_s28 = sshll.u32 %s4654_s18, 5 }
  0x43   : > { %s3458_s5 = sshll.u32 %s4657_s19, 1  ;;  %s4792_s20 = sadd.s32 %s3462_s28, %s4657_s19 }
  0x44   : > { %s607_s30 = sadd.s32 %s3459_s26, %s3458_s5  ;;  %s7002_s16 = smov 64  }
  0x45   : > { %s3460_s27 = sshll.u32 %s607_s30, 3  ;;  %s3463_s30 = sshll.u32 %s4792_s20, 3 }
  0x46   : > { %s4664_s23 = scalar_lea.vmem %s7022_s0, %s3460_s27  ;;  %s5007_s11 = scalar_lea.vmem %s6918_s1, %s3463_s30 }
  0x47   : > { %v4667_v0 = vld [vmem:[%s4664_s23 + $0x20] sm:$0xff]  ;;  %v4670_v1 = vld [vmem:[%s4664_s23 + $0x28] sm:$0xff]  ;;  %v4687_v8 = vld [vmem:[%s4664_s23 + $0x30] sm:$0xff]  ;;  %s4442_s18 = smov 32   ;;  %s5604_s5 = scalar_lea.vmem %s6919_s2, %s3463_s30 }
  0x48   : > { %v4673_v2 = vld [vmem:[%s4664_s23] sm:$0xff]  ;;  %v670_v3 = vmul.f32 %v4667_v0, %v4667_v0  ;;  %v671_v4 = vmul.f32 %v4670_v1, %v4670_v1  ;;  %v4680_v5 = vld [vmem:[%s4664_s23 + $0x8] sm:$0xff]  ;;  %v4690_v9 = vld [vmem:[%s4664_s23 + $0x38] sm:$0xff]  ;;  %v672_v18 = vmul.f32 %v4687_v8, %v4687_v8  ;;  %s5621_s20 = sand.u32 1, %s4405_s22   ;;  %s3802_s15 = sshll.u32 %s4413_s24, 5 }
  0x49   : > { %v666_v6 = vmul.f32 %v4673_v2, %v4673_v2  ;;  %v667_v7 = vmul.f32 %v4680_v5, %v4680_v5  ;;  %v4693_v10 = vld [vmem:[%s4664_s23 + $0x40] sm:$0xff]  ;;  %v4696_v12 = vld [vmem:[%s4664_s23 + $0x10] sm:$0xff]  ;;  %v4699_v13 = vld [vmem:[%s4664_s23 + $0x18] sm:$0xff]  ;;  %v673_v19 = vmul.f32 %v4690_v9, %v4690_v9  ;;  %s3454_s30 = sshll.u32 %s5621_s20, 7  ;;  %s3455_s14 = sshll.u32 %s5621_s20, 6 }
  0x4a   : > { %v704_v11 = vadd.f32 %v671_v4, %v670_v3  ;;  %v4702_v14 = vld [vmem:[%s4664_s23 + $0x48] sm:$0xff]  ;;  %v674_v15 = vmul.f32 %v4693_v10, %v4693_v10  ;;  %v4713_v20 = vld [vmem:[%s4664_s23 + $0x50] sm:$0xff]  ;;  %v4716_v21 = vld [vmem:[%s4664_s23 + $0x58] sm:$0xff]  ;;  %v668_v22 = vmul.f32 %v4696_v12, %v4696_v12  ;;  %v669_v23 = vmul.f32 %v4699_v13, %v4699_v13  ;;  %s5655_s27 = scalar_lea.vmem [#allocation13], %s3454_s30  ;;  %s5730_s12 = scalar_lea.vmem [#allocation16], %s3455_s14 }
  0x4b   : > { %v698_v16 = vadd.f32 %v667_v7, %v666_v6  ;;  %v675_v17 = vmul.f32 %v4702_v14, %v4702_v14  ;;  %v676_v25 = vmul.f32 %v4713_v20, %v4713_v20  ;;  %v677_v26 = vmul.f32 %v4716_v21, %v4716_v21  ;;  %v4727_v29 = vld [vmem:[%s4664_s23 + $0x70] sm:$0xff]  ;;  %v4730_v30 = vld [vmem:[%s4664_s23 + $0x78] sm:$0xff]  ;;  %v4733_v31 = vld [vmem:[%s4664_s23 + $0x60] sm:$0xff]  ;;  %s6447_s28 = scalar_lea.vmem [#allocation14], %s3455_s14  ;;  %s3728_s21 = sshll.u32 %s4417_s25, 6 }
  0x4c   : > { %705 = vadd.xlane.f32.xlu1 %v704_v11  ;;  %v707_v27 = vadd.f32 %v673_v19, %v672_v18  ;;  %v701_v28 = vadd.f32 %v669_v23, %v668_v22  ;;  %v4736_v32 = vld [vmem:[%s4664_s23 + $0x68] sm:$0xff]  ;;  %v680_v34 = vmul.f32 %v4727_v29, %v4727_v29  ;;  %v681_v35 = vmul.f32 %v4730_v30, %v4730_v30  ;;  %v4743_v36 = vld [vmem:[%s4664_s23 + $0x80] sm:$0xff]  ;;  %v4763_v46 = vld [vmem:[%s4664_s23 + $0x90] sm:$0xff]  ;;  %s3146_s26 = sshll.u32 %s5655_s27, 4  ;;  %s3121_s30 = scalar_lea.sflag [#allocation4], %s5621_s20  ;;  %s6755_s26 = int_to_ptr.vmem [resolvable:$true] %s3146_s26 }
  0x4d   : > { %699 = vadd.xlane.f32.xlu0 %v698_v16  ;;  %v710_v24 = vadd.f32 %v675_v17, %v674_v15  ;;  %v713_v33 = vadd.f32 %v677_v26, %v676_v25  ;;  %v4746_v37 = vld [vmem:[%s4664_s23 + $0x88] sm:$0xff]  ;;  %v678_v38 = vmul.f32 %v4733_v31, %v4733_v31  ;;  %v679_v39 = vmul.f32 %v4736_v32, %v4736_v32  ;;  %v4757_v44 = vld [vmem:[%s4664_s23 + $0xa0] sm:$0xff]  ;;  %v4766_v47 = vld [vmem:[%s4664_s23 + $0x98] sm:$0xff] }
  0x4e   : > { %v682_v40 = vmul.f32 %v4743_v36, %v4743_v36  ;;  %v683_v41 = vmul.f32 %v4746_v37, %v4746_v37  ;;  %v719_v42 = vadd.f32 %v681_v35, %v680_v34  ;;  %v4760_v45 = vld [vmem:[%s4664_s23 + $0xa8] sm:$0xff]  ;;  %v4769_v49 = vld [vmem:[%s4664_s23 + $0xb0] sm:$0xff]  ;;  %v4772_v50 = vld [vmem:[%s4664_s23 + $0xb8] sm:$0xff]  ;;  %v686_v51 = vmul.f32 %v4757_v44, %v4757_v44 }
  0x4f   : > { %711 = vadd.xlane.f32.xlu2 %v710_v24  ;;  %v716_v43 = vadd.f32 %v679_v39, %v678_v38  ;;  %v687_v52 = vmul.f32 %v4760_v45, %v4760_v45  ;;  %v684_v53 = vmul.f32 %v4763_v46, %v4763_v46  ;;  %v685_v54 = vmul.f32 %v4766_v47, %v4766_v47  ;;  %v660_v59 = vld [vmem:[%s4664_s23 + $0xd0] sm:$0xff]  ;;  %v661_v60 = vld [vmem:[%s4664_s23 + $0xd8] sm:$0xff]  ;;  %v658_v61 = vld [vmem:[%s4664_s23 + $0xc0] sm:$0xff] }
  0x50   : > { %v722_v48 = vadd.f32 %v683_v41, %v682_v40  ;;  %v688_v55 = vmul.f32 %v4769_v49, %v4769_v49  ;;  %v689_v56 = vmul.f32 %v4772_v50, %v4772_v50  ;;  %v659_v62 = vld [vmem:[%s4664_s23 + $0xc8] sm:$0xff]  ;;  %v692_v3 = vmul.f32 %v660_v59, %v660_v59  ;;  %v662_v16 = vld [vmem:[%s4664_s23 + $0xe0] sm:$0xff]  ;;  %v664_v18 = vld [vmem:[%s4664_s23 + $0xf0] sm:$0xff] }
  0x51   : > { %v728_v57 = vadd.f32 %v687_v52, %v686_v51  ;;  %v725_v58 = vadd.f32 %v685_v54, %v684_v53  ;;  %v693_v4 = vmul.f32 %v661_v60, %v661_v60  ;;  %v690_v6 = vmul.f32 %v658_v61, %v658_v61  ;;  %v663_v17 = vld [vmem:[%s4664_s23 + $0xe8] sm:$0xff]  ;;  %v665_v23 = vld [vmem:[%s4664_s23 + $0xf8] sm:$0xff]  ;;  %v3752_v39 = vld [vmem:[%s6920_s3 + $0x74] sm:$0xf] }
  0x52   : > { %v731_v63 = vadd.f32 %v689_v56, %v688_v55  ;;  %v691_v7 = vmul.f32 %v659_v62, %v659_v62  ;;  %v694_v19 = vmul.f32 %v662_v16, %v662_v16  ;;  %v695_v22 = vmul.f32 %v663_v17, %v663_v17  ;;  %v3769_v38 = vld [vmem:[%s6920_s3 + $0xf4] sm:$0xf0]  ;;  %v3527_v40 = vld [vmem:[%s6920_s3 + $0x78] sm:$0xf0]  ;;  %v3517_v53 = vld [vmem:[%s6920_s3 + $0x60] sm:$0xf] }
  0x53   : > { %v737_v11 = vadd.f32 %v693_v4, %v692_v3  ;;  %v696_v24 = vmul.f32 %v664_v18, %v664_v18  ;;  %v697_v25 = vmul.f32 %v665_v23, %v665_v23  ;;  %v4439_v41 = vmov 256.0   ;;  %v3591_v51 = vld [vmem:[%s6920_s3 + $0xf8] sm:$0xf0]  ;;  %v3751_v54 = vld [vmem:[%s6920_s3 + $0x64] sm:$0xf0] }
  0x54   : > { %708 = vadd.xlane.f32.xlu1 %v707_v27  ;;  %v734_v15 = vadd.f32 %v691_v7, %v690_v6  ;;  %v740_v26 = vadd.f32 %v695_v22, %v694_v19  ;;  %v3525_v27 = vld [vmem:[%s6920_s3 + $0x70] sm:$0xf]  ;;  %4003 = vrcp.f32 %v4439_v41  ;;  %v3581_v55 = vld [vmem:[%s6920_s3 + $0xe0] sm:$0xf]  ;;  %v3518_v56 = vor.u32 %v3751_v54, %v3517_v53  ;;  %v3519_v59 = vld [vmem:[%s6920_s3 + $0x68] sm:$0xf0] }
  0x55   : > { %702 = vadd.xlane.f32.xlu0 %v701_v28  ;;  %v3753_v28 = vld [vmem:[%s6920_s3 + $0x74] sm:$0xf0]  ;;  %v743_v34 = vadd.f32 %v697_v25, %v696_v24  ;;  %v3766_v62 = vld [vmem:[%s6920_s3 + $0xe4] sm:$0xf]  ;;  %v3509_v6 = vld [vmem:[%s6920_s3 + $0x50] sm:$0xf] }
  0x56   : > { %v3526_v35 = vor.u32 %v3753_v28, %v3525_v27  ;;  %v3749_v7 = vld [vmem:[%s6920_s3 + $0x54] sm:$0xf0]  ;;  %v3748_v17 = vld [vmem:[%s6920_s3 + $0x54] sm:$0xf]  ;;  %v3511_v18 = vld [vmem:[%s6920_s3 + $0x58] sm:$0xf0] }
  0x57   : > { %714 = vadd.xlane.f32.xlu2 %v713_v33  ;;  %v3589_v33 = vld [vmem:[%s6920_s3 + $0xf0] sm:$0xf]  ;;  %v3765_v16 = vld [vmem:[%s6920_s3 + $0xd4] sm:$0xf0]  ;;  %v3514_v22 = vor.u32 %v3748_v17, %v3511_v18  ;;  %v3764_v23 = vld [vmem:[%s6920_s3 + $0xd4] sm:$0xf] }
  0x58   : > { %1229 = vmatpush.bf16.msra.mxu0 %v3526_v35  ;;  %v3575_v24 = vld [vmem:[%s6920_s3 + $0xd8] sm:$0xf0]  ;;  %v3501_v27 = vld [vmem:[%s6920_s3 + $0x40] sm:$0xf]  ;;  %v3747_v28 = vld [vmem:[%s6920_s3 + $0x44] sm:$0xf0] }
  0x59   : > { %v3763_v35 = vld [vmem:[%s6920_s3 + $0xc4] sm:$0xf0]  ;;  %v3745_v53 = vld [vmem:[%s6920_s3 + $0x34] sm:$0xf0]  ;;  %v3557_v54 = vld [vmem:[%s6920_s3 + $0xb0] sm:$0xf] }
  0x5a   : > { %v4846_v4 = vpop.eup %4003  ;;  %v3742_v17 = vld [vmem:[%s6920_s3 + $0x24] sm:$0xf]  ;;  %v3487_v18 = vld [vmem:[%s6920_s3 + $0x28] sm:$0xf0] }
  0x5b   : > { %v747_v25 = vmul.f32 256.0, %v4846_v4  ;;  %vm751_vm0 = vweird.f32 %v4846_v4 }
  0x5c   : > { %720 = vadd.xlane.f32.xlu1 %v719_v42  ;;  %v3590_v42 = vor.u32 %v3769_v38, %v3589_v33  ;;  %1230 = vmatpush.bf16.msra.mxu0 %v3518_v56  ;;  %v3565_v33 = vld [vmem:[%s6920_s3 + $0xc0] sm:$0xf]  ;;  %v3746_v38 = vld [vmem:[%s6920_s3 + $0x44] sm:$0xf]  ;;  %v3761_v56 = vld [vmem:[%s6920_s3 + $0xb4] sm:$0xf0] }
  0x5d   : > { %717 = vadd.xlane.f32.xlu0 %v716_v43  ;;  %v3530_v43 = vor.u32 %v3752_v39, %v3527_v40  ;;  %v3503_v39 = vld [vmem:[%s6920_s3 + $0x48] sm:$0xf0]  ;;  %v3566_v40 = vor.u32 %v3763_v35, %v3565_v33  ;;  %v3541_v33 = vld [vmem:[%s6920_s3 + $0x90] sm:$0xf]  ;;  %v3757_v35 = vld [vmem:[%s6920_s3 + $0x94] sm:$0xf0] }
  0x5e   : > { %1278 = vmatpush.bf16.msra.mxu1 %v3590_v42  ;;  %v3506_v41 = vor.u32 %v3746_v38, %v3503_v39  ;;  %v3762_v42 = vld [vmem:[%s6920_s3 + $0xc4] sm:$0xf]  ;;  %v3740_v38 = vld [vmem:[%s6920_s3 + $0x14] sm:$0xf]  ;;  %v3479_v39 = vld [vmem:[%s6920_s3 + $0x18] sm:$0xf0] }
  0x5f   : > { %723 = vadd.xlane.f32.xlu2 %v722_v48  ;;  %v3768_v48 = vld [vmem:[%s6920_s3 + $0xf4] sm:$0xf]  ;;  %1327 = vmatpush.bf16.msra.mxu2 %v3530_v43  ;;  %v3567_v43 = vld [vmem:[%s6920_s3 + $0xc8] sm:$0xf0] }
  0x60   : > { %v3594_v52 = vor.u32 %v3768_v48, %v3591_v51  ;;  %v748_v48 = vsub.f32 1.0, %v747_v25  ;;  %v3570_v51 = vor.u32 %v3762_v42, %v3567_v43  ;;  %v3756_v42 = vld [vmem:[%s6920_s3 + $0x94] sm:$0xf]  ;;  %v3543_v43 = vld [vmem:[%s6920_s3 + $0x98] sm:$0xf0] }
  0x62   : > { %1376 = vmatpush.bf16.msra.mxu3 %v3594_v52  ;;  %v3493_v52 = vld [vmem:[%s6920_s3 + $0x30] sm:$0xf] }
  0x64   : > { %729 = vadd.xlane.f32.xlu1 %v728_v57  ;;  %v3767_v57 = vld [vmem:[%s6920_s3 + $0xe4] sm:$0xf0] }
  0x65   : > { %726 = vadd.xlane.f32.xlu0 %v725_v58  ;;  %v3750_v58 = vld [vmem:[%s6920_s3 + $0x64] sm:$0xf]  ;;  %v3582_v60 = vor.u32 %v3767_v57, %v3581_v55  ;;  %v3494_v55 = vor.u32 %v3745_v53, %v3493_v52  ;;  %v3744_v57 = vld [vmem:[%s6920_s3 + $0x34] sm:$0xf]  ;;  %v3469_v53 = vld [vmem:[%s6920_s3] sm:$0xf] }
  0x66   : > { %v3522_v61 = vor.u32 %v3750_v58, %v3519_v59  ;;  %v3495_v58 = vld [vmem:[%s6920_s3 + $0x38] sm:$0xf0]  ;;  %v3558_v59 = vor.u32 %v3761_v56, %v3557_v54  ;;  %v3739_v54 = vld [vmem:[%s6920_s3 + $0x4] sm:$0xf0] }
  0x67   : > { %732 = vadd.xlane.f32.xlu2 %v731_v63  ;;  %v3583_v63 = vld [vmem:[%s6920_s3 + $0xe8] sm:$0xf0]  ;;  %1279 = vmatpush.bf16.msra.mxu1 %v3582_v60  ;;  %v3498_v60 = vor.u32 %v3744_v57, %v3495_v58  ;;  %v3470_v56 = vor.u32 %v3739_v54, %v3469_v53  ;;  %v3755_v57 = vld [vmem:[%s6920_s3 + $0x84] sm:$0xf0]  ;;  %v3738_v58 = vld [vmem:[%s6920_s3 + $0x4] sm:$0xf] }
  0x68   : > { %v3586_v3 = vor.u32 %v3766_v62, %v3583_v63  ;;  %1328 = vmatpush.bf16.msra.mxu2 %v3522_v61  ;;  %v3760_v61 = vld [vmem:[%s6920_s3 + $0xb4] sm:$0xf]  ;;  %v3559_v62 = vld [vmem:[%s6920_s3 + $0xb8] sm:$0xf0]  ;;  %v749_v63 = vmul.f32 %v4846_v4, %v748_v48 }
  0x6a   : > { %1377 = vmatpush.bf16.msra.mxu3 %v3586_v3  ;;  %v3562_v3 = vor.u32 %v3760_v61, %v3559_v62  ;;  %v750_v25 = vadd.f32 %v4846_v4, %v749_v63  ;;  %v3754_v63 = vld [vmem:[%s6920_s3 + $0x84] sm:$0xf] }
  0x6c   : > { %738 = vadd.xlane.f32.xlu1 %v737_v11  ;;  %v3573_v11 = vld [vmem:[%s6920_s3 + $0xd0] sm:$0xf]  ;;  %1329 = vmatpush.bf16.msra.mxu2 %v3514_v22  ;;  %v3490_v22 = vor.u32 %v3742_v17, %v3487_v18  ;;  %v4973_v48 = vsel %vm751_vm0, %v4846_v4, %v750_v25 }
  0x6d   : > { %735 = vadd.xlane.f32.xlu0 %v734_v15  ;;  %v3510_v15 = vor.u32 %v3749_v7, %v3509_v6  ;;  %v3574_v19 = vor.u32 %v3765_v16, %v3573_v11  ;;  %v3485_v6 = vld [vmem:[%s6920_s3 + $0x20] sm:$0xf]  ;;  %v3743_v7 = vld [vmem:[%s6920_s3 + $0x24] sm:$0xf0] }
  0x6e   : > { %v3549_v11 = vld [vmem:[%s6920_s3 + $0xa0] sm:$0xf]  ;;  %v3759_v16 = vld [vmem:[%s6920_s3 + $0xa4] sm:$0xf0] }
  0x6f   : > { %741 = vadd.xlane.f32.xlu2 %v740_v26  ;;  %1231 = vmatpush.bf16.msra.mxu0 %v3510_v15  ;;  %v3578_v26 = vor.u32 %v3764_v23, %v3575_v24  ;;  %v3486_v15 = vor.u32 %v3743_v7, %v3485_v6  ;;  %v3758_v23 = vld [vmem:[%s6920_s3 + $0xa4] sm:$0xf]  ;;  %v3551_v24 = vld [vmem:[%s6920_s3 + $0xa8] sm:$0xf0] }
  0x70   : > { %1280 = vmatpush.bf16.msra.mxu1 %v3574_v19  ;;  %1330 = vmatpush.bf16.msra.mxu2 %v3506_v41  ;;  %v3550_v19 = vor.u32 %v3759_v16, %v3549_v11  ;;  %v3482_v41 = vor.u32 %v3740_v38, %v3479_v39  ;;  %v1917_v16 = vld [vmem:[%s5007_s11] sm:$0xff] }
  0x71   : > { %1378 = vmatpush.bf16.msra.mxu3 %v3578_v26  ;;  %v3554_v26 = vor.u32 %v3758_v23, %v3551_v24 }
  0x74   : > { %1281 = vmatpush.bf16.msra.mxu1 %v3566_v40  ;;  %1331 = vmatpush.bf16.msra.mxu2 %v3498_v60  ;;  %v3542_v40 = vor.u32 %v3757_v35, %v3541_v33 }
  0x75   : > { %744 = vadd.xlane.f32.xlu0 %v743_v34  ;;  %v3502_v34 = vor.u32 %v3747_v28, %v3501_v27  ;;  %1379 = vmatpush.bf16.msra.mxu3 %v3570_v51  ;;  %v3477_v27 = vld [vmem:[%s6920_s3 + $0x10] sm:$0xf]  ;;  %v3741_v28 = vld [vmem:[%s6920_s3 + $0x14] sm:$0xf0]  ;;  %v3546_v51 = vor.u32 %v3756_v42, %v3543_v43 }
  0x77   : > { %1232 = vmatpush.bf16.msra.mxu0 %v3502_v34  ;;  %v3478_v34 = vor.u32 %v3741_v28, %v3477_v27 }
  0x78   : > { %1282 = vmatpush.bf16.msra.mxu1 %v3558_v59  ;;  %1332 = vmatpush.bf16.msra.mxu2 %v3490_v22  ;;  %v3471_v59 = vld [vmem:[%s6920_s3 + $0x8] sm:$0xf0] }
  0x79   : > { %1380 = vmatpush.bf16.msra.mxu3 %v3562_v3  ;;  %v3474_v62 = vor.u32 %v3738_v58, %v3471_v59  ;;  %v3535_v3 = vld [vmem:[%s6920_s3 + $0x88] sm:$0xf0] }
  0x7a   : > { %v3538_v6 = vor.u32 %v3754_v63, %v3535_v3 }
  0x7b   : > { %1233 = vmatpush.bf16.msra.mxu0 %v3494_v55  ;;  %v3533_v55 = vld [vmem:[%s6920_s3 + $0x80] sm:$0xf] }
  0x7c   : > { %1283 = vmatpush.bf16.msra.mxu1 %v3550_v19  ;;  %1333 = vmatpush.bf16.msra.mxu2 %v3482_v41  ;;  %v3534_v61 = vor.u32 %v3755_v57, %v3533_v55 }
  0x7d   : > { %1381 = vmatpush.bf16.msra.mxu3 %v3554_v26 }
  0x7f   : > { %1234 = vmatpush.bf16.msra.mxu0 %v3486_v15 }
  0x80   : > { %1284 = vmatpush.bf16.msra.mxu1 %v3542_v40  ;;  %1334 = vmatpush.bf16.msra.mxu2 %v3474_v62  ;;  %v977_v62 = vld [vmem:[#allocation11] sm:$0x3] }
  0x81   : > { %1382 = vmatpush.bf16.msra.mxu3 %v3546_v51 }
  0x83   : > { %1235 = vmatpush.bf16.msra.mxu0 %v3478_v34 }
  0x84   : > { %1285 = vmatpush.bf16.msra.mxu1 %v3534_v61 }
  0x85   : > { %1383 = vmatpush.bf16.msra.mxu3 %v3538_v6 }
  0x87   : > { %1236 = vmatpush.bf16.msra.mxu0 %v3470_v56 }
  0x89   : > { %2175 = vrot.lane.b32.xlu0 %v1917_v16, %s7002_s16  ;;  %v5043_v16 = vperm.slane %v977_v62, 1 }
  0xbf   : > { %v706_v52 = vpop.xlane.xlu1 %705 }
  0xc0   : > { %v700_v4 = vpop.xlane.xlu0 %699  ;;  %v755_v7 = vmul.f32 %v4973_v48, %v706_v52 }
  0xc1   : > { %v753_v60 = vmul.f32 %v4973_v48, %v700_v4  ;;  %v1919_v4 = vld [vmem:[%s5007_s11 + $0x10] sm:$0xff] }
  0xc2   : > { %v712_v15 = vpop.xlane.xlu2 %711  ;;  %v5010_v17 = vadd.f32 1e-06, %v755_v7  ;;  %2179 = vrot.lane.b32.xlu1 %v1919_v4, %s7002_s16  ;;  %v1918_v4 = vld [vmem:[%s5007_s11 + $0x8] sm:$0xff] }
  0xc3   : > { %v769_v11 = vadd.f32 1e-06, %v753_v60  ;;  %v757_v38 = vmul.f32 %v4973_v48, %v712_v15  ;;  %v5041_v15 = vperm.slane %v977_v62, 0  ;;  %2177 = vrot.lane.b32.xlu2 %v1918_v4, %s7002_s16 }
  0xc4   : > { %vm811_vm7 = vweird.f32 %v5010_v17 }
  0xc5   : > { %4005 = vrsqrt.f32 %v769_v11  ;;  %v5027_v52 = vadd.f32 1e-06, %v757_v38  ;;  %vm791_vm2 = vweird.f32 %v769_v11 }
  0xc6   : > { %4007 = vrsqrt.f32 %v5010_v17 }
  0xc7   : > { %v709_v18 = vpop.xlane.xlu1 %708  ;;  %vm831_vm13 = vweird.f32 %v5027_v52 }
  0xc8   : > { %v756_v19 = vmul.f32 %v4973_v48, %v709_v18  ;;  %v703_v22 = vpop.xlane.xlu0 %702 }
  0xc9   : > { %v754_v23 = vmul.f32 %v4973_v48, %v703_v22 }
  0xca   : > { %v5015_v24 = vadd.f32 1e-06, %v756_v19  ;;  %v715_v34 = vpop.xlane.xlu2 %714 }
  0xcb   : > { %v4006_v25 = vpop.eup %4005  ;;  %v770_v26 = vadd.f32 1e-06, %v754_v23  ;;  %v758_v42 = vmul.f32 %v4973_v48, %v715_v34 }
  0xcc   : > { %v786_v27 = vmul.f32 %v4006_v25, %v769_v11  ;;  %4009 = vrsqrt.f32 %v5015_v24  ;;  %v5019_v35 = vpop.eup %4007  ;;  %vm792_vm1 = vweird.f32 %v4006_v25  ;;  %vm821_vm8 = vweird.f32 %v5015_v24 }
  0xcd   : > { %4011 = vrsqrt.f32 %v770_v26  ;;  %v806_v53 = vmul.f32 %v5019_v35, %v5010_v17  ;;  %v5032_v56 = vadd.f32 1e-06, %v758_v42  ;;  %vm793_vm3 = vmor %vm791_vm2, %vm792_vm1  ;;  %vm801_vm5 = vweird.f32 %v770_v26 }
  0xce   : > { %v787_v28 = vmul.f32 %v4006_v25, %v786_v27  ;;  %4013 = vrsqrt.f32 %v5027_v52  ;;  %vm812_vm10 = vweird.f32 %v5019_v35 }
  0xcf   : > { %v807_v59 = vmul.f32 %v5019_v35, %v806_v53  ;;  %4015 = vrsqrt.f32 %v5032_v56  ;;  %v721_v6 = vpop.xlane.xlu1 %720  ;;  %vm813_vm12 = vmor %vm811_vm7, %vm812_vm10  ;;  %vm841_vm15 = vweird.f32 %v5032_v56 }
  0xd0   : > { %v788_v33 = vmul.f32 0.5, %v787_v28  ;;  %v718_v18 = vpop.xlane.xlu0 %717 }
  0xd1   : > { %v808_v19 = vmul.f32 0.5, %v807_v59 }
  0xd2   : > { %v5022_v39 = vpop.eup %4009  ;;  %v789_v40 = vsub.f32 1.5, %v788_v33 }
  0xd3   : > { %v4012_v41 = vpop.eup %4011  ;;  %v816_v43 = vmul.f32 %v5022_v39, %v5015_v24  ;;  %vm822_vm9 = vweird.f32 %v5022_v39 }
  0xd4   : > { %v796_v51 = vmul.f32 %v4012_v41, %v770_v26  ;;  %v790_v54 = vmul.f32 %v4006_v25, %v789_v40  ;;  %vm802_vm4 = vweird.f32 %v4012_v41  ;;  %v5045_v23 = vpop.eup %4013  ;;  %v760_v26 = vmul.f32 %v4973_v48, %v721_v6  ;;  %vm823_vm11 = vmor %vm821_vm8, %vm822_vm9 }
  0xd5   : > { %v817_v57 = vmul.f32 %v5022_v39, %v816_v43  ;;  %vm803_vm6 = vmor %vm801_vm5, %vm802_vm4  ;;  %vm832_vm14 = vweird.f32 %v5045_v23 }
  0xd6   : > { %v797_v55 = vmul.f32 %v4012_v41, %v796_v51  ;;  %v794_v60 = vsel %vm793_vm3, %v4006_v25, %v790_v54  ;;  %v5066_v43 = vadd.f32 1e-06, %v760_v26  ;;  %vm833_vm1 = vmor %vm831_vm13, %vm832_vm14 }
  0xd7   : > { %v818_v63 = vmul.f32 0.5, %v817_v57  ;;  %v945_v7 = vmul.f32 %v794_v60, %v4673_v2  ;;  %v946_v11 = vmul.f32 %v794_v60, %v4680_v5  ;;  %v759_v2 = vmul.f32 %v4973_v48, %v718_v18  ;;  %v5051_v5 = vpop.eup %4015 }
  0xd8   : > { %v798_v58 = vmul.f32 0.5, %v797_v55  ;;  %v836_v24 = vmul.f32 %v5051_v5, %v5032_v56  ;;  %v1920_v55 = vld [vmem:[%s5007_s11 + $0x18] sm:$0xff]  ;;  %4017 = vrsqrt.f32 %v5066_v43  ;;  %vm842_vm0 = vweird.f32 %v5051_v5 }
  0xd9   : > { %v819_v28 = vsub.f32 1.5, %v818_v63  ;;  %v983_v33 = vmul.f32 %v5041_v15, %v945_v7  ;;  %v984_v38 = vmul.f32 %v5043_v16, %v946_v11  ;;  %v5072_v53 = vadd.f32 1e-06, %v759_v2  ;;  %2181 = vrot.lane.b32.xlu0 %v1920_v55, %s7002_s16  ;;  %vm843_vm2 = vmor %vm841_vm15, %vm842_vm0 }
  0xda   : > { %v799_v61 = vsub.f32 1.5, %v798_v58  ;;  %v837_v59 = vmul.f32 %v5051_v5, %v836_v24  ;;  %vm861_vm3 = vweird.f32 %v5066_v43 }
  0xdb   : > { %v820_v51 = vmul.f32 %v5022_v39, %v819_v28  ;;  %4019 = vrsqrt.f32 %v5072_v53  ;;  %vm851_vm5 = vweird.f32 %v5072_v53 }
  0xdc   : > { %v800_v3 = vmul.f32 %v4012_v41, %v799_v61  ;;  %v838_v63 = vmul.f32 0.5, %v837_v59 }
  0xdd   : > { %v824_v58 = vsel %vm823_vm11, %v5022_v39, %v820_v51  ;;  %v727_v39 = vpop.xlane.xlu0 %726  ;;  %v3785_v51 = vld [vmem:[#allocation5 + $0x78] sm:$0xff] }
  0xde   : > { %v804_v22 = vsel %vm803_vm6, %v4012_v41, %v800_v3  ;;  %v809_v41 = vsub.f32 1.5, %v808_v19  ;;  %v951_v61 = vmul.f32 %v824_v58, %v4687_v8  ;;  %v952_v17 = vmul.f32 %v824_v58, %v4690_v9  ;;  %v724_v3 = vpop.xlane.xlu2 %723  ;;  %v5093_v6 = vpop.eup %4017  ;;  %1606 = vmatpush.bf16.msrb.mxu1 %v3785_v51 }
  0xdf   : > { %v947_v25 = vmul.f32 %v804_v22, %v4696_v12  ;;  %v948_v27 = vmul.f32 %v804_v22, %v4699_v13  ;;  %v826_v12 = vmul.f32 %v5045_v23, %v5027_v52  ;;  %v761_v8 = vmul.f32 %v4973_v48, %v724_v3 }
  0xe0   : > { %v810_v54 = vmul.f32 %v5019_v35, %v809_v41  ;;  %v989_v22 = vmul.f32 %v5041_v15, %v951_v61  ;;  %v839_v9 = vsub.f32 1.5, %v838_v63  ;;  %v1922_v41 = vld [vmem:[%s5007_s11 + $0x28] sm:$0xff]  ;;  %vm862_vm4 = vweird.f32 %v5093_v6 }
  0xe1   : > { %v985_v34 = vmul.f32 %v5041_v15, %v947_v25  ;;  %v986_v40 = vmul.f32 %v5043_v16, %v948_v27  ;;  %v827_v57 = vmul.f32 %v5045_v23, %v826_v12  ;;  %v5097_v18 = vpop.eup %4019  ;;  %v856_v25 = vmul.f32 %v5093_v6, %v5066_v43  ;;  %v3777_v12 = vld [vmem:[#allocation5 + $0x38] sm:$0xff]  ;;  %2185 = vrot.lane.b32.xlu1 %v1922_v41, %s7002_s16  ;;  %vm863_vm7 = vmor %vm861_vm3, %vm862_vm4 }
  0xe2   : > { %v814_v60 = vsel %vm813_vm12, %v5019_v35, %v810_v54  ;;  %v990_v35 = vmul.f32 %v5043_v16, %v952_v17  ;;  %v846_v26 = vmul.f32 %v5097_v18, %v5072_v53  ;;  %v1923_v54 = vld [vmem:[%s5007_s11 + $0x30] sm:$0xff]  ;;  %1557 = vmatpush.bf16.msrb.mxu0 %v3777_v12  ;;  %vm852_vm6 = vweird.f32 %v5097_v18 }
  0xe3   : > { %v5062_v13 = vpack.c.bf16 %v985_v34, %v983_v33  ;;  %v5064_v42 = vpack.c.bf16 %v986_v40, %v984_v38  ;;  %v828_v62 = vmul.f32 0.5, %v827_v57  ;;  %v949_v7 = vmul.f32 %v814_v60, %v4667_v0  ;;  %2187 = vrot.lane.b32.xlu0 %v1923_v54, %s7002_s16  ;;  %vm853_vm8 = vmor %vm851_vm5, %vm852_vm6 }
  0xe4   : > { %v950_v11 = vmul.f32 %v814_v60, %v4670_v1  ;;  %v762_v0 = vmul.f32 %v4973_v48, %v727_v39  ;;  %v5118_v33 = vadd.f32 1e-06, %v761_v8  ;;  %v840_v34 = vmul.f32 %v5051_v5, %v839_v9 }
  0xe5   : > { %1237 = vmatmul.bf16.vlgmr.msra.gmra.mxu0 %v5062_v13  ;;  %1286 = vmatmul.bf16.vlgmr.msra.gmra.mxu1 %v5064_v42  ;;  %v829_v19 = vsub.f32 1.5, %v828_v62  ;;  %v987_v1 = vmul.f32 %v5041_v15, %v949_v7  ;;  %v857_v38 = vmul.f32 %v5093_v6, %v856_v25  ;;  %v847_v56 = vmul.f32 %v5097_v18, %v846_v26  ;;  %v1921_v26 = vld [vmem:[%s5007_s11 + $0x20] sm:$0xff] }
  0xe6   : > { %1335 = vmatmul.bf16.vlgmr.msra.gmra.mxu2 %v5062_v13  ;;  %1384 = vmatmul.bf16.vlgmr.msra.gmra.mxu3 %v5064_v42  ;;  %v988_v27 = vmul.f32 %v5043_v16, %v950_v11  ;;  %v5122_v40 = vadd.f32 1e-06, %v762_v0  ;;  %4021 = vrsqrt.f32 %v5118_v33  ;;  %v844_v55 = vsel %vm843_vm2, %v5051_v5, %v840_v34  ;;  %v733_v62 = vpop.xlane.xlu2 %732 }
  0xe7   : > { %v830_v52 = vmul.f32 %v5045_v23, %v829_v19  ;;  %v5114_v28 = vpack.c.bf16 %v989_v22, %v987_v1  ;;  %v858_v4 = vmul.f32 0.5, %v857_v38  ;;  %v848_v57 = vmul.f32 0.5, %v847_v56  ;;  %2183 = vrot.lane.b32.xlu2 %v1921_v26, %s7002_s16 }
  0xe8   : > { %v5116_v2 = vpack.c.bf16 %v990_v35, %v988_v27  ;;  %4023 = vrsqrt.f32 %v5122_v40  ;;  %v956_v60 = vmul.f32 %v844_v55, %v4716_v21  ;;  %v764_v11 = vmul.f32 %v4973_v48, %v733_v62 }
  0xe9   : > { %v834_v24 = vsel %vm833_vm1, %v5045_v23, %v830_v52  ;;  %v955_v23 = vmul.f32 %v844_v55, %v4713_v20  ;;  %v859_v61 = vsub.f32 1.5, %v858_v4  ;;  %v849_v5 = vsub.f32 1.5, %v848_v57  ;;  %v3784_v52 = vld [vmem:[#allocation5 + $0x70] sm:$0xff]  ;;  %v736_v57 = vpop.xlane.xlu0 %735 }
  0xea   : > { %v953_v58 = vmul.f32 %v834_v24, %v4693_v10  ;;  %v954_v59 = vmul.f32 %v834_v24, %v4702_v14  ;;  %v730_v14 = vpop.xlane.xlu1 %729  ;;  %v994_v21 = vmul.f32 %v5043_v16, %v956_v60  ;;  %v5166_v9 = vadd.f32 1e-06, %v764_v11  ;;  %1607 = vmatpush.bf16.msrb.mxu1 %v3784_v52  ;;  %v1926_v11 = vld [vmem:[%s5007_s11 + $0x48] sm:$0xff] }
  0xeb   : > { %v993_v20 = vmul.f32 %v5041_v15, %v955_v23  ;;  %v860_v7 = vmul.f32 %v5093_v6, %v859_v61  ;;  %v850_v43 = vmul.f32 %v5097_v18, %v849_v5  ;;  %v763_v19 = vmul.f32 %v4973_v48, %v730_v14  ;;  %2193 = vrot.lane.b32.xlu0 %v1926_v11, %s7002_s16 }
  0xec   : > { %v5141_v17 = vpop.eup %4021  ;;  %v991_v3 = vmul.f32 %v5041_v15, %v953_v58  ;;  %v992_v10 = vmul.f32 %v5043_v16, %v954_v59  ;;  %4025 = vrsqrt.f32 %v5166_v9  ;;  %vm871_vm9 = vweird.f32 %v5118_v33 }
  0xed   : > { %v866_v39 = vmul.f32 %v5141_v17, %v5118_v33  ;;  %v864_v8 = vsel %vm863_vm7, %v5093_v6, %v860_v7  ;;  %v854_v25 = vsel %vm853_vm8, %v5097_v18, %v850_v43  ;;  %v5173_v27 = vadd.f32 1e-06, %v763_v19  ;;  %v3776_v6 = vld [vmem:[#allocation5 + $0x30] sm:$0xff]  ;;  %v1925_v18 = vld [vmem:[%s5007_s11 + $0x40] sm:$0xff]  ;;  %v3775_v43 = vld [vmem:[#allocation5 + $0x28] sm:$0xff] }
  0xee   : > { %v5143_v63 = vpop.eup %4023  ;;  %v5161_v22 = vpack.c.bf16 %v993_v20, %v991_v3  ;;  %v5163_v35 = vpack.c.bf16 %v994_v21, %v992_v10  ;;  %v959_v34 = vmul.f32 %v864_v8, %v4727_v29  ;;  %v960_v38 = vmul.f32 %v864_v8, %v4730_v30  ;;  %1558 = vmatpush.bf16.msrb.mxu0 %v3776_v6  ;;  %v742_v52 = vpop.xlane.xlu2 %741 }
  0xef   : > { %v876_v53 = vmul.f32 %v5143_v63, %v5122_v40  ;;  %v867_v0 = vmul.f32 %v5141_v17, %v866_v39  ;;  %v957_v56 = vmul.f32 %v854_v25, %v4733_v31  ;;  %v958_v41 = vmul.f32 %v854_v25, %v4736_v32  ;;  %2191 = vrot.lane.b32.xlu1 %v1925_v18, %s7002_s16  ;;  %v3783_v39 = vld [vmem:[#allocation5 + $0x68] sm:$0xff] }
  0xf0   : > { %4027 = vrsqrt.f32 %v5173_v27  ;;  %v997_v24 = vmul.f32 %v5041_v15, %v959_v34  ;;  %v998_v31 = vmul.f32 %v5043_v16, %v960_v38  ;;  %vm872_vm10 = vweird.f32 %v5141_v17  ;;  %1608 = vmatpush.bf16.msrb.mxu1 %v3783_v39 }
  0xf1   : > { %v877_v1 = vmul.f32 %v5143_v63, %v876_v53  ;;  %v868_v12 = vmul.f32 0.5, %v867_v0  ;;  %v995_v29 = vmul.f32 %v5041_v15, %v957_v56  ;;  %v996_v30 = vmul.f32 %v5043_v16, %v958_v41  ;;  %vm873_vm13 = vmor %vm871_vm9, %vm872_vm10 }
  0xf2   : > { %v739_v55 = vpop.xlane.xlu1 %738  ;;  %v5191_v4 = vpop.eup %4025  ;;  %vm881_vm11 = vweird.f32 %v5122_v40  ;;  %vm882_vm12 = vweird.f32 %v5143_v63  ;;  %v765_v62 = vmul.f32 %v4973_v48, %v736_v57  ;;  %1559 = vmatpush.bf16.msrb.mxu0 %v3775_v43  ;;  %vm901_vm15 = vweird.f32 %v5166_v9 }
  0xf3   : > { %v878_v51 = vmul.f32 0.5, %v877_v1  ;;  %v869_v54 = vsub.f32 1.5, %v868_v12  ;;  %v5199_v59 = vpack.c.bf16 %v997_v24, %v995_v29  ;;  %v5201_v23 = vpack.c.bf16 %v998_v31, %v996_v30  ;;  %vm883_vm14 = vmor %vm881_vm11, %vm882_vm12 }
  0xf4   : > { %v766_v60 = vmul.f32 %v4973_v48, %v739_v55  ;;  %v896_v5 = vmul.f32 %v5191_v4, %v5166_v9  ;;  %v5218_v21 = vadd.f32 1e-06, %v765_v62  ;;  %vm902_vm0 = vweird.f32 %v5191_v4 }
  0xf5   : > { %1242 = vmatmul.bf16.gmra.mxu0 %v5114_v28  ;;  %1291 = vmatmul.bf16.gmra.mxu1 %v5116_v2  ;;  %v879_v32 = vsub.f32 1.5, %v878_v51  ;;  %v870_v61 = vmul.f32 %v5141_v17, %v869_v54  ;;  %vm891_vm1 = vweird.f32 %v5173_v27  ;;  %v767_v56 = vmul.f32 %v4973_v48, %v742_v52  ;;  %vm903_vm3 = vmor %vm901_vm15, %vm902_vm0 }
  0xf6   : > { %1340 = vmatmul.bf16.gmra.mxu2 %v5114_v28  ;;  %1389 = vmatmul.bf16.gmra.mxu3 %v5116_v2  ;;  %v5195_v58 = vpop.eup %4027  ;;  %v5211_v3 = vadd.f32 1e-06, %v766_v60  ;;  %v897_v20 = vmul.f32 %v5191_v4, %v896_v5  ;;  %v3800_v60 = vld [vmem:[#allocation8 + $0x70] sm:$0xff]  ;;  %vm911_vm7 = vweird.f32 %v5218_v21 }
  0xf7   : > { %v880_v33 = vmul.f32 %v5143_v63, %v879_v32  ;;  %v886_v40 = vmul.f32 %v5195_v58, %v5173_v27  ;;  %v874_v10 = vsel %vm873_vm13, %v5141_v17, %v870_v61  ;;  %v1924_v17 = vld [vmem:[%s5007_s11 + $0x38] sm:$0xff]  ;;  %vm892_vm2 = vweird.f32 %v5195_v58  ;;  %v3774_v61 = vld [vmem:[#allocation5 + $0x20] sm:$0xff] }
  0xf8   : > { %4029 = vrsqrt.f32 %v5211_v3  ;;  %v962_v19 = vmul.f32 %v874_v10, %v4746_v37  ;;  %v898_v25 = vmul.f32 0.5, %v897_v20  ;;  %2189 = vrot.lane.b32.xlu2 %v1924_v17, %s7002_s16  ;;  %vm893_vm4 = vmor %vm891_vm1, %vm892_vm2  ;;  %v5257_v24 = vadd.f32 1e-06, %v767_v56  ;;  %v3801_v32 = vld [vmem:[#allocation8 + $0x78] sm:$0xff]  ;;  %1560 = vmatpush.bf16.msrb.mxu0 %v3774_v61  ;;  %v3772_v56 = vld [vmem:[#allocation5 + $0x10] sm:$0xff] }
  0xf9   : > { %v884_v14 = vsel %vm883_vm14, %v5143_v63, %v880_v33  ;;  %v887_v7 = vmul.f32 %v5195_v58, %v886_v40  ;;  %v961_v63 = vmul.f32 %v874_v10, %v4743_v36  ;;  %4031 = vrsqrt.f32 %v5218_v21  ;;  %1836 = vmatpush.bf16.msrb.mxu3 %v3801_v32  ;;  %v1928_v33 = vld [vmem:[%s5007_s11 + $0x58] sm:$0xff] }
  0xfa   : > { %v963_v53 = vmul.f32 %v884_v14, %v4763_v46  ;;  %v964_v8 = vmul.f32 %v884_v14, %v4766_v47  ;;  %v899_v26 = vsub.f32 1.5, %v898_v25  ;;  %v1000_v46 = vmul.f32 %v5043_v16, %v962_v19  ;;  %v745_v47 = vpop.xlane.xlu0 %744  ;;  %2197 = vrot.lane.b32.xlu1 %v1928_v33, %s7002_s16  ;;  %v3798_v19 = vld [vmem:[#allocation8 + $0x60] sm:$0xff] }
  0xfb   : > { %v888_v0 = vmul.f32 0.5, %v887_v7  ;;  %v999_v1 = vmul.f32 %v5041_v15, %v961_v63  ;;  %v768_v29 = vmul.f32 %v4973_v48, %v745_v47  ;;  %v3793_v48 = vld [vmem:[#allocation8 + $0x38] sm:$0xff]  ;;  %4033 = vrsqrt.f32 %v5257_v24  ;;  %v3799_v7 = vld [vmem:[#allocation8 + $0x68] sm:$0xff] }
  0xfc   : > { %v1001_v36 = vmul.f32 %v5041_v15, %v963_v53  ;;  %v1002_v6 = vmul.f32 %v5043_v16, %v964_v8  ;;  %v900_v41 = vmul.f32 %v5191_v4, %v899_v26  ;;  %1787 = vmatpush.bf16.msrb.mxu2 %v3793_v48  ;;  %vm921_vm5 = vweird.f32 %v5211_v3  ;;  %v3790_v53 = vld [vmem:[#allocation8 + $0x20] sm:$0xff]  ;;  %v3773_v26 = vld [vmem:[#allocation5 + $0x18] sm:$0xff] }
  0xfd   : > { %v889_v37 = vsub.f32 1.5, %v888_v0  ;;  %v5263_v54 = vadd.f32 1e-06, %v768_v29  ;;  %1837 = vmatpush.bf16.msrb.mxu3 %v3800_v60  ;;  %v3797_v47 = vld [vmem:[#allocation8 + $0x58] sm:$0xff]  ;;  %1561 = vmatpush.bf16.msrb.mxu0 %v3773_v26  ;;  %v3796_v29 = vld [vmem:[#allocation8 + $0x50] sm:$0xff]  ;;  %vm931_vm11 = vweird.f32 %v5257_v24  ;;  %v4042_v26 = vld [vmem:[%s4664_s23 + $0xe8] sm:$0xff] }
  0xfe   : > { %v5237_v34 = vpop.eup %4029  ;;  %v5245_v38 = vpack.c.bf16 %v1001_v36, %v999_v1  ;;  %v5249_v12 = vpack.c.bf16 %v1002_v6, %v1000_v46  ;;  %v904_v30 = vsel %vm903_vm3, %v5191_v4, %v900_v41  ;;  %v3792_v4 = vld [vmem:[#allocation8 + $0x30] sm:$0xff]  ;;  %v3789_v6 = vld [vmem:[#allocation8 + $0x18] sm:$0xff]  ;;  %vm2077_vm1 = vcmask 261120  }
  0xff   : > { %v5239_v18 = vpop.eup %4031  ;;  %v916_v51 = vmul.f32 %v5237_v34, %v5211_v3  ;;  %v890_v9 = vmul.f32 %v5195_v58, %v889_v37  ;;  %v967_v5 = vmul.f32 %v904_v30, %v4769_v49  ;;  %v968_v62 = vmul.f32 %v904_v30, %v4772_v50  ;;  %v3791_v49 = vld [vmem:[#allocation8 + $0x28] sm:$0xff]  ;;  %v3781_v46 = vld [vmem:[#allocation5 + $0x58] sm:$0xff] }
 0x100   : > { %v906_v27 = vmul.f32 %v5239_v18, %v5218_v21  ;;  %4035 = vrsqrt.f32 %v5263_v54  ;;  %1788 = vmatpush.bf16.msrb.mxu2 %v3792_v4  ;;  %vm922_vm6 = vweird.f32 %v5237_v34  ;;  %vm912_vm8 = vweird.f32 %v5239_v18  ;;  %v3780_v41 = vld [vmem:[#allocation5 + $0x50] sm:$0xff]  ;;  %v4039_v48 = vld [vmem:[%s4664_s23 + $0xc0] sm:$0xff] }
 0x101   : > { %v917_v31 = vmul.f32 %v5237_v34, %v916_v51  ;;  %v894_v55 = vsel %vm893_vm4, %v5195_v58, %v890_v9  ;;  %v3782_v58 = vld [vmem:[#allocation5 + $0x60] sm:$0xff]  ;;  %v1005_v50 = vmul.f32 %v5041_v15, %v967_v5  ;;  %1838 = vmatpush.bf16.msrb.mxu3 %v3799_v7  ;;  %vm923_vm9 = vmor %vm921_vm5, %vm922_vm6  ;;  %v4037_v9 = vld [vmem:[%s4664_s23 + $0xd0] sm:$0xff]  ;;  %1562 = vmatpush.bf16.msrb.mxu0 %v3772_v56  ;;  %vm941_vm13 = vweird.f32 %v5263_v54 }
 0x102   : > { %v907_v57 = vmul.f32 %v5239_v18, %v906_v27  ;;  %v965_v40 = vmul.f32 %v894_v55, %v4757_v44  ;;  %v966_v10 = vmul.f32 %v894_v55, %v4760_v45  ;;  %1609 = vmatpush.bf16.msrb.mxu1 %v3782_v58  ;;  %v1006_v44 = vmul.f32 %v5043_v16, %v968_v62  ;;  %v5281_v45 = vpop.eup %4033  ;;  %vm913_vm10 = vmor %vm911_vm7, %vm912_vm8  ;;  %v1929_v51 = vld [vmem:[%s5007_s11 + $0x60] sm:$0xff]  ;;  %v4038_v30 = vld [vmem:[%s4664_s23 + $0xd8] sm:$0xff] }
 0x103   : > { %v918_v14 = vmul.f32 0.5, %v917_v31  ;;  %v926_v3 = vmul.f32 %v5281_v45, %v5257_v24  ;;  %v4040_v55 = vld [vmem:[%s4664_s23 + $0xc8] sm:$0xff]  ;;  %2199 = vrot.lane.b32.xlu0 %v1929_v51, %s7002_s16  ;;  %v1927_v4 = vld [vmem:[%s5007_s11 + $0x50] sm:$0xff]  ;;  %vm932_vm12 = vweird.f32 %v5281_v45  ;;  %vm2142_vm2 = vcmask 519168  }
 0x104   : > { %v908_v20 = vmul.f32 0.5, %v907_v57  ;;  %v1003_v43 = vmul.f32 %v5041_v15, %v965_v40  ;;  %v1004_v39 = vmul.f32 %v5043_v16, %v966_v10  ;;  %1789 = vmatpush.bf16.msrb.mxu2 %v3791_v49  ;;  %v1931_v60 = vld [vmem:[%s5007_s11 + $0x70] sm:$0xff]  ;;  %2195 = vrot.lane.b32.xlu2 %v1927_v4, %s7002_s16  ;;  %vm933_vm15 = vmor %vm931_vm11, %vm932_vm12  ;;  %vm2367_vm3 = vcmask 1043968  }
 0x105   : > { %1247 = vmatmul.bf16.gmra.mxu0 %v5161_v22  ;;  %1296 = vmatmul.bf16.gmra.mxu1 %v5163_v35  ;;  %v919_v11 = vsub.f32 1.5, %v918_v14  ;;  %v927_v37 = vmul.f32 %v5281_v45, %v926_v3  ;;  %v3771_v5 = vld [vmem:[#allocation5 + $0x8] sm:$0xff] }
 0x106   : > { %1345 = vmatmul.bf16.gmra.mxu2 %v5161_v22  ;;  %1394 = vmatmul.bf16.gmra.mxu3 %v5163_v35  ;;  %v909_v17 = vsub.f32 1.5, %v908_v20  ;;  %v5283_v63 = vpop.eup %4035  ;;  %v5290_v25 = vpack.c.bf16 %v1005_v50, %v1003_v43  ;;  %v5292_v0 = vpack.c.bf16 %v1006_v44, %v1004_v39  ;;  %v3779_v62 = vld [vmem:[#allocation5 + $0x48] sm:$0xff]  ;;  %v3770_v39 = vld [vmem:[#allocation5] sm:$0xff] }
 0x107   : > { %v920_v8 = vmul.f32 %v5237_v34, %v919_v11  ;;  %v936_v36 = vmul.f32 %v5283_v63, %v5263_v54  ;;  %1839 = vmatpush.bf16.msrb.mxu3 %v3798_v19  ;;  %1610 = vmatpush.bf16.msrb.mxu1 %v3781_v46  ;;  %v928_v61 = vmul.f32 0.5, %v927_v37  ;;  %v3787_v58 = vld [vmem:[#allocation8 + $0x8] sm:$0xff]  ;;  %vm942_vm14 = vweird.f32 %v5283_v63  ;;  %v3778_v44 = vld [vmem:[#allocation5 + $0x40] sm:$0xff]  ;;  %v1932_v54 = vld [vmem:[%s5007_s11 + $0x78] sm:$0xff] }
 0x108   : > { %v910_v1 = vmul.f32 %v5239_v18, %v909_v17  ;;  %1790 = vmatpush.bf16.msrb.mxu2 %v3790_v53  ;;  %2203 = vrot.lane.b32.xlu1 %v1931_v60, %s7002_s16  ;;  %v3795_v40 = vld [vmem:[#allocation8 + $0x48] sm:$0xff]  ;;  %v3786_v17 = vld [vmem:[#allocation8] sm:$0xff]  ;;  %vm943_vm0 = vmor %vm941_vm13, %vm942_vm14 }
 0x109   : > { %v924_v21 = vsel %vm923_vm9, %v5237_v34, %v920_v8  ;;  %v937_v34 = vmul.f32 %v5283_v63, %v936_v36  ;;  %v929_v7 = vsub.f32 1.5, %v928_v61  ;;  %1563 = vmatpush.bf16.msrb.mxu0 %v3771_v5  ;;  %v3794_v19 = vld [vmem:[#allocation8 + $0x40] sm:$0xff]  ;;  %v4044_v37 = vld [vmem:[%s4664_s23 + $0xf8] sm:$0xff] }
 0x10a   : > { %v914_v52 = vsel %vm913_vm10, %v5239_v18, %v910_v1  ;;  %v3788_v18 = vld [vmem:[#allocation8 + $0x10] sm:$0xff]  ;;  %v971_v27 = vmul.f32 %v4037_v9, %v924_v21  ;;  %v972_v31 = vmul.f32 %v4038_v30, %v924_v21  ;;  %v1930_v3 = vld [vmem:[%s5007_s11 + $0x68] sm:$0xff]  ;;  %v4041_v36 = vld [vmem:[%s4664_s23 + $0xe0] sm:$0xff] }
 0x10b   : > { %1840 = vmatpush.bf16.msrb.mxu3 %v3797_v47  ;;  %v969_v32 = vmul.f32 %v4039_v48, %v914_v52  ;;  %v970_v57 = vmul.f32 %v4040_v55, %v914_v52  ;;  %v938_v33 = vmul.f32 0.5, %v937_v34  ;;  %1611 = vmatpush.bf16.msrb.mxu1 %v3780_v41  ;;  %v930_v24 = vmul.f32 %v5281_v45, %v929_v7 }
 0x10c   : > { %1791 = vmatpush.bf16.msrb.mxu2 %v3789_v6  ;;  %v1009_v14 = vmul.f32 %v5041_v15, %v971_v27  ;;  %v1010_v49 = vmul.f32 %v5043_v16, %v972_v31  ;;  %2205 = vrot.lane.b32.xlu0 %v1932_v54, %s7002_s16  ;;  %v4043_v6 = vld [vmem:[%s4664_s23 + $0xf0] sm:$0xff]  ;;  %s4441_s23 = smov 96  }
 0x10d   : > { %v1007_v10 = vmul.f32 %v5041_v15, %v969_v32  ;;  %v1008_v20 = vmul.f32 %v5043_v16, %v970_v57  ;;  %v939_v50 = vsub.f32 1.5, %v938_v33  ;;  %1564 = vmatpush.bf16.msrb.mxu0 %v3770_v39  ;;  %v934_v8 = vsel %vm933_vm15, %v5281_v45, %v930_v24  ;;  %2201 = vrot.lane.b32.xlu2 %v1930_v3, %s7002_s16 }
 0x10e   : > { %v973_v21 = vmul.f32 %v4041_v36, %v934_v8  ;;  %v974_v46 = vmul.f32 %v4042_v26, %v934_v8 }
 0x10f   : > { %1841 = vmatpush.bf16.msrb.mxu3 %v3796_v29  ;;  %1612 = vmatpush.bf16.msrb.mxu1 %v3779_v62  ;;  %v5325_v11 = vpack.c.bf16 %v1009_v14, %v1007_v10  ;;  %v5327_v43 = vpack.c.bf16 %v1010_v49, %v1008_v20  ;;  %v940_v53 = vmul.f32 %v5283_v63, %v939_v50 }
 0x110   : > { %1792 = vmatpush.bf16.msrb.mxu2 %v3788_v18  ;;  %v1011_v45 = vmul.f32 %v5041_v15, %v973_v21  ;;  %v1012_v47 = vmul.f32 %v5043_v16, %v974_v46  ;;  %v1063_v18 = vld [vmem:[#allocation2] sm:$0x3] }
 0x111   : > { %v944_v1 = vsel %vm943_vm0, %v5283_v63, %v940_v53  ;;  %v5357_v29 = vperm.slane %v1063_v18, 0  ;;  %v5366_v30 = vperm.slane %v1063_v18, 1 }
 0x112   : > { %v975_v52 = vmul.f32 %v4043_v6, %v944_v1  ;;  %v976_v34 = vmul.f32 %v4044_v37, %v944_v1 }
 0x113   : > { %1842 = vmatpush.bf16.msrb.mxu3 %v3795_v40  ;;  %1613 = vmatpush.bf16.msrb.mxu1 %v3778_v44 }
 0x114   : > { %1793 = vmatpush.bf16.msrb.mxu2 %v3787_v58  ;;  %v1013_v63 = vmul.f32 %v5041_v15, %v975_v52  ;;  %v1014_v56 = vmul.f32 %v5043_v16, %v976_v34 }
 0x115   : > { %1252 = vmatmul.bf16.gmra.mxu0 %v5199_v59  ;;  %1301 = vmatmul.bf16.gmra.mxu1 %v5201_v23 }
 0x116   : > { %1350 = vmatmul.bf16.gmra.mxu2 %v5199_v59  ;;  %1399 = vmatmul.bf16.gmra.mxu3 %v5201_v23  ;;  %v5349_v41 = vpack.c.bf16 %v1013_v63, %v1011_v45  ;;  %v5351_v51 = vpack.c.bf16 %v1014_v56, %v1012_v47 }
 0x117   : > { %1843 = vmatpush.bf16.msrb.mxu3 %v3794_v19 }
 0x118   : > { %1794 = vmatpush.bf16.msrb.mxu2 %v3786_v17 }
 0x11d   : > { %v5449_v47 = vpop.permute.xlu2 %2177 }
 0x11e   : > { %7034 = vst [vmem:[#allocation43_spill] sm:$0xff] %v5449_v47 }
 0x125   : > { %1257 = vmatmul.bf16.gmra.mxu0 %v5245_v38  ;;  %1306 = vmatmul.bf16.gmra.mxu1 %v5249_v12 }
 0x126   : > { %1355 = vmatmul.bf16.gmra.mxu2 %v5245_v38  ;;  %1404 = vmatmul.bf16.gmra.mxu3 %v5249_v12 }
 0x135   : > { %1262 = vmatmul.bf16.gmra.mxu0 %v5290_v25  ;;  %1311 = vmatmul.bf16.gmra.mxu1 %v5292_v0 }
 0x136   : > { %1360 = vmatmul.bf16.gmra.mxu2 %v5290_v25  ;;  %1409 = vmatmul.bf16.gmra.mxu3 %v5292_v0 }
 0x145   : > { %1267 = vmatmul.bf16.gmra.mxu0 %v5325_v11  ;;  %1316 = vmatmul.bf16.gmra.mxu1 %v5327_v43 }
 0x146   : > { %1365 = vmatmul.bf16.gmra.mxu2 %v5325_v11  ;;  %1414 = vmatmul.bf16.gmra.mxu3 %v5327_v43 }
 0x155   : > { %1272 = vmatmul.bf16.gmra.mxu0 %v5349_v41  ;;  %1321 = vmatmul.bf16.gmra.mxu1 %v5351_v51 }
 0x156   : > { %1370 = vmatmul.bf16.gmra.mxu2 %v5349_v41  ;;  %1419 = vmatmul.bf16.gmra.mxu3 %v5351_v51 }
 0x162   : > { %v1238_v15 = vpop.f32.mrf.mxu0  ;;  %v1287_v9 = vpop.f32.mrf.mxu1 }
 0x163   : > { %v1239_v27 = vadd.f32 %v1238_v15, %v5357_v29 }
 0x165   : > { %v5360_v16 = vadd.f32 %v1287_v9, %v1239_v27  ;;  %1565 = vmatmul.bf16.vlgmr.msrb.gmra.mxu0 %v5062_v13  ;;  %1614 = vmatmul.bf16.vlgmr.msrb.gmra.mxu1 %v5064_v42  ;;  %v5462_v27 = vpop.permute.xlu2 %2183 }
 0x166   : > { %1795 = vmatmul.bf16.vlgmr.msrb.gmra.mxu2 %v5062_v13  ;;  %1844 = vmatmul.bf16.vlgmr.msrb.gmra.mxu3 %v5064_v42  ;;  %7036 = vst [vmem:[#allocation45_spill] sm:$0xff] %v5462_v27 }
 0x167   : > { %7023 = vst [vmem:[#allocation32_spill] sm:$0xff] %v5360_v16  ;;  %1981 = vrot.lane.b32.xlu1 %v5360_v16, %s4441_s23 }
 0x169   : > { %v1336_v31 = vpop.f32.mrf.mxu2  ;;  %v1385_v48 = vpop.f32.mrf.mxu3 }
 0x16a   : > { %v1337_v32 = vadd.f32 %v1336_v31, %v5366_v30  ;;  %v1240_v55 = vpop.f32.mrf.mxu0  ;;  %v1289_v60 = vpop.f32.mrf.mxu1 }
 0x16b   : > { %v1241_v57 = vadd.f32 %v1240_v55, %v5357_v29 }
 0x16c   : > { %v5372_v4 = vadd.f32 %v1385_v48, %v1337_v32 }
 0x16d   : > { %v5374_v61 = vadd.f32 %v1289_v60, %v1241_v57  ;;  %v5475_v60 = vpop.permute.xlu0 %2175 }
 0x16e   : > { %7024 = vst [vmem:[#allocation33_spill] sm:$0xff] %v5372_v4  ;;  %2464 = vrot.lane.b32.xlu0 %v5372_v4, %s4442_s18 }
 0x16f   : > { %7025 = vst [vmem:[#allocation34_spill] sm:$0xff] %v5374_v61  ;;  %1983 = vrot.lane.b32.xlu2 %v5374_v61, %s4441_s23  ;;  %2029 = vrot.lane.b32.xlu1 %v5360_v16, %s4442_s18 }
 0x170   : > { %7038 = vst [vmem:[#allocation47_spill] sm:$0xff] %v5475_v60 }
 0x171   : > { %v1338_v13 = vpop.f32.mrf.mxu2  ;;  %v1387_v42 = vpop.f32.mrf.mxu3 }
 0x172   : > { %v1339_v33 = vadd.f32 %v1338_v13, %v5366_v30  ;;  %v1243_v62 = vpop.f32.mrf.mxu0  ;;  %v1292_v20 = vpop.f32.mrf.mxu1 }
 0x173   : > { %v1244_v58 = vadd.f32 %v1243_v62, %v5357_v29 }
 0x174   : > { %v5383_v5 = vadd.f32 %v1387_v42, %v1339_v33  ;;  %v5479_v42 = vpop.permute.xlu2 %2189 }
 0x175   : > { %1570 = vmatmul.bf16.gmra.mxu0 %v5114_v28  ;;  %1619 = vmatmul.bf16.gmra.mxu1 %v5116_v2  ;;  %v5397_v49 = vadd.f32 %v1292_v20, %v1244_v58  ;;  %7039 = vst [vmem:[#allocation48_spill] sm:$0xff] %v5479_v42 }
 0x176   : > { %7026 = vst [vmem:[#allocation35_spill] sm:$0xff] %v5383_v5  ;;  %2031 = vrot.lane.b32.xlu0 %v5374_v61, %s4442_s18  ;;  %1800 = vmatmul.bf16.gmra.mxu2 %v5114_v28 }
 0x177   : > { %1849 = vmatmul.bf16.gmra.mxu3 %v5116_v2  ;;  %2466 = vrot.lane.b32.xlu2 %v5383_v5, %s4442_s18  ;;  %7027 = vst [vmem:[#allocation36_spill] sm:$0xff] %v5397_v49 }
 0x178   : > { %2416 = vrot.lane.b32.xlu1 %v5372_v4, %s4441_s23 }
 0x179   : > { %v1341_v40 = vpop.f32.mrf.mxu2  ;;  %v1390_v10 = vpop.f32.mrf.mxu3 }
 0x17a   : > { %v1342_v14 = vadd.f32 %v1341_v40, %v5366_v30  ;;  %v1245_v28 = vpop.f32.mrf.mxu0  ;;  %v1294_v44 = vpop.f32.mrf.mxu1 }
 0x17b   : > { %v1246_v39 = vadd.f32 %v1245_v28, %v5357_v29 }
 0x17c   : > { %v5399_v7 = vadd.f32 %v1390_v10, %v1342_v14  ;;  %v5491_v10 = vpop.permute.xlu0 %2181 }
 0x17d   : > { %v5410_v17 = vadd.f32 %v1294_v44, %v1246_v39  ;;  %7041 = vst [vmem:[#allocation50_spill] sm:$0xff] %v5491_v10 }
 0x17e   : > { %7028 = vst [vmem:[#allocation37_spill] sm:$0xff] %v5399_v7  ;;  %2418 = vrot.lane.b32.xlu0 %v5383_v5, %s4441_s23 }
 0x17f   : > { %2033 = vrot.lane.b32.xlu2 %v5397_v49, %s4442_s18  ;;  %7029 = vst [vmem:[#allocation38_spill] sm:$0xff] %v5410_v17 }
 0x180   : > { %2468 = vrot.lane.b32.xlu1 %v5399_v7, %s4442_s18 }
 0x181   : > { %v1343_v2 = vpop.f32.mrf.mxu2  ;;  %v1392_v50 = vpop.f32.mrf.mxu3 }
 0x182   : > { %v1344_v24 = vadd.f32 %v1343_v2, %v5366_v30  ;;  %v1248_v54 = vpop.f32.mrf.mxu0  ;;  %v5502_v2 = vpop.permute.xlu2 %2195 }
 0x183   : > { %7043 = vst [vmem:[#allocation52_spill] sm:$0xff] %v5502_v2 }
 0x184   : > { %v5421_v8 = vadd.f32 %v1392_v50, %v1344_v24 }
 0x185   : > { %1575 = vmatmul.bf16.gmra.mxu0 %v5161_v22  ;;  %1624 = vmatmul.bf16.gmra.mxu1 %v5163_v35 }
 0x186   : > { %1985 = vrot.lane.b32.xlu0 %v5397_v49, %s4441_s23  ;;  %1805 = vmatmul.bf16.gmra.mxu2 %v5161_v22  ;;  %7030 = vst [vmem:[#allocation39_spill] sm:$0xff] %v5421_v8  ;;  %v1249_v22 = vadd.f32 %v1248_v54, %v5357_v29 }
 0x187   : > { %1854 = vmatmul.bf16.gmra.mxu3 %v5163_v35  ;;  %2420 = vrot.lane.b32.xlu2 %v5399_v7, %s4441_s23  ;;  %v1297_v35 = vpop.f32.mrf.mxu1 }
 0x188   : > { %2035 = vrot.lane.b32.xlu1 %v5410_v17, %s4442_s18  ;;  %v5431_v21 = vadd.f32 %v1297_v35, %v1249_v22 }
 0x189   : > { %v1346_v53 = vpop.f32.mrf.mxu2  ;;  %v1395_v19 = vpop.f32.mrf.mxu3 }
 0x18a   : > { %v1347_v1 = vadd.f32 %v1346_v53, %v5366_v30  ;;  %7031 = vst [vmem:[#allocation40_spill] sm:$0xff] %v5431_v21  ;;  %v1250_v46 = vpop.f32.mrf.mxu0 }
 0x18b   : > { %v1251_v6 = vadd.f32 %v1250_v46, %v5357_v29 }
 0x18c   : > { %v5433_v26 = vadd.f32 %v1395_v19, %v1347_v1  ;;  %v5527_v1 = vpop.permute.xlu2 %2201 }
 0x18d   : > { %7048 = vst [vmem:[#allocation57_spill] sm:$0xff] %v5527_v1 }
 0x18e   : > { %2470 = vrot.lane.b32.xlu0 %v5421_v8, %s4442_s18  ;;  %7032 = vst [vmem:[#allocation41_spill] sm:$0xff] %v5433_v26 }
 0x18f   : > { %1987 = vrot.lane.b32.xlu2 %v5410_v17, %s4441_s23  ;;  %v1299_v45 = vpop.f32.mrf.mxu1 }
 0x190   : > { %2422 = vrot.lane.b32.xlu1 %v5421_v8, %s4441_s23  ;;  %v5447_v63 = vadd.f32 %v1299_v45, %v1251_v6 }
 0x191   : > { %v1348_v3 = vpop.f32.mrf.mxu2  ;;  %v1397_v36 = vpop.f32.mrf.mxu3 }
 0x192   : > { %v1349_v34 = vadd.f32 %v1348_v3, %v5366_v30  ;;  %7033 = vst [vmem:[#allocation42_spill] sm:$0xff] %v5447_v63 }
 0x195   : > { %1580 = vmatmul.bf16.gmra.mxu0 %v5199_v59  ;;  %1629 = vmatmul.bf16.gmra.mxu1 %v5201_v23 }
 0x196   : > { %2037 = vrot.lane.b32.xlu0 %v5431_v21, %s4442_s18  ;;  %1810 = vmatmul.bf16.gmra.mxu2 %v5199_v59  ;;  %v5451_v59 = vadd.f32 %v1397_v36, %v1349_v34 }
 0x197   : > { %1859 = vmatmul.bf16.gmra.mxu3 %v5201_v23  ;;  %2472 = vrot.lane.b32.xlu2 %v5433_v26, %s4442_s18  ;;  %v1253_v23 = vpop.f32.mrf.mxu0  ;;  %v1302_v9 = vpop.f32.mrf.mxu1 }
 0x198   : > { %1989 = vrot.lane.b32.xlu1 %v5431_v21, %s4441_s23  ;;  %7035 = vst [vmem:[#allocation44_spill] sm:$0xff] %v5451_v59  ;;  %v1254_v15 = vadd.f32 %v1253_v23, %v5357_v29 }
 0x199   : > { %v1351_v52 = vpop.f32.mrf.mxu2  ;;  %v1400_v37 = vpop.f32.mrf.mxu3 }
 0x19a   : > { %v5464_v31 = vadd.f32 %v1302_v9, %v1254_v15  ;;  %v1352_v48 = vadd.f32 %v1351_v52, %v5366_v30 }
 0x19c   : > { %7037 = vst [vmem:[#allocation46_spill] sm:$0xff] %v5464_v31  ;;  %v5477_v13 = vadd.f32 %v1400_v37, %v1352_v48 }
 0x19e   : > { %2424 = vrot.lane.b32.xlu0 %v5433_v26, %s4441_s23 }
 0x19f   : > { %2039 = vrot.lane.b32.xlu2 %v5447_v63, %s4442_s18  ;;  %v1255_v57 = vpop.f32.mrf.mxu0  ;;  %v1304_v33 = vpop.f32.mrf.mxu1 }
 0x1a0   : > { %2474 = vrot.lane.b32.xlu1 %v5451_v59, %s4442_s18 }
 0x1a1   : > { %v1353_v56 = vpop.f32.mrf.mxu2  ;;  %v1402_v18 = vpop.f32.mrf.mxu3 }
 0x1a2   : > { %v1354_v62 = vadd.f32 %v1353_v56, %v5366_v30 }
 0x1a4   : > { %v5495_v20 = vadd.f32 %v1402_v18, %v1354_v62 }
 0x1a5   : > { %1585 = vmatmul.bf16.gmra.mxu0 %v5245_v38  ;;  %1634 = vmatmul.bf16.gmra.mxu1 %v5249_v12 }
 0x1a6   : > { %1991 = vrot.lane.b32.xlu0 %v5447_v63, %s4441_s23  ;;  %1815 = vmatmul.bf16.gmra.mxu2 %v5245_v38  ;;  %v5485_v38 = vpop.permute.xlu1 %2179  ;;  %7042 = vst [vmem:[#allocation51_spill] sm:$0xff] %v5495_v20 }
 0x1a7   : > { %1864 = vmatmul.bf16.gmra.mxu3 %v5249_v12  ;;  %2426 = vrot.lane.b32.xlu2 %v5451_v59, %s4441_s23  ;;  %7040 = vst [vmem:[#allocation49_spill] sm:$0xff] %v5485_v38  ;;  %v1256_v12 = vadd.f32 %v1255_v57, %v5357_v29  ;;  %v1258_v28 = vpop.f32.mrf.mxu0  ;;  %v1307_v19 = vpop.f32.mrf.mxu1 }
 0x1a8   : > { %2041 = vrot.lane.b32.xlu1 %v5464_v31, %s4442_s18  ;;  %v1259_v39 = vadd.f32 %v1258_v28, %v5357_v29 }
 0x1a9   : > { %v1356_v32 = vpop.f32.mrf.mxu2  ;;  %v1405_v55 = vpop.f32.mrf.mxu3  ;;  %v5493_v14 = vadd.f32 %v1304_v33, %v1256_v12 }
 0x1aa   : > { %v1357_v53 = vadd.f32 %v1356_v32, %v5366_v30  ;;  %v5515_v54 = vadd.f32 %v1307_v19, %v1259_v39 }
 0x1ae   : > { %2476 = vrot.lane.b32.xlu0 %v5477_v13, %s4442_s18  ;;  %v5507_v50 = vpop.permute.xlu1 %2185 }
 0x1af   : > { %1993 = vrot.lane.b32.xlu2 %v5464_v31, %s4441_s23  ;;  %7044 = vst [vmem:[#allocation53_spill] sm:$0xff] %v5507_v50  ;;  %v1260_v22 = vpop.f32.mrf.mxu0  ;;  %v1309_v52 = vpop.f32.mrf.mxu1 }
 0x1b0   : > { %2428 = vrot.lane.b32.xlu1 %v5477_v13, %s4441_s23  ;;  %v1261_v46 = vadd.f32 %v1260_v22, %v5357_v29 }
 0x1b1   : > { %v1358_v58 = vpop.f32.mrf.mxu2  ;;  %v1407_v40 = vpop.f32.mrf.mxu3 }
 0x1b2   : > { %v5534_v37 = vadd.f32 %v1309_v52, %v1261_v46  ;;  %v1359_v34 = vadd.f32 %v1358_v58, %v5366_v30 }
 0x1b4   : > { %v5551_v15 = vadd.f32 %v1407_v40, %v1359_v34 }
 0x1b5   : > { %1590 = vmatmul.bf16.gmra.mxu0 %v5290_v25  ;;  %1639 = vmatmul.bf16.gmra.mxu1 %v5292_v0 }
 0x1b6   : > { %2043 = vrot.lane.b32.xlu0 %v5493_v14, %s4442_s18  ;;  %1820 = vmatmul.bf16.gmra.mxu2 %v5290_v25  ;;  %v5513_v25 = vpop.permute.xlu0 %2187  ;;  %v5523_v35 = vpop.permute.xlu1 %2191  ;;  %7051 = vst [vmem:[#allocation60_spill] sm:$0xff] %v5551_v15 }
 0x1b7   : > { %1869 = vmatmul.bf16.gmra.mxu3 %v5292_v0  ;;  %2478 = vrot.lane.b32.xlu2 %v5495_v20, %s4442_s18  ;;  %7045 = vst [vmem:[#allocation54_spill] sm:$0xff] %v5513_v25  ;;  %v5517_v0 = vadd.f32 %v1405_v55, %v1357_v53  ;;  %v1312_v48 = vpop.f32.mrf.mxu1 }
 0x1b8   : > { %1995 = vrot.lane.b32.xlu1 %v5493_v14, %s4441_s23  ;;  %7047 = vst [vmem:[#allocation56_spill] sm:$0xff] %v5523_v35 }
 0x1b9   : > { %v1361_v44 = vpop.f32.mrf.mxu2  ;;  %v1410_v24 = vpop.f32.mrf.mxu3  ;;  %7046 = vst [vmem:[#allocation55_spill] sm:$0xff] %v5517_v0 }
 0x1ba   : > { %v1362_v55 = vadd.f32 %v1361_v44, %v5366_v30 }
 0x1bc   : > { %v5573_v58 = vadd.f32 %v1410_v24, %v1362_v55 }
 0x1be   : > { %2430 = vrot.lane.b32.xlu0 %v5495_v20, %s4441_s23  ;;  %v5530_v6 = vpop.permute.xlu0 %2193  ;;  %v5543_v45 = vpop.permute.xlu1 %2197  ;;  %7055 = vst [vmem:[#allocation64_spill] sm:$0xff] %v5573_v58 }
 0x1bf   : > { %2045 = vrot.lane.b32.xlu2 %v5515_v54, %s4442_s18  ;;  %7049 = vst [vmem:[#allocation58_spill] sm:$0xff] %v5530_v6 }
 0x1c0   : > { %2480 = vrot.lane.b32.xlu1 %v5517_v0, %s4442_s18  ;;  %7050 = vst [vmem:[#allocation59_spill] sm:$0xff] %v5543_v45 }
 0x1c1   : > { %v1363_v3 = vpop.f32.mrf.mxu2  ;;  %v1412_v36 = vpop.f32.mrf.mxu3 }
 0x1c2   : > { %v1364_v53 = vadd.f32 %v1363_v3, %v5366_v30 }
 0x1c4   : > { %v5606_v46 = vadd.f32 %v1412_v36, %v1364_v53  ;;  %v5624_v36 = vld [vmem:[%s5604_s5] sm:$0xff] }
 0x1c5   : > { %1595 = vmatmul.bf16.gmra.mxu0 %v5325_v11  ;;  %1644 = vmatmul.bf16.gmra.mxu1 %v5327_v43 }
 0x1c6   : > { %1997 = vrot.lane.b32.xlu0 %v5515_v54, %s4441_s23  ;;  %1825 = vmatmul.bf16.gmra.mxu2 %v5325_v11  ;;  %v1263_v11 = vpop.f32.mrf.mxu0  ;;  %v5553_v9 = vpop.permute.xlu0 %2199  ;;  %7058 = vst [vmem:[#allocation67_spill] sm:$0xff] %v5606_v46 }
 0x1c7   : > { %1874 = vmatmul.bf16.gmra.mxu3 %v5327_v43  ;;  %2432 = vrot.lane.b32.xlu2 %v5517_v0, %s4441_s23  ;;  %7052 = vst [vmem:[#allocation61_spill] sm:$0xff] %v5553_v9  ;;  %v1264_v43 = vadd.f32 %v1263_v11, %v5357_v29  ;;  %v5562_v32 = vpop.permute.xlu1 %2203 }
 0x1c8   : > { %2047 = vrot.lane.b32.xlu1 %v5534_v37, %s4442_s18  ;;  %7053 = vst [vmem:[#allocation62_spill] sm:$0xff] %v5562_v32 }
 0x1c9   : > { %v1366_v23 = vpop.f32.mrf.mxu2  ;;  %v5547_v56 = vpop.f32.mrf.mxu3  ;;  %v5571_v62 = vadd.f32 %v1312_v48, %v1264_v43 }
 0x1ca   : > { %v5549_v18 = vpop.permute.xlu2 %1983  ;;  %v1367_v45 = vadd.f32 %v1366_v23, %v5366_v30 }
 0x1cb   : > { %7054 = vst [vmem:[#allocation63_spill] sm:$0xff] %v5571_v62 }
 0x1cc   : > { %v5670_v6 = vadd.f32 %v5547_v56, %v1367_v45 }
 0x1ce   : > { %2482 = vrot.lane.b32.xlu0 %v5551_v15, %s4442_s18  ;;  %v1265_v40 = vpop.f32.mrf.mxu0  ;;  %v5580_v28 = vpop.permute.xlu0 %2205  ;;  %7060 = vst [vmem:[#allocation69_spill] sm:$0xff] %v5670_v6 }
 0x1cf   : > { %1999 = vrot.lane.b32.xlu2 %v5534_v37, %s4441_s23  ;;  %7056 = vst [vmem:[#allocation65_spill] sm:$0xff] %v5580_v28  ;;  %v1266_v39 = vadd.f32 %v1265_v40, %v5357_v29 }
 0x1d0   : > { %2434 = vrot.lane.b32.xlu1 %v5551_v15, %s4441_s23 }
 0x1d1   : > { %v5565_v57 = vpop.f32.mrf.mxu2  ;;  %v5567_v12 = vpop.f32.mrf.mxu3 }
 0x1d2   : > { %v5569_v33 = vpop.permute.xlu2 %2466 }
 0x1d5   : > { %1600 = vmatmul.bf16.gmra.mxu0 %v5349_v41  ;;  %1649 = vmatmul.bf16.gmra.mxu1 %v5351_v51 }
 0x1d6   : > { %2049 = vrot.lane.b32.xlu0 %v5571_v62, %s4442_s18  ;;  %1830 = vmatmul.bf16.gmra.mxu2 %v5349_v41  ;;  %v1268_v3 = vpop.f32.mrf.mxu0 }
 0x1d7   : > { %1879 = vmatmul.bf16.gmra.mxu3 %v5351_v51  ;;  %2484 = vrot.lane.b32.xlu2 %v5573_v58, %s4442_s18  ;;  %v1314_v51 = vpop.f32.mrf.mxu1  ;;  %v1269_v43 = vadd.f32 %v1268_v3, %v5357_v29  ;;  %v5645_v3 = vld [vmem:[%s5604_s5 + $0x8] sm:$0xff] }
 0x1d8   : > { %2001 = vrot.lane.b32.xlu1 %v5571_v62, %s4441_s23  ;;  %v5597_v22 = vadd.f32 %v1314_v51, %v1266_v39  ;;  %v4045_v39 = vld [vmem:[%s5007_s11] sm:$0xff] }
 0x1d9   : > { %v5588_v44 = vpop.f32.mrf.mxu2  ;;  %v5590_v24 = vpop.f32.mrf.mxu3  ;;  %v1949_v53 = vmul.f32 %v4045_v39, %v5360_v16  ;;  %v2384_v25 = vmul.f32 %v4045_v39, %v5372_v4  ;;  %v4047_v4 = vld [vmem:[%s5007_s11 + $0x10] sm:$0xff] }
 0x1da   : > { %v5593_v41 = vpop.permute.xlu2 %2033  ;;  %v5595_v19 = vpop.permute.xlu1 %1981  ;;  %7057 = vst [vmem:[#allocation66_spill] sm:$0xff] %v5597_v22 }
 0x1de   : > { %2436 = vrot.lane.b32.xlu0 %v5573_v58, %s4441_s23  ;;  %v1270_v50 = vpop.f32.mrf.mxu0 }
 0x1df   : > { %2051 = vrot.lane.b32.xlu2 %v5597_v22, %s4442_s18  ;;  %v1317_v32 = vpop.f32.mrf.mxu1  ;;  %v1271_v47 = vadd.f32 %v1270_v50, %v5357_v29 }
 0x1e0   : > { %2486 = vrot.lane.b32.xlu1 %v5606_v46, %s4442_s18  ;;  %v5614_v52 = vpop.permute.xlu0 %2464  ;;  %v5638_v1 = vadd.f32 %v1317_v32, %v1269_v43 }
 0x1e1   : > { %v5616_v34 = vpop.f32.mrf.mxu2  ;;  %v5618_v11 = vpop.f32.mrf.mxu3 }
 0x1e2   : > { %v5627_v48 = vpop.permute.xlu2 %2420  ;;  %v5629_v55 = vpop.permute.xlu1 %2029  ;;  %7059 = vst [vmem:[#allocation68_spill] sm:$0xff] %v5638_v1 }
 0x1e3   : > { %v2078_v40 = vsel %vm2077_vm1, %v5595_v19, %v5629_v55 }
 0x1e4   : > { %v2094_v51 = vmul.f32 %v2078_v40, %v5624_v36 }
 0x1e6   : > { %v2110_v28 = vadd.f32 %v2094_v51, %v1949_v53  ;;  %2003 = vrot.lane.b32.xlu0 %v5597_v22, %s4441_s23  ;;  %v4046_v51 = vld [vmem:[%s5007_s11 + $0x8] sm:$0xff] }
 0x1e7   : > { %2438 = vrot.lane.b32.xlu2 %v5606_v46, %s4441_s23  ;;  %v1950_v23 = vmul.f32 %v4046_v51, %v5374_v61  ;;  %v1319_v45 = vpop.f32.mrf.mxu1 }
 0x1e8   : > { %v2126_v2 = vpack.c.bf16 %v2110_v28, %v2110_v28  ;;  %2053 = vrot.lane.b32.xlu1 %v5638_v1, %s4442_s18  ;;  %v5650_v40 = vpop.permute.xlu0 %2031 }
 0x1e9   : > { %v2079_v32 = vsel %vm2077_vm1, %v5549_v18, %v5650_v40  ;;  %v1796_v43 = vpop.f32.mrf.mxu2  ;;  %v1845_v53 = vpop.f32.mrf.mxu3 }
 0x1ea   : > { %2143 = vst.msk [vmem:[%s5655_s27] sm:$0xf] %vm2142_vm2, %v2126_v2  ;;  %v2095_v28 = vmul.f32 %v2079_v32, %v5645_v3  ;;  %v5662_v9 = vpop.permute.xlu2 %1987  ;;  %v5664_v35 = vpop.permute.xlu1 %2416  ;;  %v5672_v2 = vld [vmem:[#allocation10] ss:$0 sm:$0xff] }
 0x1eb   : > { %v2512_v42 = vsel %vm2077_vm1, %v5664_v35, %v5614_v52  ;;  %v1797_v56 = vadd.f32 %v5672_v2, %v1796_v43 }
 0x1ec   : > { %v2111_v27 = vadd.f32 %v2095_v28, %v1950_v23  ;;  %v2528_v32 = vmul.f32 %v2512_v42, %v5624_v36  ;;  %v1369_v42 = vadd.f32 %v5565_v57, %v5366_v30  ;;  %v5705_v57 = vadd.f32 %v1319_v45, %v1271_v47  ;;  %v1273_v47 = vpop.f32.mrf.mxu0 }
 0x1ee   : > { %v2127_v38 = vpack.c.bf16 %v2111_v27, %v2111_v27  ;;  %v2544_v10 = vadd.f32 %v2528_v32, %v2384_v25  ;;  %2488 = vrot.lane.b32.xlu0 %v5670_v6, %s4442_s18  ;;  %v5715_v60 = vadd.f32 %v5567_v12, %v1369_v42  ;;  %v1951_v42 = vmul.f32 %v4047_v4, %v5397_v49 }
 0x1ef   : > { %2005 = vrot.lane.b32.xlu2 %v5638_v1, %s4441_s23 }
 0x1f0   : > { %2144 = vst.msk [vmem:[%s5655_s27 + $0x8] sm:$0xf] %vm2142_vm2, %v2127_v38  ;;  %v2560_v39 = vpack.c.bf16 %v2544_v10, %v2544_v10  ;;  %2440 = vrot.lane.b32.xlu1 %v5670_v6, %s4441_s23  ;;  %v5686_v27 = vpop.permute.xlu0 %2418  ;;  %v5694_v38 = vld [vmem:[%s5604_s5 + $0x10] sm:$0xff]  ;;  %v2385_v10 = vmul.f32 %v4046_v51, %v5383_v5  ;;  %v2386_v6 = vmul.f32 %v4047_v4, %v5399_v7 }
 0x1f1   : > { %v2513_v50 = vsel %vm2077_vm1, %v5686_v27, %v5569_v33  ;;  %v1798_v25 = vpop.f32.mrf.mxu2  ;;  %v1847_v23 = vpop.f32.mrf.mxu3  ;;  %v1846_v51 = vadd.f32 %v1845_v53, %v1797_v56  ;;  %7061 = vst [vmem:[#allocation70_spill] sm:$0xff] %v5715_v60  ;;  %v1274_v56 = vadd.f32 %v1273_v47, %v5357_v29 }
 0x1f2   : > { %2576 = vst.msk [vmem:[%s5655_s27 + $0x4] sm:$0xf] %vm2142_vm2, %v2560_v39  ;;  %v2529_v43 = vmul.f32 %v2513_v50, %v5645_v3  ;;  %v1799_v28 = vadd.f32 %v5672_v2, %v1798_v25  ;;  %v5701_v32 = vpop.permute.xlu2 %2472  ;;  %v5703_v61 = vpop.permute.xlu1 %2468 }
 0x1f3   : > { %v2514_v39 = vsel %vm2077_vm1, %v5627_v48, %v5703_v61 }
 0x1f4   : > { %v2545_v50 = vadd.f32 %v2529_v43, %v2385_v10  ;;  %v1848_v5 = vadd.f32 %v1847_v23, %v1799_v28  ;;  %v2530_v25 = vmul.f32 %v2514_v39, %v5694_v38  ;;  %v5745_v28 = vld [vmem:[%s5604_s5 + $0x18] sm:$0xff] }
 0x1f6   : > { %v2561_v45 = vpack.c.bf16 %v2545_v50, %v2545_v50  ;;  %v3806_v16 = vpack.c.bf16 %v1848_v5, %v1846_v51  ;;  %v2546_v1 = vadd.f32 %v2530_v25, %v2386_v6  ;;  %2055 = vrot.lane.b32.xlu0 %v5705_v57, %s4442_s18  ;;  %v4048_v25 = vld [vmem:[%s5007_s11 + $0x18] sm:$0xff] }
 0x1f7   : > { %2490 = vrot.lane.b32.xlu2 %v5715_v60, %s4442_s18  ;;  %v1952_v4 = vmul.f32 %v4048_v25, %v5410_v17 }
 0x1f8   : > { %2577 = vst.msk [vmem:[%s5655_s27 + $0xc] sm:$0xf] %vm2142_vm2, %v2561_v45  ;;  %v2562_v53 = vpack.c.bf16 %v2546_v1, %v2546_v1  ;;  %2007 = vrot.lane.b32.xlu1 %v5705_v57, %s4441_s23  ;;  %v5725_v12 = vpop.permute.xlu0 %1985  ;;  %v1372_v1 = vadd.f32 %v5588_v44, %v5366_v30 }
 0x1f9   : > { %3807 = vst [vmem:[%s5730_s12] sm:$0xff] %v3806_v16   ;;  %v2080_v5 = vsel %vm2077_vm1, %v5725_v12, %v5593_v41  ;;  %v1801_v6 = vpop.f32.mrf.mxu2  ;;  %v1322_v16 = vpop.f32.mrf.mxu1 }
 0x1fa   : > { %2578 = vst.msk [vmem:[%s5655_s27 + $0x14] sm:$0xf] %vm2142_vm2, %v2562_v53  ;;  %v2096_v23 = vmul.f32 %v2080_v5, %v5694_v38  ;;  %v1850_v10 = vpop.f32.mrf.mxu3  ;;  %v5742_v43 = vpop.permute.xlu2 %2039  ;;  %v5752_v50 = vadd.f32 %v1322_v16, %v1274_v56  ;;  %v5758_v45 = vadd.f32 %v5590_v24, %v1372_v1  ;;  %v1802_v56 = vadd.f32 %v5672_v2, %v1801_v6 }
 0x1fb   : > { %v5747_v39 = vpop.permute.xlu1 %2035  ;;  %v1275_v24 = vpop.f32.mrf.mxu0 }
 0x1fc   : > { %v2112_v51 = vadd.f32 %v2096_v23, %v1951_v42  ;;  %v2081_v44 = vsel %vm2077_vm1, %v5662_v9, %v5747_v39  ;;  %7062 = vst [vmem:[#allocation71_spill] sm:$0xff] %v5752_v50  ;;  %v1276_v16 = vadd.f32 %v1275_v24, %v5357_v29 }
 0x1fd   : > { %v2097_v47 = vmul.f32 %v2081_v44, %v5745_v28  ;;  %7063 = vst [vmem:[#allocation72_spill] sm:$0xff] %v5758_v45 }
 0x1fe   : > { %v2128_v53 = vpack.c.bf16 %v2112_v51, %v2112_v51  ;;  %2442 = vrot.lane.b32.xlu0 %v5715_v60, %s4441_s23  ;;  %v2239_v51 = vsel %vm2077_vm1, %v5629_v55, %v5595_v19  ;;  %v2387_v55 = vmul.f32 %v4048_v25, %v5421_v8 }
 0x1ff   : > { %v2113_v5 = vadd.f32 %v2097_v47, %v1952_v4  ;;  %2057 = vrot.lane.b32.xlu2 %v5752_v50, %s4442_s18  ;;  %v2255_v19 = vmul.f32 %v2239_v51, %v5624_v36 }
 0x200   : > { %2145 = vst.msk [vmem:[%s5655_s27 + $0x10] sm:$0xf] %vm2142_vm2, %v2128_v53  ;;  %2492 = vrot.lane.b32.xlu1 %v5758_v45, %s4442_s18  ;;  %v5769_v42 = vpop.permute.xlu0 %2470  ;;  %v1851_v53 = vadd.f32 %v1850_v10, %v1802_v56  ;;  %v1374_v56 = vadd.f32 %v5616_v34, %v5366_v30  ;;  %v2240_v30 = vsel %vm2077_vm1, %v5650_v40, %v5549_v18 }
 0x201   : > { %v2129_v1 = vpack.c.bf16 %v2113_v5, %v2113_v5  ;;  %v1803_v23 = vpop.f32.mrf.mxu2  ;;  %v1324_v5 = vpop.f32.mrf.mxu1 }
 0x202   : > { %v1804_v44 = vadd.f32 %v5672_v2, %v1803_v23  ;;  %v1852_v4 = vpop.f32.mrf.mxu3  ;;  %v5776_v47 = vpop.permute.xlu2 %2426  ;;  %v5788_v23 = vadd.f32 %v1324_v5, %v1276_v16 }
 0x203   : > { %2146 = vst.msk [vmem:[%s5655_s27 + $0x18] sm:$0xf] %vm2142_vm2, %v2129_v1  ;;  %v5780_v6 = vpop.permute.xlu1 %2422  ;;  %v1566_v5 = vpop.f32.mrf.mxu0 }
 0x204   : > { %v1853_v7 = vadd.f32 %v1852_v4, %v1804_v44  ;;  %v2515_v29 = vsel %vm2077_vm1, %v5780_v6, %v5769_v42 }
 0x205   : > { %v2531_v24 = vmul.f32 %v2515_v29, %v5745_v28  ;;  %v5815_v29 = vadd.f32 %v5618_v11, %v1374_v56 }
 0x206   : > { %v3811_v1 = vpack.c.bf16 %v1853_v7, %v1851_v53  ;;  %2009 = vrot.lane.b32.xlu0 %v5752_v50, %s4441_s23  ;;  %v5801_v7 = vld [vmem:[%s5604_s5 + $0x20] sm:$0xff] }
 0x207   : > { %v2547_v10 = vadd.f32 %v2531_v24, %v2387_v55  ;;  %2287 = vrot.lane.b32.xlu2 %v2255_v19, %s7002_s16  ;;  %v5805_v53 = vld [vmem:[#allocation7] ss:$0 sm:$0xff] }
 0x208   : > { %3843 = vst [vmem:[%s5730_s12 + $0x8] sm:$0xff] %v3811_v1   ;;  %2059 = vrot.lane.b32.xlu1 %v5788_v23, %s4442_s18  ;;  %v5798_v25 = vpop.permute.xlu0 %2037  ;;  %v4049_v55 = vld [vmem:[%s5007_s11 + $0x20] sm:$0xff]  ;;  %v1567_v18 = vadd.f32 %v5805_v53, %v1566_v5 }
 0x209   : > { %v2563_v16 = vpack.c.bf16 %v2547_v10, %v2547_v10  ;;  %v1806_v51 = vpop.f32.mrf.mxu2  ;;  %v1953_v24 = vmul.f32 %v4049_v55, %v5431_v21  ;;  %v2256_v10 = vmul.f32 %v2240_v30, %v5645_v3  ;;  %v2388_v5 = vmul.f32 %v4049_v55, %v5433_v26 }
 0x20a   : > { %v1855_v44 = vpop.f32.mrf.mxu3  ;;  %v5803_v4 = vpop.permute.xlu2 %1993  ;;  %v1807_v40 = vadd.f32 %v5672_v2, %v1806_v51  ;;  %v5840_v51 = vld [vmem:[%s5604_s5 + $0x28] sm:$0xff] }
 0x20b   : > { %2579 = vst.msk [vmem:[%s5655_s27 + $0x1c] sm:$0xf] %vm2142_vm2, %v2563_v16  ;;  %v5812_v34 = vpop.permute.xlu1 %1989  ;;  %v1615_v16 = vpop.f32.mrf.mxu1 }
 0x20c   : > { %v2082_v19 = vsel %vm2077_vm1, %v5812_v34, %v5798_v25  ;;  %v5844_v49 = vadd.f32 %v1615_v16, %v1567_v18  ;;  %v1856_v17 = vadd.f32 %v1855_v44, %v1807_v40  ;;  %v2608_v40 = vsel %vm2077_vm1, %v5614_v52, %v5664_v35 }
 0x20d   : > { %v2098_v1 = vmul.f32 %v2082_v19, %v5801_v7  ;;  %v2624_v52 = vmul.f32 %v2608_v40, %v5624_v36 }
 0x20e   : > { %2494 = vrot.lane.b32.xlu0 %v5815_v29, %s4442_s18  ;;  %7064 = vst [vmem:[#allocation73_spill] sm:$0xff] %v5844_v49 }
 0x20f   : > { %v2114_v11 = vadd.f32 %v2098_v1, %v1953_v24  ;;  %2444 = vrot.lane.b32.xlu2 %v5758_v45, %s4441_s23 }
 0x210   : > { %2289 = vrot.lane.b32.xlu1 %v2256_v10, %s7002_s16  ;;  %v5831_v56 = vpop.permute.xlu0 %2424 }
 0x211   : > { %v2130_v19 = vpack.c.bf16 %v2114_v11, %v2114_v11  ;;  %v2516_v30 = vsel %vm2077_vm1, %v5831_v56, %v5701_v32  ;;  %v1808_v21 = vpop.f32.mrf.mxu2 }
 0x212   : > { %v2532_v24 = vmul.f32 %v2516_v30, %v5801_v7  ;;  %v1809_v1 = vadd.f32 %v5672_v2, %v1808_v21  ;;  %v1857_v8 = vpop.f32.mrf.mxu3  ;;  %v5842_v10 = vpop.permute.xlu2 %2478  ;;  %v4050_v30 = vld [vmem:[%s5007_s11 + $0x28] sm:$0xff] }
 0x213   : > { %2147 = vst.msk [vmem:[%s5655_s27 + $0x20] sm:$0xf] %vm2142_vm2, %v2130_v19  ;;  %v5848_v11 = vpop.permute.xlu1 %2474  ;;  %v2389_v26 = vmul.f32 %v4050_v30, %v5451_v59  ;;  %v1568_v19 = vpop.f32.mrf.mxu0 }
 0x214   : > { %v2548_v50 = vadd.f32 %v2532_v24, %v2388_v5  ;;  %v1858_v55 = vadd.f32 %v1857_v8, %v1809_v1  ;;  %v2517_v21 = vsel %vm2077_vm1, %v5776_v47, %v5848_v11  ;;  %v1954_v5 = vmul.f32 %v4050_v30, %v5447_v63  ;;  %v1617_v30 = vpop.f32.mrf.mxu1 }
 0x215   : > { %v2533_v45 = vmul.f32 %v2517_v21, %v5840_v51 }
 0x216   : > { %v2564_v18 = vpack.c.bf16 %v2548_v50, %v2548_v50  ;;  %v3816_v16 = vpack.c.bf16 %v1858_v55, %v1856_v17  ;;  %2832 = vrot.lane.b32.xlu0 %v5844_v49, %s4442_s18  ;;  %v2241_v17 = vsel %vm2077_vm1, %v5593_v41, %v5725_v12  ;;  %v5879_v55 = vld [vmem:[%s5604_s5 + $0x30] sm:$0xff] }
 0x217   : > { %v2549_v44 = vadd.f32 %v2533_v45, %v2389_v26  ;;  %2011 = vrot.lane.b32.xlu2 %v5788_v23, %s4441_s23  ;;  %v2257_v21 = vmul.f32 %v2241_v17, %v5694_v38  ;;  %v1569_v17 = vadd.f32 %v5805_v53, %v1568_v19 }
 0x218   : > { %2580 = vst.msk [vmem:[%s5655_s27 + $0x24] sm:$0xf] %vm2142_vm2, %v2564_v18  ;;  %2446 = vrot.lane.b32.xlu1 %v5815_v29, %s4441_s23  ;;  %v5864_v8 = vpop.permute.xlu0 %1991 }
 0x219   : > { %3844 = vst [vmem:[%s5730_s12 + $0x10] sm:$0xff] %v3816_v16   ;;  %v2565_v50 = vpack.c.bf16 %v2549_v44, %v2549_v44  ;;  %v2083_v26 = vsel %vm2077_vm1, %v5864_v8, %v5742_v43  ;;  %v1811_v45 = vpop.f32.mrf.mxu2  ;;  %v4051_v16 = vld [vmem:[%s5007_s11 + $0x30] sm:$0xff] }
 0x21a   : > { %v2099_v24 = vmul.f32 %v2083_v26, %v5840_v51  ;;  %v1860_v1 = vpop.f32.mrf.mxu3  ;;  %v5881_v41 = vpop.permute.xlu2 %2045  ;;  %v1955_v44 = vmul.f32 %v4051_v16, %v5464_v31 }
 0x21b   : > { %2581 = vst.msk [vmem:[%s5655_s27 + $0x2c] sm:$0xf] %vm2142_vm2, %v2565_v50  ;;  %v5885_v12 = vpop.permute.xlu1 %2041  ;;  %v1571_v40 = vpop.f32.mrf.mxu0 }
 0x21c   : > { %v2115_v18 = vadd.f32 %v2099_v24, %v1954_v5  ;;  %v2084_v35 = vsel %vm2077_vm1, %v5803_v4, %v5885_v12  ;;  %v1812_v5 = vadd.f32 %v5672_v2, %v1811_v45  ;;  %v5915_v45 = vadd.f32 %v1617_v30, %v1569_v17 }
 0x21d   : > { %v2100_v26 = vmul.f32 %v2084_v35, %v5879_v55 }
 0x21e   : > { %v2131_v59 = vpack.c.bf16 %v2115_v18, %v2115_v18  ;;  %2291 = vrot.lane.b32.xlu0 %v2257_v21, %s7002_s16  ;;  %7065 = vst [vmem:[#allocation74_spill] sm:$0xff] %v5915_v45 }
 0x21f   : > { %v2116_v50 = vadd.f32 %v2100_v26, %v1955_v44  ;;  %2656 = vrot.lane.b32.xlu2 %v2624_v52, %s7002_s16  ;;  %v1861_v52 = vadd.f32 %v1860_v1, %v1812_v5  ;;  %v1572_v5 = vadd.f32 %v5805_v53, %v1571_v40 }
 0x220   : > { %2148 = vst.msk [vmem:[%s5655_s27 + $0x28] sm:$0xf] %vm2142_vm2, %v2131_v59  ;;  %2784 = vrot.lane.b32.xlu1 %v5844_v49, %s4441_s23  ;;  %v5903_v36 = vpop.permute.xlu0 %2476  ;;  %v2609_v59 = vsel %vm2077_vm1, %v5569_v33, %v5686_v27  ;;  %v1620_v27 = vpop.f32.mrf.mxu1 }
 0x221   : > { %v2132_v24 = vpack.c.bf16 %v2116_v50, %v2116_v50  ;;  %v1813_v18 = vpop.f32.mrf.mxu2  ;;  %v2625_v31 = vmul.f32 %v2609_v59, %v5645_v3  ;;  %v2610_v3 = vsel %vm2077_vm1, %v5703_v61, %v5627_v48 }
 0x222   : > { %v1814_v35 = vadd.f32 %v5672_v2, %v1813_v18  ;;  %v1862_v21 = vpop.f32.mrf.mxu3  ;;  %v5906_v44 = vpop.permute.xlu2 %2432  ;;  %v2390_v18 = vmul.f32 %v4051_v16, %v5477_v13  ;;  %v2626_v59 = vmul.f32 %v2610_v3, %v5694_v38 }
 0x223   : > { %2149 = vst.msk [vmem:[%s5655_s27 + $0x30] sm:$0xf] %vm2142_vm2, %v2132_v24  ;;  %v5913_v19 = vpop.permute.xlu1 %2428  ;;  %v1573_v61 = vpop.f32.mrf.mxu0 }
 0x224   : > { %v1863_v26 = vadd.f32 %v1862_v21, %v1814_v35  ;;  %v2518_v50 = vsel %vm2077_vm1, %v5913_v19, %v5903_v36  ;;  %v5939_v35 = vld [vmem:[%s5604_s5 + $0x38] sm:$0xff]  ;;  %v1574_v38 = vadd.f32 %v5805_v53, %v1573_v61  ;;  %v5976_v61 = vld [vmem:[%s5604_s5 + $0x40] sm:$0xff] }
 0x225   : > { %v2534_v63 = vmul.f32 %v2518_v50, %v5879_v55 }
 0x226   : > { %v3821_v33 = vpack.c.bf16 %v1863_v26, %v1861_v52  ;;  %2786 = vrot.lane.b32.xlu0 %v5915_v45, %s4441_s23  ;;  %v5953_v52 = vld [vmem:[%s5007_s11 + $0x38] sm:$0xff]  ;;  %v5958_v26 = vadd.f32 %v1620_v27, %v1572_v5 }
 0x227   : > { %v2550_v30 = vadd.f32 %v2534_v63, %v2390_v18  ;;  %2834 = vrot.lane.b32.xlu2 %v5915_v45, %s4442_s18  ;;  %v2242_v63 = vsel %vm2077_vm1, %v5747_v39, %v5662_v9  ;;  %7066 = vst [vmem:[#allocation75_spill] sm:$0xff] %v5953_v52  ;;  %v1956_v9 = vmul.f32 %v5953_v52, %v5493_v14 }
 0x228   : > { %3845 = vst [vmem:[%s5730_s12 + $0x18] sm:$0xff] %v3821_v33   ;;  %2658 = vrot.lane.b32.xlu1 %v2625_v31, %s7002_s16  ;;  %v5929_v1 = vpop.permute.xlu0 %2043  ;;  %v2258_v40 = vmul.f32 %v2242_v63, %v5745_v28  ;;  %v2391_v5 = vmul.f32 %v5953_v52, %v5495_v20  ;;  %v5993_v52 = vld [vmem:[%s5007_s11 + $0x40] sm:$0xff] }
 0x229   : > { %v2566_v16 = vpack.c.bf16 %v2550_v30, %v2550_v30  ;;  %v1816_v17 = vpop.f32.mrf.mxu2  ;;  %v1622_v30 = vpop.f32.mrf.mxu1  ;;  %7067 = vst [vmem:[#allocation76_spill] sm:$0xff] %v5993_v52 }
 0x22a   : > { %v1865_v24 = vpop.f32.mrf.mxu3  ;;  %v5941_v21 = vpop.permute.xlu2 %1999  ;;  %v1817_v18 = vadd.f32 %v5672_v2, %v1816_v17 }
 0x22b   : > { %2582 = vst.msk [vmem:[%s5655_s27 + $0x34] sm:$0xf] %vm2142_vm2, %v2566_v16  ;;  %v5945_v31 = vpop.permute.xlu1 %1995 }
 0x22c   : > { %v2085_v48 = vsel %vm2077_vm1, %v5945_v31, %v5929_v1 }
 0x22d   : > { %v2101_v39 = vmul.f32 %v2085_v48, %v5939_v35 }
 0x22e   : > { %2660 = vrot.lane.b32.xlu0 %v2626_v59, %s7002_s16 }
 0x22f   : > { %v2117_v50 = vadd.f32 %v2101_v39, %v1956_v9  ;;  %2293 = vrot.lane.b32.xlu2 %v2258_v40, %s7002_s16  ;;  %v5980_v40 = vadd.f32 %v1622_v30, %v1574_v38  ;;  %v2243_v9 = vsel %vm2077_vm1, %v5798_v25, %v5812_v34  ;;  %v2392_v38 = vmul.f32 %v5993_v52, %v5517_v0 }
 0x230   : > { %2836 = vrot.lane.b32.xlu1 %v5958_v26, %s4442_s18  ;;  %v5966_v33 = vpop.permute.xlu0 %2430  ;;  %v2259_v34 = vmul.f32 %v2243_v9, %v5801_v7  ;;  %v2611_v9 = vsel %vm2077_vm1, %v5769_v42, %v5780_v6 }
 0x231   : > { %v2133_v3 = vpack.c.bf16 %v2117_v50, %v2117_v50  ;;  %v2519_v27 = vsel %vm2077_vm1, %v5966_v33, %v5842_v10  ;;  %v1818_v16 = vpop.f32.mrf.mxu2  ;;  %v1866_v50 = vadd.f32 %v1865_v24, %v1817_v18  ;;  %v1576_v24 = vpop.f32.mrf.mxu0  ;;  %v2627_v6 = vmul.f32 %v2611_v9, %v5745_v28 }
 0x232   : > { %v2535_v63 = vmul.f32 %v2519_v27, %v5939_v35  ;;  %v1819_v17 = vadd.f32 %v5672_v2, %v1818_v16  ;;  %v1867_v59 = vpop.f32.mrf.mxu3  ;;  %v5978_v48 = vpop.permute.xlu2 %2484 }
 0x233   : > { %2150 = vst.msk [vmem:[%s5655_s27 + $0x38] sm:$0xf] %vm2142_vm2, %v2133_v3  ;;  %v5987_v39 = vpop.permute.xlu1 %2480 }
 0x234   : > { %v2551_v27 = vadd.f32 %v2535_v63, %v2391_v5  ;;  %v1868_v20 = vadd.f32 %v1867_v59, %v1819_v17  ;;  %v2520_v16 = vsel %vm2077_vm1, %v5906_v44, %v5987_v39 }
 0x235   : > { %v2536_v25 = vmul.f32 %v2520_v16, %v5976_v61 }
 0x236   : > { %v2567_v30 = vpack.c.bf16 %v2551_v27, %v2551_v27  ;;  %v3826_v3 = vpack.c.bf16 %v1868_v20, %v1866_v50  ;;  %2838 = vrot.lane.b32.xlu0 %v5980_v40, %s4442_s18  ;;  %v2244_v20 = vsel %vm2077_vm1, %v5742_v43, %v5864_v8  ;;  %v1957_v50 = vmul.f32 %v5993_v52, %v5515_v54 }
 0x237   : > { %v2552_v18 = vadd.f32 %v2536_v25, %v2392_v38  ;;  %2788 = vrot.lane.b32.xlu2 %v5958_v26, %s4441_s23  ;;  %v6022_v38 = vld [vmem:[%s5604_s5 + $0x48] sm:$0xff]  ;;  %v2260_v25 = vmul.f32 %v2244_v20, %v5840_v51 }
 0x238   : > { %2583 = vst.msk [vmem:[%s5655_s27 + $0x3c] sm:$0xf] %vm2142_vm2, %v2567_v30  ;;  %2295 = vrot.lane.b32.xlu1 %v2259_v34, %s7002_s16  ;;  %v6006_v5 = vpop.permute.xlu0 %1997  ;;  %v1625_v30 = vpop.f32.mrf.mxu1 }
 0x239   : > { %3846 = vst [vmem:[%s5730_s12 + $0x20] sm:$0xff] %v3826_v3   ;;  %v2568_v63 = vpack.c.bf16 %v2552_v18, %v2552_v18  ;;  %v2086_v17 = vsel %vm2077_vm1, %v6006_v5, %v5881_v41  ;;  %v1821_v59 = vpop.f32.mrf.mxu2  ;;  %v6036_v3 = vld [vmem:[%s5007_s11 + $0x48] sm:$0xff] }
 0x23a   : > { %v2102_v27 = vmul.f32 %v2086_v17, %v5976_v61  ;;  %v1870_v16 = vpop.f32.mrf.mxu3  ;;  %v6024_v43 = vpop.permute.xlu2 %2051  ;;  %7068 = vst [vmem:[#allocation77_spill] sm:$0xff] %v6036_v3  ;;  %v1958_v18 = vmul.f32 %v6036_v3, %v5534_v37  ;;  %v1822_v28 = vadd.f32 %v5672_v2, %v1821_v59 }
 0x23b   : > { %2584 = vst.msk [vmem:[%s5655_s27 + $0x44] sm:$0xf] %vm2142_vm2, %v2568_v63  ;;  %v6028_v8 = vpop.permute.xlu1 %2047 }
 0x23c   : > { %v2118_v34 = vadd.f32 %v2102_v27, %v1957_v50  ;;  %v2087_v42 = vsel %vm2077_vm1, %v5941_v21, %v6028_v8  ;;  %v1577_v50 = vadd.f32 %v5805_v53, %v1576_v24  ;;  %v1578_v27 = vpop.f32.mrf.mxu0  ;;  %v2612_v24 = vsel %vm2077_vm1, %v5701_v32, %v5831_v56 }
 0x23d   : > { %v2103_v17 = vmul.f32 %v2087_v42, %v6022_v38  ;;  %v2628_v32 = vmul.f32 %v2612_v24, %v5801_v7  ;;  %v2613_v7 = vsel %vm2077_vm1, %v5848_v11, %v5776_v47  ;;  %v6086_v24 = vld [vmem:[%s5604_s5 + $0x50] sm:$0xff] }
 0x23e   : > { %v2134_v63 = vpack.c.bf16 %v2118_v34, %v2118_v34  ;;  %2297 = vrot.lane.b32.xlu0 %v2260_v25, %s7002_s16 }
 0x23f   : > { %v2119_v20 = vadd.f32 %v2103_v17, %v1958_v18  ;;  %2662 = vrot.lane.b32.xlu2 %v2627_v6, %s7002_s16  ;;  %v6061_v6 = vadd.f32 %v1625_v30, %v1577_v50  ;;  %v1871_v17 = vadd.f32 %v1870_v16, %v1822_v28 }
 0x240   : > { %2151 = vst.msk [vmem:[%s5655_s27 + $0x40] sm:$0xf] %vm2142_vm2, %v2134_v63  ;;  %2790 = vrot.lane.b32.xlu1 %v5980_v40, %s4441_s23  ;;  %v6049_v9 = vpop.permute.xlu0 %2482  ;;  %v1627_v30 = vpop.f32.mrf.mxu1 }
 0x241   : > { %v2135_v42 = vpack.c.bf16 %v2119_v20, %v2119_v20  ;;  %v1823_v34 = vpop.f32.mrf.mxu2 }
 0x242   : > { %v1824_v52 = vadd.f32 %v5672_v2, %v1823_v34  ;;  %v1872_v25 = vpop.f32.mrf.mxu3  ;;  %v6052_v18 = vpop.permute.xlu2 %2438  ;;  %v2393_v34 = vmul.f32 %v6036_v3, %v5551_v15 }
 0x243   : > { %2152 = vst.msk [vmem:[%s5655_s27 + $0x48] sm:$0xf] %vm2142_vm2, %v2135_v42  ;;  %v6059_v59 = vpop.permute.xlu1 %2434  ;;  %v1579_v42 = vadd.f32 %v5805_v53, %v1578_v27 }
 0x244   : > { %v1873_v63 = vadd.f32 %v1872_v25, %v1824_v52  ;;  %v2521_v20 = vsel %vm2077_vm1, %v6059_v59, %v6049_v9  ;;  %v1581_v47 = vpop.f32.mrf.mxu0 }
 0x245   : > { %v2537_v0 = vmul.f32 %v2521_v20, %v6022_v38  ;;  %v2629_v20 = vmul.f32 %v2613_v7, %v5840_v51  ;;  %v1582_v51 = vadd.f32 %v5805_v53, %v1581_v47 }
 0x246   : > { %v3831_v56 = vpack.c.bf16 %v1873_v63, %v1871_v17  ;;  %2792 = vrot.lane.b32.xlu0 %v6061_v6, %s4441_s23 }
 0x247   : > { %v2553_v16 = vadd.f32 %v2537_v0, %v2393_v34  ;;  %2840 = vrot.lane.b32.xlu2 %v6061_v6, %s4442_s18  ;;  %v2245_v0 = vsel %vm2077_vm1, %v5885_v12, %v5803_v4  ;;  %v6100_v34 = vld [vmem:[%s5007_s11 + $0x50] sm:$0xff] }
 0x248   : > { %3847 = vst [vmem:[%s5730_s12 + $0x28] sm:$0xff] %v3831_v56   ;;  %2664 = vrot.lane.b32.xlu1 %v2628_v32, %s7002_s16  ;;  %v6076_v52 = vpop.permute.xlu0 %2049  ;;  %v2261_v27 = vmul.f32 %v2245_v0, %v5879_v55  ;;  %v1959_v4 = vmul.f32 %v6100_v34, %v5571_v62  ;;  %v6105_v32 = vadd.f32 %v1627_v30, %v1579_v42  ;;  %v6140_v62 = vld [vmem:[%s5007_s11 + $0x58] sm:$0xff] }
 0x249   : > { %v2569_v50 = vpack.c.bf16 %v2553_v16, %v2553_v16  ;;  %v1826_v28 = vpop.f32.mrf.mxu2  ;;  %7069 = vst [vmem:[#allocation78_spill] sm:$0xff] %v6100_v34 }
 0x24a   : > { %v1875_v25 = vpop.f32.mrf.mxu3  ;;  %v6088_v17 = vpop.permute.xlu2 %2005  ;;  %v1827_v16 = vadd.f32 %v5672_v2, %v1826_v28  ;;  %7070 = vst [vmem:[#allocation79_spill] sm:$0xff] %v6140_v62 }
 0x24b   : > { %2585 = vst.msk [vmem:[%s5655_s27 + $0x4c] sm:$0xf] %vm2142_vm2, %v2569_v50  ;;  %v6092_v63 = vpop.permute.xlu1 %2001  ;;  %v1630_v50 = vpop.f32.mrf.mxu1 }
 0x24c   : > { %v2088_v11 = vsel %vm2077_vm1, %v6092_v63, %v6076_v52 }
 0x24d   : > { %v2104_v12 = vmul.f32 %v2088_v11, %v6086_v24 }
 0x24e   : > { %2666 = vrot.lane.b32.xlu0 %v2629_v20, %s7002_s16  ;;  %v2394_v20 = vmul.f32 %v6100_v34, %v5573_v58  ;;  %v1876_v58 = vadd.f32 %v1875_v25, %v1827_v16  ;;  %v1583_v25 = vpop.f32.mrf.mxu0 }
 0x24f   : > { %v2120_v56 = vadd.f32 %v2104_v12, %v1959_v4  ;;  %2299 = vrot.lane.b32.xlu2 %v2261_v27, %s7002_s16  ;;  %v6123_v27 = vld [vmem:[%s5604_s5 + $0x58] sm:$0xff]  ;;  %v6127_v12 = vadd.f32 %v1630_v50, %v1582_v51  ;;  %v2395_v51 = vmul.f32 %v6140_v62, %v5606_v46  ;;  %v7072_v46 = vld [vmem:[#allocation32_spill] sm:$0xff] }
 0x250   : > { %2842 = vrot.lane.b32.xlu1 %v6105_v32, %s4442_s18  ;;  %v6113_v7 = vpop.permute.xlu0 %2436 }
 0x251   : > { %v2136_v0 = vpack.c.bf16 %v2120_v56, %v2120_v56  ;;  %v2522_v30 = vsel %vm2077_vm1, %v6113_v7, %v5978_v48  ;;  %v1828_v42 = vpop.f32.mrf.mxu2  ;;  %v2246_v56 = vsel %vm2077_vm1, %v5929_v1, %v5945_v31 }
 0x252   : > { %v2538_v47 = vmul.f32 %v2522_v30, %v6086_v24  ;;  %v1829_v28 = vadd.f32 %v5672_v2, %v1828_v42  ;;  %v1877_v11 = vpop.f32.mrf.mxu3  ;;  %v6125_v4 = vpop.permute.xlu2 %2490  ;;  %v2262_v31 = vmul.f32 %v2246_v56, %v5939_v35  ;;  %v1960_v56 = vmul.f32 %v6140_v62, %v5597_v22 }
 0x253   : > { %2153 = vst.msk [vmem:[%s5655_s27 + $0x50] sm:$0xf] %vm2142_vm2, %v2136_v0  ;;  %v6134_v3 = vpop.permute.xlu1 %2486 }
 0x254   : > { %v2554_v30 = vadd.f32 %v2538_v47, %v2394_v20  ;;  %v1878_v34 = vadd.f32 %v1877_v11, %v1829_v28  ;;  %v2523_v42 = vsel %vm2077_vm1, %v6052_v18, %v6134_v3  ;;  %v2614_v11 = vsel %vm2077_vm1, %v5903_v36, %v5913_v19  ;;  %v1632_v19 = vpop.f32.mrf.mxu1 }
 0x255   : > { %v2539_v1 = vmul.f32 %v2523_v42, %v6123_v27 }
 0x256   : > { %v2570_v50 = vpack.c.bf16 %v2554_v30, %v2554_v30  ;;  %v3836_v0 = vpack.c.bf16 %v1878_v34, %v1876_v58  ;;  %2844 = vrot.lane.b32.xlu0 %v6127_v12, %s4442_s18  ;;  %v2247_v58 = vsel %vm2077_vm1, %v5881_v41, %v6006_v5 }
 0x257   : > { %v2555_v16 = vadd.f32 %v2539_v1, %v2395_v51  ;;  %2794 = vrot.lane.b32.xlu2 %v6105_v32, %s4441_s23  ;;  %v6169_v51 = vld [vmem:[%s5604_s5 + $0x60] sm:$0xff]  ;;  %v2263_v1 = vmul.f32 %v2247_v58, %v5976_v61  ;;  %v1584_v58 = vadd.f32 %v5805_v53, %v1583_v25 }
 0x258   : > { %2586 = vst.msk [vmem:[%s5655_s27 + $0x54] sm:$0xf] %vm2142_vm2, %v2570_v50  ;;  %2301 = vrot.lane.b32.xlu1 %v2262_v31, %s7002_s16  ;;  %v6153_v20 = vpop.permute.xlu0 %2003  ;;  %v2630_v50 = vmul.f32 %v2614_v11, %v5879_v55 }
 0x259   : > { %3848 = vst [vmem:[%s5730_s12 + $0x30] sm:$0xff] %v3836_v0   ;;  %v2571_v34 = vpack.c.bf16 %v2555_v16, %v2555_v16  ;;  %v2089_v47 = vsel %vm2077_vm1, %v6153_v20, %v6024_v43  ;;  %v1831_v28 = vpop.f32.mrf.mxu2  ;;  %v6183_v0 = vld [vmem:[%s5007_s11 + $0x60] sm:$0xff]  ;;  %v7071_v16 = vld [vmem:[#allocation68_spill] sm:$0xff] }
 0x25a   : > { %v2105_v30 = vmul.f32 %v2089_v47, %v6123_v27  ;;  %v1880_v42 = vpop.f32.mrf.mxu3  ;;  %v6171_v41 = vpop.permute.xlu2 %2057  ;;  %v1961_v47 = vmul.f32 %v6183_v0, %v7071_v16  ;;  %v1832_v55 = vadd.f32 %v5672_v2, %v1831_v28  ;;  %v2615_v28 = vsel %vm2077_vm1, %v5842_v10, %v5966_v33 }
 0x25b   : > { %2587 = vst.msk [vmem:[%s5655_s27 + $0x5c] sm:$0xf] %vm2142_vm2, %v2571_v34  ;;  %v6175_v5 = vpop.permute.xlu1 %2053 }
 0x25c   : > { %v2121_v31 = vadd.f32 %v2105_v30, %v1960_v56  ;;  %v2090_v36 = vsel %vm2077_vm1, %v6088_v17, %v6175_v5  ;;  %v1586_v30 = vpop.f32.mrf.mxu0  ;;  %v1881_v16 = vadd.f32 %v1880_v42, %v1832_v55 }
 0x25d   : > { %v2106_v62 = vmul.f32 %v2090_v36, %v6169_v51 }
 0x25e   : > { %v2137_v34 = vpack.c.bf16 %v2121_v31, %v2121_v31  ;;  %2303 = vrot.lane.b32.xlu0 %v2263_v1, %s7002_s16  ;;  %v7073_v1 = vld [vmem:[#allocation47_spill] sm:$0xff] }
 0x25f   : > { %v2122_v56 = vadd.f32 %v2106_v62, %v1961_v47  ;;  %2668 = vrot.lane.b32.xlu2 %v2630_v50, %s7002_s16  ;;  %v2223_v22 = vmul.f32 %v7073_v1, %v7072_v46  ;;  %v6201_v47 = vadd.f32 %v1632_v19, %v1584_v58  ;;  %v2631_v58 = vmul.f32 %v2615_v28, %v5939_v35 }
 0x260   : > { %2154 = vst.msk [vmem:[%s5655_s27 + $0x58] sm:$0xf] %vm2142_vm2, %v2137_v34  ;;  %2796 = vrot.lane.b32.xlu1 %v6127_v12, %s4441_s23  ;;  %v6196_v11 = vpop.permute.xlu0 %2488 }
 0x261   : > { %v2138_v36 = vpack.c.bf16 %v2122_v56, %v2122_v56  ;;  %v1833_v31 = vpop.f32.mrf.mxu2 }
 0x262   : > { %v1834_v25 = vadd.f32 %v5672_v2, %v1833_v31  ;;  %v2288_v62 = vpop.permute.xlu2 %2287  ;;  %v1882_v50 = vpop.f32.mrf.mxu3  ;;  %v7074_v2 = vld [vmem:[#allocation69_spill] sm:$0xff]  ;;  %v2248_v31 = vsel %vm2077_vm1, %v6028_v8, %v5941_v21 }
 0x263   : > { %2155 = vst.msk [vmem:[%s5655_s27 + $0x60] sm:$0xf] %vm2142_vm2, %v2138_v36  ;;  %v6208_v34 = vpop.permute.xlu1 %2440  ;;  %v2335_v56 = vadd.f32 %v2288_v62, %v2223_v22  ;;  %v2396_v19 = vmul.f32 %v6183_v0, %v7074_v2  ;;  %v1635_v22 = vpop.f32.mrf.mxu1 }
 0x264   : > { %v1883_v15 = vadd.f32 %v1882_v50, %v1834_v25  ;;  %v2524_v46 = vsel %vm2077_vm1, %v6208_v34, %v6196_v11  ;;  %v6235_v25 = vld [vmem:[%s5604_s5 + $0x68] sm:$0xff]  ;;  %v1588_v28 = vpop.f32.mrf.mxu0 }
 0x265   : > { %v2540_v10 = vmul.f32 %v2524_v46, %v6169_v51  ;;  %v2351_v33 = vpack.c.bf16 %v2335_v56, %v2335_v56 }
 0x266   : > { %v3841_v36 = vpack.c.bf16 %v1883_v15, %v1881_v16  ;;  %2798 = vrot.lane.b32.xlu0 %v6201_v47, %s4441_s23  ;;  %v2616_v15 = vsel %vm2077_vm1, %v5987_v39, %v5906_v44  ;;  %v1587_v16 = vadd.f32 %v5805_v53, %v1586_v30  ;;  %v2264_v39 = vmul.f32 %v2248_v31, %v6022_v38  ;;  %v6249_v30 = vld [vmem:[%s5007_s11 + $0x68] sm:$0xff] }
 0x267   : > { %v2556_v42 = vadd.f32 %v2540_v10, %v2396_v19  ;;  %2368 = vst.msk [vmem:[%s5655_s27] sm:$0xf] %vm2367_vm3, %v2351_v33  ;;  %2846 = vrot.lane.b32.xlu2 %v6201_v47, %s4442_s18  ;;  %v2632_v56 = vmul.f32 %v2616_v15, %v5976_v61  ;;  %v1962_v21 = vmul.f32 %v6249_v30, %v5705_v57  ;;  %v6270_v15 = vld [vmem:[%s5604_s5 + $0x70] sm:$0xff] }
 0x268   : > { %3849 = vst [vmem:[%s5730_s12 + $0x38] sm:$0xff] %v3841_v36   ;;  %2670 = vrot.lane.b32.xlu1 %v2631_v58, %s7002_s16  ;;  %v6225_v55 = vpop.permute.xlu0 %2055  ;;  %v6254_v46 = vadd.f32 %v1635_v22, %v1587_v16  ;;  %v1589_v19 = vadd.f32 %v5805_v53, %v1588_v28  ;;  %v2397_v22 = vmul.f32 %v6249_v30, %v5715_v60 }
 0x269   : > { %v2572_v35 = vpack.c.bf16 %v2556_v42, %v2556_v42  ;;  %7075 = vst [vmem:[#allocation32_spill] sm:$0xff] %v6249_v30  ;;  %v2249_v16 = vsel %vm2077_vm1, %v6076_v52, %v6092_v63 }
 0x26a   : > { %v6237_v62 = vpop.permute.xlu2 %2444  ;;  %v2265_v52 = vmul.f32 %v2249_v16, %v6086_v24  ;;  %v7078_v16 = vld [vmem:[#allocation33_spill] sm:$0xff] }
 0x26b   : > { %2588 = vst.msk [vmem:[%s5655_s27 + $0x64] sm:$0xf] %vm2142_vm2, %v2572_v35  ;;  %v6241_v50 = vpop.permute.xlu1 %2007  ;;  %v1637_v33 = vpop.f32.mrf.mxu1 }
 0x26c   : > { %v2091_v44 = vsel %vm2077_vm1, %v6241_v50, %v6225_v55  ;;  %v6281_v28 = vadd.f32 %v1637_v33, %v1589_v19 }
 0x26d   : > { %v2107_v8 = vmul.f32 %v2091_v44, %v6235_v25 }
 0x26e   : > { %2672 = vrot.lane.b32.xlu0 %v2632_v56, %s7002_s16 }
 0x26f   : > { %v2123_v61 = vadd.f32 %v2107_v8, %v1962_v21  ;;  %2305 = vrot.lane.b32.xlu2 %v2264_v39, %s7002_s16  ;;  %v1591_v39 = vpop.f32.mrf.mxu0  ;;  %v6287_v21 = vld [vmem:[%s5007_s11 + $0x70] sm:$0xff]  ;;  %v7077_v8 = vld [vmem:[#allocation72_spill] sm:$0xff] }
 0x270   : > { %2848 = vrot.lane.b32.xlu1 %v6254_v46, %s4442_s18  ;;  %v6261_v10 = vpop.permute.xlu0 %2442  ;;  %7076 = vst [vmem:[#allocation69_spill] sm:$0xff] %v6287_v21 }
 0x271   : > { %v2139_v58 = vpack.c.bf16 %v2123_v61, %v2123_v61  ;;  %v2525_v36 = vsel %vm2077_vm1, %v6261_v10, %v6125_v4  ;;  %v2398_v61 = vmul.f32 %v6287_v21, %v7077_v8 }
 0x272   : > { %v2541_v42 = vmul.f32 %v2525_v36, %v6235_v25  ;;  %v6272_v35 = vpop.permute.xlu2 %2011 }
 0x273   : > { %2156 = vst.msk [vmem:[%s5655_s27 + $0x68] sm:$0xf] %vm2142_vm2, %v2139_v58  ;;  %v6279_v31 = vpop.permute.xlu1 %2492  ;;  %v2250_v58 = vsel %vm2077_vm1, %v6024_v43, %v6153_v20  ;;  %v1640_v20 = vpop.f32.mrf.mxu1 }
 0x274   : > { %v2557_v56 = vadd.f32 %v2541_v42, %v2397_v22  ;;  %v2526_v44 = vsel %vm2077_vm1, %v6237_v62, %v6279_v31 }
 0x275   : > { %v2542_v36 = vmul.f32 %v2526_v44, %v6270_v15  ;;  %v2617_v44 = vsel %vm2077_vm1, %v6049_v9, %v6059_v59 }
 0x276   : > { %v2573_v63 = vpack.c.bf16 %v2557_v56, %v2557_v56  ;;  %2850 = vrot.lane.b32.xlu0 %v6281_v28, %s4442_s18  ;;  %v2592_v56 = vmul.f32 %v7073_v1, %v7078_v16  ;;  %v2266_v16 = vmul.f32 %v2250_v58, %v6123_v27  ;;  %v2633_v59 = vmul.f32 %v2617_v44, %v6022_v38 }
 0x277   : > { %v2558_v19 = vadd.f32 %v2542_v36, %v2398_v61  ;;  %2800 = vrot.lane.b32.xlu2 %v6254_v46, %s4441_s23  ;;  %v7079_v61 = vld [vmem:[#allocation71_spill] sm:$0xff]  ;;  %v1593_v58 = vpop.f32.mrf.mxu0  ;;  %v1592_v38 = vadd.f32 %v5805_v53, %v1591_v39 }
 0x278   : > { %2589 = vst.msk [vmem:[%s5655_s27 + $0x6c] sm:$0xf] %vm2142_vm2, %v2573_v63  ;;  %2307 = vrot.lane.b32.xlu1 %v2265_v52, %s7002_s16  ;;  %v6300_v33 = vpop.permute.xlu0 %2009  ;;  %v1963_v36 = vmul.f32 %v6287_v21, %v7079_v61  ;;  %v6317_v63 = vld [vmem:[%s5604_s5 + $0x78] sm:$0xff] }
 0x279   : > { %v2574_v22 = vpack.c.bf16 %v2558_v19, %v2558_v19  ;;  %v2092_v42 = vsel %vm2077_vm1, %v6300_v33, %v6171_v41 }
 0x27a   : > { %v2108_v52 = vmul.f32 %v2092_v42, %v6270_v15  ;;  %v2657_v43 = vpop.permute.xlu2 %2656  ;;  %v6329_v42 = vld [vmem:[%s5007_s11 + $0x78] sm:$0xff] }
 0x27b   : > { %2590 = vst.msk [vmem:[%s5655_s27 + $0x74] sm:$0xf] %vm2142_vm2, %v2574_v22  ;;  %v6321_v19 = vpop.permute.xlu1 %2059  ;;  %v2704_v8 = vadd.f32 %v2657_v43, %v2592_v56  ;;  %v1964_v21 = vmul.f32 %v6329_v42, %v5788_v23  ;;  %v7082_v43 = vld [vmem:[#allocation43_spill] sm:$0xff] }
 0x27c   : > { %v2124_v1 = vadd.f32 %v2108_v52, %v1963_v36  ;;  %v2093_v9 = vsel %vm2077_vm1, %v6272_v35, %v6321_v19  ;;  %7080 = vst [vmem:[#allocation33_spill] sm:$0xff] %v6329_v42  ;;  %v7081_v52 = vld [vmem:[#allocation34_spill] sm:$0xff] }
 0x27d   : > { %v2109_v22 = vmul.f32 %v2093_v9, %v6317_v63  ;;  %v2720_v60 = vpack.c.bf16 %v2704_v8, %v2704_v8 }
 0x27e   : > { %v2140_v56 = vpack.c.bf16 %v2124_v1, %v2124_v1  ;;  %2309 = vrot.lane.b32.xlu0 %v2266_v16, %s7002_s16  ;;  %v6354_v16 = vadd.f32 %v1640_v20, %v1592_v38  ;;  %v2619_v20 = vsel %vm2077_vm1, %v6134_v3, %v6052_v18  ;;  %v7084_v38 = vld [vmem:[#allocation50_spill] sm:$0xff] }
 0x27f   : > { %v2125_v36 = vadd.f32 %v2109_v22, %v1964_v21  ;;  %2736 = vst.msk [vmem:[%s5655_s27 + $0x4] sm:$0xf] %vm2367_vm3, %v2720_v60  ;;  %2674 = vrot.lane.b32.xlu2 %v2633_v59, %s7002_s16  ;;  %v2224_v21 = vmul.f32 %v7082_v43, %v7081_v52  ;;  %v2618_v60 = vsel %vm2077_vm1, %v5978_v48, %v6113_v7  ;;  %v1642_v59 = vpop.f32.mrf.mxu1  ;;  %v1596_v7 = vpop.f32.mrf.mxu0 }
 0x280   : > { %2157 = vst.msk [vmem:[%s5655_s27 + $0x70] sm:$0xf] %vm2142_vm2, %v2140_v56  ;;  %2802 = vrot.lane.b32.xlu1 %v6281_v28, %s4441_s23  ;;  %v6343_v44 = vpop.permute.xlu0 %2494  ;;  %v2634_v22 = vmul.f32 %v2618_v60, %v6086_v24  ;;  %v1594_v52 = vadd.f32 %v5805_v53, %v1593_v58  ;;  %v2399_v58 = vmul.f32 %v6329_v42, %v5815_v29  ;;  %v6440_v42 = vld [vmem:[%s5604_s5 + $0x8] sm:$0xff] }
 0x281   : > { %v2141_v8 = vpack.c.bf16 %v2125_v36, %v2125_v36  ;;  %v7083_v36 = vld [vmem:[#allocation38_spill] sm:$0xff] }
 0x282   : > { %v6345_v1 = vpop.permute.xlu2 %2834 }
 0x283   : > { %2158 = vst.msk [vmem:[%s5655_s27 + $0x78] sm:$0xf] %vm2142_vm2, %v2141_v8  ;;  %v2290_v39 = vpop.permute.xlu1 %2289  ;;  %v2226_v8 = vmul.f32 %v7084_v38, %v7083_v36 }
 0x284   : > { %v2336_v9 = vadd.f32 %v2290_v39, %v2224_v21  ;;  %v2251_v21 = vsel %vm2077_vm1, %v6175_v5, %v6088_v17  ;;  %v6385_v17 = vadd.f32 %v1642_v59, %v1594_v52 }
 0x285   : > { %v2267_v18 = vmul.f32 %v2251_v21, %v6169_v51  ;;  %v7086_v21 = vld [vmem:[#allocation49_spill] sm:$0xff] }
 0x286   : > { %v2352_v56 = vpack.c.bf16 %v2336_v9, %v2336_v9  ;;  %2804 = vrot.lane.b32.xlu0 %v6354_v16, %s4441_s23 }
 0x287   : > { %2852 = vrot.lane.b32.xlu2 %v6354_v16, %s4442_s18  ;;  %v1645_v5 = vpop.f32.mrf.mxu1 }
 0x288   : > { %2369 = vst.msk [vmem:[%s5655_s27 + $0x8] sm:$0xf] %vm2367_vm3, %v2352_v56  ;;  %2676 = vrot.lane.b32.xlu1 %v2634_v22, %s7002_s16  ;;  %v6364_v48 = vpop.permute.xlu0 %2832  ;;  %v2635_v22 = vmul.f32 %v2619_v20, %v6123_v27 }
 0x28a   : > { %v2294_v60 = vpop.permute.xlu2 %2293 }
 0x28b   : > { %v2338_v39 = vadd.f32 %v2294_v60, %v2226_v8  ;;  %v6375_v9 = vpop.permute.xlu1 %2446  ;;  %v7085_v8 = vld [vmem:[#allocation36_spill] sm:$0xff] }
 0x28c   : > { %v2527_v3 = vsel %vm2077_vm1, %v6375_v9, %v6343_v44  ;;  %v2225_v60 = vmul.f32 %v7086_v21, %v7085_v8 }
 0x28d   : > { %v2354_v56 = vpack.c.bf16 %v2338_v39, %v2338_v39  ;;  %v2543_v36 = vmul.f32 %v2527_v3, %v6317_v63  ;;  %v1597_v39 = vadd.f32 %v5805_v53, %v1596_v7 }
 0x28e   : > { %2678 = vrot.lane.b32.xlu0 %v2635_v22, %s7002_s16 }
 0x28f   : > { %2371 = vst.msk [vmem:[%s5655_s27 + $0x18] sm:$0xf] %vm2367_vm3, %v2354_v56  ;;  %v2559_v20 = vadd.f32 %v2543_v36, %v2399_v58  ;;  %2311 = vrot.lane.b32.xlu2 %v2267_v18, %s7002_s16  ;;  %v1598_v56 = vpop.f32.mrf.mxu0  ;;  %v2252_v18 = vsel %vm2077_vm1, %v6225_v55, %v6241_v50  ;;  %v6405_v7 = vadd.f32 %v1645_v5, %v1597_v39 }
 0x290   : > { %2854 = vrot.lane.b32.xlu1 %v6385_v17, %s4442_s18  ;;  %v2292_v59 = vpop.permute.xlu0 %2291  ;;  %v2268_v50 = vmul.f32 %v2252_v18, %v6235_v25 }
 0x291   : > { %v2575_v52 = vpack.c.bf16 %v2559_v20, %v2559_v20  ;;  %v2337_v22 = vadd.f32 %v2292_v59, %v2225_v60  ;;  %v4061_v20 = vld [vmem:[%s5007_s11] sm:$0xff] }
 0x292   : > { %v6396_v3 = vpop.permute.xlu2 %2788  ;;  %v2752_v60 = vmul.f32 %v4061_v20, %v5844_v49  ;;  %v6415_v59 = vld [vmem:[%s5604_s5] sm:$0xff] }
 0x293   : > { %2591 = vst.msk [vmem:[%s5655_s27 + $0x7c] sm:$0xf] %vm2142_vm2, %v2575_v52  ;;  %v2353_v58 = vpack.c.bf16 %v2337_v22, %v2337_v22  ;;  %v6403_v36 = vpop.permute.xlu1 %2784  ;;  %v1647_v52 = vpop.f32.mrf.mxu1  ;;  %v2253_v22 = vsel %vm2077_vm1, %v6171_v41, %v6300_v33  ;;  %v7088_v41 = vld [vmem:[#allocation35_spill] sm:$0xff] }
 0x294   : > { %v2880_v8 = vsel %vm2077_vm1, %v6403_v36, %v6364_v48  ;;  %v2593_v33 = vmul.f32 %v7082_v43, %v7088_v41 }
 0x295   : > { %2370 = vst.msk [vmem:[%s5655_s27 + $0x10] sm:$0xf] %vm2367_vm3, %v2353_v58  ;;  %v2896_v55 = vmul.f32 %v6415_v59, %v2880_v8  ;;  %v7087_v8 = vld [vmem:[#allocation39_spill] sm:$0xff] }
 0x296   : > { %2856 = vrot.lane.b32.xlu0 %v6405_v7, %s4442_s18  ;;  %v2595_v20 = vmul.f32 %v7084_v38, %v7087_v8  ;;  %v2269_v8 = vmul.f32 %v2253_v22, %v6270_v15 }
 0x297   : > { %v2912_v5 = vadd.f32 %v2896_v55, %v2752_v60  ;;  %2806 = vrot.lane.b32.xlu2 %v6385_v17, %s4441_s23  ;;  %v2620_v60 = vsel %vm2077_vm1, %v6196_v11, %v6208_v34  ;;  %v4063_v55 = vld [vmem:[%s5007_s11 + $0x8] sm:$0xff] }
 0x298   : > { %2313 = vrot.lane.b32.xlu1 %v2268_v50, %s7002_s16  ;;  %v6424_v39 = vpop.permute.xlu0 %2786  ;;  %v2753_v50 = vmul.f32 %v4063_v55, %v5915_v45  ;;  %v2636_v38 = vmul.f32 %v2620_v60, %v6169_v51 }
 0x299   : > { %v2928_v58 = vpack.c.bf16 %v2912_v5, %v2912_v5  ;;  %v2881_v18 = vsel %vm2077_vm1, %v6424_v39, %v6345_v1 }
 0x29a   : > { %v2897_v49 = vmul.f32 %v6440_v42, %v2881_v18  ;;  %v2663_v5 = vpop.permute.xlu2 %2662  ;;  %v1601_v18 = vpop.f32.mrf.mxu0 }
 0x29b   : > { %2944 = vst.msk [vmem:[%s6447_s28] sm:$0xf] %vm2142_vm2, %v2928_v58  ;;  %v2659_v11 = vpop.permute.xlu1 %2658  ;;  %v2707_v34 = vadd.f32 %v2663_v5, %v2595_v20  ;;  %v7089_v58 = vld [vmem:[#allocation37_spill] sm:$0xff]  ;;  %v1650_v60 = vpop.f32.mrf.mxu1 }
 0x29c   : > { %v2913_v55 = vadd.f32 %v2897_v49, %v2753_v50  ;;  %v2705_v45 = vadd.f32 %v2659_v11, %v2593_v33  ;;  %v2594_v22 = vmul.f32 %v7086_v21, %v7089_v58  ;;  %v1599_v49 = vadd.f32 %v5805_v53, %v1598_v56  ;;  %v4065_v11 = vld [vmem:[%s5007_s11 + $0x10] sm:$0xff] }
 0x29d   : > { %v2723_v30 = vpack.c.bf16 %v2707_v34, %v2707_v34  ;;  %v6480_v34 = vld [vmem:[%s5604_s5 + $0x10] sm:$0xff] }
 0x29e   : > { %v2929_v41 = vpack.c.bf16 %v2913_v55, %v2913_v55  ;;  %v2721_v43 = vpack.c.bf16 %v2705_v45, %v2705_v45  ;;  %2315 = vrot.lane.b32.xlu0 %v2269_v8, %s7002_s16  ;;  %v6471_v56 = vadd.f32 %v1647_v52, %v1599_v49  ;;  %v7091_v49 = vld [vmem:[#allocation54_spill] sm:$0xff] }
 0x29f   : > { %2739 = vst.msk [vmem:[%s5655_s27 + $0x1c] sm:$0xf] %vm2367_vm3, %v2723_v30  ;;  %2680 = vrot.lane.b32.xlu2 %v2636_v38, %s7002_s16  ;;  %v2621_v38 = vsel %vm2077_vm1, %v6125_v4, %v6261_v10 }
 0x2a0   : > { %2945 = vst.msk [vmem:[%s6447_s28 + $0x4] sm:$0xf] %vm2142_vm2, %v2929_v41  ;;  %2808 = vrot.lane.b32.xlu1 %v6405_v7, %s4441_s23  ;;  %v2661_v45 = vpop.permute.xlu0 %2660  ;;  %v2637_v55 = vmul.f32 %v2621_v38, %v6235_v25  ;;  %v2622_v41 = vsel %vm2077_vm1, %v6279_v31, %v6237_v62  ;;  %v2254_v38 = vsel %vm2077_vm1, %v6321_v19, %v6272_v35  ;;  %v7094_v35 = vld [vmem:[#allocation42_spill] sm:$0xff]  ;;  %v7095_v19 = vld [vmem:[#allocation53_spill] sm:$0xff] }
 0x2a1   : > { %2737 = vst.msk [vmem:[%s5655_s27 + $0xc] sm:$0xf] %vm2367_vm3, %v2721_v43  ;;  %v2706_v20 = vadd.f32 %v2661_v45, %v2594_v22  ;;  %v2754_v43 = vmul.f32 %v4065_v11, %v5958_v26  ;;  %v7090_v22 = vld [vmem:[#allocation46_spill] sm:$0xff]  ;;  %v7093_v11 = vld [vmem:[#allocation45_spill] sm:$0xff]  ;;  %v2638_v31 = vmul.f32 %v2622_v41, %v6270_v15  ;;  %v2228_v41 = vmul.f32 %v7095_v19, %v7094_v35 }
 0x2a2   : > { %v6466_v30 = vpop.permute.xlu2 %2840  ;;  %v1603_v4 = vpop.f32.mrf.mxu0  ;;  %v2229_v45 = vmul.f32 %v7091_v49, %v7090_v22  ;;  %v2270_v22 = vmul.f32 %v2254_v38, %v6317_v63 }
 0x2a3   : > { %v2722_v50 = vpack.c.bf16 %v2706_v20, %v2706_v20  ;;  %v2837_v33 = vpop.permute.xlu1 %2836  ;;  %v1604_v20 = vadd.f32 %v5805_v53, %v1603_v4 }
 0x2a4   : > { %v2882_v5 = vsel %vm2077_vm1, %v6396_v3, %v2837_v33 }
 0x2a5   : > { %2738 = vst.msk [vmem:[%s5655_s27 + $0x14] sm:$0xf] %vm2367_vm3, %v2722_v50  ;;  %v2898_v8 = vmul.f32 %v6480_v34, %v2882_v5  ;;  %v7092_v5 = vld [vmem:[#allocation40_spill] sm:$0xff] }
 0x2a6   : > { %2810 = vrot.lane.b32.xlu0 %v6471_v56, %s4441_s23 }
 0x2a7   : > { %v2914_v10 = vadd.f32 %v2898_v8, %v2754_v43  ;;  %2858 = vrot.lane.b32.xlu2 %v6471_v56, %s4442_s18  ;;  %v2227_v43 = vmul.f32 %v7093_v11, %v7092_v5 }
 0x2a8   : > { %2682 = vrot.lane.b32.xlu1 %v2637_v55, %s7002_s16  ;;  %v6489_v52 = vpop.permute.xlu0 %2838 }
 0x2a9   : > { %v2930_v58 = vpack.c.bf16 %v2914_v10, %v2914_v10  ;;  %v1652_v10 = vpop.f32.mrf.mxu1 }
 0x2aa   : > { %v2300_v50 = vpop.permute.xlu2 %2299  ;;  %v6506_v4 = vadd.f32 %v1652_v10, %v1604_v20 }
 0x2ab   : > { %2946 = vst.msk [vmem:[%s6447_s28 + $0x8] sm:$0xf] %vm2142_vm2, %v2930_v58  ;;  %v2341_v8 = vadd.f32 %v2300_v50, %v2229_v45  ;;  %v2296_v62 = vpop.permute.xlu1 %2295  ;;  %v4067_v45 = vld [vmem:[#allocation7] ss:$0 sm:$0xff] }
 0x2ac   : > { %v2339_v55 = vadd.f32 %v2296_v62, %v2227_v43  ;;  %v1602_v20 = vadd.f32 %v4067_v45, %v1601_v18  ;;  %v4070_v45 = vld [vmem:[%s5007_s11 + $0x20] sm:$0xff] }
 0x2ad   : > { %v2357_v53 = vpack.c.bf16 %v2341_v8, %v2341_v8 }
 0x2ae   : > { %v2355_v21 = vpack.c.bf16 %v2339_v55, %v2339_v55  ;;  %2684 = vrot.lane.b32.xlu0 %v2638_v31, %s7002_s16  ;;  %v6523_v62 = vadd.f32 %v1650_v60, %v1602_v20  ;;  %v6530_v55 = vld [vmem:[%s5604_s5 + $0x18] sm:$0xff]  ;;  %v2756_v20 = vmul.f32 %v4070_v45, %v6061_v6 }
 0x2af   : > { %2374 = vst.msk [vmem:[%s5655_s27 + $0x30] sm:$0xf] %vm2367_vm3, %v2357_v53  ;;  %2317 = vrot.lane.b32.xlu2 %v2270_v22, %s7002_s16  ;;  %v2978_v22 = vsel %vm2077_vm1, %v2837_v33, %v6396_v3 }
 0x2b0   : > { %2372 = vst.msk [vmem:[%s5655_s27 + $0x20] sm:$0xf] %vm2367_vm3, %v2355_v21  ;;  %2814 = vrot.lane.b32.xlu1 %v6506_v4, %s4441_s23  ;;  %v2298_v58 = vpop.permute.xlu0 %2297  ;;  %v4068_v21 = vld [vmem:[%s5007_s11 + $0x18] sm:$0xff] }
 0x2b1   : > { %v2340_v38 = vadd.f32 %v2298_v58, %v2228_v41  ;;  %v2755_v31 = vmul.f32 %v4068_v21, %v5980_v40  ;;  %v2598_v41 = vmul.f32 %v7091_v49, %v5477_v13  ;;  %v2623_v58 = vsel %vm2077_vm1, %v6343_v44, %v6375_v9 }
 0x2b2   : > { %v2795_v50 = vpop.permute.xlu2 %2794  ;;  %v2977_v21 = vsel %vm2077_vm1, %v6345_v1, %v6424_v39  ;;  %v2994_v44 = vmul.f32 %v6480_v34, %v2978_v22  ;;  %v7097_v1 = vld [vmem:[#allocation44_spill] sm:$0xff]  ;;  %v2976_v22 = vsel %vm2077_vm1, %v6364_v48, %v6403_v36 }
 0x2b3   : > { %v2356_v5 = vpack.c.bf16 %v2340_v38, %v2340_v38  ;;  %v6518_v43 = vpop.permute.xlu1 %2790  ;;  %v4071_v38 = vld [vmem:[%s5604_s5 + $0x20] sm:$0xff]  ;;  %v2993_v45 = vmul.f32 %v6440_v42, %v2977_v21  ;;  %v2597_v39 = vmul.f32 %v7095_v19, %v7097_v1 }
 0x2b4   : > { %v2883_v8 = vsel %vm2077_vm1, %v6518_v43, %v6489_v52 }
 0x2b5   : > { %2373 = vst.msk [vmem:[%s5655_s27 + $0x28] sm:$0xf] %vm2367_vm3, %v2356_v5  ;;  %v2899_v18 = vmul.f32 %v6530_v55, %v2883_v8  ;;  %v7096_v8 = vld [vmem:[#allocation41_spill] sm:$0xff] }
 0x2b6   : > { %2862 = vrot.lane.b32.xlu0 %v6506_v4, %s4442_s18  ;;  %v2596_v3 = vmul.f32 %v7093_v11, %v7096_v8 }
 0x2b7   : > { %v2915_v10 = vadd.f32 %v2899_v18, %v2755_v31  ;;  %2812 = vrot.lane.b32.xlu2 %v6523_v62, %s4441_s23 }
 0x2b8   : > { %2860 = vrot.lane.b32.xlu1 %v6523_v62, %s4442_s18  ;;  %v2793_v60 = vpop.permute.xlu0 %2792 }
 0x2b9   : > { %v2931_v53 = vpack.c.bf16 %v2915_v10, %v2915_v10  ;;  %v2884_v35 = vsel %vm2077_vm1, %v2793_v60, %v6466_v30  ;;  %v2639_v10 = vmul.f32 %v2623_v58, %v6317_v63 }
 0x2ba   : > { %v2900_v5 = vmul.f32 %v4071_v38, %v2884_v35  ;;  %v2669_v33 = vpop.permute.xlu2 %2668 }
 0x2bb   : > { %2947 = vst.msk [vmem:[%s6447_s28 + $0xc] sm:$0xf] %vm2142_vm2, %v2931_v53  ;;  %v2665_v13 = vpop.permute.xlu1 %2664  ;;  %v2710_v31 = vadd.f32 %v2669_v33, %v2598_v41  ;;  %v2980_v41 = vsel %vm2077_vm1, %v6466_v30, %v2793_v60  ;;  %v2992_v33 = vmul.f32 %v6415_v59, %v2976_v22 }
 0x2bc   : > { %v2916_v9 = vadd.f32 %v2900_v5, %v2756_v20  ;;  %v2708_v18 = vadd.f32 %v2665_v13, %v2596_v3  ;;  %v4073_v13 = vld [vmem:[%s5604_s5 + $0x28] sm:$0xff] }
 0x2bd   : > { %v2726_v35 = vpack.c.bf16 %v2710_v31, %v2710_v31  ;;  %v2996_v31 = vmul.f32 %v4071_v38, %v2980_v41  ;;  %v7099_v38 = vld [vmem:[#allocation48_spill] sm:$0xff] }
 0x2be   : > { %v2932_v8 = vpack.c.bf16 %v2916_v9, %v2916_v9  ;;  %v2724_v11 = vpack.c.bf16 %v2708_v18, %v2708_v18  ;;  %3028 = vrot.lane.b32.xlu0 %v2994_v44, %s7002_s16  ;;  %v2979_v9 = vsel %vm2077_vm1, %v6489_v52, %v6518_v43  ;;  %v7100_v52 = vld [vmem:[#allocation56_spill] sm:$0xff] }
 0x2bf   : > { %2742 = vst.msk [vmem:[%s5655_s27 + $0x34] sm:$0xf] %vm2367_vm3, %v2726_v35  ;;  %2686 = vrot.lane.b32.xlu2 %v2639_v10, %s7002_s16  ;;  %v2230_v10 = vmul.f32 %v7099_v38, %v5493_v14  ;;  %v2995_v1 = vmul.f32 %v6530_v55, %v2979_v9  ;;  %v2231_v43 = vmul.f32 %v7100_v52, %v5515_v54 }
 0x2c0   : > { %2948 = vst.msk [vmem:[%s6447_s28 + $0x10] sm:$0xf] %vm2142_vm2, %v2932_v8  ;;  %3026 = vrot.lane.b32.xlu1 %v2993_v45, %s7002_s16  ;;  %v2667_v34 = vpop.permute.xlu0 %2666 }
 0x2c1   : > { %2740 = vst.msk [vmem:[%s5655_s27 + $0x24] sm:$0xf] %vm2367_vm3, %v2724_v11  ;;  %v2709_v42 = vadd.f32 %v2667_v34, %v2597_v39  ;;  %v4072_v11 = vld [vmem:[%s5007_s11 + $0x28] sm:$0xff] }
 0x2c2   : > { %v2847_v53 = vpop.permute.xlu2 %2846  ;;  %v2757_v21 = vmul.f32 %v4072_v11, %v6105_v32 }
 0x2c3   : > { %v2725_v58 = vpack.c.bf16 %v2709_v42, %v2709_v42  ;;  %v2843_v20 = vpop.permute.xlu1 %2842 }
 0x2c4   : > { %v2885_v5 = vsel %vm2077_vm1, %v2795_v50, %v2843_v20  ;;  %v2981_v3 = vsel %vm2077_vm1, %v2843_v20, %v2795_v50  ;;  %v7098_v50 = vld [vmem:[#allocation58_spill] sm:$0xff]  ;;  %v4074_v20 = vld [vmem:[%s5007_s11 + $0x30] sm:$0xff]  ;;  %s3143_s11 = sadd.s32 %s3802_s15, %s3728_s21 }
 0x2c5   : > { %2741 = vst.msk [vmem:[%s5655_s27 + $0x2c] sm:$0xf] %vm2367_vm3, %v2725_v58  ;;  %v2901_v48 = vmul.f32 %v4073_v13, %v2885_v5  ;;  %v2997_v36 = vmul.f32 %v4073_v13, %v2981_v3  ;;  %v2232_v60 = vmul.f32 %v7098_v50, %v5534_v37  ;;  %v2758_v5 = vmul.f32 %v4074_v20, %v6127_v12  ;;  %v4075_v3 = vld [vmem:[%s5604_s5 + $0x30] sm:$0xff]  ;;  %s3729_s23 = sshll.u32 %s3143_s11, 2  ;;  %s4279_s11 = scalar_lea.hbm %s6927_s10, 512 }
 0x2c6   : > { %s3145_s19 = scalar_lea.hbm %s6927_s10, %s3729_s23 }
 0x2c7   : > { %v2917_v44 = vadd.f32 %v2901_v48, %v2757_v21  ;;  %3034 = vrot.lane.b32.xlu0 %v2997_v36, %s7002_s16  ;;  %3024 = vrot.lane.b32.xlu2 %v2992_v33, %s7002_s16 }
 0x2c8   : > { %3032 = vrot.lane.b32.xlu1 %v2996_v31, %s7002_s16  ;;  %v2845_v30 = vpop.permute.xlu0 %2844  ;;  %v7101_v31 = vld [vmem:[#allocation60_spill] sm:$0xff] }
 0x2c9   : > { %v2933_v59 = vpack.c.bf16 %v2917_v44, %v2917_v44  ;;  %v2601_v44 = vmul.f32 %v7098_v50, %v7101_v31 }
 0x2ca   : > { %v2306_v18 = vpop.permute.xlu2 %2305 }
 0x2cb   : > { %2949 = vst.msk [vmem:[%s6447_s28 + $0x14] sm:$0xf] %vm2142_vm2, %v2933_v59  ;;  %v2344_v35 = vadd.f32 %v2306_v18, %v2232_v60  ;;  %v2302_v45 = vpop.permute.xlu1 %2301  ;;  %v4076_v60 = vld [vmem:[%s5604_s5 + $0x38] sm:$0xff] }
 0x2cc   : > { %v2342_v8 = vadd.f32 %v2302_v45, %v2230_v10  ;;  %v7103_v10 = vld [vmem:[#allocation51_spill] sm:$0xff] }
 0x2cd   : > { %v2360_v39 = vpack.c.bf16 %v2344_v35, %v2344_v35  ;;  %v2599_v35 = vmul.f32 %v7099_v38, %v7103_v10 }
 0x2ce   : > { %v2358_v37 = vpack.c.bf16 %v2342_v8, %v2342_v8 }
 0x2cf   : > { %2377 = vst.msk [vmem:[%s5655_s27 + $0x48] sm:$0xf] %vm2367_vm3, %v2360_v39  ;;  %3030 = vrot.lane.b32.xlu2 %v2995_v1, %s7002_s16 }
 0x2d0   : > { %2375 = vst.msk [vmem:[%s5655_s27 + $0x38] sm:$0xf] %vm2367_vm3, %v2358_v37  ;;  %v2304_v14 = vpop.permute.xlu0 %2303 }
 0x2d1   : > { %v2343_v34 = vadd.f32 %v2304_v14, %v2231_v43 }
 0x2d2   : > { %v2801_v42 = vpop.permute.xlu2 %2800 }
 0x2d3   : > { %v2359_v22 = vpack.c.bf16 %v2343_v34, %v2343_v34  ;;  %v2797_v41 = vpop.permute.xlu1 %2796  ;;  %v7104_v34 = vld [vmem:[#allocation55_spill] sm:$0xff] }
 0x2d4   : > { %v2886_v58 = vsel %vm2077_vm1, %v2797_v41, %v2845_v30  ;;  %v2982_v55 = vsel %vm2077_vm1, %v2845_v30, %v2797_v41  ;;  %v7102_v30 = vld [vmem:[#allocation75_spill] sm:$0xff] }
 0x2d5   : > { %2376 = vst.msk [vmem:[%s5655_s27 + $0x40] sm:$0xf] %vm2367_vm3, %v2359_v22  ;;  %v2902_v54 = vmul.f32 %v4075_v3, %v2886_v58  ;;  %v2998_v33 = vmul.f32 %v4075_v3, %v2982_v55  ;;  %v2759_v59 = vmul.f32 %v7102_v30, %v6201_v47  ;;  %v2600_v22 = vmul.f32 %v7100_v52, %v7104_v34  ;;  %v7106_v30 = vld [vmem:[#allocation68_spill] sm:$0xff] }
 0x2d7   : > { %v2918_v11 = vadd.f32 %v2902_v54, %v2758_v5  ;;  %3036 = vrot.lane.b32.xlu2 %v2998_v33, %s7002_s16  ;;  %v7105_v33 = vld [vmem:[#allocation76_spill] sm:$0xff] }
 0x2d8   : > { %v2799_v21 = vpop.permute.xlu0 %2798 }
 0x2d9   : > { %v2934_v13 = vpack.c.bf16 %v2918_v11, %v2918_v11  ;;  %v2887_v48 = vsel %vm2077_vm1, %v2799_v21, %v2847_v53  ;;  %v2983_v36 = vsel %vm2077_vm1, %v2847_v53, %v2799_v21  ;;  %v2760_v11 = vmul.f32 %v7105_v33, %v6254_v46  ;;  %v4077_v21 = vld [vmem:[%s5604_s5 + $0x40] sm:$0xff]  ;;  %v4078_v33 = vld [vmem:[%s5604_s5 + $0x48] sm:$0xff]  ;;  %s3148_s5 = sshll.u32 %s3145_s19, 4  ;;  %s3149_s5 = int_to_ptr.hbm [resolvable:$true] %s3148_s5 }
 0x2da   : > { %v2903_v9 = vmul.f32 %v4076_v60, %v2887_v48  ;;  %v2999_v18 = vmul.f32 %v4076_v60, %v2983_v36  ;;  %v2675_v45 = vpop.permute.xlu2 %2674 }
 0x2db   : > { %2950 = vst.msk [vmem:[%s6447_s28 + $0x18] sm:$0xf] %vm2142_vm2, %v2934_v13  ;;  %v2671_v8 = vpop.permute.xlu1 %2670  ;;  %v2713_v53 = vadd.f32 %v2675_v45, %v2601_v44 }
 0x2dc   : > { %v2919_v1 = vadd.f32 %v2903_v9, %v2759_v59  ;;  %v2711_v39 = vadd.f32 %v2671_v8, %v2599_v35  ;;  %3038 = vrot.lane.b32.xlu1 %v2999_v18, %s7002_s16  ;;  %v7107_v59 = vld [vmem:[#allocation61_spill] sm:$0xff]  ;;  %v7109_v18 = vld [vmem:[#allocation52_spill] sm:$0xff] }
 0x2dd   : > { %v2729_v37 = vpack.c.bf16 %v2713_v53, %v2713_v53  ;;  %v2235_v60 = vmul.f32 %v7107_v59, %v7106_v30 }
 0x2de   : > { %v2935_v43 = vpack.c.bf16 %v2919_v1, %v2919_v1  ;;  %v2727_v14 = vpack.c.bf16 %v2711_v39, %v2711_v39  ;;  %v7110_v39 = vld [vmem:[#allocation66_spill] sm:$0xff] }
 0x2df   : > { %2745 = vst.msk [vmem:[%s5655_s27 + $0x4c] sm:$0xf] %vm2367_vm3, %v2729_v37  ;;  %v7111_v37 = vld [vmem:[#allocation59_spill] sm:$0xff] }
 0x2e0   : > { %2951 = vst.msk [vmem:[%s6447_s28 + $0x1c] sm:$0xf] %vm2142_vm2, %v2935_v43  ;;  %v2673_v41 = vpop.permute.xlu0 %2672  ;;  %v2234_v43 = vmul.f32 %v7111_v37, %v7110_v39 }
 0x2e1   : > { %2743 = vst.msk [vmem:[%s5655_s27 + $0x3c] sm:$0xf] %vm2367_vm3, %v2727_v14  ;;  %v2712_v58 = vadd.f32 %v2673_v41, %v2600_v22 }
 0x2e2   : > { %v2853_v55 = vpop.permute.xlu2 %2852 }
 0x2e3   : > { %v2728_v20 = vpack.c.bf16 %v2712_v58, %v2712_v58  ;;  %v2849_v5 = vpop.permute.xlu1 %2848 }
 0x2e4   : > { %v2888_v3 = vsel %vm2077_vm1, %v2801_v42, %v2849_v5  ;;  %v2984_v54 = vsel %vm2077_vm1, %v2849_v5, %v2801_v42  ;;  %v7108_v42 = vld [vmem:[#allocation63_spill] sm:$0xff] }
 0x2e5   : > { %2744 = vst.msk [vmem:[%s5655_s27 + $0x44] sm:$0xf] %vm2367_vm3, %v2728_v20  ;;  %v2904_v13 = vmul.f32 %v4077_v21, %v2888_v3  ;;  %v3000_v48 = vmul.f32 %v4077_v21, %v2984_v54  ;;  %v2233_v10 = vmul.f32 %v7109_v18, %v7108_v42  ;;  %v7112_v3 = vld [vmem:[#allocation77_spill] sm:$0xff] }
 0x2e6   : > { %v2761_v54 = vmul.f32 %v7112_v3, %v6281_v28 }
 0x2e7   : > { %v2920_v36 = vadd.f32 %v2904_v13, %v2760_v11  ;;  %3040 = vrot.lane.b32.xlu0 %v3000_v48, %s7002_s16 }
 0x2e8   : > { %v2851_v31 = vpop.permute.xlu0 %2850 }
 0x2e9   : > { %v2936_v44 = vpack.c.bf16 %v2920_v36, %v2920_v36 }
 0x2ea   : > { %v2312_v9 = vpop.permute.xlu2 %2311 }
 0x2eb   : > { %2952 = vst.msk [vmem:[%s6447_s28 + $0x20] sm:$0xf] %vm2142_vm2, %v2936_v44  ;;  %v2347_v35 = vadd.f32 %v2312_v9, %v2235_v60  ;;  %v2308_v45 = vpop.permute.xlu1 %2307  ;;  %v7113_v60 = vld [vmem:[#allocation78_spill] sm:$0xff] }
 0x2ec   : > { %v2345_v8 = vadd.f32 %v2308_v45, %v2233_v10  ;;  %v2762_v9 = vmul.f32 %v7113_v60, %v6354_v16 }
 0x2ed   : > { %v2363_v53 = vpack.c.bf16 %v2347_v35, %v2347_v35  ;;  %v7114_v35 = vld [vmem:[#allocation64_spill] sm:$0xff] }
 0x2ee   : > { %v2361_v1 = vpack.c.bf16 %v2345_v8, %v2345_v8  ;;  %v2602_v45 = vmul.f32 %v7109_v18, %v7114_v35 }
 0x2ef   : > { %2380 = vst.msk [vmem:[%s5655_s27 + $0x60] sm:$0xf] %vm2367_vm3, %v2363_v53 }
 0x2f0   : > { %2378 = vst.msk [vmem:[%s5655_s27 + $0x50] sm:$0xf] %vm2367_vm3, %v2361_v1  ;;  %v2310_v14 = vpop.permute.xlu0 %2309 }
 0x2f1   : > { %v2346_v34 = vadd.f32 %v2310_v14, %v2234_v43 }
 0x2f2   : > { %v2807_v22 = vpop.permute.xlu2 %2806 }
 0x2f3   : > { %v2362_v41 = vpack.c.bf16 %v2346_v34, %v2346_v34  ;;  %v2803_v58 = vpop.permute.xlu1 %2802 }
 0x2f4   : > { %v2889_v20 = vsel %vm2077_vm1, %v2803_v58, %v2851_v31  ;;  %v2985_v5 = vsel %vm2077_vm1, %v2851_v31, %v2803_v58  ;;  %v2604_v31 = vmul.f32 %v7107_v59, %v7074_v2 }
 0x2f5   : > { %2379 = vst.msk [vmem:[%s5655_s27 + $0x58] sm:$0xf] %vm2367_vm3, %v2362_v41  ;;  %v2905_v11 = vmul.f32 %v4078_v33, %v2889_v20  ;;  %v3001_v21 = vmul.f32 %v4078_v33, %v2985_v5 }
 0x2f7   : > { %v2921_v13 = vadd.f32 %v2905_v11, %v2761_v54  ;;  %3042 = vrot.lane.b32.xlu2 %v3001_v21, %s7002_s16  ;;  %v7116_v11 = vld [vmem:[#allocation79_spill] sm:$0xff] }
 0x2f8   : > { %v2805_v48 = vpop.permute.xlu0 %2804  ;;  %v2763_v21 = vmul.f32 %v7116_v11, %v6385_v17  ;;  %v7120_v11 = vld [vmem:[#allocation32_spill] sm:$0xff] }
 0x2f9   : > { %v2937_v36 = vpack.c.bf16 %v2921_v13, %v2921_v13  ;;  %v2890_v44 = vsel %vm2077_vm1, %v2805_v48, %v2853_v55  ;;  %v2986_v30 = vsel %vm2077_vm1, %v2853_v55, %v2805_v48 }
 0x2fa   : > { %v2906_v42 = vmul.f32 %v2890_v44, %v6086_v24  ;;  %v3002_v10 = vmul.f32 %v2986_v30, %v6086_v24  ;;  %v2681_v8 = vpop.permute.xlu2 %2680  ;;  %v7115_v24 = vld [vmem:[#allocation67_spill] sm:$0xff] }
 0x2fb   : > { %2953 = vst.msk [vmem:[%s6447_s28 + $0x24] sm:$0xf] %vm2142_vm2, %v2937_v36  ;;  %v2677_v55 = vpop.permute.xlu1 %2676  ;;  %v2716_v53 = vadd.f32 %v2681_v8, %v2604_v31  ;;  %v2603_v34 = vmul.f32 %v7111_v37, %v7115_v24  ;;  %v7117_v31 = vld [vmem:[#allocation65_spill] sm:$0xff]  ;;  %v2764_v24 = vmul.f32 %v6183_v0, %v6405_v7  ;;  %v2765_v0 = vmul.f32 %v7120_v11, %v6471_v56 }
 0x2fc   : > { %v2922_v1 = vadd.f32 %v2906_v42, %v2762_v9  ;;  %v2714_v39 = vadd.f32 %v2677_v55, %v2602_v45  ;;  %3044 = vrot.lane.b32.xlu1 %v3002_v10, %s7002_s16  ;;  %v2238_v60 = vmul.f32 %v7117_v31, %v5788_v23  ;;  %v7118_v9 = vld [vmem:[#allocation57_spill] sm:$0xff]  ;;  %v7119_v55 = vld [vmem:[#allocation62_spill] sm:$0xff] }
 0x2fd   : > { %v2732_v2 = vpack.c.bf16 %v2716_v53, %v2716_v53  ;;  %v2236_v42 = vmul.f32 %v7118_v9, %v5705_v57  ;;  %v2237_v53 = vmul.f32 %v7119_v55, %v7079_v61 }
 0x2fe   : > { %v2938_v43 = vpack.c.bf16 %v2922_v1, %v2922_v1  ;;  %v2730_v14 = vpack.c.bf16 %v2714_v39, %v2714_v39 }
 0x2ff   : > { %2748 = vst.msk [vmem:[%s5655_s27 + $0x64] sm:$0xf] %vm2367_vm3, %v2732_v2 }
 0x300   : > { %2954 = vst.msk [vmem:[%s6447_s28 + $0x28] sm:$0xf] %vm2142_vm2, %v2938_v43  ;;  %v2679_v41 = vpop.permute.xlu0 %2678 }
 0x301   : > { %2746 = vst.msk [vmem:[%s5655_s27 + $0x54] sm:$0xf] %vm2367_vm3, %v2730_v14  ;;  %v2715_v58 = vadd.f32 %v2679_v41, %v2603_v34 }
 0x302   : > { %v2859_v20 = vpop.permute.xlu2 %2858 }
 0x303   : > { %v2731_v5 = vpack.c.bf16 %v2715_v58, %v2715_v58  ;;  %v2855_v3 = vpop.permute.xlu1 %2854 }
 0x304   : > { %v2891_v54 = vsel %vm2077_vm1, %v2807_v22, %v2855_v3  ;;  %v2987_v33 = vsel %vm2077_vm1, %v2855_v3, %v2807_v22 }
 0x305   : > { %2747 = vst.msk [vmem:[%s5655_s27 + $0x5c] sm:$0xf] %vm2367_vm3, %v2731_v5  ;;  %v2907_v13 = vmul.f32 %v2891_v54, %v6123_v27  ;;  %v3003_v48 = vmul.f32 %v2987_v33, %v6123_v27  ;;  %v2607_v33 = vmul.f32 %v7117_v31, %v5815_v29 }
 0x307   : > { %v2923_v36 = vadd.f32 %v2907_v13, %v2763_v21  ;;  %3046 = vrot.lane.b32.xlu0 %v3003_v48, %s7002_s16  ;;  %v7121_v13 = vld [vmem:[#allocation70_spill] sm:$0xff] }
 0x308   : > { %v2857_v44 = vpop.permute.xlu0 %2856  ;;  %v2605_v48 = vmul.f32 %v7118_v9, %v7121_v13 }
 0x309   : > { %v2939_v30 = vpack.c.bf16 %v2923_v36, %v2923_v36 }
 0x30a   : > { %v2318_v22 = vpop.permute.xlu2 %2317 }
 0x30b   : > { %2955 = vst.msk [vmem:[%s6447_s28 + $0x2c] sm:$0xf] %vm2142_vm2, %v2939_v30  ;;  %v2350_v10 = vadd.f32 %v2318_v22, %v2238_v60  ;;  %v2314_v35 = vpop.permute.xlu1 %2313 }
 0x30c   : > { %v2348_v45 = vadd.f32 %v2314_v35, %v2236_v42 }
 0x30d   : > { %v2366_v27 = vpack.c.bf16 %v2350_v10, %v2350_v10 }
 0x30e   : > { %v2364_v8 = vpack.c.bf16 %v2348_v45, %v2348_v45 }
 0x30f   : > { %2383 = vst.msk [vmem:[%s5655_s27 + $0x78] sm:$0xf] %vm2367_vm3, %v2366_v27  ;;  %v7123_v27 = vld [vmem:[#allocation73_spill] sm:$0xff] }
 0x310   : > { %2381 = vst.msk [vmem:[%s5655_s27 + $0x68] sm:$0xf] %vm2367_vm3, %v2364_v8  ;;  %v2316_v23 = vpop.permute.xlu0 %2315  ;;  %v7124_v8 = vld [vmem:[#allocation47_spill] sm:$0xff] }
 0x311   : > { %v2349_v1 = vadd.f32 %v2316_v23, %v2237_v53  ;;  %v2960_v53 = vmul.f32 %v7124_v8, %v7123_v27 }
 0x312   : > { %v6703_v39 = vpop.permute.xlu2 %2812 }
 0x313   : > { %v2365_v57 = vpack.c.bf16 %v2349_v1, %v2349_v1  ;;  %v2809_v2 = vpop.permute.xlu1 %2808 }
 0x314   : > { %v2892_v43 = vsel %vm2077_vm1, %v2809_v2, %v2857_v44  ;;  %v2988_v14 = vsel %vm2077_vm1, %v2857_v44, %v2809_v2 }
 0x315   : > { %2382 = vst.msk [vmem:[%s5655_s27 + $0x70] sm:$0xf] %vm2367_vm3, %v2365_v57  ;;  %v2908_v61 = vmul.f32 %v2892_v43, %v6169_v51  ;;  %v3004_v34 = vmul.f32 %v2988_v14, %v6169_v51 }
 0x317   : > { %v2924_v41 = vadd.f32 %v2908_v61, %v2764_v24  ;;  %3048 = vrot.lane.b32.xlu2 %v3004_v34, %s7002_s16  ;;  %v7125_v34 = vld [vmem:[#allocation50_spill] sm:$0xff] }
 0x318   : > { %v2811_v58 = vpop.permute.xlu0 %2810 }
 0x319   : > { %v2940_v5 = vpack.c.bf16 %v2924_v41, %v2924_v41  ;;  %v2893_v3 = vsel %vm2077_vm1, %v2811_v58, %v2859_v20  ;;  %v2989_v54 = vsel %vm2077_vm1, %v2859_v20, %v2811_v58  ;;  %v2963_v41 = vmul.f32 %v7125_v34, %v5980_v40  ;;  %v7126_v58 = vld [vmem:[#allocation33_spill] sm:$0xff] }
 0x31a   : > { %v2909_v21 = vmul.f32 %v2893_v3, %v6235_v25  ;;  %v3005_v51 = vmul.f32 %v2989_v54, %v6235_v25  ;;  %v2687_v36 = vpop.permute.xlu2 %2686  ;;  %v7122_v25 = vld [vmem:[#allocation72_spill] sm:$0xff] }
 0x31b   : > { %2956 = vst.msk [vmem:[%s6447_s28 + $0x30] sm:$0xf] %vm2142_vm2, %v2940_v5  ;;  %v2683_v20 = vpop.permute.xlu1 %2682  ;;  %v2719_v44 = vadd.f32 %v2687_v36, %v2607_v33  ;;  %v2606_v10 = vmul.f32 %v7119_v55, %v7122_v25  ;;  %v2767_v5 = vmul.f32 %v7126_v58, %v6506_v4 }
 0x31c   : > { %v2925_v30 = vadd.f32 %v2909_v21, %v2765_v0  ;;  %v2717_v60 = vadd.f32 %v2683_v20, %v2605_v48  ;;  %3050 = vrot.lane.b32.xlu1 %v3005_v51, %s7002_s16  ;;  %v7127_v51 = vld [vmem:[#allocation69_spill] sm:$0xff] }
 0x31d   : > { %v2735_v29 = vpack.c.bf16 %v2719_v44, %v2719_v44  ;;  %v2766_v13 = vmul.f32 %v7127_v51, %v6523_v62 }
 0x31e   : > { %v2941_v22 = vpack.c.bf16 %v2925_v30, %v2925_v30  ;;  %v2733_v42 = vpack.c.bf16 %v2717_v60, %v2717_v60 }
 0x31f   : > { %2751 = vst.msk [vmem:[%s5655_s27 + $0x7c] sm:$0xf] %vm2367_vm3, %v2735_v29 }
 0x320   : > { %2957 = vst.msk [vmem:[%s6447_s28 + $0x34] sm:$0xf] %vm2142_vm2, %v2941_v22  ;;  %v2685_v35 = vpop.permute.xlu0 %2684 }
 0x321   : > { %2749 = vst.msk [vmem:[%s5655_s27 + $0x6c] sm:$0xf] %vm2367_vm3, %v2733_v42  ;;  %v2718_v45 = vadd.f32 %v2685_v35, %v2606_v10 }
 0x322   : > { %v3025_v23 = vpop.permute.xlu2 %3024 }
 0x323   : > { %v2734_v1 = vpack.c.bf16 %v2718_v45, %v2718_v45  ;;  %v2815_v57 = vpop.permute.xlu1 %2814  ;;  %v3072_v2 = vadd.f32 %v3025_v23, %v2960_v53 }
 0x325   : > { %2750 = vst.msk [vmem:[%s5655_s27 + $0x74] sm:$0xf] %vm2367_vm3, %v2734_v1  ;;  %v3088_v43 = vpack.c.bf16 %v3072_v2, %v3072_v2  ;;  %s4273_s27 = sshra.s32 %s3149_s5, 4  ;;  %s4274_s27 = int_to_ptr.hbm [resolvable:$true] %s4273_s27 }
 0x326   : > { %s4275_s14 = scalar_lea.hbm %s4274_s27, 128  ;;  %p4280_p7 = scmp.lt.s32.totalorder %s4274_s27, %s6927_s10 }
 0x327   : > { %3104 = vst.msk [vmem:[%s6447_s28] sm:$0xf] %vm2367_vm3, %v3088_v43  ;;  %p4276_p4 = scmp.ne.s32.totalorder %s4274_s27, %s4275_s14  ;;  %p4281_p9 = scmp.lt.s32.totalorder %s4279_s11, %s4275_s14 }
 0x328   : > { %v2863_v14 = vpop.permute.xlu0 %2862 }
 0x329   : > { %v2895_v24 = vsel %vm2077_vm1, %v2815_v57, %v2863_v14  ;;  %v2991_v61 = vsel %vm2077_vm1, %v2863_v14, %v2815_v57  ;;  %p4277_p5 = pnand %p4276_p4, %p4566_p3  ;;  %p4282_p10 = por %p4281_p9, %p4280_p7 }
 0x32a   : > { %v2911_v3 = vmul.f32 %v2895_v24, %v6317_v63  ;;  %v3007_v54 = vmul.f32 %v2991_v61, %v6317_v63  ;;  %v3031_v33 = vpop.permute.xlu2 %3030 }
 0x32b   : > { %v2861_v11 = vpop.permute.xlu1 %2860  ;;  %v3075_v0 = vadd.f32 %v3031_v33, %v2963_v41  ;;  %p4278_p6 = pneg %p4277_p5 }
 0x32c   : > { %v2927_v40 = vadd.f32 %v2911_v3, %v2767_v5  ;;  %v2894_v21 = vsel %vm2077_vm1, %v6703_v39, %v2861_v11  ;;  %v2990_v63 = vsel %vm2077_vm1, %v2861_v11, %v6703_v39  ;;  %3054 = vrot.lane.b32.xlu2 %v3007_v54, %s7002_s16 }
 0x32d   : > { %v2910_v48 = vmul.f32 %v2894_v21, %v6270_v15  ;;  %v3006_v36 = vmul.f32 %v2990_v63, %v6270_v15  ;;  %v3091_v20 = vpack.c.bf16 %v3075_v0, %v3075_v0  ;;  %p4283_p11 = pnand %p4282_p10, %p4278_p6 }
 0x32e   : > { %v2943_v44 = vpack.c.bf16 %v2927_v40, %v2927_v40 }
 0x32f   : > { %4286 = shalt.err (!%p4283_p11)
}
 0x330   : > { %s4443_s20 = smov 128   ;;  %s4444_s18 = smov 8   ;;  %v2926_v15 = vadd.f32 %v2910_v48, %v2766_v13  ;;  %3107 = vst.msk [vmem:[%s6447_s28 + $0xc] sm:$0xf] %vm2367_vm3, %v3091_v20  ;;  %3052 = vrot.lane.b32.xlu0 %v3006_v36, %s7002_s16  ;;  %v7128_v39 = vld [vmem:[#allocation49_spill] sm:$0xff]  ;;  %v3029_v60 = vpop.permute.xlu0 %3028  ;;  %v2966_v42 = vmul.f32 %v7091_v49, %v6127_v12  ;;  %v7129_v25 = vld [vmem:[#allocation74_spill] sm:$0xff]  ;;  %v2965_v12 = vmul.f32 %v7095_v19, %v6105_v32 }
 0x331   : > { %3874 = dma.vmem_to_hbm [thread:$0]  (%p4566_p3), %s6755_s26, 2048, %s3149_s5, %s3121_s30, %s4443_s20, %s4443_s20, %s4444_s18   ;;  %v2962_v30 = vmul.f32 %v7128_v39, %v5958_v26  ;;  %v7130_v10 = vld [vmem:[#allocation43_spill] sm:$0xff]  ;;  %v7131_v2 = vld [vmem:[#allocation45_spill] sm:$0xff]  ;;  %v2967_v41 = vmul.f32 %v7099_v38, %v6201_v47  ;;  %v2969_v58 = vmul.f32 %v7098_v50, %v6281_v28  ;;  %v2968_v33 = vmul.f32 %v7100_v52, %v6254_v46 }
 0x332   : > { %2959 = vst.msk [vmem:[%s6447_s28 + $0x3c] sm:$0xf] %vm2142_vm2, %v2943_v44  ;;  %v2942_v29 = vpack.c.bf16 %v2926_v15, %v2926_v15  ;;  %v2961_v35 = vmul.f32 %v7130_v10, %v7129_v25  ;;  %v3037_v45 = vpop.permute.xlu2 %3036  ;;  %v2964_v43 = vmul.f32 %v7131_v2, %v6061_v6  ;;  %v2970_v28 = vmul.f32 %v7109_v18, %v6354_v16  ;;  %s3731_s19 = sshll.u32 %s4417_s25, 5  ;;  %s7132_s14 = sld [smem:[#allocation82_spill]] }
 0x333   : > { %v3074_v22 = vadd.f32 %v3029_v60, %v2962_v30  ;;  %v3027_v8 = vpop.permute.xlu1 %3026  ;;  %v3078_v26 = vadd.f32 %v3037_v45, %v2966_v42  ;;  %v2972_v40 = vmul.f32 %v7107_v59, %v6405_v7  ;;  %v2971_v52 = vmul.f32 %v7111_v37, %v6385_v17  ;;  %s3162_s26 = sadd.s32 %s3731_s19, %s4649_s13  ;;  %s7133_s23 = sld [smem:[#allocation83_spill]] }
 0x334   : > { %2958 = vst.msk [vmem:[%s6447_s28 + $0x38] sm:$0xf] %vm2142_vm2, %v2942_v29  ;;  %v3073_v53 = vadd.f32 %v3027_v8, %v2961_v35  ;;  %v2975_v7 = vmul.f32 %v7117_v31, %v6506_v4  ;;  %v2973_v17 = vmul.f32 %v7118_v9, %v6471_v56  ;;  %s3732_s5 = sshll.u32 %s3162_s26, 2  ;;  %v2974_v56 = vmul.f32 %v7119_v55, %v6523_v62  ;;  %s3125_s18 = sand.u32 1, %s4552_s29  }
 0x335   : > { %v3090_v27 = vpack.c.bf16 %v3074_v22, %v3074_v22  ;;  %v3094_v23 = vpack.c.bf16 %v3078_v26, %v3078_v26  ;;  %s3165_s16 = sshll.u32 %s6447_s28, 4  ;;  %s3184_s25 = sshll.u32 %s5730_s12, 4  ;;  %s3166_s16 = int_to_ptr.vmem [resolvable:$true] %s3165_s16  ;;  %s6850_s25 = int_to_ptr.vmem [resolvable:$true] %s3184_s25 }
 0x336   : > { %v3089_v1 = vpack.c.bf16 %v3073_v53, %v3073_v53  ;;  %s6856_s19 = scalar_lea.sflag [#allocation15], %s3125_s18 }
 0x337   : > { %3106 = vst.msk [vmem:[%s6447_s28 + $0x8] sm:$0xf] %vm2367_vm3, %v3090_v27 }
 0x338   : > { %3110 = vst.msk [vmem:[%s6447_s28 + $0x18] sm:$0xf] %vm2367_vm3, %v3094_v23  ;;  %s3164_s15 = scalar_lea.hbm %s7132_s14, %s3732_s5  ;;  %s4307_s30 = scalar_lea.hbm %s7132_s14, 256 }
 0x339   : > { %3105 = vst.msk [vmem:[%s6447_s28 + $0x4] sm:$0xf] %vm2367_vm3, %v3089_v1  ;;  %v3035_v49 = vpop.permute.xlu0 %3034  ;;  %s7134_s20 = smov %s7133_s23  ;;  %s3183_s24 = scalar_lea.hbm %s7133_s23, %s3732_s5 }
 0x33a   : > { %v3077_v57 = vadd.f32 %v3035_v49, %v2965_v12  ;;  %s3167_s0 = sshll.u32 %s3164_s15, 4  ;;  %s3186_s13 = sshll.u32 %s3183_s24, 4  ;;  %s3168_s0 = int_to_ptr.hbm [resolvable:$true] %s3167_s0  ;;  %s6852_s13 = int_to_ptr.hbm [resolvable:$true] %s3186_s13 }
 0x33b   : > { %v3033_v14 = vpop.permute.xlu1 %3032  ;;  %s4301_s26 = sshra.s32 %s3168_s0, 4  ;;  %s4302_s26 = int_to_ptr.hbm [resolvable:$true] %s4301_s26 }
 0x33c   : > { %v3093_v24 = vpack.c.bf16 %v3077_v57, %v3077_v57  ;;  %v3076_v61 = vadd.f32 %v3033_v14, %v2964_v43  ;;  %s4303_s29 = scalar_lea.hbm %s4302_s26, 64  ;;  %p4308_p1 = scmp.lt.s32.totalorder %s4302_s26, %s7132_s14 }
 0x33d   : > { %p4304_p12 = scmp.ne.s32.totalorder %s4302_s26, %s4303_s29  ;;  %p4309_p2 = scmp.lt.s32.totalorder %s4307_s30, %s4303_s29 }
 0x33e   : > { %3109 = vst.msk [vmem:[%s6447_s28 + $0x14] sm:$0xf] %vm2367_vm3, %v3093_v24  ;;  %v3092_v34 = vpack.c.bf16 %v3076_v61, %v3076_v61 }
 0x33f   : > { %p4305_p13 = pnand %p4304_p12, %p4566_p3  ;;  %p4310_p4 = por %p4309_p2, %p4308_p1 }
 0x340   : > { %3108 = vst.msk [vmem:[%s6447_s28 + $0x10] sm:$0xf] %vm2367_vm3, %v3092_v34 }
 0x341   : > { %p4306_p0 = pneg %p4305_p13 }
 0x343   : > { %p4311_p5 = pnand %p4310_p4, %p4306_p0 }
 0x34e   : > { %v3039_v32 = vpop.permute.xlu1 %3038 }
 0x34f   : > { %v3079_v19 = vadd.f32 %v3039_v32, %v2967_v41 }
 0x351   : > { %v3095_v5 = vpack.c.bf16 %v3079_v19, %v3079_v19  ;;  %v3043_v6 = vpop.permute.xlu2 %3042 }
 0x352   : > { %v3081_v3 = vadd.f32 %v3043_v6, %v2969_v58 }
 0x353   : > { %3111 = vst.msk [vmem:[%s6447_s28 + $0x1c] sm:$0xf] %vm2367_vm3, %v3095_v5 }
 0x354   : > { %v3097_v54 = vpack.c.bf16 %v3081_v3, %v3081_v3 }
 0x356   : > { %3113 = vst.msk [vmem:[%s6447_s28 + $0x24] sm:$0xf] %vm2367_vm3, %v3097_v54 }
 0x359   : > { %v3041_v11 = vpop.permute.xlu0 %3040 }
 0x35a   : > { %v3080_v47 = vadd.f32 %v3041_v11, %v2968_v33 }
 0x35c   : > { %v3096_v38 = vpack.c.bf16 %v3080_v47, %v3080_v47 }
 0x35e   : > { %3112 = vst.msk [vmem:[%s6447_s28 + $0x20] sm:$0xf] %vm2367_vm3, %v3096_v38 }
 0x36e   : > { %v3045_v50 = vpop.permute.xlu1 %3044 }
 0x36f   : > { %v3082_v0 = vadd.f32 %v3045_v50, %v2970_v28 }
 0x371   : > { %v3098_v21 = vpack.c.bf16 %v3082_v0, %v3082_v0  ;;  %v3049_v63 = vpop.permute.xlu2 %3048 }
 0x372   : > { %v3084_v51 = vadd.f32 %v3049_v63, %v2972_v40 }
 0x373   : > { %3114 = vst.msk [vmem:[%s6447_s28 + $0x28] sm:$0xf] %vm2367_vm3, %v3098_v21 }
 0x374   : > { %v3100_v46 = vpack.c.bf16 %v3084_v51, %v3084_v51 }
 0x376   : > { %3116 = vst.msk [vmem:[%s6447_s28 + $0x30] sm:$0xf] %vm2367_vm3, %v3100_v46 }
 0x379   : > { %v3047_v16 = vpop.permute.xlu0 %3046 }
 0x37a   : > { %v3083_v18 = vadd.f32 %v3047_v16, %v2971_v52 }
 0x37c   : > { %v3099_v13 = vpack.c.bf16 %v3083_v18, %v3083_v18 }
 0x37e   : > { %3115 = vst.msk [vmem:[%s6447_s28 + $0x2c] sm:$0xf] %vm2367_vm3, %v3099_v13 }
 0x386   : > { %v3055_v59 = vpop.permute.xlu2 %3054 }
 0x387   : > { %v3087_v48 = vadd.f32 %v3055_v59, %v2975_v7 }
 0x389   : > { %v3103_v36 = vpack.c.bf16 %v3087_v48, %v3087_v48 }
 0x38b   : > { %3119 = vst.msk [vmem:[%s6447_s28 + $0x3c] sm:$0xf] %vm2367_vm3, %v3103_v36 }
 0x38e   : > { %v3051_v37 = vpop.permute.xlu1 %3050 }
 0x38f   : > { %v3085_v20 = vadd.f32 %v3051_v37, %v2973_v17 }
 0x391   : > { %v3101_v44 = vpack.c.bf16 %v3085_v20, %v3085_v20 }
 0x393   : > { %3117 = vst.msk [vmem:[%s6447_s28 + $0x34] sm:$0xf] %vm2367_vm3, %v3101_v44 }
 0x3a2   : > { %v3053_v4 = vpop.permute.xlu0 %3052 }
 0x3a3   : > { %v3086_v31 = vadd.f32 %v3053_v4, %v2974_v56 }
 0x3a5   : > { %v3102_v9 = vpack.c.bf16 %v3086_v31, %v3086_v31 }
 0x3a7   : > { %3118 = vst.msk [vmem:[%s6447_s28 + $0x38] sm:$0xf] %vm2367_vm3, %v3102_v9 }
 0x3a8   : > { %4314 = shalt.err (!%p4311_p5)
}
 0x3a9   : > { %s4445_s28 = smov 4   ;;  %s7135_s21 = smov 64  }
 0x3aa   : > { %3875 = dma.vmem_to_hbm [thread:$0]  (%p4566_p3), %s3166_s16, 1024, %s3168_s0, %s6856_s19, %s7135_s21, %s7135_s21, %s4445_s28  }
 0x3ab   : > { %s4329_s11 = sshra.s32 %s6852_s13, 4  ;;  %s4335_s26 = scalar_lea.hbm %s7134_s20, 256  ;;  %s4330_s11 = int_to_ptr.hbm [resolvable:$true] %s4329_s11 }
 0x3ac   : > { %s4331_s23 = scalar_lea.hbm %s4330_s11, 64  ;;  %p4336_p10 = scmp.lt.s32.totalorder %s4330_s11, %s7134_s20 }
 0x3ad   : > { %p4332_p6 = scmp.ne.s32.totalorder %s4330_s11, %s4331_s23  ;;  %p4337_p11 = scmp.lt.s32.totalorder %s4335_s26, %s4331_s23 }
 0x3af   : > { %p4333_p7 = pnand %p4332_p6, %p4566_p3  ;;  %p4338_p12 = por %p4337_p11, %p4336_p10 }
 0x3b1   : > { %p4334_p9 = pneg %p4333_p7 }
 0x3b3   : > { %p4339_p13 = pnand %p4338_p12, %p4334_p9 }
 0x3b5   : > { %4342 = shalt.err (!%p4339_p13)
}
 0x3b6   : > { %3876 = dma.vmem_to_hbm [thread:$0]  (%p4566_p3), %s6850_s25, 1024, %s6852_s13, %s6856_s19, %s7135_s21, %s7135_s21, %s4445_s28  }
 0x3b7 PF: > { %s7136_s0 = sld [smem:[#allocation27_spill]] }
 0x3b8   : > { %s7137_s16 = sld [smem:[#allocation23_spill]] }
 0x3bd   : > { %p3921_p0 = scmp.ge.s32.totalorder %s7136_s0, 2 }
 0x3be   : > { %s3201_s30 = sand.u32 1, %s7137_s16  }
 0x3bf   : > { %p3900_p1 = pnand %p3921_p0, %p4577_p8  ;;  %s3202_s27 = scalar_lea.sflag [#allocation4], %s3201_s30 }
 0x3c1   : > { %p3901_p2 = pneg %p3900_p1 }
 0x3c3   : > { %4392 = dma.done.wait (%p3901_p2), %s3202_s27, 2048  }
 0x3c4   : > { %4394 = vsyncadd (%p3901_p2), %s3202_s27, 4294965248  ;;  %s7139_s17 = sadd.s32 4294967294, %s7136_s0  }
 0x3c5   : > { %s3211_s15 = sand.u32 1, %s7139_s17  }
 0x3c6   : > { %s3212_s11 = scalar_lea.sflag [#allocation15], %s3211_s15 }
 0x3c7   : > { %4396 = dma.done.wait (%p3901_p2), %s3212_s11, 2048  }
 0x3c8   : > { %4398 = vsyncadd (%p3901_p2), %s3212_s11, 4294965248  ;;  %s33_s28 = sadd.s32 1, %s7136_s0   ;;  %s7140_s25 = sld [smem:[#allocation24_spill]] }
 0x3c9   : > { %p30_p3 = scmp.ge.s32.totalorder %s33_s28, 6   ;;  %s7141_s23 = sld [smem:[#allocation31_spill]] }
 0x3ca   : > { %s7142_s24 = sld [smem:[#allocation25_spill]]  ;;  %s7146_s21 = smov %s4405_s22 }
 0x3cb   : > { %s7143_s13 = sld [smem:[#allocation26_spill]] }
 0x3cc   : > { %s7144_s26 = sld [smem:[#allocation28_spill]] }
 0x3cd   : > { %s7145_s27 = sld [smem:[#allocation29_spill]]  ;;  %32 = sbr.rel (!%p30_p3) target bundleno = 16 (0x10), region = 158 }
 0x3ce   : > { %s7147_s22 = smov %s7140_s25 }
 0x3d1   : > { %s7148_s25 = smov %s7143_s13 }
 0x3d2   :  { %3228 = vsyncpa [#allocation3], 1 }
 0x3d3   :  { %3230 = vsyncpa [#allocation3 + $0x1], 1 }
 0x3d4   :  { %3231 = vsyncpa [#allocation6], 1 }
 0x3d5   :  { %3232 = vsyncpa [#allocation9], 1 }
 0x3d6   :  { %3233 = vsyncpa [#allocation12], 1 }
 0x3d7   :  { %3234 = vsyncpa [#allocation4], 1 }
 0x3d8   :  { %3236 = vsyncpa [#allocation4 + $0x1], 1 }
 0x3d9   :  { %3237 = vsyncpa [#allocation15], 1 }
 0x3da   :  { %3239 = vsyncpa [#allocation15 + $0x1], 1 }

</bundles_post_ra>
